<compile_context>
chip_gen: v7x
topology: tpu7x:2x2x1
jax: 0.10.0
libtpu: 0.0.40
codegen_flags: <defaults>
</compile_context>

<pallas_src>
import jax
import jax.numpy as jnp
from jax import lax
from jax.experimental import pallas as pl
from jax.experimental.pallas import tpu as pltpu

# ----- module hyper-parameters -----
B = 4              # sampling block size
Nb = 8             # measurements per block
Recon_filter = 8   # reconstruction feature width
step = 2.0         # quantization step
BN_EPS = 1e-5

_VMEM = pl.BlockSpec(memory_space=pltpu.MemorySpace.VMEM)


# ============================== fused kernel ==================================
def _make_kernel(N, H, W):
    """Whole-model kernel for an (N, Cin, H, W) input (H, W multiples of B)."""
    Rf = Recon_filter
    f32 = jnp.float32

    def mm(a, b):
        # MXU matmul; the (host-prepared) weight dtype decides the operand
        # precision: bf16 x bf16 -> f32 accumulate for everything except the
        # sampling matmul (kept f32 for `measure` fidelity).
        return jnp.dot(a.astype(b.dtype), b, preferred_element_type=f32)

    def batchnorm(x, g_t, b_t, C, relu, residual=None):
        # Training-mode BatchNorm2d, one-pass statistics.
        # x: (rows, groups*C), column g*C + c -> channel c.
        # Group->channel fold (and broadcast back) is a log-step cyclic lane
        # roll on one native (8,128) stats vreg: XLU slots, no MXU, short chain.
        rows, lanes = x.shape
        groups = lanes // C
        s = jnp.concatenate(
            [jnp.sum(x, axis=0, keepdims=True),          # sum(x)
             jnp.sum(x * x, axis=0, keepdims=True),      # sum(x^2)
             jnp.zeros((6, lanes), f32)], axis=0)        # pad to native (8,lanes)
        shift = C
        while shift < lanes:                             # log2(groups) rolls
            s = s + pltpu.roll(s, shift, axis=1)
            shift *= 2
        inv_cnt = 1.0 / float(rows * groups)
        mean = s[0:1] * inv_cnt
        var = s[1:2] * inv_cnt - mean * mean             # biased var (PyTorch BN)
        scale = g_t * lax.rsqrt(var + BN_EPS)
        y = x * scale + (b_t - mean * scale)
        if residual is not None:
            y = y + residual
        if relu:
            y = jnp.maximum(y, 0.0)
        return y

    def kernel(xflat_ref, ws2_ref, bs_ref,
               moc1_ref, boc1_ref, morb_ref, borbc_ref, gorb_ref, borb_ref,
               wc0_ref, bc0_ref,
               tc1_ref, bc1_ref,
               trrb_ref, brrbc_ref, grrb_ref, brrb_ref,
               tc2_ref, bc2_ref,
               measure_ref, out_ref,
               pad_a, pad_b1, pad_b2):
        # Zero the y-pad scratch once: interiors are fully overwritten before
        # every use; the p top/bottom rows per batch stay zero (= y padding).
        pad_a[...] = jnp.zeros(pad_a.shape, f32)
        pad_b1[...] = jnp.zeros(pad_b1.shape, f32)
        pad_b2[...] = jnp.zeros(pad_b2.shape, f32)

        def y_taps(pad_ref, t_ref):
            # 'same' KxK conv: x-padding/x-offsets are folded into the banded
            # weight matrices, so each tap is one (N*H, W*Cin)x(W*Cin, W*Cout)
            # matmul over a y-shifted row window of the padded image.
            K = t_ref.shape[0]
            wc = pad_ref.shape[2]
            acc = mm(pad_ref[:, 0:H, :].reshape(N * H, wc), t_ref[0])
            for ky in range(1, K):
                rows = pad_ref[:, ky:ky + H, :].reshape(N * H, wc)
                acc = acc + mm(rows, t_ref[ky])
            return acc

        def conv_rf(x_rows, pad_ref, t_ref):
            # Full-lane (128-wide), offset-0 interior store, then K taps.
            p = (t_ref.shape[0] - 1) // 2
            pad_ref[:, p:p + H, :] = x_rows.reshape(N, H, pad_ref.shape[2])
            return y_taps(pad_ref, t_ref)

        # ---------------- Sample sub-network + quantize (f32) ----------------
        # BxB stride-B conv == space-to-depth + dense; the space-to-depth is
        # folded into ws2, so the flat NCHW image is consumed directly.
        measure = mm(xflat_ref[...], ws2_ref[...]) + bs_ref[...]
        measure_ref[...] = measure                       # (N, h*w*Nb)
        q = measure * (1.0 / step)                       # quantized = measure/step

        # ---------------- Offset sub-network (h x w stage) -------------------
        # 3x3 convs on the tiny grid are fully folded into dense 128x128
        # matrices; activations stay in the lane-dense (N, h*w*Nb) layout.
        moc1, morb = moc1_ref[...], morb_ref[...]
        boc1, borbc = boc1_ref[...], borbc_ref[...]
        g_o, b_o = gorb_ref[...], borb_ref[...]

        def resblock_o(a):
            t = batchnorm(mm(a, morb) + borbc, g_o, b_o, Nb, relu=True)
            return batchnorm(mm(t, morb) + borbc, g_o, b_o, Nb,
                             relu=True, residual=a)

        x1 = mm(q, moc1) + boc1
        r = x1
        for _ in range(4):                 # shared ResBlock applied 4 times
            r = resblock_o(r)
        x2 = mm(r, moc1) + boc1
        deq = q * ((x2 + q) + step)        # dequantized = q*(Offset(q)+step)

        # ---------------- Reconstruction sub-network -------------------------
        # conv0 (1x1) + PixelShuffle folded into one matmul -> flat (N, H*W).
        shuf = mm(deq, wc0_ref[...]) + bc0_ref[...]
        # Place the shuffled image (lanes -> image rows) into the 7x7-conv
        # buffer.  Unrolled per-row stores, now at lane offset 0; a single
        # reshape-store needs the same lane->sublane relayout work.
        for y in range(H):
            pad_b1[:, 3 + y, :] = shuf[:, y * W:(y + 1) * W]
        x = y_taps(pad_b1, tc1_ref) + bc1_ref[...]        # conv1 -> (N*H, W*Rf)

        brrbc = brrbc_ref[...]
        g_r, b_r = grrb_ref[...], brrb_ref[...]

        def resblock_r(a):
            t = conv_rf(a, pad_a, trrb_ref) + brrbc
            t = batchnorm(t, g_r, b_r, Rf, relu=True)
            t = conv_rf(t, pad_a, trrb_ref) + brrbc
            return batchnorm(t, g_r, b_r, Rf, relu=True, residual=a)

        for _ in range(5):                 # shared ResBlock applied 5 times
            x = resblock_r(x)

        out_ref[...] = conv_rf(x, pad_b2, tc2_ref) + bc2_ref[...]   # (N*H, W*Cout)

    return kernel


# ======================= host-side weight preparation =========================
def _band_matrix(w_hwio, Wd, pad, dtype):
    """(K,K,Cin,Cout) 'same'-conv weight -> (K, Wd*Cin, Wd*Cout) banded matrices
    with the x-direction zero padding folded in:
      T[ky, xi*Cin+ci, x*Cout+co] = w[ky, xi-x+pad, ci, co]  if 0<=xi-x+pad<K.
    """
    K, _, Cin, Cout = w_hwio.shape
    kx = jnp.arange(Wd)[:, None] - jnp.arange(Wd)[None, :] + pad    # (xi, x)
    valid = (kx >= 0) & (kx < K)
    wt = w_hwio[:, jnp.clip(kx, 0, K - 1), :, :]                    # (K,Wd,Wd,Ci,Co)
    wt = jnp.where(valid[None, :, :, None, None], wt, 0.0)
    wt = wt.transpose(0, 1, 3, 2, 4).reshape(K, Wd * Cin, Wd * Cout)
    return wt.astype(dtype)


def _full_conv_matrix(w_hwio, hh, ww, pad, dtype):
    """'same' KxK conv on an hh x ww grid, fully folded into one dense matrix.

    M[(y2*ww+x2)*Cin+ci, (y*ww+x)*Cout+co] = w[y2-y+p, x2-x+p, ci, co] (valid).
    """
    K, _, Cin, Cout = w_hwio.shape
    ky = jnp.arange(hh)[:, None] - jnp.arange(hh)[None, :] + pad     # (hh, hh)
    kx = jnp.arange(ww)[:, None] - jnp.arange(ww)[None, :] + pad     # (ww, ww)
    vy = (ky >= 0) & (ky < K)
    vx = (kx >= 0) & (kx < K)
    wt = w_hwio[jnp.clip(ky, 0, K - 1)[:, :, None, None],
                jnp.clip(kx, 0, K - 1)[None, None, :, :], :, :]
    mask = vy[:, :, None, None, None, None] & vx[None, None, :, :, None, None]
    wt = jnp.where(mask, wt, 0.0)                    # (y2, y, x2, x, Cin, Cout)
    wt = wt.transpose(0, 2, 4, 1, 3, 5)              # (y2, x2, ci, y, x, co)
    return wt.reshape(hh * ww * Cin, hh * ww * Cout).astype(dtype)


def _tile_c(v, groups):
    # per-channel vector -> (1, groups*C), column g*C+c -> v[c]
    return jnp.tile(v.reshape(1, -1).astype(jnp.float32), (1, groups))


def _prepare_inputs(params, H, W, mxu_dtype=jnp.bfloat16):
    h, w = H // B, W // B
    Rf = Recon_filter
    eye_h = jnp.eye(h, dtype=jnp.float32)
    eye_w = jnp.eye(w, dtype=jnp.float32)

    # The in-kernel roll reduction needs power-of-two group counts.
    for g in (h * w, W):
        assert g & (g - 1) == 0, "group count must be a power of two"

    # Sample conv (BxB, stride B): fold space-to-depth into the weights so the
    # kernel consumes the flat NCHW image directly.  Kept f32 (measure output).
    ws2 = jnp.einsum('ab,cd,efig->iaecfbdg', eye_h, eye_w,
                     params['sample_w']).reshape(-1, h * w * Nb)
    bs_t = _tile_c(params['sample_b'], h * w)

    # Offset sub-network (3x3 convs on the h x w grid, fully folded, bf16).
    po = params['offset']
    moc1 = _full_conv_matrix(po['conv1_w'], h, w, 1, mxu_dtype)
    boc1_t = _tile_c(po['conv1_b'], h * w)
    morb = _full_conv_matrix(po['rb']['w'], h, w, 1, mxu_dtype)
    borbc_t = _tile_c(po['rb']['b'], h * w)
    gorb_t = _tile_c(po['rb']['g'], h * w)
    borb_t = _tile_c(po['rb']['beta'], h * w)

    # Reconstruction sub-network.
    pr = params['recon']
    w0_kdd = pr['conv0_w'].reshape(Nb, B, B)             # (k, dy, dx)
    wc0 = jnp.einsum('ab,cd,kef->bdkaecf', eye_h, eye_w,
                     w0_kdd).reshape(h * w * Nb, H * W).astype(mxu_dtype)
    bc0 = jnp.broadcast_to(pr['conv0_b'].reshape(1, B, 1, B),
                           (h, B, w, B)).reshape(1, H * W).astype(jnp.float32)

    tc1 = _band_matrix(pr['conv1_w'], W, 3, mxu_dtype)
    bc1_t = _tile_c(pr['conv1_b'], W)
    trrb = _band_matrix(pr['rb']['w'], W, 1, mxu_dtype)
    brrbc_t = _tile_c(pr['rb']['b'], W)
    grrb_t = _tile_c(pr['rb']['g'], W)
    brrb_t = _tile_c(pr['rb']['beta'], W)
    tc2 = _band_matrix(pr['conv2_w'], W, 3, mxu_dtype)
    bc2_t = _tile_c(pr['conv2_b'], W)

    return (ws2, bs_t,
            moc1, boc1_t, morb, borbc_t, gorb_t, borb_t,
            wc0, bc0,
            tc1, bc1_t, trrb, brrbc_t, grrb_t, brrb_t,
            tc2, bc2_t)


# ================================ full model ==================================
def make_dqbcs_forward(params, x_shape):
    """Build a jitted forward for a fixed input shape.

    All weight folding (einsum / transpose / banded-matrix prep) runs ONCE
    here, off the per-call path; the returned callable only runs the fused
    kernel plus two tiny output transposes.
    """
    N, Cin, H, W = x_shape
    assert H % B == 0 and W % B == 0
    h, w = H // B, W // B
    Rf = Recon_filter
    Cout = int(params['recon']['conv2_w'].shape[3])
    assert int(params['sample_w'].shape[2]) == Cin

    prep = _prepare_inputs(params, H, W)

    # VMEM scaling guard: folded weights grow O((h*w*Nb)^2) and O(W^2*Rf^2*K);
    # fail loudly before Mosaic hits a VMEM OOM (v7x has only 64 MiB / core).
    vmem_limit = 32 * 1024 * 1024
    prep_bytes = sum(int(p.size) * p.dtype.itemsize for p in prep)
    scratch_bytes = 4 * (N * (H + 2) * W * Rf + N * (H + 6) * W
                         + N * (H + 6) * W * Rf)
    act_bytes = 4 * (N * Cin * H * W + 6 * N * H * W * Rf)
    if prep_bytes + scratch_bytes + act_bytes > vmem_limit // 2:
        raise ValueError(
            "DQBCS fused kernel: folded weights / activations exceed the VMEM "
            "budget for this image size; switch the reconstruction convs to a "
            "BlockSpec-pipelined row-tile grid.")

    kernel_fn = pl.pallas_call(
        _make_kernel(N, H, W),
        out_shape=(jax.ShapeDtypeStruct((N, h * w * Nb), jnp.float32),
                   jax.ShapeDtypeStruct((N * H, W * Cout), jnp.float32)),
        in_specs=[_VMEM] * (1 + len(prep)),
        out_specs=(_VMEM, _VMEM),
        scratch_shapes=[
            pltpu.VMEM((N, H + 2, W * Rf), jnp.float32),   # 3x3 RB convs (y pad)
            pltpu.VMEM((N, H + 6, W), jnp.float32),        # 7x7 conv1 (Cin=1)
            pltpu.VMEM((N, H + 6, W * Rf), jnp.float32),   # 7x7 conv2
        ],
        compiler_params=pltpu.CompilerParams(vmem_limit_bytes=vmem_limit),
    )
    # TODO(synk): training-mode BatchNorm couples the whole batch, so a single
    # forward cannot be split across the two v7x TensorCores without changing
    # results; serve multiple independent streams via a leading 'parallel'
    # grid axis (one instance per core) to use both TCs.

    @jax.jit
    def _forward(x_nchw, prep_args):
        xflat = x_nchw.astype(jnp.float32).reshape(N, Cin * H * W)
        measure2, out2 = kernel_fn(xflat, *prep_args)
        measure = measure2.reshape(N, h, w, Nb).transpose(0, 3, 1, 2)   # NCHW
        output = out2.reshape(N, H, W, Cout).transpose(0, 3, 1, 2)      # NCHW
        return measure, output

    return lambda x_nchw: _forward(x_nchw, prep)


# ============================== parameter init ================================
def init_params(key, in_channels, out_channels):
    ks = jax.random.split(key, 14)

    def w(k, shape, s=0.1):
        return jax.random.normal(k, shape, jnp.float32) * s

    return {
        "sample_w": w(ks[0], (B, B, in_channels, Nb)),       # HWIO
        "sample_b": w(ks[1], (Nb,), 0.01),
        "offset": {
            "conv1_w": w(ks[2], (3, 3, Nb, Nb)),
            "conv1_b": w(ks[3], (Nb,), 0.01),
            "rb": {"w": w(ks[4], (3, 3, Nb, Nb)),
                   "b": w(ks[5], (Nb,), 0.01),
                   "g": jnp.ones((Nb,), jnp.float32),
                   "beta": jnp.zeros((Nb,), jnp.float32)},
        },
        "recon": {
            "conv0_w": w(ks[6], (Nb, B * B)),                # 1x1 conv weights
            "conv0_b": w(ks[7], (B * B,), 0.01),
            "conv1_w": w(ks[8], (7, 7, 1, Recon_filter)),
            "conv1_b": w(ks[9], (Recon_filter,), 0.01),
            "rb": {"w": w(ks[10], (3, 3, Recon_filter, Recon_filter)),
                   "b": w(ks[11], (Recon_filter,), 0.01),
                   "g": jnp.ones((Recon_filter,), jnp.float32),
                   "beta": jnp.zeros((Recon_filter,), jnp.float32)},
            "conv2_w": w(ks[12], (7, 7, Recon_filter, out_channels)),
            "conv2_b": w(ks[13], (out_channels,), 0.01),
        },
    }


# =================================== main =====================================
if __name__ == "__main__":
    key = jax.random.PRNGKey(0)
    k_in, k_par = jax.random.split(key)

    in_channels, out_channels = 1, 1
    N, H, W = 2, 16, 16
    x = jax.random.normal(k_in, (N, in_channels, H, W), jnp.float32)  # NCHW

    params = init_params(k_par, in_channels, out_channels)

    fwd = make_dqbcs_forward(params, (N, in_channels, H, W))
    measure, output = fwd(x)
    jax.block_until_ready((measure, output))

    assert measure.shape == (N, Nb, H // B, W // B), measure.shape
    assert output.shape == (N, out_channels, H, W), output.shape
    assert bool(jnp.all(jnp.isfinite(measure)))
    assert bool(jnp.all(jnp.isfinite(output)))
    print("KERNEL_OK")
</pallas_src>

<mosaic_0001>
module attributes {stable_mosaic.version = 11 : i64} {
  func.func @kernel(%arg0: memref<2x256xf32, #tpu.memory_space<vmem>>, %arg1: memref<256x128xf32, #tpu.memory_space<vmem>>, %arg2: memref<1x128xf32, #tpu.memory_space<vmem>>, %arg3: memref<128x128xbf16, #tpu.memory_space<vmem>>, %arg4: memref<1x128xf32, #tpu.memory_space<vmem>>, %arg5: memref<128x128xbf16, #tpu.memory_space<vmem>>, %arg6: memref<1x128xf32, #tpu.memory_space<vmem>>, %arg7: memref<1x128xf32, #tpu.memory_space<vmem>>, %arg8: memref<1x128xf32, #tpu.memory_space<vmem>>, %arg9: memref<128x256xbf16, #tpu.memory_space<vmem>>, %arg10: memref<1x256xf32, #tpu.memory_space<vmem>>, %arg11: memref<7x16x128xbf16, #tpu.memory_space<vmem>>, %arg12: memref<1x128xf32, #tpu.memory_space<vmem>>, %arg13: memref<3x128x128xbf16, #tpu.memory_space<vmem>>, %arg14: memref<1x128xf32, #tpu.memory_space<vmem>>, %arg15: memref<1x128xf32, #tpu.memory_space<vmem>>, %arg16: memref<1x128xf32, #tpu.memory_space<vmem>>, %arg17: memref<7x128x16xbf16, #tpu.memory_space<vmem>>, %arg18: memref<1x16xf32, #tpu.memory_space<vmem>>, %arg19: memref<2x128xf32, #tpu.memory_space<vmem>>, %arg20: memref<32x16xf32, #tpu.memory_space<vmem>>, %arg21: memref<2x18x128xf32, #tpu.memory_space<vmem>>, %arg22: memref<2x22x16xf32, #tpu.memory_space<vmem>>, %arg23: memref<2x22x128xf32, #tpu.memory_space<vmem>>) attributes {dimension_semantics = [], scalar_prefetch = 0 : i64, scratch_operands = 3 : i64, tpu.core_type = #tpu.core_type<tc>} {
    %cst = arith.constant 0.000000e+00 : f32
    %0 = vector.broadcast %cst : f32 to vector<2x18x128xf32>
    %c0 = arith.constant 0 : index
    %c0_0 = arith.constant 0 : index
    %c0_1 = arith.constant 0 : index
    %1 = vector.load %arg21[%c0, %c0_0, %c0_1] : memref<2x18x128xf32, #tpu.memory_space<vmem>>, vector<2x18x128xf32>
    tpu.vector_store %arg21[%c0, %c0_0, %c0_1], %0 {strides = array<i32>} : memref<2x18x128xf32, #tpu.memory_space<vmem>>, vector<2x18x128xf32>,
    %cst_2 = arith.constant 0.000000e+00 : f32
    %2 = vector.broadcast %cst_2 : f32 to vector<2x22x16xf32>
    %c0_3 = arith.constant 0 : index
    %c0_4 = arith.constant 0 : index
    %c0_5 = arith.constant 0 : index
    %3 = vector.load %arg22[%c0_3, %c0_4, %c0_5] : memref<2x22x16xf32, #tpu.memory_space<vmem>>, vector<2x22x16xf32>
    tpu.vector_store %arg22[%c0_3, %c0_4, %c0_5], %2 {strides = array<i32>} : memref<2x22x16xf32, #tpu.memory_space<vmem>>, vector<2x22x16xf32>,
    %cst_6 = arith.constant 0.000000e+00 : f32
    %4 = vector.broadcast %cst_6 : f32 to vector<2x22x128xf32>
    %c0_7 = arith.constant 0 : index
    %c0_8 = arith.constant 0 : index
    %c0_9 = arith.constant 0 : index
    %5 = vector.load %arg23[%c0_7, %c0_8, %c0_9] : memref<2x22x128xf32, #tpu.memory_space<vmem>>, vector<2x22x128xf32>
    tpu.vector_store %arg23[%c0_7, %c0_8, %c0_9], %4 {strides = array<i32>} : memref<2x22x128xf32, #tpu.memory_space<vmem>>, vector<2x22x128xf32>,
    %c0_10 = arith.constant 0 : index
    %c0_11 = arith.constant 0 : index
    %6 = vector.load %arg0[%c0_10, %c0_11] : memref<2x256xf32, #tpu.memory_space<vmem>>, vector<2x256xf32>
    %c0_12 = arith.constant 0 : index
    %c0_13 = arith.constant 0 : index
    %7 = vector.load %arg1[%c0_12, %c0_13] : memref<256x128xf32, #tpu.memory_space<vmem>>, vector<256x128xf32>
    %cst_14 = arith.constant dense<0.000000e+00> : vector<2x128xf32>
    %8 = tpu.matmul %6, %7, %cst_14 {dimension_numbers = #tpu.dot_dimension_numbers<[1], [0], [0], [1], [0, 0, 1, 1], [], []>} : vector<2x256xf32>, vector<256x128xf32>, vector<2x128xf32> -> vector<2x128xf32>
    %c0_15 = arith.constant 0 : index
    %c0_16 = arith.constant 0 : index
    %9 = vector.load %arg2[%c0_15, %c0_16] : memref<1x128xf32, #tpu.memory_space<vmem>>, vector<1x128xf32>
    %10 = vector.broadcast %9 : vector<1x128xf32> to vector<2x128xf32>
    %11 = arith.addf %8, %10 : vector<2x128xf32>
    %c0_17 = arith.constant 0 : index
    %c0_18 = arith.constant 0 : index
    %12 = vector.load %arg19[%c0_17, %c0_18] : memref<2x128xf32, #tpu.memory_space<vmem>>, vector<2x128xf32>
    tpu.vector_store %arg19[%c0_17, %c0_18], %11 {strides = array<i32>} : memref<2x128xf32, #tpu.memory_space<vmem>>, vector<2x128xf32>,
    %cst_19 = arith.constant 5.000000e-01 : f32
    %13 = vector.broadcast %cst_19 : f32 to vector<2x128xf32>
    %14 = arith.mulf %11, %13 : vector<2x128xf32>
    %c0_20 = arith.constant 0 : index
    %c0_21 = arith.constant 0 : index
    %15 = vector.load %arg3[%c0_20, %c0_21] : memref<128x128xbf16, #tpu.memory_space<vmem>>, vector<128x128xbf16>
    %c0_22 = arith.constant 0 : index
    %c0_23 = arith.constant 0 : index
    %16 = vector.load %arg5[%c0_22, %c0_23] : memref<128x128xbf16, #tpu.memory_space<vmem>>, vector<128x128xbf16>
    %c0_24 = arith.constant 0 : index
    %c0_25 = arith.constant 0 : index
    %17 = vector.load %arg4[%c0_24, %c0_25] : memref<1x128xf32, #tpu.memory_space<vmem>>, vector<1x128xf32>
    %c0_26 = arith.constant 0 : index
    %c0_27 = arith.constant 0 : index
    %18 = vector.load %arg6[%c0_26, %c0_27] : memref<1x128xf32, #tpu.memory_space<vmem>>, vector<1x128xf32>
    %c0_28 = arith.constant 0 : index
    %c0_29 = arith.constant 0 : index
    %19 = vector.load %arg7[%c0_28, %c0_29] : memref<1x128xf32, #tpu.memory_space<vmem>>, vector<1x128xf32>
    %c0_30 = arith.constant 0 : index
    %c0_31 = arith.constant 0 : index
    %20 = vector.load %arg8[%c0_30, %c0_31] : memref<1x128xf32, #tpu.memory_space<vmem>>, vector<1x128xf32>
    %21 = arith.truncf %14 : vector<2x128xf32> to vector<2x128xbf16>
    %cst_32 = arith.constant dense<0.000000e+00> : vector<2x128xf32>
    %22 = tpu.matmul %21, %15, %cst_32 {dimension_numbers = #tpu.dot_dimension_numbers<[1], [0], [0], [1], [0, 0, 1, 1], [], []>} : vector<2x128xbf16>, vector<128x128xbf16>, vector<2x128xf32> -> vector<2x128xf32>
    %23 = vector.broadcast %17 : vector<1x128xf32> to vector<2x128xf32>
    %24 = arith.addf %22, %23 : vector<2x128xf32>
    %25 = arith.truncf %24 : vector<2x128xf32> to vector<2x128xbf16>
    %cst_33 = arith.constant dense<0.000000e+00> : vector<2x128xf32>
    %26 = tpu.matmul %25, %16, %cst_33 {dimension_numbers = #tpu.dot_dimension_numbers<[1], [0], [0], [1], [0, 0, 1, 1], [], []>} : vector<2x128xbf16>, vector<128x128xbf16>, vector<2x128xf32> -> vector<2x128xf32>
    %27 = vector.broadcast %18 : vector<1x128xf32> to vector<2x128xf32>
    %28 = arith.addf %26, %27 : vector<2x128xf32>
    %cst_34 = arith.constant dense<0.000000e+00> : vector<128xf32>
    %29 = vector.multi_reduction <add>, %28, %cst_34 [0] : vector<2x128xf32> to vector<128xf32>
    %30 = vector.shape_cast %29 : vector<128xf32> to vector<1x128xf32>
    %31 = arith.mulf %28, %28 : vector<2x128xf32>
    %cst_35 = arith.constant dense<0.000000e+00> : vector<128xf32>
    %32 = vector.multi_reduction <add>, %31, %cst_35 [0] : vector<2x128xf32> to vector<128xf32>
    %33 = vector.shape_cast %32 : vector<128xf32> to vector<1x128xf32>
    %cst_36 = arith.constant 0.000000e+00 : f32
    %34 = vector.broadcast %cst_36 : f32 to vector<6x128xf32>
    %35 = tpu.concatenate %30, %33, %34 in 0 : vector<1x128xf32>, vector<1x128xf32>, vector<6x128xf32> -> vector<8x128xf32>
    %c8_i32 = arith.constant 8 : i32
    %36 = tpu.dynamic_rotate %35 by %c8_i32 dim 1 : vector<8x128xf32>, i32 -> vector<8x128xf32>
    %37 = arith.addf %35, %36 : vector<8x128xf32>
    %c16_i32 = arith.constant 16 : i32
    %38 = tpu.dynamic_rotate %37 by %c16_i32 dim 1 : vector<8x128xf32>, i32 -> vector<8x128xf32>
    %39 = arith.addf %37, %38 : vector<8x128xf32>
    %c32_i32 = arith.constant 32 : i32
    %40 = tpu.dynamic_rotate %39 by %c32_i32 dim 1 : vector<8x128xf32>, i32 -> vector<8x128xf32>
    %41 = arith.addf %39, %40 : vector<8x128xf32>
    %c64_i32 = arith.constant 64 : i32
    %42 = tpu.dynamic_rotate %41 by %c64_i32 dim 1 : vector<8x128xf32>, i32 -> vector<8x128xf32>
    %43 = arith.addf %41, %42 : vector<8x128xf32>
    %44 = vector.extract_strided_slice %43 {offsets = [0, 0], sizes = [1, 128], strides = [1, 1]} : vector<8x128xf32> to vector<1x128xf32>
    %cst_37 = arith.constant 3.125000e-02 : f32
    %45 = vector.broadcast %cst_37 : f32 to vector<1x128xf32>
    %46 = arith.mulf %44, %45 : vector<1x128xf32>
    %47 = vector.extract_strided_slice %43 {offsets = [1, 0], sizes = [1, 128], strides = [1, 1]} : vector<8x128xf32> to vector<1x128xf32>
    %cst_38 = arith.constant 3.125000e-02 : f32
    %48 = vector.broadcast %cst_38 : f32 to vector<1x128xf32>
    %49 = arith.mulf %47, %48 : vector<1x128xf32>
    %50 = arith.mulf %46, %46 : vector<1x128xf32>
    %51 = arith.subf %49, %50 : vector<1x128xf32>
    %cst_39 = arith.constant 9.99999974E-6 : f32
    %52 = vector.broadcast %cst_39 : f32 to vector<1x128xf32>
    %53 = arith.addf %51, %52 : vector<1x128xf32>
    %54 = math.rsqrt %53 : vector<1x128xf32>
    %55 = arith.mulf %19, %54 : vector<1x128xf32>
    %56 = vector.broadcast %55 : vector<1x128xf32> to vector<2x128xf32>
    %57 = arith.mulf %28, %56 : vector<2x128xf32>
    %58 = arith.mulf %46, %55 : vector<1x128xf32>
    %59 = arith.subf %20, %58 : vector<1x128xf32>
    %60 = vector.broadcast %59 : vector<1x128xf32> to vector<2x128xf32>
    %61 = arith.addf %57, %60 : vector<2x128xf32>
    %cst_40 = arith.constant 0.000000e+00 : f32
    %62 = vector.broadcast %cst_40 : f32 to vector<2x128xf32>
    %63 = arith.maximumf %61, %62 : vector<2x128xf32>
    %64 = arith.truncf %63 : vector<2x128xf32> to vector<2x128xbf16>
    %cst_41 = arith.constant dense<0.000000e+00> : vector<2x128xf32>
    %65 = tpu.matmul %64, %16, %cst_41 {dimension_numbers = #tpu.dot_dimension_numbers<[1], [0], [0], [1], [0, 0, 1, 1], [], []>} : vector<2x128xbf16>, vector<128x128xbf16>, vector<2x128xf32> -> vector<2x128xf32>
    %66 = vector.broadcast %18 : vector<1x128xf32> to vector<2x128xf32>
    %67 = arith.addf %65, %66 : vector<2x128xf32>
    %cst_42 = arith.constant dense<0.000000e+00> : vector<128xf32>
    %68 = vector.multi_reduction <add>, %67, %cst_42 [0] : vector<2x128xf32> to vector<128xf32>
    %69 = vector.shape_cast %68 : vector<128xf32> to vector<1x128xf32>
    %70 = arith.mulf %67, %67 : vector<2x128xf32>
    %cst_43 = arith.constant dense<0.000000e+00> : vector<128xf32>
    %71 = vector.multi_reduction <add>, %70, %cst_43 [0] : vector<2x128xf32> to vector<128xf32>
    %72 = vector.shape_cast %71 : vector<128xf32> to vector<1x128xf32>
    %cst_44 = arith.constant 0.000000e+00 : f32
    %73 = vector.broadcast %cst_44 : f32 to vector<6x128xf32>
    %74 = tpu.concatenate %69, %72, %73 in 0 : vector<1x128xf32>, vector<1x128xf32>, vector<6x128xf32> -> vector<8x128xf32>
    %c8_i32_45 = arith.constant 8 : i32
    %75 = tpu.dynamic_rotate %74 by %c8_i32_45 dim 1 : vector<8x128xf32>, i32 -> vector<8x128xf32>
    %76 = arith.addf %74, %75 : vector<8x128xf32>
    %c16_i32_46 = arith.constant 16 : i32
    %77 = tpu.dynamic_rotate %76 by %c16_i32_46 dim 1 : vector<8x128xf32>, i32 -> vector<8x128xf32>
    %78 = arith.addf %76, %77 : vector<8x128xf32>
    %c32_i32_47 = arith.constant 32 : i32
    %79 = tpu.dynamic_rotate %78 by %c32_i32_47 dim 1 : vector<8x128xf32>, i32 -> vector<8x128xf32>
    %80 = arith.addf %78, %79 : vector<8x128xf32>
    %c64_i32_48 = arith.constant 64 : i32
    %81 = tpu.dynamic_rotate %80 by %c64_i32_48 dim 1 : vector<8x128xf32>, i32 -> vector<8x128xf32>
    %82 = arith.addf %80, %81 : vector<8x128xf32>
    %83 = vector.extract_strided_slice %82 {offsets = [0, 0], sizes = [1, 128], strides = [1, 1]} : vector<8x128xf32> to vector<1x128xf32>
    %cst_49 = arith.constant 3.125000e-02 : f32
    %84 = vector.broadcast %cst_49 : f32 to vector<1x128xf32>
    %85 = arith.mulf %83, %84 : vector<1x128xf32>
    %86 = vector.extract_strided_slice %82 {offsets = [1, 0], sizes = [1, 128], strides = [1, 1]} : vector<8x128xf32> to vector<1x128xf32>
    %cst_50 = arith.constant 3.125000e-02 : f32
    %87 = vector.broadcast %cst_50 : f32 to vector<1x128xf32>
    %88 = arith.mulf %86, %87 : vector<1x128xf32>
    %89 = arith.mulf %85, %85 : vector<1x128xf32>
    %90 = arith.subf %88, %89 : vector<1x128xf32>
    %cst_51 = arith.constant 9.99999974E-6 : f32
    %91 = vector.broadcast %cst_51 : f32 to vector<1x128xf32>
    %92 = arith.addf %90, %91 : vector<1x128xf32>
    %93 = math.rsqrt %92 : vector<1x128xf32>
    %94 = arith.mulf %19, %93 : vector<1x128xf32>
    %95 = vector.broadcast %94 : vector<1x128xf32> to vector<2x128xf32>
    %96 = arith.mulf %67, %95 : vector<2x128xf32>
    %97 = arith.mulf %85, %94 : vector<1x128xf32>
    %98 = arith.subf %20, %97 : vector<1x128xf32>
    %99 = vector.broadcast %98 : vector<1x128xf32> to vector<2x128xf32>
    %100 = arith.addf %96, %99 : vector<2x128xf32>
    %101 = arith.addf %100, %24 : vector<2x128xf32>
    %cst_52 = arith.constant 0.000000e+00 : f32
    %102 = vector.broadcast %cst_52 : f32 to vector<2x128xf32>
    %103 = arith.maximumf %101, %102 : vector<2x128xf32>
    %104 = arith.truncf %103 : vector<2x128xf32> to vector<2x128xbf16>
    %cst_53 = arith.constant dense<0.000000e+00> : vector<2x128xf32>
    %105 = tpu.matmul %104, %16, %cst_53 {dimension_numbers = #tpu.dot_dimension_numbers<[1], [0], [0], [1], [0, 0, 1, 1], [], []>} : vector<2x128xbf16>, vector<128x128xbf16>, vector<2x128xf32> -> vector<2x128xf32>
    %106 = vector.broadcast %18 : vector<1x128xf32> to vector<2x128xf32>
    %107 = arith.addf %105, %106 : vector<2x128xf32>
    %cst_54 = arith.constant dense<0.000000e+00> : vector<128xf32>
    %108 = vector.multi_reduction <add>, %107, %cst_54 [0] : vector<2x128xf32> to vector<128xf32>
    %109 = vector.shape_cast %108 : vector<128xf32> to vector<1x128xf32>
    %110 = arith.mulf %107, %107 : vector<2x128xf32>
    %cst_55 = arith.constant dense<0.000000e+00> : vector<128xf32>
    %111 = vector.multi_reduction <add>, %110, %cst_55 [0] : vector<2x128xf32> to vector<128xf32>
    %112 = vector.shape_cast %111 : vector<128xf32> to vector<1x128xf32>
    %cst_56 = arith.constant 0.000000e+00 : f32
    %113 = vector.broadcast %cst_56 : f32 to vector<6x128xf32>
    %114 = tpu.concatenate %109, %112, %113 in 0 : vector<1x128xf32>, vector<1x128xf32>, vector<6x128xf32> -> vector<8x128xf32>
    %c8_i32_57 = arith.constant 8 : i32
    %115 = tpu.dynamic_rotate %114 by %c8_i32_57 dim 1 : vector<8x128xf32>, i32 -> vector<8x128xf32>
    %116 = arith.addf %114, %115 : vector<8x128xf32>
    %c16_i32_58 = arith.constant 16 : i32
    %117 = tpu.dynamic_rotate %116 by %c16_i32_58 dim 1 : vector<8x128xf32>, i32 -> vector<8x128xf32>
    %118 = arith.addf %116, %117 : vector<8x128xf32>
    %c32_i32_59 = arith.constant 32 : i32
    %119 = tpu.dynamic_rotate %118 by %c32_i32_59 dim 1 : vector<8x128xf32>, i32 -> vector<8x128xf32>
    %120 = arith.addf %118, %119 : vector<8x128xf32>
    %c64_i32_60 = arith.constant 64 : i32
    %121 = tpu.dynamic_rotate %120 by %c64_i32_60 dim 1 : vector<8x128xf32>, i32 -> vector<8x128xf32>
    %122 = arith.addf %120, %121 : vector<8x128xf32>
    %123 = vector.extract_strided_slice %122 {offsets = [0, 0], sizes = [1, 128], strides = [1, 1]} : vector<8x128xf32> to vector<1x128xf32>
    %cst_61 = arith.constant 3.125000e-02 : f32
    %124 = vector.broadcast %cst_61 : f32 to vector<1x128xf32>
    %125 = arith.mulf %123, %124 : vector<1x128xf32>
    %126 = vector.extract_strided_slice %122 {offsets = [1, 0], sizes = [1, 128], strides = [1, 1]} : vector<8x128xf32> to vector<1x128xf32>
    %cst_62 = arith.constant 3.125000e-02 : f32
    %127 = vector.broadcast %cst_62 : f32 to vector<1x128xf32>
    %128 = arith.mulf %126, %127 : vector<1x128xf32>
    %129 = arith.mulf %125, %125 : vector<1x128xf32>
    %130 = arith.subf %128, %129 : vector<1x128xf32>
    %cst_63 = arith.constant 9.99999974E-6 : f32
    %131 = vector.broadcast %cst_63 : f32 to vector<1x128xf32>
    %132 = arith.addf %130, %131 : vector<1x128xf32>
    %133 = math.rsqrt %132 : vector<1x128xf32>
    %134 = arith.mulf %19, %133 : vector<1x128xf32>
    %135 = vector.broadcast %134 : vector<1x128xf32> to vector<2x128xf32>
    %136 = arith.mulf %107, %135 : vector<2x128xf32>
    %137 = arith.mulf %125, %134 : vector<1x128xf32>
    %138 = arith.subf %20, %137 : vector<1x128xf32>
    %139 = vector.broadcast %138 : vector<1x128xf32> to vector<2x128xf32>
    %140 = arith.addf %136, %139 : vector<2x128xf32>
    %cst_64 = arith.constant 0.000000e+00 : f32
    %141 = vector.broadcast %cst_64 : f32 to vector<2x128xf32>
    %142 = arith.maximumf %140, %141 : vector<2x128xf32>
    %143 = arith.truncf %142 : vector<2x128xf32> to vector<2x128xbf16>
    %cst_65 = arith.constant dense<0.000000e+00> : vector<2x128xf32>
    %144 = tpu.matmul %143, %16, %cst_65 {dimension_numbers = #tpu.dot_dimension_numbers<[1], [0], [0], [1], [0, 0, 1, 1], [], []>} : vector<2x128xbf16>, vector<128x128xbf16>, vector<2x128xf32> -> vector<2x128xf32>
    %145 = vector.broadcast %18 : vector<1x128xf32> to vector<2x128xf32>
    %146 = arith.addf %144, %145 : vector<2x128xf32>
    %cst_66 = arith.constant dense<0.000000e+00> : vector<128xf32>
    %147 = vector.multi_reduction <add>, %146, %cst_66 [0] : vector<2x128xf32> to vector<128xf32>
    %148 = vector.shape_cast %147 : vector<128xf32> to vector<1x128xf32>
    %149 = arith.mulf %146, %146 : vector<2x128xf32>
    %cst_67 = arith.constant dense<0.000000e+00> : vector<128xf32>
    %150 = vector.multi_reduction <add>, %149, %cst_67 [0] : vector<2x128xf32> to vector<128xf32>
    %151 = vector.shape_cast %150 : vector<128xf32> to vector<1x128xf32>
    %cst_68 = arith.constant 0.000000e+00 : f32
    %152 = vector.broadcast %cst_68 : f32 to vector<6x128xf32>
    %153 = tpu.concatenate %148, %151, %152 in 0 : vector<1x128xf32>, vector<1x128xf32>, vector<6x128xf32> -> vector<8x128xf32>
    %c8_i32_69 = arith.constant 8 : i32
    %154 = tpu.dynamic_rotate %153 by %c8_i32_69 dim 1 : vector<8x128xf32>, i32 -> vector<8x128xf32>
    %155 = arith.addf %153, %154 : vector<8x128xf32>
    %c16_i32_70 = arith.constant 16 : i32
    %156 = tpu.dynamic_rotate %155 by %c16_i32_70 dim 1 : vector<8x128xf32>, i32 -> vector<8x128xf32>
    %157 = arith.addf %155, %156 : vector<8x128xf32>
    %c32_i32_71 = arith.constant 32 : i32
    %158 = tpu.dynamic_rotate %157 by %c32_i32_71 dim 1 : vector<8x128xf32>, i32 -> vector<8x128xf32>
    %159 = arith.addf %157, %158 : vector<8x128xf32>
    %c64_i32_72 = arith.constant 64 : i32
    %160 = tpu.dynamic_rotate %159 by %c64_i32_72 dim 1 : vector<8x128xf32>, i32 -> vector<8x128xf32>
    %161 = arith.addf %159, %160 : vector<8x128xf32>
    %162 = vector.extract_strided_slice %161 {offsets = [0, 0], sizes = [1, 128], strides = [1, 1]} : vector<8x128xf32> to vector<1x128xf32>
    %cst_73 = arith.constant 3.125000e-02 : f32
    %163 = vector.broadcast %cst_73 : f32 to vector<1x128xf32>
    %164 = arith.mulf %162, %163 : vector<1x128xf32>
    %165 = vector.extract_strided_slice %161 {offsets = [1, 0], sizes = [1, 128], strides = [1, 1]} : vector<8x128xf32> to vector<1x128xf32>
    %cst_74 = arith.constant 3.125000e-02 : f32
    %166 = vector.broadcast %cst_74 : f32 to vector<1x128xf32>
    %167 = arith.mulf %165, %166 : vector<1x128xf32>
    %168 = arith.mulf %164, %164 : vector<1x128xf32>
    %169 = arith.subf %167, %168 : vector<1x128xf32>
    %cst_75 = arith.constant 9.99999974E-6 : f32
    %170 = vector.broadcast %cst_75 : f32 to vector<1x128xf32>
    %171 = arith.addf %169, %170 : vector<1x128xf32>
    %172 = math.rsqrt %171 : vector<1x128xf32>
    %173 = arith.mulf %19, %172 : vector<1x128xf32>
    %174 = vector.broadcast %173 : vector<1x128xf32> to vector<2x128xf32>
    %175 = arith.mulf %146, %174 : vector<2x128xf32>
    %176 = arith.mulf %164, %173 : vector<1x128xf32>
    %177 = arith.subf %20, %176 : vector<1x128xf32>
    %178 = vector.broadcast %177 : vector<1x128xf32> to vector<2x128xf32>
    %179 = arith.addf %175, %178 : vector<2x128xf32>
    %180 = arith.addf %179, %103 : vector<2x128xf32>
    %cst_76 = arith.constant 0.000000e+00 : f32
    %181 = vector.broadcast %cst_76 : f32 to vector<2x128xf32>
    %182 = arith.maximumf %180, %181 : vector<2x128xf32>
    %183 = arith.truncf %182 : vector<2x128xf32> to vector<2x128xbf16>
    %cst_77 = arith.constant dense<0.000000e+00> : vector<2x128xf32>
    %184 = tpu.matmul %183, %16, %cst_77 {dimension_numbers = #tpu.dot_dimension_numbers<[1], [0], [0], [1], [0, 0, 1, 1], [], []>} : vector<2x128xbf16>, vector<128x128xbf16>, vector<2x128xf32> -> vector<2x128xf32>
    %185 = vector.broadcast %18 : vector<1x128xf32> to vector<2x128xf32>
    %186 = arith.addf %184, %185 : vector<2x128xf32>
    %cst_78 = arith.constant dense<0.000000e+00> : vector<128xf32>
    %187 = vector.multi_reduction <add>, %186, %cst_78 [0] : vector<2x128xf32> to vector<128xf32>
    %188 = vector.shape_cast %187 : vector<128xf32> to vector<1x128xf32>
    %189 = arith.mulf %186, %186 : vector<2x128xf32>
    %cst_79 = arith.constant dense<0.000000e+00> : vector<128xf32>
    %190 = vector.multi_reduction <add>, %189, %cst_79 [0] : vector<2x128xf32> to vector<128xf32>
    %191 = vector.shape_cast %190 : vector<128xf32> to vector<1x128xf32>
    %cst_80 = arith.constant 0.000000e+00 : f32
    %192 = vector.broadcast %cst_80 : f32 to vector<6x128xf32>
    %193 = tpu.concatenate %188, %191, %192 in 0 : vector<1x128xf32>, vector<1x128xf32>, vector<6x128xf32> -> vector<8x128xf32>
    %c8_i32_81 = arith.constant 8 : i32
    %194 = tpu.dynamic_rotate %193 by %c8_i32_81 dim 1 : vector<8x128xf32>, i32 -> vector<8x128xf32>
    %195 = arith.addf %193, %194 : vector<8x128xf32>
    %c16_i32_82 = arith.constant 16 : i32
    %196 = tpu.dynamic_rotate %195 by %c16_i32_82 dim 1 : vector<8x128xf32>, i32 -> vector<8x128xf32>
    %197 = arith.addf %195, %196 : vector<8x128xf32>
    %c32_i32_83 = arith.constant 32 : i32
    %198 = tpu.dynamic_rotate %197 by %c32_i32_83 dim 1 : vector<8x128xf32>, i32 -> vector<8x128xf32>
    %199 = arith.addf %197, %198 : vector<8x128xf32>
    %c64_i32_84 = arith.constant 64 : i32
    %200 = tpu.dynamic_rotate %199 by %c64_i32_84 dim 1 : vector<8x128xf32>, i32 -> vector<8x128xf32>
    %201 = arith.addf %199, %200 : vector<8x128xf32>
    %202 = vector.extract_strided_slice %201 {offsets = [0, 0], sizes = [1, 128], strides = [1, 1]} : vector<8x128xf32> to vector<1x128xf32>
    %cst_85 = arith.constant 3.125000e-02 : f32
    %203 = vector.broadcast %cst_85 : f32 to vector<1x128xf32>
    %204 = arith.mulf %202, %203 : vector<1x128xf32>
    %205 = vector.extract_strided_slice %201 {offsets = [1, 0], sizes = [1, 128], strides = [1, 1]} : vector<8x128xf32> to vector<1x128xf32>
    %cst_86 = arith.constant 3.125000e-02 : f32
    %206 = vector.broadcast %cst_86 : f32 to vector<1x128xf32>
    %207 = arith.mulf %205, %206 : vector<1x128xf32>
    %208 = arith.mulf %204, %204 : vector<1x128xf32>
    %209 = arith.subf %207, %208 : vector<1x128xf32>
    %cst_87 = arith.constant 9.99999974E-6 : f32
    %210 = vector.broadcast %cst_87 : f32 to vector<1x128xf32>
    %211 = arith.addf %209, %210 : vector<1x128xf32>
    %212 = math.rsqrt %211 : vector<1x128xf32>
    %213 = arith.mulf %19, %212 : vector<1x128xf32>
    %214 = vector.broadcast %213 : vector<1x128xf32> to vector<2x128xf32>
    %215 = arith.mulf %186, %214 : vector<2x128xf32>
    %216 = arith.mulf %204, %213 : vector<1x128xf32>
    %217 = arith.subf %20, %216 : vector<1x128xf32>
    %218 = vector.broadcast %217 : vector<1x128xf32> to vector<2x128xf32>
    %219 = arith.addf %215, %218 : vector<2x128xf32>
    %cst_88 = arith.constant 0.000000e+00 : f32
    %220 = vector.broadcast %cst_88 : f32 to vector<2x128xf32>
    %221 = arith.maximumf %219, %220 : vector<2x128xf32>
    %222 = arith.truncf %221 : vector<2x128xf32> to vector<2x128xbf16>
    %cst_89 = arith.constant dense<0.000000e+00> : vector<2x128xf32>
    %223 = tpu.matmul %222, %16, %cst_89 {dimension_numbers = #tpu.dot_dimension_numbers<[1], [0], [0], [1], [0, 0, 1, 1], [], []>} : vector<2x128xbf16>, vector<128x128xbf16>, vector<2x128xf32> -> vector<2x128xf32>
    %224 = vector.broadcast %18 : vector<1x128xf32> to vector<2x128xf32>
    %225 = arith.addf %223, %224 : vector<2x128xf32>
    %cst_90 = arith.constant dense<0.000000e+00> : vector<128xf32>
    %226 = vector.multi_reduction <add>, %225, %cst_90 [0] : vector<2x128xf32> to vector<128xf32>
    %227 = vector.shape_cast %226 : vector<128xf32> to vector<1x128xf32>
    %228 = arith.mulf %225, %225 : vector<2x128xf32>
    %cst_91 = arith.constant dense<0.000000e+00> : vector<128xf32>
    %229 = vector.multi_reduction <add>, %228, %cst_91 [0] : vector<2x128xf32> to vector<128xf32>
    %230 = vector.shape_cast %229 : vector<128xf32> to vector<1x128xf32>
    %cst_92 = arith.constant 0.000000e+00 : f32
    %231 = vector.broadcast %cst_92 : f32 to vector<6x128xf32>
    %232 = tpu.concatenate %227, %230, %231 in 0 : vector<1x128xf32>, vector<1x128xf32>, vector<6x128xf32> -> vector<8x128xf32>
    %c8_i32_93 = arith.constant 8 : i32
    %233 = tpu.dynamic_rotate %232 by %c8_i32_93 dim 1 : vector<8x128xf32>, i32 -> vector<8x128xf32>
    %234 = arith.addf %232, %233 : vector<8x128xf32>
    %c16_i32_94 = arith.constant 16 : i32
    %235 = tpu.dynamic_rotate %234 by %c16_i32_94 dim 1 : vector<8x128xf32>, i32 -> vector<8x128xf32>
    %236 = arith.addf %234, %235 : vector<8x128xf32>
    %c32_i32_95 = arith.constant 32 : i32
    %237 = tpu.dynamic_rotate %236 by %c32_i32_95 dim 1 : vector<8x128xf32>, i32 -> vector<8x128xf32>
    %238 = arith.addf %236, %237 : vector<8x128xf32>
    %c64_i32_96 = arith.constant 64 : i32
    %239 = tpu.dynamic_rotate %238 by %c64_i32_96 dim 1 : vector<8x128xf32>, i32 -> vector<8x128xf32>
    %240 = arith.addf %238, %239 : vector<8x128xf32>
    %241 = vector.extract_strided_slice %240 {offsets = [0, 0], sizes = [1, 128], strides = [1, 1]} : vector<8x128xf32> to vector<1x128xf32>
    %cst_97 = arith.constant 3.125000e-02 : f32
    %242 = vector.broadcast %cst_97 : f32 to vector<1x128xf32>
    %243 = arith.mulf %241, %242 : vector<1x128xf32>
    %244 = vector.extract_strided_slice %240 {offsets = [1, 0], sizes = [1, 128], strides = [1, 1]} : vector<8x128xf32> to vector<1x128xf32>
    %cst_98 = arith.constant 3.125000e-02 : f32
    %245 = vector.broadcast %cst_98 : f32 to vector<1x128xf32>
    %246 = arith.mulf %244, %245 : vector<1x128xf32>
    %247 = arith.mulf %243, %243 : vector<1x128xf32>
    %248 = arith.subf %246, %247 : vector<1x128xf32>
    %cst_99 = arith.constant 9.99999974E-6 : f32
    %249 = vector.broadcast %cst_99 : f32 to vector<1x128xf32>
    %250 = arith.addf %248, %249 : vector<1x128xf32>
    %251 = math.rsqrt %250 : vector<1x128xf32>
    %252 = arith.mulf %19, %251 : vector<1x128xf32>
    %253 = vector.broadcast %252 : vector<1x128xf32> to vector<2x128xf32>
    %254 = arith.mulf %225, %253 : vector<2x128xf32>
    %255 = arith.mulf %243, %252 : vector<1x128xf32>
    %256 = arith.subf %20, %255 : vector<1x128xf32>
    %257 = vector.broadcast %256 : vector<1x128xf32> to vector<2x128xf32>
    %258 = arith.addf %254, %257 : vector<2x128xf32>
    %259 = arith.addf %258, %182 : vector<2x128xf32>
    %cst_100 = arith.constant 0.000000e+00 : f32
    %260 = vector.broadcast %cst_100 : f32 to vector<2x128xf32>
    %261 = arith.maximumf %259, %260 : vector<2x128xf32>
    %262 = arith.truncf %261 : vector<2x128xf32> to vector<2x128xbf16>
    %cst_101 = arith.constant dense<0.000000e+00> : vector<2x128xf32>
    %263 = tpu.matmul %262, %16, %cst_101 {dimension_numbers = #tpu.dot_dimension_numbers<[1], [0], [0], [1], [0, 0, 1, 1], [], []>} : vector<2x128xbf16>, vector<128x128xbf16>, vector<2x128xf32> -> vector<2x128xf32>
    %264 = vector.broadcast %18 : vector<1x128xf32> to vector<2x128xf32>
    %265 = arith.addf %263, %264 : vector<2x128xf32>
    %cst_102 = arith.constant dense<0.000000e+00> : vector<128xf32>
    %266 = vector.multi_reduction <add>, %265, %cst_102 [0] : vector<2x128xf32> to vector<128xf32>
    %267 = vector.shape_cast %266 : vector<128xf32> to vector<1x128xf32>
    %268 = arith.mulf %265, %265 : vector<2x128xf32>
    %cst_103 = arith.constant dense<0.000000e+00> : vector<128xf32>
    %269 = vector.multi_reduction <add>, %268, %cst_103 [0] : vector<2x128xf32> to vector<128xf32>
    %270 = vector.shape_cast %269 : vector<128xf32> to vector<1x128xf32>
    %cst_104 = arith.constant 0.000000e+00 : f32
    %271 = vector.broadcast %cst_104 : f32 to vector<6x128xf32>
    %272 = tpu.concatenate %267, %270, %271 in 0 : vector<1x128xf32>, vector<1x128xf32>, vector<6x128xf32> -> vector<8x128xf32>
    %c8_i32_105 = arith.constant 8 : i32
    %273 = tpu.dynamic_rotate %272 by %c8_i32_105 dim 1 : vector<8x128xf32>, i32 -> vector<8x128xf32>
    %274 = arith.addf %272, %273 : vector<8x128xf32>
    %c16_i32_106 = arith.constant 16 : i32
    %275 = tpu.dynamic_rotate %274 by %c16_i32_106 dim 1 : vector<8x128xf32>, i32 -> vector<8x128xf32>
    %276 = arith.addf %274, %275 : vector<8x128xf32>
    %c32_i32_107 = arith.constant 32 : i32
    %277 = tpu.dynamic_rotate %276 by %c32_i32_107 dim 1 : vector<8x128xf32>, i32 -> vector<8x128xf32>
    %278 = arith.addf %276, %277 : vector<8x128xf32>
    %c64_i32_108 = arith.constant 64 : i32
    %279 = tpu.dynamic_rotate %278 by %c64_i32_108 dim 1 : vector<8x128xf32>, i32 -> vector<8x128xf32>
    %280 = arith.addf %278, %279 : vector<8x128xf32>
    %281 = vector.extract_strided_slice %280 {offsets = [0, 0], sizes = [1, 128], strides = [1, 1]} : vector<8x128xf32> to vector<1x128xf32>
    %cst_109 = arith.constant 3.125000e-02 : f32
    %282 = vector.broadcast %cst_109 : f32 to vector<1x128xf32>
    %283 = arith.mulf %281, %282 : vector<1x128xf32>
    %284 = vector.extract_strided_slice %280 {offsets = [1, 0], sizes = [1, 128], strides = [1, 1]} : vector<8x128xf32> to vector<1x128xf32>
    %cst_110 = arith.constant 3.125000e-02 : f32
    %285 = vector.broadcast %cst_110 : f32 to vector<1x128xf32>
    %286 = arith.mulf %284, %285 : vector<1x128xf32>
    %287 = arith.mulf %283, %283 : vector<1x128xf32>
    %288 = arith.subf %286, %287 : vector<1x128xf32>
    %cst_111 = arith.constant 9.99999974E-6 : f32
    %289 = vector.broadcast %cst_111 : f32 to vector<1x128xf32>
    %290 = arith.addf %288, %289 : vector<1x128xf32>
    %291 = math.rsqrt %290 : vector<1x128xf32>
    %292 = arith.mulf %19, %291 : vector<1x128xf32>
    %293 = vector.broadcast %292 : vector<1x128xf32> to vector<2x128xf32>
    %294 = arith.mulf %265, %293 : vector<2x128xf32>
    %295 = arith.mulf %283, %292 : vector<1x128xf32>
    %296 = arith.subf %20, %295 : vector<1x128xf32>
    %297 = vector.broadcast %296 : vector<1x128xf32> to vector<2x128xf32>
    %298 = arith.addf %294, %297 : vector<2x128xf32>
    %cst_112 = arith.constant 0.000000e+00 : f32
    %299 = vector.broadcast %cst_112 : f32 to vector<2x128xf32>
    %300 = arith.maximumf %298, %299 : vector<2x128xf32>
    %301 = arith.truncf %300 : vector<2x128xf32> to vector<2x128xbf16>
    %cst_113 = arith.constant dense<0.000000e+00> : vector<2x128xf32>
    %302 = tpu.matmul %301, %16, %cst_113 {dimension_numbers = #tpu.dot_dimension_numbers<[1], [0], [0], [1], [0, 0, 1, 1], [], []>} : vector<2x128xbf16>, vector<128x128xbf16>, vector<2x128xf32> -> vector<2x128xf32>
    %303 = vector.broadcast %18 : vector<1x128xf32> to vector<2x128xf32>
    %304 = arith.addf %302, %303 : vector<2x128xf32>
    %cst_114 = arith.constant dense<0.000000e+00> : vector<128xf32>
    %305 = vector.multi_reduction <add>, %304, %cst_114 [0] : vector<2x128xf32> to vector<128xf32>
    %306 = vector.shape_cast %305 : vector<128xf32> to vector<1x128xf32>
    %307 = arith.mulf %304, %304 : vector<2x128xf32>
    %cst_115 = arith.constant dense<0.000000e+00> : vector<128xf32>
    %308 = vector.multi_reduction <add>, %307, %cst_115 [0] : vector<2x128xf32> to vector<128xf32>
    %309 = vector.shape_cast %308 : vector<128xf32> to vector<1x128xf32>
    %cst_116 = arith.constant 0.000000e+00 : f32
    %310 = vector.broadcast %cst_116 : f32 to vector<6x128xf32>
    %311 = tpu.concatenate %306, %309, %310 in 0 : vector<1x128xf32>, vector<1x128xf32>, vector<6x128xf32> -> vector<8x128xf32>
    %c8_i32_117 = arith.constant 8 : i32
    %312 = tpu.dynamic_rotate %311 by %c8_i32_117 dim 1 : vector<8x128xf32>, i32 -> vector<8x128xf32>
    %313 = arith.addf %311, %312 : vector<8x128xf32>
    %c16_i32_118 = arith.constant 16 : i32
    %314 = tpu.dynamic_rotate %313 by %c16_i32_118 dim 1 : vector<8x128xf32>, i32 -> vector<8x128xf32>
    %315 = arith.addf %313, %314 : vector<8x128xf32>
    %c32_i32_119 = arith.constant 32 : i32
    %316 = tpu.dynamic_rotate %315 by %c32_i32_119 dim 1 : vector<8x128xf32>, i32 -> vector<8x128xf32>
    %317 = arith.addf %315, %316 : vector<8x128xf32>
    %c64_i32_120 = arith.constant 64 : i32
    %318 = tpu.dynamic_rotate %317 by %c64_i32_120 dim 1 : vector<8x128xf32>, i32 -> vector<8x128xf32>
    %319 = arith.addf %317, %318 : vector<8x128xf32>
    %320 = vector.extract_strided_slice %319 {offsets = [0, 0], sizes = [1, 128], strides = [1, 1]} : vector<8x128xf32> to vector<1x128xf32>
    %cst_121 = arith.constant 3.125000e-02 : f32
    %321 = vector.broadcast %cst_121 : f32 to vector<1x128xf32>
    %322 = arith.mulf %320, %321 : vector<1x128xf32>
    %323 = vector.extract_strided_slice %319 {offsets = [1, 0], sizes = [1, 128], strides = [1, 1]} : vector<8x128xf32> to vector<1x128xf32>
    %cst_122 = arith.constant 3.125000e-02 : f32
    %324 = vector.broadcast %cst_122 : f32 to vector<1x128xf32>
    %325 = arith.mulf %323, %324 : vector<1x128xf32>
    %326 = arith.mulf %322, %322 : vector<1x128xf32>
    %327 = arith.subf %325, %326 : vector<1x128xf32>
    %cst_123 = arith.constant 9.99999974E-6 : f32
    %328 = vector.broadcast %cst_123 : f32 to vector<1x128xf32>
    %329 = arith.addf %327, %328 : vector<1x128xf32>
    %330 = math.rsqrt %329 : vector<1x128xf32>
    %331 = arith.mulf %19, %330 : vector<1x128xf32>
    %332 = vector.broadcast %331 : vector<1x128xf32> to vector<2x128xf32>
    %333 = arith.mulf %304, %332 : vector<2x128xf32>
    %334 = arith.mulf %322, %331 : vector<1x128xf32>
    %335 = arith.subf %20, %334 : vector<1x128xf32>
    %336 = vector.broadcast %335 : vector<1x128xf32> to vector<2x128xf32>
    %337 = arith.addf %333, %336 : vector<2x128xf32>
    %338 = arith.addf %337, %261 : vector<2x128xf32>
    %cst_124 = arith.constant 0.000000e+00 : f32
    %339 = vector.broadcast %cst_124 : f32 to vector<2x128xf32>
    %340 = arith.maximumf %338, %339 : vector<2x128xf32>
    %341 = arith.truncf %340 : vector<2x128xf32> to vector<2x128xbf16>
    %cst_125 = arith.constant dense<0.000000e+00> : vector<2x128xf32>
    %342 = tpu.matmul %341, %15, %cst_125 {dimension_numbers = #tpu.dot_dimension_numbers<[1], [0], [0], [1], [0, 0, 1, 1], [], []>} : vector<2x128xbf16>, vector<128x128xbf16>, vector<2x128xf32> -> vector<2x128xf32>
    %343 = vector.broadcast %17 : vector<1x128xf32> to vector<2x128xf32>
    %344 = arith.addf %342, %343 : vector<2x128xf32>
    %345 = arith.addf %344, %14 : vector<2x128xf32>
    %cst_126 = arith.constant 2.000000e+00 : f32
    %346 = vector.broadcast %cst_126 : f32 to vector<2x128xf32>
    %347 = arith.addf %345, %346 : vector<2x128xf32>
    %348 = arith.mulf %14, %347 : vector<2x128xf32>
    %c0_127 = arith.constant 0 : index
    %c0_128 = arith.constant 0 : index
    %349 = vector.load %arg9[%c0_127, %c0_128] : memref<128x256xbf16, #tpu.memory_space<vmem>>, vector<128x256xbf16>
    %350 = arith.truncf %348 : vector<2x128xf32> to vector<2x128xbf16>
    %cst_129 = arith.constant dense<0.000000e+00> : vector<2x256xf32>
    %351 = tpu.matmul %350, %349, %cst_129 {dimension_numbers = #tpu.dot_dimension_numbers<[1], [0], [0], [1], [0, 0, 1, 1], [], []>} : vector<2x128xbf16>, vector<128x256xbf16>, vector<2x256xf32> -> vector<2x256xf32>
    %c0_130 = arith.constant 0 : index
    %c0_131 = arith.constant 0 : index
    %352 = vector.load %arg10[%c0_130, %c0_131] : memref<1x256xf32, #tpu.memory_space<vmem>>, vector<1x256xf32>
    %353 = vector.broadcast %352 : vector<1x256xf32> to vector<2x256xf32>
    %354 = arith.addf %351, %353 : vector<2x256xf32>
    %355 = vector.extract_strided_slice %354 {offsets = [0, 0], sizes = [2, 16], strides = [1, 1]} : vector<2x256xf32> to vector<2x16xf32>
    %c0_132 = arith.constant 0 : index
    %c3 = arith.constant 3 : index
    %c0_133 = arith.constant 0 : index
    %356 = vector.load %arg22[%c0_132, %c3, %c0_133] : memref<2x22x16xf32, #tpu.memory_space<vmem>>, vector<2x1x16xf32>
    %357 = vector.shape_cast %356 : vector<2x1x16xf32> to vector<2x16xf32>
    %358 = vector.shape_cast %355 : vector<2x16xf32> to vector<2x1x16xf32>
    tpu.vector_store %arg22[%c0_132, %c3, %c0_133], %358 {strides = array<i32>} : memref<2x22x16xf32, #tpu.memory_space<vmem>>, vector<2x1x16xf32>,
    %359 = vector.extract_strided_slice %354 {offsets = [0, 16], sizes = [2, 16], strides = [1, 1]} : vector<2x256xf32> to vector<2x16xf32>
    %c0_134 = arith.constant 0 : index
    %c4 = arith.constant 4 : index
    %c0_135 = arith.constant 0 : index
    %360 = vector.load %arg22[%c0_134, %c4, %c0_135] : memref<2x22x16xf32, #tpu.memory_space<vmem>>, vector<2x1x16xf32>
    %361 = vector.shape_cast %360 : vector<2x1x16xf32> to vector<2x16xf32>
    %362 = vector.shape_cast %359 : vector<2x16xf32> to vector<2x1x16xf32>
    tpu.vector_store %arg22[%c0_134, %c4, %c0_135], %362 {strides = array<i32>} : memref<2x22x16xf32, #tpu.memory_space<vmem>>, vector<2x1x16xf32>,
    %363 = vector.extract_strided_slice %354 {offsets = [0, 32], sizes = [2, 16], strides = [1, 1]} : vector<2x256xf32> to vector<2x16xf32>
    %c0_136 = arith.constant 0 : index
    %c5 = arith.constant 5 : index
    %c0_137 = arith.constant 0 : index
    %364 = vector.load %arg22[%c0_136, %c5, %c0_137] : memref<2x22x16xf32, #tpu.memory_space<vmem>>, vector<2x1x16xf32>
    %365 = vector.shape_cast %364 : vector<2x1x16xf32> to vector<2x16xf32>
    %366 = vector.shape_cast %363 : vector<2x16xf32> to vector<2x1x16xf32>
    tpu.vector_store %arg22[%c0_136, %c5, %c0_137], %366 {strides = array<i32>} : memref<2x22x16xf32, #tpu.memory_space<vmem>>, vector<2x1x16xf32>,
    %367 = vector.extract_strided_slice %354 {offsets = [0, 48], sizes = [2, 16], strides = [1, 1]} : vector<2x256xf32> to vector<2x16xf32>
    %c0_138 = arith.constant 0 : index
    %c6 = arith.constant 6 : index
    %c0_139 = arith.constant 0 : index
    %368 = vector.load %arg22[%c0_138, %c6, %c0_139] : memref<2x22x16xf32, #tpu.memory_space<vmem>>, vector<2x1x16xf32>
    %369 = vector.shape_cast %368 : vector<2x1x16xf32> to vector<2x16xf32>
    %370 = vector.shape_cast %367 : vector<2x16xf32> to vector<2x1x16xf32>
    tpu.vector_store %arg22[%c0_138, %c6, %c0_139], %370 {strides = array<i32>} : memref<2x22x16xf32, #tpu.memory_space<vmem>>, vector<2x1x16xf32>,
    %371 = vector.extract_strided_slice %354 {offsets = [0, 64], sizes = [2, 16], strides = [1, 1]} : vector<2x256xf32> to vector<2x16xf32>
    %c0_140 = arith.constant 0 : index
    %c7 = arith.constant 7 : index
    %c0_141 = arith.constant 0 : index
    %372 = vector.load %arg22[%c0_140, %c7, %c0_141] : memref<2x22x16xf32, #tpu.memory_space<vmem>>, vector<2x1x16xf32>
    %373 = vector.shape_cast %372 : vector<2x1x16xf32> to vector<2x16xf32>
    %374 = vector.shape_cast %371 : vector<2x16xf32> to vector<2x1x16xf32>
    tpu.vector_store %arg22[%c0_140, %c7, %c0_141], %374 {strides = array<i32>} : memref<2x22x16xf32, #tpu.memory_space<vmem>>, vector<2x1x16xf32>,
    %375 = vector.extract_strided_slice %354 {offsets = [0, 80], sizes = [2, 16], strides = [1, 1]} : vector<2x256xf32> to vector<2x16xf32>
    %c0_142 = arith.constant 0 : index
    %c8 = arith.constant 8 : index
    %c0_143 = arith.constant 0 : index
    %376 = vector.load %arg22[%c0_142, %c8, %c0_143] : memref<2x22x16xf32, #tpu.memory_space<vmem>>, vector<2x1x16xf32>
    %377 = vector.shape_cast %376 : vector<2x1x16xf32> to vector<2x16xf32>
    %378 = vector.shape_cast %375 : vector<2x16xf32> to vector<2x1x16xf32>
    tpu.vector_store %arg22[%c0_142, %c8, %c0_143], %378 {strides = array<i32>} : memref<2x22x16xf32, #tpu.memory_space<vmem>>, vector<2x1x16xf32>,
    %379 = vector.extract_strided_slice %354 {offsets = [0, 96], sizes = [2, 16], strides = [1, 1]} : vector<2x256xf32> to vector<2x16xf32>
    %c0_144 = arith.constant 0 : index
    %c9 = arith.constant 9 : index
    %c0_145 = arith.constant 0 : index
    %380 = vector.load %arg22[%c0_144, %c9, %c0_145] : memref<2x22x16xf32, #tpu.memory_space<vmem>>, vector<2x1x16xf32>
    %381 = vector.shape_cast %380 : vector<2x1x16xf32> to vector<2x16xf32>
    %382 = vector.shape_cast %379 : vector<2x16xf32> to vector<2x1x16xf32>
    tpu.vector_store %arg22[%c0_144, %c9, %c0_145], %382 {strides = array<i32>} : memref<2x22x16xf32, #tpu.memory_space<vmem>>, vector<2x1x16xf32>,
    %383 = vector.extract_strided_slice %354 {offsets = [0, 112], sizes = [2, 16], strides = [1, 1]} : vector<2x256xf32> to vector<2x16xf32>
    %c0_146 = arith.constant 0 : index
    %c10 = arith.constant 10 : index
    %c0_147 = arith.constant 0 : index
    %384 = vector.load %arg22[%c0_146, %c10, %c0_147] : memref<2x22x16xf32, #tpu.memory_space<vmem>>, vector<2x1x16xf32>
    %385 = vector.shape_cast %384 : vector<2x1x16xf32> to vector<2x16xf32>
    %386 = vector.shape_cast %383 : vector<2x16xf32> to vector<2x1x16xf32>
    tpu.vector_store %arg22[%c0_146, %c10, %c0_147], %386 {strides = array<i32>} : memref<2x22x16xf32, #tpu.memory_space<vmem>>, vector<2x1x16xf32>,
    %387 = vector.extract_strided_slice %354 {offsets = [0, 128], sizes = [2, 16], strides = [1, 1]} : vector<2x256xf32> to vector<2x16xf32>
    %c0_148 = arith.constant 0 : index
    %c11 = arith.constant 11 : index
    %c0_149 = arith.constant 0 : index
    %388 = vector.load %arg22[%c0_148, %c11, %c0_149] : memref<2x22x16xf32, #tpu.memory_space<vmem>>, vector<2x1x16xf32>
    %389 = vector.shape_cast %388 : vector<2x1x16xf32> to vector<2x16xf32>
    %390 = vector.shape_cast %387 : vector<2x16xf32> to vector<2x1x16xf32>
    tpu.vector_store %arg22[%c0_148, %c11, %c0_149], %390 {strides = array<i32>} : memref<2x22x16xf32, #tpu.memory_space<vmem>>, vector<2x1x16xf32>,
    %391 = vector.extract_strided_slice %354 {offsets = [0, 144], sizes = [2, 16], strides = [1, 1]} : vector<2x256xf32> to vector<2x16xf32>
    %c0_150 = arith.constant 0 : index
    %c12 = arith.constant 12 : index
    %c0_151 = arith.constant 0 : index
    %392 = vector.load %arg22[%c0_150, %c12, %c0_151] : memref<2x22x16xf32, #tpu.memory_space<vmem>>, vector<2x1x16xf32>
    %393 = vector.shape_cast %392 : vector<2x1x16xf32> to vector<2x16xf32>
    %394 = vector.shape_cast %391 : vector<2x16xf32> to vector<2x1x16xf32>
    tpu.vector_store %arg22[%c0_150, %c12, %c0_151], %394 {strides = array<i32>} : memref<2x22x16xf32, #tpu.memory_space<vmem>>, vector<2x1x16xf32>,
    %395 = vector.extract_strided_slice %354 {offsets = [0, 160], sizes = [2, 16], strides = [1, 1]} : vector<2x256xf32> to vector<2x16xf32>
    %c0_152 = arith.constant 0 : index
    %c13 = arith.constant 13 : index
    %c0_153 = arith.constant 0 : index
    %396 = vector.load %arg22[%c0_152, %c13, %c0_153] : memref<2x22x16xf32, #tpu.memory_space<vmem>>, vector<2x1x16xf32>
    %397 = vector.shape_cast %396 : vector<2x1x16xf32> to vector<2x16xf32>
    %398 = vector.shape_cast %395 : vector<2x16xf32> to vector<2x1x16xf32>
    tpu.vector_store %arg22[%c0_152, %c13, %c0_153], %398 {strides = array<i32>} : memref<2x22x16xf32, #tpu.memory_space<vmem>>, vector<2x1x16xf32>,
    %399 = vector.extract_strided_slice %354 {offsets = [0, 176], sizes = [2, 16], strides = [1, 1]} : vector<2x256xf32> to vector<2x16xf32>
    %c0_154 = arith.constant 0 : index
    %c14 = arith.constant 14 : index
    %c0_155 = arith.constant 0 : index
    %400 = vector.load %arg22[%c0_154, %c14, %c0_155] : memref<2x22x16xf32, #tpu.memory_space<vmem>>, vector<2x1x16xf32>
    %401 = vector.shape_cast %400 : vector<2x1x16xf32> to vector<2x16xf32>
    %402 = vector.shape_cast %399 : vector<2x16xf32> to vector<2x1x16xf32>
    tpu.vector_store %arg22[%c0_154, %c14, %c0_155], %402 {strides = array<i32>} : memref<2x22x16xf32, #tpu.memory_space<vmem>>, vector<2x1x16xf32>,
    %403 = vector.extract_strided_slice %354 {offsets = [0, 192], sizes = [2, 16], strides = [1, 1]} : vector<2x256xf32> to vector<2x16xf32>
    %c0_156 = arith.constant 0 : index
    %c15 = arith.constant 15 : index
    %c0_157 = arith.constant 0 : index
    %404 = vector.load %arg22[%c0_156, %c15, %c0_157] : memref<2x22x16xf32, #tpu.memory_space<vmem>>, vector<2x1x16xf32>
    %405 = vector.shape_cast %404 : vector<2x1x16xf32> to vector<2x16xf32>
    %406 = vector.shape_cast %403 : vector<2x16xf32> to vector<2x1x16xf32>
    tpu.vector_store %arg22[%c0_156, %c15, %c0_157], %406 {strides = array<i32>} : memref<2x22x16xf32, #tpu.memory_space<vmem>>, vector<2x1x16xf32>,
    %407 = vector.extract_strided_slice %354 {offsets = [0, 208], sizes = [2, 16], strides = [1, 1]} : vector<2x256xf32> to vector<2x16xf32>
    %c0_158 = arith.constant 0 : index
    %c16 = arith.constant 16 : index
    %c0_159 = arith.constant 0 : index
    %408 = vector.load %arg22[%c0_158, %c16, %c0_159] : memref<2x22x16xf32, #tpu.memory_space<vmem>>, vector<2x1x16xf32>
    %409 = vector.shape_cast %408 : vector<2x1x16xf32> to vector<2x16xf32>
    %410 = vector.shape_cast %407 : vector<2x16xf32> to vector<2x1x16xf32>
    tpu.vector_store %arg22[%c0_158, %c16, %c0_159], %410 {strides = array<i32>} : memref<2x22x16xf32, #tpu.memory_space<vmem>>, vector<2x1x16xf32>,
    %411 = vector.extract_strided_slice %354 {offsets = [0, 224], sizes = [2, 16], strides = [1, 1]} : vector<2x256xf32> to vector<2x16xf32>
    %c0_160 = arith.constant 0 : index
    %c17 = arith.constant 17 : index
    %c0_161 = arith.constant 0 : index
    %412 = vector.load %arg22[%c0_160, %c17, %c0_161] : memref<2x22x16xf32, #tpu.memory_space<vmem>>, vector<2x1x16xf32>
    %413 = vector.shape_cast %412 : vector<2x1x16xf32> to vector<2x16xf32>
    %414 = vector.shape_cast %411 : vector<2x16xf32> to vector<2x1x16xf32>
    tpu.vector_store %arg22[%c0_160, %c17, %c0_161], %414 {strides = array<i32>} : memref<2x22x16xf32, #tpu.memory_space<vmem>>, vector<2x1x16xf32>,
    %415 = vector.extract_strided_slice %354 {offsets = [0, 240], sizes = [2, 16], strides = [1, 1]} : vector<2x256xf32> to vector<2x16xf32>
    %c0_162 = arith.constant 0 : index
    %c18 = arith.constant 18 : index
    %c0_163 = arith.constant 0 : index
    %416 = vector.load %arg22[%c0_162, %c18, %c0_163] : memref<2x22x16xf32, #tpu.memory_space<vmem>>, vector<2x1x16xf32>
    %417 = vector.shape_cast %416 : vector<2x1x16xf32> to vector<2x16xf32>
    %418 = vector.shape_cast %415 : vector<2x16xf32> to vector<2x1x16xf32>
    tpu.vector_store %arg22[%c0_162, %c18, %c0_163], %418 {strides = array<i32>} : memref<2x22x16xf32, #tpu.memory_space<vmem>>, vector<2x1x16xf32>,
    %c0_164 = arith.constant 0 : index
    %c0_165 = arith.constant 0 : index
    %c0_166 = arith.constant 0 : index
    %419 = vector.load %arg22[%c0_164, %c0_165, %c0_166] : memref<2x22x16xf32, #tpu.memory_space<vmem>>, vector<2x16x16xf32>
    %420 = vector.shape_cast %419 : vector<2x16x16xf32> to vector<32x16xf32>
    %c0_167 = arith.constant 0 : index
    %c0_168 = arith.constant 0 : index
    %c0_169 = arith.constant 0 : index
    %421 = vector.load %arg11[%c0_167, %c0_168, %c0_169] : memref<7x16x128xbf16, #tpu.memory_space<vmem>>, vector<1x16x128xbf16>
    %422 = vector.shape_cast %421 : vector<1x16x128xbf16> to vector<16x128xbf16>
    %423 = arith.truncf %420 : vector<32x16xf32> to vector<32x16xbf16>
    %cst_170 = arith.constant dense<0.000000e+00> : vector<32x128xf32>
    %424 = tpu.matmul %423, %422, %cst_170 {dimension_numbers = #tpu.dot_dimension_numbers<[1], [0], [0], [1], [0, 0, 1, 1], [], []>} : vector<32x16xbf16>, vector<16x128xbf16>, vector<32x128xf32> -> vector<32x128xf32>
    %c0_171 = arith.constant 0 : index
    %c1 = arith.constant 1 : index
    %c0_172 = arith.constant 0 : index
    %425 = vector.load %arg22[%c0_171, %c1, %c0_172] : memref<2x22x16xf32, #tpu.memory_space<vmem>>, vector<2x16x16xf32>
    %426 = vector.shape_cast %425 : vector<2x16x16xf32> to vector<32x16xf32>
    %c1_173 = arith.constant 1 : index
    %c0_174 = arith.constant 0 : index
    %c0_175 = arith.constant 0 : index
    %427 = vector.load %arg11[%c1_173, %c0_174, %c0_175] : memref<7x16x128xbf16, #tpu.memory_space<vmem>>, vector<1x16x128xbf16>
    %428 = vector.shape_cast %427 : vector<1x16x128xbf16> to vector<16x128xbf16>
    %429 = arith.truncf %426 : vector<32x16xf32> to vector<32x16xbf16>
    %cst_176 = arith.constant dense<0.000000e+00> : vector<32x128xf32>
    %430 = tpu.matmul %429, %428, %cst_176 {dimension_numbers = #tpu.dot_dimension_numbers<[1], [0], [0], [1], [0, 0, 1, 1], [], []>} : vector<32x16xbf16>, vector<16x128xbf16>, vector<32x128xf32> -> vector<32x128xf32>
    %431 = arith.addf %424, %430 : vector<32x128xf32>
    %c0_177 = arith.constant 0 : index
    %c2 = arith.constant 2 : index
    %c0_178 = arith.constant 0 : index
    %432 = vector.load %arg22[%c0_177, %c2, %c0_178] : memref<2x22x16xf32, #tpu.memory_space<vmem>>, vector<2x16x16xf32>
    %433 = vector.shape_cast %432 : vector<2x16x16xf32> to vector<32x16xf32>
    %c2_179 = arith.constant 2 : index
    %c0_180 = arith.constant 0 : index
    %c0_181 = arith.constant 0 : index
    %434 = vector.load %arg11[%c2_179, %c0_180, %c0_181] : memref<7x16x128xbf16, #tpu.memory_space<vmem>>, vector<1x16x128xbf16>
    %435 = vector.shape_cast %434 : vector<1x16x128xbf16> to vector<16x128xbf16>
    %436 = arith.truncf %433 : vector<32x16xf32> to vector<32x16xbf16>
    %cst_182 = arith.constant dense<0.000000e+00> : vector<32x128xf32>
    %437 = tpu.matmul %436, %435, %cst_182 {dimension_numbers = #tpu.dot_dimension_numbers<[1], [0], [0], [1], [0, 0, 1, 1], [], []>} : vector<32x16xbf16>, vector<16x128xbf16>, vector<32x128xf32> -> vector<32x128xf32>
    %438 = arith.addf %431, %437 : vector<32x128xf32>
    %c0_183 = arith.constant 0 : index
    %c3_184 = arith.constant 3 : index
    %c0_185 = arith.constant 0 : index
    %439 = vector.load %arg22[%c0_183, %c3_184, %c0_185] : memref<2x22x16xf32, #tpu.memory_space<vmem>>, vector<2x16x16xf32>
    %440 = vector.shape_cast %439 : vector<2x16x16xf32> to vector<32x16xf32>
    %c3_186 = arith.constant 3 : index
    %c0_187 = arith.constant 0 : index
    %c0_188 = arith.constant 0 : index
    %441 = vector.load %arg11[%c3_186, %c0_187, %c0_188] : memref<7x16x128xbf16, #tpu.memory_space<vmem>>, vector<1x16x128xbf16>
    %442 = vector.shape_cast %441 : vector<1x16x128xbf16> to vector<16x128xbf16>
    %443 = arith.truncf %440 : vector<32x16xf32> to vector<32x16xbf16>
    %cst_189 = arith.constant dense<0.000000e+00> : vector<32x128xf32>
    %444 = tpu.matmul %443, %442, %cst_189 {dimension_numbers = #tpu.dot_dimension_numbers<[1], [0], [0], [1], [0, 0, 1, 1], [], []>} : vector<32x16xbf16>, vector<16x128xbf16>, vector<32x128xf32> -> vector<32x128xf32>
    %445 = arith.addf %438, %444 : vector<32x128xf32>
    %c0_190 = arith.constant 0 : index
    %c4_191 = arith.constant 4 : index
    %c0_192 = arith.constant 0 : index
    %446 = vector.load %arg22[%c0_190, %c4_191, %c0_192] : memref<2x22x16xf32, #tpu.memory_space<vmem>>, vector<2x16x16xf32>
    %447 = vector.shape_cast %446 : vector<2x16x16xf32> to vector<32x16xf32>
    %c4_193 = arith.constant 4 : index
    %c0_194 = arith.constant 0 : index
    %c0_195 = arith.constant 0 : index
    %448 = vector.load %arg11[%c4_193, %c0_194, %c0_195] : memref<7x16x128xbf16, #tpu.memory_space<vmem>>, vector<1x16x128xbf16>
    %449 = vector.shape_cast %448 : vector<1x16x128xbf16> to vector<16x128xbf16>
    %450 = arith.truncf %447 : vector<32x16xf32> to vector<32x16xbf16>
    %cst_196 = arith.constant dense<0.000000e+00> : vector<32x128xf32>
    %451 = tpu.matmul %450, %449, %cst_196 {dimension_numbers = #tpu.dot_dimension_numbers<[1], [0], [0], [1], [0, 0, 1, 1], [], []>} : vector<32x16xbf16>, vector<16x128xbf16>, vector<32x128xf32> -> vector<32x128xf32>
    %452 = arith.addf %445, %451 : vector<32x128xf32>
    %c0_197 = arith.constant 0 : index
    %c5_198 = arith.constant 5 : index
    %c0_199 = arith.constant 0 : index
    %453 = vector.load %arg22[%c0_197, %c5_198, %c0_199] : memref<2x22x16xf32, #tpu.memory_space<vmem>>, vector<2x16x16xf32>
    %454 = vector.shape_cast %453 : vector<2x16x16xf32> to vector<32x16xf32>
    %c5_200 = arith.constant 5 : index
    %c0_201 = arith.constant 0 : index
    %c0_202 = arith.constant 0 : index
    %455 = vector.load %arg11[%c5_200, %c0_201, %c0_202] : memref<7x16x128xbf16, #tpu.memory_space<vmem>>, vector<1x16x128xbf16>
    %456 = vector.shape_cast %455 : vector<1x16x128xbf16> to vector<16x128xbf16>
    %457 = arith.truncf %454 : vector<32x16xf32> to vector<32x16xbf16>
    %cst_203 = arith.constant dense<0.000000e+00> : vector<32x128xf32>
    %458 = tpu.matmul %457, %456, %cst_203 {dimension_numbers = #tpu.dot_dimension_numbers<[1], [0], [0], [1], [0, 0, 1, 1], [], []>} : vector<32x16xbf16>, vector<16x128xbf16>, vector<32x128xf32> -> vector<32x128xf32>
    %459 = arith.addf %452, %458 : vector<32x128xf32>
    %c0_204 = arith.constant 0 : index
    %c6_205 = arith.constant 6 : index
    %c0_206 = arith.constant 0 : index
    %460 = vector.load %arg22[%c0_204, %c6_205, %c0_206] : memref<2x22x16xf32, #tpu.memory_space<vmem>>, vector<2x16x16xf32>
    %461 = vector.shape_cast %460 : vector<2x16x16xf32> to vector<32x16xf32>
    %c6_207 = arith.constant 6 : index
    %c0_208 = arith.constant 0 : index
    %c0_209 = arith.constant 0 : index
    %462 = vector.load %arg11[%c6_207, %c0_208, %c0_209] : memref<7x16x128xbf16, #tpu.memory_space<vmem>>, vector<1x16x128xbf16>
    %463 = vector.shape_cast %462 : vector<1x16x128xbf16> to vector<16x128xbf16>
    %464 = arith.truncf %461 : vector<32x16xf32> to vector<32x16xbf16>
    %cst_210 = arith.constant dense<0.000000e+00> : vector<32x128xf32>
    %465 = tpu.matmul %464, %463, %cst_210 {dimension_numbers = #tpu.dot_dimension_numbers<[1], [0], [0], [1], [0, 0, 1, 1], [], []>} : vector<32x16xbf16>, vector<16x128xbf16>, vector<32x128xf32> -> vector<32x128xf32>
    %466 = arith.addf %459, %465 : vector<32x128xf32>
    %c0_211 = arith.constant 0 : index
    %c0_212 = arith.constant 0 : index
    %467 = vector.load %arg12[%c0_211, %c0_212] : memref<1x128xf32, #tpu.memory_space<vmem>>, vector<1x128xf32>
    %468 = vector.broadcast %467 : vector<1x128xf32> to vector<32x128xf32>
    %469 = arith.addf %466, %468 : vector<32x128xf32>
    %c0_213 = arith.constant 0 : index
    %c0_214 = arith.constant 0 : index
    %470 = vector.load %arg14[%c0_213, %c0_214] : memref<1x128xf32, #tpu.memory_space<vmem>>, vector<1x128xf32>
    %c0_215 = arith.constant 0 : index
    %c0_216 = arith.constant 0 : index
    %471 = vector.load %arg15[%c0_215, %c0_216] : memref<1x128xf32, #tpu.memory_space<vmem>>, vector<1x128xf32>
    %c0_217 = arith.constant 0 : index
    %c0_218 = arith.constant 0 : index
    %472 = vector.load %arg16[%c0_217, %c0_218] : memref<1x128xf32, #tpu.memory_space<vmem>>, vector<1x128xf32>
    %473 = vector.shape_cast %469 : vector<32x128xf32> to vector<2x16x128xf32>
    %c0_219 = arith.constant 0 : index
    %c1_220 = arith.constant 1 : index
    %c0_221 = arith.constant 0 : index
    %474 = vector.load %arg21[%c0_219, %c1_220, %c0_221] : memref<2x18x128xf32, #tpu.memory_space<vmem>>, vector<2x16x128xf32>
    tpu.vector_store %arg21[%c0_219, %c1_220, %c0_221], %473 {strides = array<i32>} : memref<2x18x128xf32, #tpu.memory_space<vmem>>, vector<2x16x128xf32>,
    %c0_222 = arith.constant 0 : index
    %c0_223 = arith.constant 0 : index
    %c0_224 = arith.constant 0 : index
    %475 = vector.load %arg21[%c0_222, %c0_223, %c0_224] : memref<2x18x128xf32, #tpu.memory_space<vmem>>, vector<2x16x128xf32>
    %476 = vector.shape_cast %475 : vector<2x16x128xf32> to vector<32x128xf32>
    %c0_225 = arith.constant 0 : index
    %c0_226 = arith.constant 0 : index
    %c0_227 = arith.constant 0 : index
    %477 = vector.load %arg13[%c0_225, %c0_226, %c0_227] : memref<3x128x128xbf16, #tpu.memory_space<vmem>>, vector<1x128x128xbf16>
    %478 = vector.shape_cast %477 : vector<1x128x128xbf16> to vector<128x128xbf16>
    %479 = arith.truncf %476 : vector<32x128xf32> to vector<32x128xbf16>
    %cst_228 = arith.constant dense<0.000000e+00> : vector<32x128xf32>
    %480 = tpu.matmul %479, %478, %cst_228 {dimension_numbers = #tpu.dot_dimension_numbers<[1], [0], [0], [1], [0, 0, 1, 1], [], []>} : vector<32x128xbf16>, vector<128x128xbf16>, vector<32x128xf32> -> vector<32x128xf32>
    %c0_229 = arith.constant 0 : index
    %c1_230 = arith.constant 1 : index
    %c0_231 = arith.constant 0 : index
    %481 = vector.load %arg21[%c0_229, %c1_230, %c0_231] : memref<2x18x128xf32, #tpu.memory_space<vmem>>, vector<2x16x128xf32>
    %482 = vector.shape_cast %481 : vector<2x16x128xf32> to vector<32x128xf32>
    %c1_232 = arith.constant 1 : index
    %c0_233 = arith.constant 0 : index
    %c0_234 = arith.constant 0 : index
    %483 = vector.load %arg13[%c1_232, %c0_233, %c0_234] : memref<3x128x128xbf16, #tpu.memory_space<vmem>>, vector<1x128x128xbf16>
    %484 = vector.shape_cast %483 : vector<1x128x128xbf16> to vector<128x128xbf16>
    %485 = arith.truncf %482 : vector<32x128xf32> to vector<32x128xbf16>
    %cst_235 = arith.constant dense<0.000000e+00> : vector<32x128xf32>
    %486 = tpu.matmul %485, %484, %cst_235 {dimension_numbers = #tpu.dot_dimension_numbers<[1], [0], [0], [1], [0, 0, 1, 1], [], []>} : vector<32x128xbf16>, vector<128x128xbf16>, vector<32x128xf32> -> vector<32x128xf32>
    %487 = arith.addf %480, %486 : vector<32x128xf32>
    %c0_236 = arith.constant 0 : index
    %c2_237 = arith.constant 2 : index
    %c0_238 = arith.constant 0 : index
    %488 = vector.load %arg21[%c0_236, %c2_237, %c0_238] : memref<2x18x128xf32, #tpu.memory_space<vmem>>, vector<2x16x128xf32>
    %489 = vector.shape_cast %488 : vector<2x16x128xf32> to vector<32x128xf32>
    %c2_239 = arith.constant 2 : index
    %c0_240 = arith.constant 0 : index
    %c0_241 = arith.constant 0 : index
    %490 = vector.load %arg13[%c2_239, %c0_240, %c0_241] : memref<3x128x128xbf16, #tpu.memory_space<vmem>>, vector<1x128x128xbf16>
    %491 = vector.shape_cast %490 : vector<1x128x128xbf16> to vector<128x128xbf16>
    %492 = arith.truncf %489 : vector<32x128xf32> to vector<32x128xbf16>
    %cst_242 = arith.constant dense<0.000000e+00> : vector<32x128xf32>
    %493 = tpu.matmul %492, %491, %cst_242 {dimension_numbers = #tpu.dot_dimension_numbers<[1], [0], [0], [1], [0, 0, 1, 1], [], []>} : vector<32x128xbf16>, vector<128x128xbf16>, vector<32x128xf32> -> vector<32x128xf32>
    %494 = arith.addf %487, %493 : vector<32x128xf32>
    %495 = vector.broadcast %470 : vector<1x128xf32> to vector<32x128xf32>
    %496 = arith.addf %494, %495 : vector<32x128xf32>
    %cst_243 = arith.constant dense<0.000000e+00> : vector<128xf32>
    %497 = vector.multi_reduction <add>, %496, %cst_243 [0] : vector<32x128xf32> to vector<128xf32>
    %498 = vector.shape_cast %497 : vector<128xf32> to vector<1x128xf32>
    %499 = arith.mulf %496, %496 : vector<32x128xf32>
    %cst_244 = arith.constant dense<0.000000e+00> : vector<128xf32>
    %500 = vector.multi_reduction <add>, %499, %cst_244 [0] : vector<32x128xf32> to vector<128xf32>
    %501 = vector.shape_cast %500 : vector<128xf32> to vector<1x128xf32>
    %cst_245 = arith.constant 0.000000e+00 : f32
    %502 = vector.broadcast %cst_245 : f32 to vector<6x128xf32>
    %503 = tpu.concatenate %498, %501, %502 in 0 : vector<1x128xf32>, vector<1x128xf32>, vector<6x128xf32> -> vector<8x128xf32>
    %c8_i32_246 = arith.constant 8 : i32
    %504 = tpu.dynamic_rotate %503 by %c8_i32_246 dim 1 : vector<8x128xf32>, i32 -> vector<8x128xf32>
    %505 = arith.addf %503, %504 : vector<8x128xf32>
    %c16_i32_247 = arith.constant 16 : i32
    %506 = tpu.dynamic_rotate %505 by %c16_i32_247 dim 1 : vector<8x128xf32>, i32 -> vector<8x128xf32>
    %507 = arith.addf %505, %506 : vector<8x128xf32>
    %c32_i32_248 = arith.constant 32 : i32
    %508 = tpu.dynamic_rotate %507 by %c32_i32_248 dim 1 : vector<8x128xf32>, i32 -> vector<8x128xf32>
    %509 = arith.addf %507, %508 : vector<8x128xf32>
    %c64_i32_249 = arith.constant 64 : i32
    %510 = tpu.dynamic_rotate %509 by %c64_i32_249 dim 1 : vector<8x128xf32>, i32 -> vector<8x128xf32>
    %511 = arith.addf %509, %510 : vector<8x128xf32>
    %512 = vector.extract_strided_slice %511 {offsets = [0, 0], sizes = [1, 128], strides = [1, 1]} : vector<8x128xf32> to vector<1x128xf32>
    %cst_250 = arith.constant 0.001953125 : f32
    %513 = vector.broadcast %cst_250 : f32 to vector<1x128xf32>
    %514 = arith.mulf %512, %513 : vector<1x128xf32>
    %515 = vector.extract_strided_slice %511 {offsets = [1, 0], sizes = [1, 128], strides = [1, 1]} : vector<8x128xf32> to vector<1x128xf32>
    %cst_251 = arith.constant 0.001953125 : f32
    %516 = vector.broadcast %cst_251 : f32 to vector<1x128xf32>
    %517 = arith.mulf %515, %516 : vector<1x128xf32>
    %518 = arith.mulf %514, %514 : vector<1x128xf32>
    %519 = arith.subf %517, %518 : vector<1x128xf32>
    %cst_252 = arith.constant 9.99999974E-6 : f32
    %520 = vector.broadcast %cst_252 : f32 to vector<1x128xf32>
    %521 = arith.addf %519, %520 : vector<1x128xf32>
    %522 = math.rsqrt %521 : vector<1x128xf32>
    %523 = arith.mulf %471, %522 : vector<1x128xf32>
    %524 = vector.broadcast %523 : vector<1x128xf32> to vector<32x128xf32>
    %525 = arith.mulf %496, %524 : vector<32x128xf32>
    %526 = arith.mulf %514, %523 : vector<1x128xf32>
    %527 = arith.subf %472, %526 : vector<1x128xf32>
    %528 = vector.broadcast %527 : vector<1x128xf32> to vector<32x128xf32>
    %529 = arith.addf %525, %528 : vector<32x128xf32>
    %cst_253 = arith.constant 0.000000e+00 : f32
    %530 = vector.broadcast %cst_253 : f32 to vector<32x128xf32>
    %531 = arith.maximumf %529, %530 : vector<32x128xf32>
    %532 = vector.shape_cast %531 : vector<32x128xf32> to vector<2x16x128xf32>
    %c0_254 = arith.constant 0 : index
    %c1_255 = arith.constant 1 : index
    %c0_256 = arith.constant 0 : index
    %533 = vector.load %arg21[%c0_254, %c1_255, %c0_256] : memref<2x18x128xf32, #tpu.memory_space<vmem>>, vector<2x16x128xf32>
    tpu.vector_store %arg21[%c0_254, %c1_255, %c0_256], %532 {strides = array<i32>} : memref<2x18x128xf32, #tpu.memory_space<vmem>>, vector<2x16x128xf32>,
    %c0_257 = arith.constant 0 : index
    %c0_258 = arith.constant 0 : index
    %c0_259 = arith.constant 0 : index
    %534 = vector.load %arg21[%c0_257, %c0_258, %c0_259] : memref<2x18x128xf32, #tpu.memory_space<vmem>>, vector<2x16x128xf32>
    %535 = vector.shape_cast %534 : vector<2x16x128xf32> to vector<32x128xf32>
    %c0_260 = arith.constant 0 : index
    %c0_261 = arith.constant 0 : index
    %c0_262 = arith.constant 0 : index
    %536 = vector.load %arg13[%c0_260, %c0_261, %c0_262] : memref<3x128x128xbf16, #tpu.memory_space<vmem>>, vector<1x128x128xbf16>
    %537 = vector.shape_cast %536 : vector<1x128x128xbf16> to vector<128x128xbf16>
    %538 = arith.truncf %535 : vector<32x128xf32> to vector<32x128xbf16>
    %cst_263 = arith.constant dense<0.000000e+00> : vector<32x128xf32>
    %539 = tpu.matmul %538, %537, %cst_263 {dimension_numbers = #tpu.dot_dimension_numbers<[1], [0], [0], [1], [0, 0, 1, 1], [], []>} : vector<32x128xbf16>, vector<128x128xbf16>, vector<32x128xf32> -> vector<32x128xf32>
    %c0_264 = arith.constant 0 : index
    %c1_265 = arith.constant 1 : index
    %c0_266 = arith.constant 0 : index
    %540 = vector.load %arg21[%c0_264, %c1_265, %c0_266] : memref<2x18x128xf32, #tpu.memory_space<vmem>>, vector<2x16x128xf32>
    %541 = vector.shape_cast %540 : vector<2x16x128xf32> to vector<32x128xf32>
    %c1_267 = arith.constant 1 : index
    %c0_268 = arith.constant 0 : index
    %c0_269 = arith.constant 0 : index
    %542 = vector.load %arg13[%c1_267, %c0_268, %c0_269] : memref<3x128x128xbf16, #tpu.memory_space<vmem>>, vector<1x128x128xbf16>
    %543 = vector.shape_cast %542 : vector<1x128x128xbf16> to vector<128x128xbf16>
    %544 = arith.truncf %541 : vector<32x128xf32> to vector<32x128xbf16>
    %cst_270 = arith.constant dense<0.000000e+00> : vector<32x128xf32>
    %545 = tpu.matmul %544, %543, %cst_270 {dimension_numbers = #tpu.dot_dimension_numbers<[1], [0], [0], [1], [0, 0, 1, 1], [], []>} : vector<32x128xbf16>, vector<128x128xbf16>, vector<32x128xf32> -> vector<32x128xf32>
    %546 = arith.addf %539, %545 : vector<32x128xf32>
    %c0_271 = arith.constant 0 : index
    %c2_272 = arith.constant 2 : index
    %c0_273 = arith.constant 0 : index
    %547 = vector.load %arg21[%c0_271, %c2_272, %c0_273] : memref<2x18x128xf32, #tpu.memory_space<vmem>>, vector<2x16x128xf32>
    %548 = vector.shape_cast %547 : vector<2x16x128xf32> to vector<32x128xf32>
    %c2_274 = arith.constant 2 : index
    %c0_275 = arith.constant 0 : index
    %c0_276 = arith.constant 0 : index
    %549 = vector.load %arg13[%c2_274, %c0_275, %c0_276] : memref<3x128x128xbf16, #tpu.memory_space<vmem>>, vector<1x128x128xbf16>
    %550 = vector.shape_cast %549 : vector<1x128x128xbf16> to vector<128x128xbf16>
    %551 = arith.truncf %548 : vector<32x128xf32> to vector<32x128xbf16>
    %cst_277 = arith.constant dense<0.000000e+00> : vector<32x128xf32>
    %552 = tpu.matmul %551, %550, %cst_277 {dimension_numbers = #tpu.dot_dimension_numbers<[1], [0], [0], [1], [0, 0, 1, 1], [], []>} : vector<32x128xbf16>, vector<128x128xbf16>, vector<32x128xf32> -> vector<32x128xf32>
    %553 = arith.addf %546, %552 : vector<32x128xf32>
    %554 = vector.broadcast %470 : vector<1x128xf32> to vector<32x128xf32>
    %555 = arith.addf %553, %554 : vector<32x128xf32>
    %cst_278 = arith.constant dense<0.000000e+00> : vector<128xf32>
    %556 = vector.multi_reduction <add>, %555, %cst_278 [0] : vector<32x128xf32> to vector<128xf32>
    %557 = vector.shape_cast %556 : vector<128xf32> to vector<1x128xf32>
    %558 = arith.mulf %555, %555 : vector<32x128xf32>
    %cst_279 = arith.constant dense<0.000000e+00> : vector<128xf32>
    %559 = vector.multi_reduction <add>, %558, %cst_279 [0] : vector<32x128xf32> to vector<128xf32>
    %560 = vector.shape_cast %559 : vector<128xf32> to vector<1x128xf32>
    %cst_280 = arith.constant 0.000000e+00 : f32
    %561 = vector.broadcast %cst_280 : f32 to vector<6x128xf32>
    %562 = tpu.concatenate %557, %560, %561 in 0 : vector<1x128xf32>, vector<1x128xf32>, vector<6x128xf32> -> vector<8x128xf32>
    %c8_i32_281 = arith.constant 8 : i32
    %563 = tpu.dynamic_rotate %562 by %c8_i32_281 dim 1 : vector<8x128xf32>, i32 -> vector<8x128xf32>
    %564 = arith.addf %562, %563 : vector<8x128xf32>
    %c16_i32_282 = arith.constant 16 : i32
    %565 = tpu.dynamic_rotate %564 by %c16_i32_282 dim 1 : vector<8x128xf32>, i32 -> vector<8x128xf32>
    %566 = arith.addf %564, %565 : vector<8x128xf32>
    %c32_i32_283 = arith.constant 32 : i32
    %567 = tpu.dynamic_rotate %566 by %c32_i32_283 dim 1 : vector<8x128xf32>, i32 -> vector<8x128xf32>
    %568 = arith.addf %566, %567 : vector<8x128xf32>
    %c64_i32_284 = arith.constant 64 : i32
    %569 = tpu.dynamic_rotate %568 by %c64_i32_284 dim 1 : vector<8x128xf32>, i32 -> vector<8x128xf32>
    %570 = arith.addf %568, %569 : vector<8x128xf32>
    %571 = vector.extract_strided_slice %570 {offsets = [0, 0], sizes = [1, 128], strides = [1, 1]} : vector<8x128xf32> to vector<1x128xf32>
    %cst_285 = arith.constant 0.001953125 : f32
    %572 = vector.broadcast %cst_285 : f32 to vector<1x128xf32>
    %573 = arith.mulf %571, %572 : vector<1x128xf32>
    %574 = vector.extract_strided_slice %570 {offsets = [1, 0], sizes = [1, 128], strides = [1, 1]} : vector<8x128xf32> to vector<1x128xf32>
    %cst_286 = arith.constant 0.001953125 : f32
    %575 = vector.broadcast %cst_286 : f32 to vector<1x128xf32>
    %576 = arith.mulf %574, %575 : vector<1x128xf32>
    %577 = arith.mulf %573, %573 : vector<1x128xf32>
    %578 = arith.subf %576, %577 : vector<1x128xf32>
    %cst_287 = arith.constant 9.99999974E-6 : f32
    %579 = vector.broadcast %cst_287 : f32 to vector<1x128xf32>
    %580 = arith.addf %578, %579 : vector<1x128xf32>
    %581 = math.rsqrt %580 : vector<1x128xf32>
    %582 = arith.mulf %471, %581 : vector<1x128xf32>
    %583 = vector.broadcast %582 : vector<1x128xf32> to vector<32x128xf32>
    %584 = arith.mulf %555, %583 : vector<32x128xf32>
    %585 = arith.mulf %573, %582 : vector<1x128xf32>
    %586 = arith.subf %472, %585 : vector<1x128xf32>
    %587 = vector.broadcast %586 : vector<1x128xf32> to vector<32x128xf32>
    %588 = arith.addf %584, %587 : vector<32x128xf32>
    %589 = arith.addf %588, %469 : vector<32x128xf32>
    %cst_288 = arith.constant 0.000000e+00 : f32
    %590 = vector.broadcast %cst_288 : f32 to vector<32x128xf32>
    %591 = arith.maximumf %589, %590 : vector<32x128xf32>
    %592 = vector.shape_cast %591 : vector<32x128xf32> to vector<2x16x128xf32>
    %c0_289 = arith.constant 0 : index
    %c1_290 = arith.constant 1 : index
    %c0_291 = arith.constant 0 : index
    %593 = vector.load %arg21[%c0_289, %c1_290, %c0_291] : memref<2x18x128xf32, #tpu.memory_space<vmem>>, vector<2x16x128xf32>
    tpu.vector_store %arg21[%c0_289, %c1_290, %c0_291], %592 {strides = array<i32>} : memref<2x18x128xf32, #tpu.memory_space<vmem>>, vector<2x16x128xf32>,
    %c0_292 = arith.constant 0 : index
    %c0_293 = arith.constant 0 : index
    %c0_294 = arith.constant 0 : index
    %594 = vector.load %arg21[%c0_292, %c0_293, %c0_294] : memref<2x18x128xf32, #tpu.memory_space<vmem>>, vector<2x16x128xf32>
    %595 = vector.shape_cast %594 : vector<2x16x128xf32> to vector<32x128xf32>
    %c0_295 = arith.constant 0 : index
    %c0_296 = arith.constant 0 : index
    %c0_297 = arith.constant 0 : index
    %596 = vector.load %arg13[%c0_295, %c0_296, %c0_297] : memref<3x128x128xbf16, #tpu.memory_space<vmem>>, vector<1x128x128xbf16>
    %597 = vector.shape_cast %596 : vector<1x128x128xbf16> to vector<128x128xbf16>
    %598 = arith.truncf %595 : vector<32x128xf32> to vector<32x128xbf16>
    %cst_298 = arith.constant dense<0.000000e+00> : vector<32x128xf32>
    %599 = tpu.matmul %598, %597, %cst_298 {dimension_numbers = #tpu.dot_dimension_numbers<[1], [0], [0], [1], [0, 0, 1, 1], [], []>} : vector<32x128xbf16>, vector<128x128xbf16>, vector<32x128xf32> -> vector<32x128xf32>
    %c0_299 = arith.constant 0 : index
    %c1_300 = arith.constant 1 : index
    %c0_301 = arith.constant 0 : index
    %600 = vector.load %arg21[%c0_299, %c1_300, %c0_301] : memref<2x18x128xf32, #tpu.memory_space<vmem>>, vector<2x16x128xf32>
    %601 = vector.shape_cast %600 : vector<2x16x128xf32> to vector<32x128xf32>
    %c1_302 = arith.constant 1 : index
    %c0_303 = arith.constant 0 : index
    %c0_304 = arith.constant 0 : index
    %602 = vector.load %arg13[%c1_302, %c0_303, %c0_304] : memref<3x128x128xbf16, #tpu.memory_space<vmem>>, vector<1x128x128xbf16>
    %603 = vector.shape_cast %602 : vector<1x128x128xbf16> to vector<128x128xbf16>
    %604 = arith.truncf %601 : vector<32x128xf32> to vector<32x128xbf16>
    %cst_305 = arith.constant dense<0.000000e+00> : vector<32x128xf32>
    %605 = tpu.matmul %604, %603, %cst_305 {dimension_numbers = #tpu.dot_dimension_numbers<[1], [0], [0], [1], [0, 0, 1, 1], [], []>} : vector<32x128xbf16>, vector<128x128xbf16>, vector<32x128xf32> -> vector<32x128xf32>
    %606 = arith.addf %599, %605 : vector<32x128xf32>
    %c0_306 = arith.constant 0 : index
    %c2_307 = arith.constant 2 : index
    %c0_308 = arith.constant 0 : index
    %607 = vector.load %arg21[%c0_306, %c2_307, %c0_308] : memref<2x18x128xf32, #tpu.memory_space<vmem>>, vector<2x16x128xf32>
    %608 = vector.shape_cast %607 : vector<2x16x128xf32> to vector<32x128xf32>
    %c2_309 = arith.constant 2 : index
    %c0_310 = arith.constant 0 : index
    %c0_311 = arith.constant 0 : index
    %609 = vector.load %arg13[%c2_309, %c0_310, %c0_311] : memref<3x128x128xbf16, #tpu.memory_space<vmem>>, vector<1x128x128xbf16>
    %610 = vector.shape_cast %609 : vector<1x128x128xbf16> to vector<128x128xbf16>
    %611 = arith.truncf %608 : vector<32x128xf32> to vector<32x128xbf16>
    %cst_312 = arith.constant dense<0.000000e+00> : vector<32x128xf32>
    %612 = tpu.matmul %611, %610, %cst_312 {dimension_numbers = #tpu.dot_dimension_numbers<[1], [0], [0], [1], [0, 0, 1, 1], [], []>} : vector<32x128xbf16>, vector<128x128xbf16>, vector<32x128xf32> -> vector<32x128xf32>
    %613 = arith.addf %606, %612 : vector<32x128xf32>
    %614 = vector.broadcast %470 : vector<1x128xf32> to vector<32x128xf32>
    %615 = arith.addf %613, %614 : vector<32x128xf32>
    %cst_313 = arith.constant dense<0.000000e+00> : vector<128xf32>
    %616 = vector.multi_reduction <add>, %615, %cst_313 [0] : vector<32x128xf32> to vector<128xf32>
    %617 = vector.shape_cast %616 : vector<128xf32> to vector<1x128xf32>
    %618 = arith.mulf %615, %615 : vector<32x128xf32>
    %cst_314 = arith.constant dense<0.000000e+00> : vector<128xf32>
    %619 = vector.multi_reduction <add>, %618, %cst_314 [0] : vector<32x128xf32> to vector<128xf32>
    %620 = vector.shape_cast %619 : vector<128xf32> to vector<1x128xf32>
    %cst_315 = arith.constant 0.000000e+00 : f32
    %621 = vector.broadcast %cst_315 : f32 to vector<6x128xf32>
    %622 = tpu.concatenate %617, %620, %621 in 0 : vector<1x128xf32>, vector<1x128xf32>, vector<6x128xf32> -> vector<8x128xf32>
    %c8_i32_316 = arith.constant 8 : i32
    %623 = tpu.dynamic_rotate %622 by %c8_i32_316 dim 1 : vector<8x128xf32>, i32 -> vector<8x128xf32>
    %624 = arith.addf %622, %623 : vector<8x128xf32>
    %c16_i32_317 = arith.constant 16 : i32
    %625 = tpu.dynamic_rotate %624 by %c16_i32_317 dim 1 : vector<8x128xf32>, i32 -> vector<8x128xf32>
    %626 = arith.addf %624, %625 : vector<8x128xf32>
    %c32_i32_318 = arith.constant 32 : i32
    %627 = tpu.dynamic_rotate %626 by %c32_i32_318 dim 1 : vector<8x128xf32>, i32 -> vector<8x128xf32>
    %628 = arith.addf %626, %627 : vector<8x128xf32>
    %c64_i32_319 = arith.constant 64 : i32
    %629 = tpu.dynamic_rotate %628 by %c64_i32_319 dim 1 : vector<8x128xf32>, i32 -> vector<8x128xf32>
    %630 = arith.addf %628, %629 : vector<8x128xf32>
    %631 = vector.extract_strided_slice %630 {offsets = [0, 0], sizes = [1, 128], strides = [1, 1]} : vector<8x128xf32> to vector<1x128xf32>
    %cst_320 = arith.constant 0.001953125 : f32
    %632 = vector.broadcast %cst_320 : f32 to vector<1x128xf32>
    %633 = arith.mulf %631, %632 : vector<1x128xf32>
    %634 = vector.extract_strided_slice %630 {offsets = [1, 0], sizes = [1, 128], strides = [1, 1]} : vector<8x128xf32> to vector<1x128xf32>
    %cst_321 = arith.constant 0.001953125 : f32
    %635 = vector.broadcast %cst_321 : f32 to vector<1x128xf32>
    %636 = arith.mulf %634, %635 : vector<1x128xf32>
    %637 = arith.mulf %633, %633 : vector<1x128xf32>
    %638 = arith.subf %636, %637 : vector<1x128xf32>
    %cst_322 = arith.constant 9.99999974E-6 : f32
    %639 = vector.broadcast %cst_322 : f32 to vector<1x128xf32>
    %640 = arith.addf %638, %639 : vector<1x128xf32>
    %641 = math.rsqrt %640 : vector<1x128xf32>
    %642 = arith.mulf %471, %641 : vector<1x128xf32>
    %643 = vector.broadcast %642 : vector<1x128xf32> to vector<32x128xf32>
    %644 = arith.mulf %615, %643 : vector<32x128xf32>
    %645 = arith.mulf %633, %642 : vector<1x128xf32>
    %646 = arith.subf %472, %645 : vector<1x128xf32>
    %647 = vector.broadcast %646 : vector<1x128xf32> to vector<32x128xf32>
    %648 = arith.addf %644, %647 : vector<32x128xf32>
    %cst_323 = arith.constant 0.000000e+00 : f32
    %649 = vector.broadcast %cst_323 : f32 to vector<32x128xf32>
    %650 = arith.maximumf %648, %649 : vector<32x128xf32>
    %651 = vector.shape_cast %650 : vector<32x128xf32> to vector<2x16x128xf32>
    %c0_324 = arith.constant 0 : index
    %c1_325 = arith.constant 1 : index
    %c0_326 = arith.constant 0 : index
    %652 = vector.load %arg21[%c0_324, %c1_325, %c0_326] : memref<2x18x128xf32, #tpu.memory_space<vmem>>, vector<2x16x128xf32>
    tpu.vector_store %arg21[%c0_324, %c1_325, %c0_326], %651 {strides = array<i32>} : memref<2x18x128xf32, #tpu.memory_space<vmem>>, vector<2x16x128xf32>,
    %c0_327 = arith.constant 0 : index
    %c0_328 = arith.constant 0 : index
    %c0_329 = arith.constant 0 : index
    %653 = vector.load %arg21[%c0_327, %c0_328, %c0_329] : memref<2x18x128xf32, #tpu.memory_space<vmem>>, vector<2x16x128xf32>
    %654 = vector.shape_cast %653 : vector<2x16x128xf32> to vector<32x128xf32>
    %c0_330 = arith.constant 0 : index
    %c0_331 = arith.constant 0 : index
    %c0_332 = arith.constant 0 : index
    %655 = vector.load %arg13[%c0_330, %c0_331, %c0_332] : memref<3x128x128xbf16, #tpu.memory_space<vmem>>, vector<1x128x128xbf16>
    %656 = vector.shape_cast %655 : vector<1x128x128xbf16> to vector<128x128xbf16>
    %657 = arith.truncf %654 : vector<32x128xf32> to vector<32x128xbf16>
    %cst_333 = arith.constant dense<0.000000e+00> : vector<32x128xf32>
    %658 = tpu.matmul %657, %656, %cst_333 {dimension_numbers = #tpu.dot_dimension_numbers<[1], [0], [0], [1], [0, 0, 1, 1], [], []>} : vector<32x128xbf16>, vector<128x128xbf16>, vector<32x128xf32> -> vector<32x128xf32>
    %c0_334 = arith.constant 0 : index
    %c1_335 = arith.constant 1 : index
    %c0_336 = arith.constant 0 : index
    %659 = vector.load %arg21[%c0_334, %c1_335, %c0_336] : memref<2x18x128xf32, #tpu.memory_space<vmem>>, vector<2x16x128xf32>
    %660 = vector.shape_cast %659 : vector<2x16x128xf32> to vector<32x128xf32>
    %c1_337 = arith.constant 1 : index
    %c0_338 = arith.constant 0 : index
    %c0_339 = arith.constant 0 : index
    %661 = vector.load %arg13[%c1_337, %c0_338, %c0_339] : memref<3x128x128xbf16, #tpu.memory_space<vmem>>, vector<1x128x128xbf16>
    %662 = vector.shape_cast %661 : vector<1x128x128xbf16> to vector<128x128xbf16>
    %663 = arith.truncf %660 : vector<32x128xf32> to vector<32x128xbf16>
    %cst_340 = arith.constant dense<0.000000e+00> : vector<32x128xf32>
    %664 = tpu.matmul %663, %662, %cst_340 {dimension_numbers = #tpu.dot_dimension_numbers<[1], [0], [0], [1], [0, 0, 1, 1], [], []>} : vector<32x128xbf16>, vector<128x128xbf16>, vector<32x128xf32> -> vector<32x128xf32>
    %665 = arith.addf %658, %664 : vector<32x128xf32>
    %c0_341 = arith.constant 0 : index
    %c2_342 = arith.constant 2 : index
    %c0_343 = arith.constant 0 : index
    %666 = vector.load %arg21[%c0_341, %c2_342, %c0_343] : memref<2x18x128xf32, #tpu.memory_space<vmem>>, vector<2x16x128xf32>
    %667 = vector.shape_cast %666 : vector<2x16x128xf32> to vector<32x128xf32>
    %c2_344 = arith.constant 2 : index
    %c0_345 = arith.constant 0 : index
    %c0_346 = arith.constant 0 : index
    %668 = vector.load %arg13[%c2_344, %c0_345, %c0_346] : memref<3x128x128xbf16, #tpu.memory_space<vmem>>, vector<1x128x128xbf16>
    %669 = vector.shape_cast %668 : vector<1x128x128xbf16> to vector<128x128xbf16>
    %670 = arith.truncf %667 : vector<32x128xf32> to vector<32x128xbf16>
    %cst_347 = arith.constant dense<0.000000e+00> : vector<32x128xf32>
    %671 = tpu.matmul %670, %669, %cst_347 {dimension_numbers = #tpu.dot_dimension_numbers<[1], [0], [0], [1], [0, 0, 1, 1], [], []>} : vector<32x128xbf16>, vector<128x128xbf16>, vector<32x128xf32> -> vector<32x128xf32>
    %672 = arith.addf %665, %671 : vector<32x128xf32>
    %673 = vector.broadcast %470 : vector<1x128xf32> to vector<32x128xf32>
    %674 = arith.addf %672, %673 : vector<32x128xf32>
    %cst_348 = arith.constant dense<0.000000e+00> : vector<128xf32>
    %675 = vector.multi_reduction <add>, %674, %cst_348 [0] : vector<32x128xf32> to vector<128xf32>
    %676 = vector.shape_cast %675 : vector<128xf32> to vector<1x128xf32>
    %677 = arith.mulf %674, %674 : vector<32x128xf32>
    %cst_349 = arith.constant dense<0.000000e+00> : vector<128xf32>
    %678 = vector.multi_reduction <add>, %677, %cst_349 [0] : vector<32x128xf32> to vector<128xf32>
    %679 = vector.shape_cast %678 : vector<128xf32> to vector<1x128xf32>
    %cst_350 = arith.constant 0.000000e+00 : f32
    %680 = vector.broadcast %cst_350 : f32 to vector<6x128xf32>
    %681 = tpu.concatenate %676, %679, %680 in 0 : vector<1x128xf32>, vector<1x128xf32>, vector<6x128xf32> -> vector<8x128xf32>
    %c8_i32_351 = arith.constant 8 : i32
    %682 = tpu.dynamic_rotate %681 by %c8_i32_351 dim 1 : vector<8x128xf32>, i32 -> vector<8x128xf32>
    %683 = arith.addf %681, %682 : vector<8x128xf32>
    %c16_i32_352 = arith.constant 16 : i32
    %684 = tpu.dynamic_rotate %683 by %c16_i32_352 dim 1 : vector<8x128xf32>, i32 -> vector<8x128xf32>
    %685 = arith.addf %683, %684 : vector<8x128xf32>
    %c32_i32_353 = arith.constant 32 : i32
    %686 = tpu.dynamic_rotate %685 by %c32_i32_353 dim 1 : vector<8x128xf32>, i32 -> vector<8x128xf32>
    %687 = arith.addf %685, %686 : vector<8x128xf32>
    %c64_i32_354 = arith.constant 64 : i32
    %688 = tpu.dynamic_rotate %687 by %c64_i32_354 dim 1 : vector<8x128xf32>, i32 -> vector<8x128xf32>
    %689 = arith.addf %687, %688 : vector<8x128xf32>
    %690 = vector.extract_strided_slice %689 {offsets = [0, 0], sizes = [1, 128], strides = [1, 1]} : vector<8x128xf32> to vector<1x128xf32>
    %cst_355 = arith.constant 0.001953125 : f32
    %691 = vector.broadcast %cst_355 : f32 to vector<1x128xf32>
    %692 = arith.mulf %690, %691 : vector<1x128xf32>
    %693 = vector.extract_strided_slice %689 {offsets = [1, 0], sizes = [1, 128], strides = [1, 1]} : vector<8x128xf32> to vector<1x128xf32>
    %cst_356 = arith.constant 0.001953125 : f32
    %694 = vector.broadcast %cst_356 : f32 to vector<1x128xf32>
    %695 = arith.mulf %693, %694 : vector<1x128xf32>
    %696 = arith.mulf %692, %692 : vector<1x128xf32>
    %697 = arith.subf %695, %696 : vector<1x128xf32>
    %cst_357 = arith.constant 9.99999974E-6 : f32
    %698 = vector.broadcast %cst_357 : f32 to vector<1x128xf32>
    %699 = arith.addf %697, %698 : vector<1x128xf32>
    %700 = math.rsqrt %699 : vector<1x128xf32>
    %701 = arith.mulf %471, %700 : vector<1x128xf32>
    %702 = vector.broadcast %701 : vector<1x128xf32> to vector<32x128xf32>
    %703 = arith.mulf %674, %702 : vector<32x128xf32>
    %704 = arith.mulf %692, %701 : vector<1x128xf32>
    %705 = arith.subf %472, %704 : vector<1x128xf32>
    %706 = vector.broadcast %705 : vector<1x128xf32> to vector<32x128xf32>
    %707 = arith.addf %703, %706 : vector<32x128xf32>
    %708 = arith.addf %707, %591 : vector<32x128xf32>
    %cst_358 = arith.constant 0.000000e+00 : f32
    %709 = vector.broadcast %cst_358 : f32 to vector<32x128xf32>
    %710 = arith.maximumf %708, %709 : vector<32x128xf32>
    %711 = vector.shape_cast %710 : vector<32x128xf32> to vector<2x16x128xf32>
    %c0_359 = arith.constant 0 : index
    %c1_360 = arith.constant 1 : index
    %c0_361 = arith.constant 0 : index
    %712 = vector.load %arg21[%c0_359, %c1_360, %c0_361] : memref<2x18x128xf32, #tpu.memory_space<vmem>>, vector<2x16x128xf32>
    tpu.vector_store %arg21[%c0_359, %c1_360, %c0_361], %711 {strides = array<i32>} : memref<2x18x128xf32, #tpu.memory_space<vmem>>, vector<2x16x128xf32>,
    %c0_362 = arith.constant 0 : index
    %c0_363 = arith.constant 0 : index
    %c0_364 = arith.constant 0 : index
    %713 = vector.load %arg21[%c0_362, %c0_363, %c0_364] : memref<2x18x128xf32, #tpu.memory_space<vmem>>, vector<2x16x128xf32>
    %714 = vector.shape_cast %713 : vector<2x16x128xf32> to vector<32x128xf32>
    %c0_365 = arith.constant 0 : index
    %c0_366 = arith.constant 0 : index
    %c0_367 = arith.constant 0 : index
    %715 = vector.load %arg13[%c0_365, %c0_366, %c0_367] : memref<3x128x128xbf16, #tpu.memory_space<vmem>>, vector<1x128x128xbf16>
    %716 = vector.shape_cast %715 : vector<1x128x128xbf16> to vector<128x128xbf16>
    %717 = arith.truncf %714 : vector<32x128xf32> to vector<32x128xbf16>
    %cst_368 = arith.constant dense<0.000000e+00> : vector<32x128xf32>
    %718 = tpu.matmul %717, %716, %cst_368 {dimension_numbers = #tpu.dot_dimension_numbers<[1], [0], [0], [1], [0, 0, 1, 1], [], []>} : vector<32x128xbf16>, vector<128x128xbf16>, vector<32x128xf32> -> vector<32x128xf32>
    %c0_369 = arith.constant 0 : index
    %c1_370 = arith.constant 1 : index
    %c0_371 = arith.constant 0 : index
    %719 = vector.load %arg21[%c0_369, %c1_370, %c0_371] : memref<2x18x128xf32, #tpu.memory_space<vmem>>, vector<2x16x128xf32>
    %720 = vector.shape_cast %719 : vector<2x16x128xf32> to vector<32x128xf32>
    %c1_372 = arith.constant 1 : index
    %c0_373 = arith.constant 0 : index
    %c0_374 = arith.constant 0 : index
    %721 = vector.load %arg13[%c1_372, %c0_373, %c0_374] : memref<3x128x128xbf16, #tpu.memory_space<vmem>>, vector<1x128x128xbf16>
    %722 = vector.shape_cast %721 : vector<1x128x128xbf16> to vector<128x128xbf16>
    %723 = arith.truncf %720 : vector<32x128xf32> to vector<32x128xbf16>
    %cst_375 = arith.constant dense<0.000000e+00> : vector<32x128xf32>
    %724 = tpu.matmul %723, %722, %cst_375 {dimension_numbers = #tpu.dot_dimension_numbers<[1], [0], [0], [1], [0, 0, 1, 1], [], []>} : vector<32x128xbf16>, vector<128x128xbf16>, vector<32x128xf32> -> vector<32x128xf32>
    %725 = arith.addf %718, %724 : vector<32x128xf32>
    %c0_376 = arith.constant 0 : index
    %c2_377 = arith.constant 2 : index
    %c0_378 = arith.constant 0 : index
    %726 = vector.load %arg21[%c0_376, %c2_377, %c0_378] : memref<2x18x128xf32, #tpu.memory_space<vmem>>, vector<2x16x128xf32>
    %727 = vector.shape_cast %726 : vector<2x16x128xf32> to vector<32x128xf32>
    %c2_379 = arith.constant 2 : index
    %c0_380 = arith.constant 0 : index
    %c0_381 = arith.constant 0 : index
    %728 = vector.load %arg13[%c2_379, %c0_380, %c0_381] : memref<3x128x128xbf16, #tpu.memory_space<vmem>>, vector<1x128x128xbf16>
    %729 = vector.shape_cast %728 : vector<1x128x128xbf16> to vector<128x128xbf16>
    %730 = arith.truncf %727 : vector<32x128xf32> to vector<32x128xbf16>
    %cst_382 = arith.constant dense<0.000000e+00> : vector<32x128xf32>
    %731 = tpu.matmul %730, %729, %cst_382 {dimension_numbers = #tpu.dot_dimension_numbers<[1], [0], [0], [1], [0, 0, 1, 1], [], []>} : vector<32x128xbf16>, vector<128x128xbf16>, vector<32x128xf32> -> vector<32x128xf32>
    %732 = arith.addf %725, %731 : vector<32x128xf32>
    %733 = vector.broadcast %470 : vector<1x128xf32> to vector<32x128xf32>
    %734 = arith.addf %732, %733 : vector<32x128xf32>
    %cst_383 = arith.constant dense<0.000000e+00> : vector<128xf32>
    %735 = vector.multi_reduction <add>, %734, %cst_383 [0] : vector<32x128xf32> to vector<128xf32>
    %736 = vector.shape_cast %735 : vector<128xf32> to vector<1x128xf32>
    %737 = arith.mulf %734, %734 : vector<32x128xf32>
    %cst_384 = arith.constant dense<0.000000e+00> : vector<128xf32>
    %738 = vector.multi_reduction <add>, %737, %cst_384 [0] : vector<32x128xf32> to vector<128xf32>
    %739 = vector.shape_cast %738 : vector<128xf32> to vector<1x128xf32>
    %cst_385 = arith.constant 0.000000e+00 : f32
    %740 = vector.broadcast %cst_385 : f32 to vector<6x128xf32>
    %741 = tpu.concatenate %736, %739, %740 in 0 : vector<1x128xf32>, vector<1x128xf32>, vector<6x128xf32> -> vector<8x128xf32>
    %c8_i32_386 = arith.constant 8 : i32
    %742 = tpu.dynamic_rotate %741 by %c8_i32_386 dim 1 : vector<8x128xf32>, i32 -> vector<8x128xf32>
    %743 = arith.addf %741, %742 : vector<8x128xf32>
    %c16_i32_387 = arith.constant 16 : i32
    %744 = tpu.dynamic_rotate %743 by %c16_i32_387 dim 1 : vector<8x128xf32>, i32 -> vector<8x128xf32>
    %745 = arith.addf %743, %744 : vector<8x128xf32>
    %c32_i32_388 = arith.constant 32 : i32
    %746 = tpu.dynamic_rotate %745 by %c32_i32_388 dim 1 : vector<8x128xf32>, i32 -> vector<8x128xf32>
    %747 = arith.addf %745, %746 : vector<8x128xf32>
    %c64_i32_389 = arith.constant 64 : i32
    %748 = tpu.dynamic_rotate %747 by %c64_i32_389 dim 1 : vector<8x128xf32>, i32 -> vector<8x128xf32>
    %749 = arith.addf %747, %748 : vector<8x128xf32>
    %750 = vector.extract_strided_slice %749 {offsets = [0, 0], sizes = [1, 128], strides = [1, 1]} : vector<8x128xf32> to vector<1x128xf32>
    %cst_390 = arith.constant 0.001953125 : f32
    %751 = vector.broadcast %cst_390 : f32 to vector<1x128xf32>
    %752 = arith.mulf %750, %751 : vector<1x128xf32>
    %753 = vector.extract_strided_slice %749 {offsets = [1, 0], sizes = [1, 128], strides = [1, 1]} : vector<8x128xf32> to vector<1x128xf32>
    %cst_391 = arith.constant 0.001953125 : f32
    %754 = vector.broadcast %cst_391 : f32 to vector<1x128xf32>
    %755 = arith.mulf %753, %754 : vector<1x128xf32>
    %756 = arith.mulf %752, %752 : vector<1x128xf32>
    %757 = arith.subf %755, %756 : vector<1x128xf32>
    %cst_392 = arith.constant 9.99999974E-6 : f32
    %758 = vector.broadcast %cst_392 : f32 to vector<1x128xf32>
    %759 = arith.addf %757, %758 : vector<1x128xf32>
    %760 = math.rsqrt %759 : vector<1x128xf32>
    %761 = arith.mulf %471, %760 : vector<1x128xf32>
    %762 = vector.broadcast %761 : vector<1x128xf32> to vector<32x128xf32>
    %763 = arith.mulf %734, %762 : vector<32x128xf32>
    %764 = arith.mulf %752, %761 : vector<1x128xf32>
    %765 = arith.subf %472, %764 : vector<1x128xf32>
    %766 = vector.broadcast %765 : vector<1x128xf32> to vector<32x128xf32>
    %767 = arith.addf %763, %766 : vector<32x128xf32>
    %cst_393 = arith.constant 0.000000e+00 : f32
    %768 = vector.broadcast %cst_393 : f32 to vector<32x128xf32>
    %769 = arith.maximumf %767, %768 : vector<32x128xf32>
    %770 = vector.shape_cast %769 : vector<32x128xf32> to vector<2x16x128xf32>
    %c0_394 = arith.constant 0 : index
    %c1_395 = arith.constant 1 : index
    %c0_396 = arith.constant 0 : index
    %771 = vector.load %arg21[%c0_394, %c1_395, %c0_396] : memref<2x18x128xf32, #tpu.memory_space<vmem>>, vector<2x16x128xf32>
    tpu.vector_store %arg21[%c0_394, %c1_395, %c0_396], %770 {strides = array<i32>} : memref<2x18x128xf32, #tpu.memory_space<vmem>>, vector<2x16x128xf32>,
    %c0_397 = arith.constant 0 : index
    %c0_398 = arith.constant 0 : index
    %c0_399 = arith.constant 0 : index
    %772 = vector.load %arg21[%c0_397, %c0_398, %c0_399] : memref<2x18x128xf32, #tpu.memory_space<vmem>>, vector<2x16x128xf32>
    %773 = vector.shape_cast %772 : vector<2x16x128xf32> to vector<32x128xf32>
    %c0_400 = arith.constant 0 : index
    %c0_401 = arith.constant 0 : index
    %c0_402 = arith.constant 0 : index
    %774 = vector.load %arg13[%c0_400, %c0_401, %c0_402] : memref<3x128x128xbf16, #tpu.memory_space<vmem>>, vector<1x128x128xbf16>
    %775 = vector.shape_cast %774 : vector<1x128x128xbf16> to vector<128x128xbf16>
    %776 = arith.truncf %773 : vector<32x128xf32> to vector<32x128xbf16>
    %cst_403 = arith.constant dense<0.000000e+00> : vector<32x128xf32>
    %777 = tpu.matmul %776, %775, %cst_403 {dimension_numbers = #tpu.dot_dimension_numbers<[1], [0], [0], [1], [0, 0, 1, 1], [], []>} : vector<32x128xbf16>, vector<128x128xbf16>, vector<32x128xf32> -> vector<32x128xf32>
    %c0_404 = arith.constant 0 : index
    %c1_405 = arith.constant 1 : index
    %c0_406 = arith.constant 0 : index
    %778 = vector.load %arg21[%c0_404, %c1_405, %c0_406] : memref<2x18x128xf32, #tpu.memory_space<vmem>>, vector<2x16x128xf32>
    %779 = vector.shape_cast %778 : vector<2x16x128xf32> to vector<32x128xf32>
    %c1_407 = arith.constant 1 : index
    %c0_408 = arith.constant 0 : index
    %c0_409 = arith.constant 0 : index
    %780 = vector.load %arg13[%c1_407, %c0_408, %c0_409] : memref<3x128x128xbf16, #tpu.memory_space<vmem>>, vector<1x128x128xbf16>
    %781 = vector.shape_cast %780 : vector<1x128x128xbf16> to vector<128x128xbf16>
    %782 = arith.truncf %779 : vector<32x128xf32> to vector<32x128xbf16>
    %cst_410 = arith.constant dense<0.000000e+00> : vector<32x128xf32>
    %783 = tpu.matmul %782, %781, %cst_410 {dimension_numbers = #tpu.dot_dimension_numbers<[1], [0], [0], [1], [0, 0, 1, 1], [], []>} : vector<32x128xbf16>, vector<128x128xbf16>, vector<32x128xf32> -> vector<32x128xf32>
    %784 = arith.addf %777, %783 : vector<32x128xf32>
    %c0_411 = arith.constant 0 : index
    %c2_412 = arith.constant 2 : index
    %c0_413 = arith.constant 0 : index
    %785 = vector.load %arg21[%c0_411, %c2_412, %c0_413] : memref<2x18x128xf32, #tpu.memory_space<vmem>>, vector<2x16x128xf32>
    %786 = vector.shape_cast %785 : vector<2x16x128xf32> to vector<32x128xf32>
    %c2_414 = arith.constant 2 : index
    %c0_415 = arith.constant 0 : index
    %c0_416 = arith.constant 0 : index
    %787 = vector.load %arg13[%c2_414, %c0_415, %c0_416] : memref<3x128x128xbf16, #tpu.memory_space<vmem>>, vector<1x128x128xbf16>
    %788 = vector.shape_cast %787 : vector<1x128x128xbf16> to vector<128x128xbf16>
    %789 = arith.truncf %786 : vector<32x128xf32> to vector<32x128xbf16>
    %cst_417 = arith.constant dense<0.000000e+00> : vector<32x128xf32>
    %790 = tpu.matmul %789, %788, %cst_417 {dimension_numbers = #tpu.dot_dimension_numbers<[1], [0], [0], [1], [0, 0, 1, 1], [], []>} : vector<32x128xbf16>, vector<128x128xbf16>, vector<32x128xf32> -> vector<32x128xf32>
    %791 = arith.addf %784, %790 : vector<32x128xf32>
    %792 = vector.broadcast %470 : vector<1x128xf32> to vector<32x128xf32>
    %793 = arith.addf %791, %792 : vector<32x128xf32>
    %cst_418 = arith.constant dense<0.000000e+00> : vector<128xf32>
    %794 = vector.multi_reduction <add>, %793, %cst_418 [0] : vector<32x128xf32> to vector<128xf32>
    %795 = vector.shape_cast %794 : vector<128xf32> to vector<1x128xf32>
    %796 = arith.mulf %793, %793 : vector<32x128xf32>
    %cst_419 = arith.constant dense<0.000000e+00> : vector<128xf32>
    %797 = vector.multi_reduction <add>, %796, %cst_419 [0] : vector<32x128xf32> to vector<128xf32>
    %798 = vector.shape_cast %797 : vector<128xf32> to vector<1x128xf32>
    %cst_420 = arith.constant 0.000000e+00 : f32
    %799 = vector.broadcast %cst_420 : f32 to vector<6x128xf32>
    %800 = tpu.concatenate %795, %798, %799 in 0 : vector<1x128xf32>, vector<1x128xf32>, vector<6x128xf32> -> vector<8x128xf32>
    %c8_i32_421 = arith.constant 8 : i32
    %801 = tpu.dynamic_rotate %800 by %c8_i32_421 dim 1 : vector<8x128xf32>, i32 -> vector<8x128xf32>
    %802 = arith.addf %800, %801 : vector<8x128xf32>
    %c16_i32_422 = arith.constant 16 : i32
    %803 = tpu.dynamic_rotate %802 by %c16_i32_422 dim 1 : vector<8x128xf32>, i32 -> vector<8x128xf32>
    %804 = arith.addf %802, %803 : vector<8x128xf32>
    %c32_i32_423 = arith.constant 32 : i32
    %805 = tpu.dynamic_rotate %804 by %c32_i32_423 dim 1 : vector<8x128xf32>, i32 -> vector<8x128xf32>
    %806 = arith.addf %804, %805 : vector<8x128xf32>
    %c64_i32_424 = arith.constant 64 : i32
    %807 = tpu.dynamic_rotate %806 by %c64_i32_424 dim 1 : vector<8x128xf32>, i32 -> vector<8x128xf32>
    %808 = arith.addf %806, %807 : vector<8x128xf32>
    %809 = vector.extract_strided_slice %808 {offsets = [0, 0], sizes = [1, 128], strides = [1, 1]} : vector<8x128xf32> to vector<1x128xf32>
    %cst_425 = arith.constant 0.001953125 : f32
    %810 = vector.broadcast %cst_425 : f32 to vector<1x128xf32>
    %811 = arith.mulf %809, %810 : vector<1x128xf32>
    %812 = vector.extract_strided_slice %808 {offsets = [1, 0], sizes = [1, 128], strides = [1, 1]} : vector<8x128xf32> to vector<1x128xf32>
    %cst_426 = arith.constant 0.001953125 : f32
    %813 = vector.broadcast %cst_426 : f32 to vector<1x128xf32>
    %814 = arith.mulf %812, %813 : vector<1x128xf32>
    %815 = arith.mulf %811, %811 : vector<1x128xf32>
    %816 = arith.subf %814, %815 : vector<1x128xf32>
    %cst_427 = arith.constant 9.99999974E-6 : f32
    %817 = vector.broadcast %cst_427 : f32 to vector<1x128xf32>
    %818 = arith.addf %816, %817 : vector<1x128xf32>
    %819 = math.rsqrt %818 : vector<1x128xf32>
    %820 = arith.mulf %471, %819 : vector<1x128xf32>
    %821 = vector.broadcast %820 : vector<1x128xf32> to vector<32x128xf32>
    %822 = arith.mulf %793, %821 : vector<32x128xf32>
    %823 = arith.mulf %811, %820 : vector<1x128xf32>
    %824 = arith.subf %472, %823 : vector<1x128xf32>
    %825 = vector.broadcast %824 : vector<1x128xf32> to vector<32x128xf32>
    %826 = arith.addf %822, %825 : vector<32x128xf32>
    %827 = arith.addf %826, %710 : vector<32x128xf32>
    %cst_428 = arith.constant 0.000000e+00 : f32
    %828 = vector.broadcast %cst_428 : f32 to vector<32x128xf32>
    %829 = arith.maximumf %827, %828 : vector<32x128xf32>
    %830 = vector.shape_cast %829 : vector<32x128xf32> to vector<2x16x128xf32>
    %c0_429 = arith.constant 0 : index
    %c1_430 = arith.constant 1 : index
    %c0_431 = arith.constant 0 : index
    %831 = vector.load %arg21[%c0_429, %c1_430, %c0_431] : memref<2x18x128xf32, #tpu.memory_space<vmem>>, vector<2x16x128xf32>
    tpu.vector_store %arg21[%c0_429, %c1_430, %c0_431], %830 {strides = array<i32>} : memref<2x18x128xf32, #tpu.memory_space<vmem>>, vector<2x16x128xf32>,
    %c0_432 = arith.constant 0 : index
    %c0_433 = arith.constant 0 : index
    %c0_434 = arith.constant 0 : index
    %832 = vector.load %arg21[%c0_432, %c0_433, %c0_434] : memref<2x18x128xf32, #tpu.memory_space<vmem>>, vector<2x16x128xf32>
    %833 = vector.shape_cast %832 : vector<2x16x128xf32> to vector<32x128xf32>
    %c0_435 = arith.constant 0 : index
    %c0_436 = arith.constant 0 : index
    %c0_437 = arith.constant 0 : index
    %834 = vector.load %arg13[%c0_435, %c0_436, %c0_437] : memref<3x128x128xbf16, #tpu.memory_space<vmem>>, vector<1x128x128xbf16>
    %835 = vector.shape_cast %834 : vector<1x128x128xbf16> to vector<128x128xbf16>
    %836 = arith.truncf %833 : vector<32x128xf32> to vector<32x128xbf16>
    %cst_438 = arith.constant dense<0.000000e+00> : vector<32x128xf32>
    %837 = tpu.matmul %836, %835, %cst_438 {dimension_numbers = #tpu.dot_dimension_numbers<[1], [0], [0], [1], [0, 0, 1, 1], [], []>} : vector<32x128xbf16>, vector<128x128xbf16>, vector<32x128xf32> -> vector<32x128xf32>
    %c0_439 = arith.constant 0 : index
    %c1_440 = arith.constant 1 : index
    %c0_441 = arith.constant 0 : index
    %838 = vector.load %arg21[%c0_439, %c1_440, %c0_441] : memref<2x18x128xf32, #tpu.memory_space<vmem>>, vector<2x16x128xf32>
    %839 = vector.shape_cast %838 : vector<2x16x128xf32> to vector<32x128xf32>
    %c1_442 = arith.constant 1 : index
    %c0_443 = arith.constant 0 : index
    %c0_444 = arith.constant 0 : index
    %840 = vector.load %arg13[%c1_442, %c0_443, %c0_444] : memref<3x128x128xbf16, #tpu.memory_space<vmem>>, vector<1x128x128xbf16>
    %841 = vector.shape_cast %840 : vector<1x128x128xbf16> to vector<128x128xbf16>
    %842 = arith.truncf %839 : vector<32x128xf32> to vector<32x128xbf16>
    %cst_445 = arith.constant dense<0.000000e+00> : vector<32x128xf32>
    %843 = tpu.matmul %842, %841, %cst_445 {dimension_numbers = #tpu.dot_dimension_numbers<[1], [0], [0], [1], [0, 0, 1, 1], [], []>} : vector<32x128xbf16>, vector<128x128xbf16>, vector<32x128xf32> -> vector<32x128xf32>
    %844 = arith.addf %837, %843 : vector<32x128xf32>
    %c0_446 = arith.constant 0 : index
    %c2_447 = arith.constant 2 : index
    %c0_448 = arith.constant 0 : index
    %845 = vector.load %arg21[%c0_446, %c2_447, %c0_448] : memref<2x18x128xf32, #tpu.memory_space<vmem>>, vector<2x16x128xf32>
    %846 = vector.shape_cast %845 : vector<2x16x128xf32> to vector<32x128xf32>
    %c2_449 = arith.constant 2 : index
    %c0_450 = arith.constant 0 : index
    %c0_451 = arith.constant 0 : index
    %847 = vector.load %arg13[%c2_449, %c0_450, %c0_451] : memref<3x128x128xbf16, #tpu.memory_space<vmem>>, vector<1x128x128xbf16>
    %848 = vector.shape_cast %847 : vector<1x128x128xbf16> to vector<128x128xbf16>
    %849 = arith.truncf %846 : vector<32x128xf32> to vector<32x128xbf16>
    %cst_452 = arith.constant dense<0.000000e+00> : vector<32x128xf32>
    %850 = tpu.matmul %849, %848, %cst_452 {dimension_numbers = #tpu.dot_dimension_numbers<[1], [0], [0], [1], [0, 0, 1, 1], [], []>} : vector<32x128xbf16>, vector<128x128xbf16>, vector<32x128xf32> -> vector<32x128xf32>
    %851 = arith.addf %844, %850 : vector<32x128xf32>
    %852 = vector.broadcast %470 : vector<1x128xf32> to vector<32x128xf32>
    %853 = arith.addf %851, %852 : vector<32x128xf32>
    %cst_453 = arith.constant dense<0.000000e+00> : vector<128xf32>
    %854 = vector.multi_reduction <add>, %853, %cst_453 [0] : vector<32x128xf32> to vector<128xf32>
    %855 = vector.shape_cast %854 : vector<128xf32> to vector<1x128xf32>
    %856 = arith.mulf %853, %853 : vector<32x128xf32>
    %cst_454 = arith.constant dense<0.000000e+00> : vector<128xf32>
    %857 = vector.multi_reduction <add>, %856, %cst_454 [0] : vector<32x128xf32> to vector<128xf32>
    %858 = vector.shape_cast %857 : vector<128xf32> to vector<1x128xf32>
    %cst_455 = arith.constant 0.000000e+00 : f32
    %859 = vector.broadcast %cst_455 : f32 to vector<6x128xf32>
    %860 = tpu.concatenate %855, %858, %859 in 0 : vector<1x128xf32>, vector<1x128xf32>, vector<6x128xf32> -> vector<8x128xf32>
    %c8_i32_456 = arith.constant 8 : i32
    %861 = tpu.dynamic_rotate %860 by %c8_i32_456 dim 1 : vector<8x128xf32>, i32 -> vector<8x128xf32>
    %862 = arith.addf %860, %861 : vector<8x128xf32>
    %c16_i32_457 = arith.constant 16 : i32
    %863 = tpu.dynamic_rotate %862 by %c16_i32_457 dim 1 : vector<8x128xf32>, i32 -> vector<8x128xf32>
    %864 = arith.addf %862, %863 : vector<8x128xf32>
    %c32_i32_458 = arith.constant 32 : i32
    %865 = tpu.dynamic_rotate %864 by %c32_i32_458 dim 1 : vector<8x128xf32>, i32 -> vector<8x128xf32>
    %866 = arith.addf %864, %865 : vector<8x128xf32>
    %c64_i32_459 = arith.constant 64 : i32
    %867 = tpu.dynamic_rotate %866 by %c64_i32_459 dim 1 : vector<8x128xf32>, i32 -> vector<8x128xf32>
    %868 = arith.addf %866, %867 : vector<8x128xf32>
    %869 = vector.extract_strided_slice %868 {offsets = [0, 0], sizes = [1, 128], strides = [1, 1]} : vector<8x128xf32> to vector<1x128xf32>
    %cst_460 = arith.constant 0.001953125 : f32
    %870 = vector.broadcast %cst_460 : f32 to vector<1x128xf32>
    %871 = arith.mulf %869, %870 : vector<1x128xf32>
    %872 = vector.extract_strided_slice %868 {offsets = [1, 0], sizes = [1, 128], strides = [1, 1]} : vector<8x128xf32> to vector<1x128xf32>
    %cst_461 = arith.constant 0.001953125 : f32
    %873 = vector.broadcast %cst_461 : f32 to vector<1x128xf32>
    %874 = arith.mulf %872, %873 : vector<1x128xf32>
    %875 = arith.mulf %871, %871 : vector<1x128xf32>
    %876 = arith.subf %874, %875 : vector<1x128xf32>
    %cst_462 = arith.constant 9.99999974E-6 : f32
    %877 = vector.broadcast %cst_462 : f32 to vector<1x128xf32>
    %878 = arith.addf %876, %877 : vector<1x128xf32>
    %879 = math.rsqrt %878 : vector<1x128xf32>
    %880 = arith.mulf %471, %879 : vector<1x128xf32>
    %881 = vector.broadcast %880 : vector<1x128xf32> to vector<32x128xf32>
    %882 = arith.mulf %853, %881 : vector<32x128xf32>
    %883 = arith.mulf %871, %880 : vector<1x128xf32>
    %884 = arith.subf %472, %883 : vector<1x128xf32>
    %885 = vector.broadcast %884 : vector<1x128xf32> to vector<32x128xf32>
    %886 = arith.addf %882, %885 : vector<32x128xf32>
    %cst_463 = arith.constant 0.000000e+00 : f32
    %887 = vector.broadcast %cst_463 : f32 to vector<32x128xf32>
    %888 = arith.maximumf %886, %887 : vector<32x128xf32>
    %889 = vector.shape_cast %888 : vector<32x128xf32> to vector<2x16x128xf32>
    %c0_464 = arith.constant 0 : index
    %c1_465 = arith.constant 1 : index
    %c0_466 = arith.constant 0 : index
    %890 = vector.load %arg21[%c0_464, %c1_465, %c0_466] : memref<2x18x128xf32, #tpu.memory_space<vmem>>, vector<2x16x128xf32>
    tpu.vector_store %arg21[%c0_464, %c1_465, %c0_466], %889 {strides = array<i32>} : memref<2x18x128xf32, #tpu.memory_space<vmem>>, vector<2x16x128xf32>,
    %c0_467 = arith.constant 0 : index
    %c0_468 = arith.constant 0 : index
    %c0_469 = arith.constant 0 : index
    %891 = vector.load %arg21[%c0_467, %c0_468, %c0_469] : memref<2x18x128xf32, #tpu.memory_space<vmem>>, vector<2x16x128xf32>
    %892 = vector.shape_cast %891 : vector<2x16x128xf32> to vector<32x128xf32>
    %c0_470 = arith.constant 0 : index
    %c0_471 = arith.constant 0 : index
    %c0_472 = arith.constant 0 : index
    %893 = vector.load %arg13[%c0_470, %c0_471, %c0_472] : memref<3x128x128xbf16, #tpu.memory_space<vmem>>, vector<1x128x128xbf16>
    %894 = vector.shape_cast %893 : vector<1x128x128xbf16> to vector<128x128xbf16>
    %895 = arith.truncf %892 : vector<32x128xf32> to vector<32x128xbf16>
    %cst_473 = arith.constant dense<0.000000e+00> : vector<32x128xf32>
    %896 = tpu.matmul %895, %894, %cst_473 {dimension_numbers = #tpu.dot_dimension_numbers<[1], [0], [0], [1], [0, 0, 1, 1], [], []>} : vector<32x128xbf16>, vector<128x128xbf16>, vector<32x128xf32> -> vector<32x128xf32>
    %c0_474 = arith.constant 0 : index
    %c1_475 = arith.constant 1 : index
    %c0_476 = arith.constant 0 : index
    %897 = vector.load %arg21[%c0_474, %c1_475, %c0_476] : memref<2x18x128xf32, #tpu.memory_space<vmem>>, vector<2x16x128xf32>
    %898 = vector.shape_cast %897 : vector<2x16x128xf32> to vector<32x128xf32>
    %c1_477 = arith.constant 1 : index
    %c0_478 = arith.constant 0 : index
    %c0_479 = arith.constant 0 : index
    %899 = vector.load %arg13[%c1_477, %c0_478, %c0_479] : memref<3x128x128xbf16, #tpu.memory_space<vmem>>, vector<1x128x128xbf16>
    %900 = vector.shape_cast %899 : vector<1x128x128xbf16> to vector<128x128xbf16>
    %901 = arith.truncf %898 : vector<32x128xf32> to vector<32x128xbf16>
    %cst_480 = arith.constant dense<0.000000e+00> : vector<32x128xf32>
    %902 = tpu.matmul %901, %900, %cst_480 {dimension_numbers = #tpu.dot_dimension_numbers<[1], [0], [0], [1], [0, 0, 1, 1], [], []>} : vector<32x128xbf16>, vector<128x128xbf16>, vector<32x128xf32> -> vector<32x128xf32>
    %903 = arith.addf %896, %902 : vector<32x128xf32>
    %c0_481 = arith.constant 0 : index
    %c2_482 = arith.constant 2 : index
    %c0_483 = arith.constant 0 : index
    %904 = vector.load %arg21[%c0_481, %c2_482, %c0_483] : memref<2x18x128xf32, #tpu.memory_space<vmem>>, vector<2x16x128xf32>
    %905 = vector.shape_cast %904 : vector<2x16x128xf32> to vector<32x128xf32>
    %c2_484 = arith.constant 2 : index
    %c0_485 = arith.constant 0 : index
    %c0_486 = arith.constant 0 : index
    %906 = vector.load %arg13[%c2_484, %c0_485, %c0_486] : memref<3x128x128xbf16, #tpu.memory_space<vmem>>, vector<1x128x128xbf16>
    %907 = vector.shape_cast %906 : vector<1x128x128xbf16> to vector<128x128xbf16>
    %908 = arith.truncf %905 : vector<32x128xf32> to vector<32x128xbf16>
    %cst_487 = arith.constant dense<0.000000e+00> : vector<32x128xf32>
    %909 = tpu.matmul %908, %907, %cst_487 {dimension_numbers = #tpu.dot_dimension_numbers<[1], [0], [0], [1], [0, 0, 1, 1], [], []>} : vector<32x128xbf16>, vector<128x128xbf16>, vector<32x128xf32> -> vector<32x128xf32>
    %910 = arith.addf %903, %909 : vector<32x128xf32>
    %911 = vector.broadcast %470 : vector<1x128xf32> to vector<32x128xf32>
    %912 = arith.addf %910, %911 : vector<32x128xf32>
    %cst_488 = arith.constant dense<0.000000e+00> : vector<128xf32>
    %913 = vector.multi_reduction <add>, %912, %cst_488 [0] : vector<32x128xf32> to vector<128xf32>
    %914 = vector.shape_cast %913 : vector<128xf32> to vector<1x128xf32>
    %915 = arith.mulf %912, %912 : vector<32x128xf32>
    %cst_489 = arith.constant dense<0.000000e+00> : vector<128xf32>
    %916 = vector.multi_reduction <add>, %915, %cst_489 [0] : vector<32x128xf32> to vector<128xf32>
    %917 = vector.shape_cast %916 : vector<128xf32> to vector<1x128xf32>
    %cst_490 = arith.constant 0.000000e+00 : f32
    %918 = vector.broadcast %cst_490 : f32 to vector<6x128xf32>
    %919 = tpu.concatenate %914, %917, %918 in 0 : vector<1x128xf32>, vector<1x128xf32>, vector<6x128xf32> -> vector<8x128xf32>
    %c8_i32_491 = arith.constant 8 : i32
    %920 = tpu.dynamic_rotate %919 by %c8_i32_491 dim 1 : vector<8x128xf32>, i32 -> vector<8x128xf32>
    %921 = arith.addf %919, %920 : vector<8x128xf32>
    %c16_i32_492 = arith.constant 16 : i32
    %922 = tpu.dynamic_rotate %921 by %c16_i32_492 dim 1 : vector<8x128xf32>, i32 -> vector<8x128xf32>
    %923 = arith.addf %921, %922 : vector<8x128xf32>
    %c32_i32_493 = arith.constant 32 : i32
    %924 = tpu.dynamic_rotate %923 by %c32_i32_493 dim 1 : vector<8x128xf32>, i32 -> vector<8x128xf32>
    %925 = arith.addf %923, %924 : vector<8x128xf32>
    %c64_i32_494 = arith.constant 64 : i32
    %926 = tpu.dynamic_rotate %925 by %c64_i32_494 dim 1 : vector<8x128xf32>, i32 -> vector<8x128xf32>
    %927 = arith.addf %925, %926 : vector<8x128xf32>
    %928 = vector.extract_strided_slice %927 {offsets = [0, 0], sizes = [1, 128], strides = [1, 1]} : vector<8x128xf32> to vector<1x128xf32>
    %cst_495 = arith.constant 0.001953125 : f32
    %929 = vector.broadcast %cst_495 : f32 to vector<1x128xf32>
    %930 = arith.mulf %928, %929 : vector<1x128xf32>
    %931 = vector.extract_strided_slice %927 {offsets = [1, 0], sizes = [1, 128], strides = [1, 1]} : vector<8x128xf32> to vector<1x128xf32>
    %cst_496 = arith.constant 0.001953125 : f32
    %932 = vector.broadcast %cst_496 : f32 to vector<1x128xf32>
    %933 = arith.mulf %931, %932 : vector<1x128xf32>
    %934 = arith.mulf %930, %930 : vector<1x128xf32>
    %935 = arith.subf %933, %934 : vector<1x128xf32>
    %cst_497 = arith.constant 9.99999974E-6 : f32
    %936 = vector.broadcast %cst_497 : f32 to vector<1x128xf32>
    %937 = arith.addf %935, %936 : vector<1x128xf32>
    %938 = math.rsqrt %937 : vector<1x128xf32>
    %939 = arith.mulf %471, %938 : vector<1x128xf32>
    %940 = vector.broadcast %939 : vector<1x128xf32> to vector<32x128xf32>
    %941 = arith.mulf %912, %940 : vector<32x128xf32>
    %942 = arith.mulf %930, %939 : vector<1x128xf32>
    %943 = arith.subf %472, %942 : vector<1x128xf32>
    %944 = vector.broadcast %943 : vector<1x128xf32> to vector<32x128xf32>
    %945 = arith.addf %941, %944 : vector<32x128xf32>
    %946 = arith.addf %945, %829 : vector<32x128xf32>
    %cst_498 = arith.constant 0.000000e+00 : f32
    %947 = vector.broadcast %cst_498 : f32 to vector<32x128xf32>
    %948 = arith.maximumf %946, %947 : vector<32x128xf32>
    %949 = vector.shape_cast %948 : vector<32x128xf32> to vector<2x16x128xf32>
    %c0_499 = arith.constant 0 : index
    %c1_500 = arith.constant 1 : index
    %c0_501 = arith.constant 0 : index
    %950 = vector.load %arg21[%c0_499, %c1_500, %c0_501] : memref<2x18x128xf32, #tpu.memory_space<vmem>>, vector<2x16x128xf32>
    tpu.vector_store %arg21[%c0_499, %c1_500, %c0_501], %949 {strides = array<i32>} : memref<2x18x128xf32, #tpu.memory_space<vmem>>, vector<2x16x128xf32>,
    %c0_502 = arith.constant 0 : index
    %c0_503 = arith.constant 0 : index
    %c0_504 = arith.constant 0 : index
    %951 = vector.load %arg21[%c0_502, %c0_503, %c0_504] : memref<2x18x128xf32, #tpu.memory_space<vmem>>, vector<2x16x128xf32>
    %952 = vector.shape_cast %951 : vector<2x16x128xf32> to vector<32x128xf32>
    %c0_505 = arith.constant 0 : index
    %c0_506 = arith.constant 0 : index
    %c0_507 = arith.constant 0 : index
    %953 = vector.load %arg13[%c0_505, %c0_506, %c0_507] : memref<3x128x128xbf16, #tpu.memory_space<vmem>>, vector<1x128x128xbf16>
    %954 = vector.shape_cast %953 : vector<1x128x128xbf16> to vector<128x128xbf16>
    %955 = arith.truncf %952 : vector<32x128xf32> to vector<32x128xbf16>
    %cst_508 = arith.constant dense<0.000000e+00> : vector<32x128xf32>
    %956 = tpu.matmul %955, %954, %cst_508 {dimension_numbers = #tpu.dot_dimension_numbers<[1], [0], [0], [1], [0, 0, 1, 1], [], []>} : vector<32x128xbf16>, vector<128x128xbf16>, vector<32x128xf32> -> vector<32x128xf32>
    %c0_509 = arith.constant 0 : index
    %c1_510 = arith.constant 1 : index
    %c0_511 = arith.constant 0 : index
    %957 = vector.load %arg21[%c0_509, %c1_510, %c0_511] : memref<2x18x128xf32, #tpu.memory_space<vmem>>, vector<2x16x128xf32>
    %958 = vector.shape_cast %957 : vector<2x16x128xf32> to vector<32x128xf32>
    %c1_512 = arith.constant 1 : index
    %c0_513 = arith.constant 0 : index
    %c0_514 = arith.constant 0 : index
    %959 = vector.load %arg13[%c1_512, %c0_513, %c0_514] : memref<3x128x128xbf16, #tpu.memory_space<vmem>>, vector<1x128x128xbf16>
    %960 = vector.shape_cast %959 : vector<1x128x128xbf16> to vector<128x128xbf16>
    %961 = arith.truncf %958 : vector<32x128xf32> to vector<32x128xbf16>
    %cst_515 = arith.constant dense<0.000000e+00> : vector<32x128xf32>
    %962 = tpu.matmul %961, %960, %cst_515 {dimension_numbers = #tpu.dot_dimension_numbers<[1], [0], [0], [1], [0, 0, 1, 1], [], []>} : vector<32x128xbf16>, vector<128x128xbf16>, vector<32x128xf32> -> vector<32x128xf32>
    %963 = arith.addf %956, %962 : vector<32x128xf32>
    %c0_516 = arith.constant 0 : index
    %c2_517 = arith.constant 2 : index
    %c0_518 = arith.constant 0 : index
    %964 = vector.load %arg21[%c0_516, %c2_517, %c0_518] : memref<2x18x128xf32, #tpu.memory_space<vmem>>, vector<2x16x128xf32>
    %965 = vector.shape_cast %964 : vector<2x16x128xf32> to vector<32x128xf32>
    %c2_519 = arith.constant 2 : index
    %c0_520 = arith.constant 0 : index
    %c0_521 = arith.constant 0 : index
    %966 = vector.load %arg13[%c2_519, %c0_520, %c0_521] : memref<3x128x128xbf16, #tpu.memory_space<vmem>>, vector<1x128x128xbf16>
    %967 = vector.shape_cast %966 : vector<1x128x128xbf16> to vector<128x128xbf16>
    %968 = arith.truncf %965 : vector<32x128xf32> to vector<32x128xbf16>
    %cst_522 = arith.constant dense<0.000000e+00> : vector<32x128xf32>
    %969 = tpu.matmul %968, %967, %cst_522 {dimension_numbers = #tpu.dot_dimension_numbers<[1], [0], [0], [1], [0, 0, 1, 1], [], []>} : vector<32x128xbf16>, vector<128x128xbf16>, vector<32x128xf32> -> vector<32x128xf32>
    %970 = arith.addf %963, %969 : vector<32x128xf32>
    %971 = vector.broadcast %470 : vector<1x128xf32> to vector<32x128xf32>
    %972 = arith.addf %970, %971 : vector<32x128xf32>
    %cst_523 = arith.constant dense<0.000000e+00> : vector<128xf32>
    %973 = vector.multi_reduction <add>, %972, %cst_523 [0] : vector<32x128xf32> to vector<128xf32>
    %974 = vector.shape_cast %973 : vector<128xf32> to vector<1x128xf32>
    %975 = arith.mulf %972, %972 : vector<32x128xf32>
    %cst_524 = arith.constant dense<0.000000e+00> : vector<128xf32>
    %976 = vector.multi_reduction <add>, %975, %cst_524 [0] : vector<32x128xf32> to vector<128xf32>
    %977 = vector.shape_cast %976 : vector<128xf32> to vector<1x128xf32>
    %cst_525 = arith.constant 0.000000e+00 : f32
    %978 = vector.broadcast %cst_525 : f32 to vector<6x128xf32>
    %979 = tpu.concatenate %974, %977, %978 in 0 : vector<1x128xf32>, vector<1x128xf32>, vector<6x128xf32> -> vector<8x128xf32>
    %c8_i32_526 = arith.constant 8 : i32
    %980 = tpu.dynamic_rotate %979 by %c8_i32_526 dim 1 : vector<8x128xf32>, i32 -> vector<8x128xf32>
    %981 = arith.addf %979, %980 : vector<8x128xf32>
    %c16_i32_527 = arith.constant 16 : i32
    %982 = tpu.dynamic_rotate %981 by %c16_i32_527 dim 1 : vector<8x128xf32>, i32 -> vector<8x128xf32>
    %983 = arith.addf %981, %982 : vector<8x128xf32>
    %c32_i32_528 = arith.constant 32 : i32
    %984 = tpu.dynamic_rotate %983 by %c32_i32_528 dim 1 : vector<8x128xf32>, i32 -> vector<8x128xf32>
    %985 = arith.addf %983, %984 : vector<8x128xf32>
    %c64_i32_529 = arith.constant 64 : i32
    %986 = tpu.dynamic_rotate %985 by %c64_i32_529 dim 1 : vector<8x128xf32>, i32 -> vector<8x128xf32>
    %987 = arith.addf %985, %986 : vector<8x128xf32>
    %988 = vector.extract_strided_slice %987 {offsets = [0, 0], sizes = [1, 128], strides = [1, 1]} : vector<8x128xf32> to vector<1x128xf32>
    %cst_530 = arith.constant 0.001953125 : f32
    %989 = vector.broadcast %cst_530 : f32 to vector<1x128xf32>
    %990 = arith.mulf %988, %989 : vector<1x128xf32>
    %991 = vector.extract_strided_slice %987 {offsets = [1, 0], sizes = [1, 128], strides = [1, 1]} : vector<8x128xf32> to vector<1x128xf32>
    %cst_531 = arith.constant 0.001953125 : f32
    %992 = vector.broadcast %cst_531 : f32 to vector<1x128xf32>
    %993 = arith.mulf %991, %992 : vector<1x128xf32>
    %994 = arith.mulf %990, %990 : vector<1x128xf32>
    %995 = arith.subf %993, %994 : vector<1x128xf32>
    %cst_532 = arith.constant 9.99999974E-6 : f32
    %996 = vector.broadcast %cst_532 : f32 to vector<1x128xf32>
    %997 = arith.addf %995, %996 : vector<1x128xf32>
    %998 = math.rsqrt %997 : vector<1x128xf32>
    %999 = arith.mulf %471, %998 : vector<1x128xf32>
    %1000 = vector.broadcast %999 : vector<1x128xf32> to vector<32x128xf32>
    %1001 = arith.mulf %972, %1000 : vector<32x128xf32>
    %1002 = arith.mulf %990, %999 : vector<1x128xf32>
    %1003 = arith.subf %472, %1002 : vector<1x128xf32>
    %1004 = vector.broadcast %1003 : vector<1x128xf32> to vector<32x128xf32>
    %1005 = arith.addf %1001, %1004 : vector<32x128xf32>
    %cst_533 = arith.constant 0.000000e+00 : f32
    %1006 = vector.broadcast %cst_533 : f32 to vector<32x128xf32>
    %1007 = arith.maximumf %1005, %1006 : vector<32x128xf32>
    %1008 = vector.shape_cast %1007 : vector<32x128xf32> to vector<2x16x128xf32>
    %c0_534 = arith.constant 0 : index
    %c1_535 = arith.constant 1 : index
    %c0_536 = arith.constant 0 : index
    %1009 = vector.load %arg21[%c0_534, %c1_535, %c0_536] : memref<2x18x128xf32, #tpu.memory_space<vmem>>, vector<2x16x128xf32>
    tpu.vector_store %arg21[%c0_534, %c1_535, %c0_536], %1008 {strides = array<i32>} : memref<2x18x128xf32, #tpu.memory_space<vmem>>, vector<2x16x128xf32>,
    %c0_537 = arith.constant 0 : index
    %c0_538 = arith.constant 0 : index
    %c0_539 = arith.constant 0 : index
    %1010 = vector.load %arg21[%c0_537, %c0_538, %c0_539] : memref<2x18x128xf32, #tpu.memory_space<vmem>>, vector<2x16x128xf32>
    %1011 = vector.shape_cast %1010 : vector<2x16x128xf32> to vector<32x128xf32>
    %c0_540 = arith.constant 0 : index
    %c0_541 = arith.constant 0 : index
    %c0_542 = arith.constant 0 : index
    %1012 = vector.load %arg13[%c0_540, %c0_541, %c0_542] : memref<3x128x128xbf16, #tpu.memory_space<vmem>>, vector<1x128x128xbf16>
    %1013 = vector.shape_cast %1012 : vector<1x128x128xbf16> to vector<128x128xbf16>
    %1014 = arith.truncf %1011 : vector<32x128xf32> to vector<32x128xbf16>
    %cst_543 = arith.constant dense<0.000000e+00> : vector<32x128xf32>
    %1015 = tpu.matmul %1014, %1013, %cst_543 {dimension_numbers = #tpu.dot_dimension_numbers<[1], [0], [0], [1], [0, 0, 1, 1], [], []>} : vector<32x128xbf16>, vector<128x128xbf16>, vector<32x128xf32> -> vector<32x128xf32>
    %c0_544 = arith.constant 0 : index
    %c1_545 = arith.constant 1 : index
    %c0_546 = arith.constant 0 : index
    %1016 = vector.load %arg21[%c0_544, %c1_545, %c0_546] : memref<2x18x128xf32, #tpu.memory_space<vmem>>, vector<2x16x128xf32>
    %1017 = vector.shape_cast %1016 : vector<2x16x128xf32> to vector<32x128xf32>
    %c1_547 = arith.constant 1 : index
    %c0_548 = arith.constant 0 : index
    %c0_549 = arith.constant 0 : index
    %1018 = vector.load %arg13[%c1_547, %c0_548, %c0_549] : memref<3x128x128xbf16, #tpu.memory_space<vmem>>, vector<1x128x128xbf16>
    %1019 = vector.shape_cast %1018 : vector<1x128x128xbf16> to vector<128x128xbf16>
    %1020 = arith.truncf %1017 : vector<32x128xf32> to vector<32x128xbf16>
    %cst_550 = arith.constant dense<0.000000e+00> : vector<32x128xf32>
    %1021 = tpu.matmul %1020, %1019, %cst_550 {dimension_numbers = #tpu.dot_dimension_numbers<[1], [0], [0], [1], [0, 0, 1, 1], [], []>} : vector<32x128xbf16>, vector<128x128xbf16>, vector<32x128xf32> -> vector<32x128xf32>
    %1022 = arith.addf %1015, %1021 : vector<32x128xf32>
    %c0_551 = arith.constant 0 : index
    %c2_552 = arith.constant 2 : index
    %c0_553 = arith.constant 0 : index
    %1023 = vector.load %arg21[%c0_551, %c2_552, %c0_553] : memref<2x18x128xf32, #tpu.memory_space<vmem>>, vector<2x16x128xf32>
    %1024 = vector.shape_cast %1023 : vector<2x16x128xf32> to vector<32x128xf32>
    %c2_554 = arith.constant 2 : index
    %c0_555 = arith.constant 0 : index
    %c0_556 = arith.constant 0 : index
    %1025 = vector.load %arg13[%c2_554, %c0_555, %c0_556] : memref<3x128x128xbf16, #tpu.memory_space<vmem>>, vector<1x128x128xbf16>
    %1026 = vector.shape_cast %1025 : vector<1x128x128xbf16> to vector<128x128xbf16>
    %1027 = arith.truncf %1024 : vector<32x128xf32> to vector<32x128xbf16>
    %cst_557 = arith.constant dense<0.000000e+00> : vector<32x128xf32>
    %1028 = tpu.matmul %1027, %1026, %cst_557 {dimension_numbers = #tpu.dot_dimension_numbers<[1], [0], [0], [1], [0, 0, 1, 1], [], []>} : vector<32x128xbf16>, vector<128x128xbf16>, vector<32x128xf32> -> vector<32x128xf32>
    %1029 = arith.addf %1022, %1028 : vector<32x128xf32>
    %1030 = vector.broadcast %470 : vector<1x128xf32> to vector<32x128xf32>
    %1031 = arith.addf %1029, %1030 : vector<32x128xf32>
    %cst_558 = arith.constant dense<0.000000e+00> : vector<128xf32>
    %1032 = vector.multi_reduction <add>, %1031, %cst_558 [0] : vector<32x128xf32> to vector<128xf32>
    %1033 = vector.shape_cast %1032 : vector<128xf32> to vector<1x128xf32>
    %1034 = arith.mulf %1031, %1031 : vector<32x128xf32>
    %cst_559 = arith.constant dense<0.000000e+00> : vector<128xf32>
    %1035 = vector.multi_reduction <add>, %1034, %cst_559 [0] : vector<32x128xf32> to vector<128xf32>
    %1036 = vector.shape_cast %1035 : vector<128xf32> to vector<1x128xf32>
    %cst_560 = arith.constant 0.000000e+00 : f32
    %1037 = vector.broadcast %cst_560 : f32 to vector<6x128xf32>
    %1038 = tpu.concatenate %1033, %1036, %1037 in 0 : vector<1x128xf32>, vector<1x128xf32>, vector<6x128xf32> -> vector<8x128xf32>
    %c8_i32_561 = arith.constant 8 : i32
    %1039 = tpu.dynamic_rotate %1038 by %c8_i32_561 dim 1 : vector<8x128xf32>, i32 -> vector<8x128xf32>
    %1040 = arith.addf %1038, %1039 : vector<8x128xf32>
    %c16_i32_562 = arith.constant 16 : i32
    %1041 = tpu.dynamic_rotate %1040 by %c16_i32_562 dim 1 : vector<8x128xf32>, i32 -> vector<8x128xf32>
    %1042 = arith.addf %1040, %1041 : vector<8x128xf32>
    %c32_i32_563 = arith.constant 32 : i32
    %1043 = tpu.dynamic_rotate %1042 by %c32_i32_563 dim 1 : vector<8x128xf32>, i32 -> vector<8x128xf32>
    %1044 = arith.addf %1042, %1043 : vector<8x128xf32>
    %c64_i32_564 = arith.constant 64 : i32
    %1045 = tpu.dynamic_rotate %1044 by %c64_i32_564 dim 1 : vector<8x128xf32>, i32 -> vector<8x128xf32>
    %1046 = arith.addf %1044, %1045 : vector<8x128xf32>
    %1047 = vector.extract_strided_slice %1046 {offsets = [0, 0], sizes = [1, 128], strides = [1, 1]} : vector<8x128xf32> to vector<1x128xf32>
    %cst_565 = arith.constant 0.001953125 : f32
    %1048 = vector.broadcast %cst_565 : f32 to vector<1x128xf32>
    %1049 = arith.mulf %1047, %1048 : vector<1x128xf32>
    %1050 = vector.extract_strided_slice %1046 {offsets = [1, 0], sizes = [1, 128], strides = [1, 1]} : vector<8x128xf32> to vector<1x128xf32>
    %cst_566 = arith.constant 0.001953125 : f32
    %1051 = vector.broadcast %cst_566 : f32 to vector<1x128xf32>
    %1052 = arith.mulf %1050, %1051 : vector<1x128xf32>
    %1053 = arith.mulf %1049, %1049 : vector<1x128xf32>
    %1054 = arith.subf %1052, %1053 : vector<1x128xf32>
    %cst_567 = arith.constant 9.99999974E-6 : f32
    %1055 = vector.broadcast %cst_567 : f32 to vector<1x128xf32>
    %1056 = arith.addf %1054, %1055 : vector<1x128xf32>
    %1057 = math.rsqrt %1056 : vector<1x128xf32>
    %1058 = arith.mulf %471, %1057 : vector<1x128xf32>
    %1059 = vector.broadcast %1058 : vector<1x128xf32> to vector<32x128xf32>
    %1060 = arith.mulf %1031, %1059 : vector<32x128xf32>
    %1061 = arith.mulf %1049, %1058 : vector<1x128xf32>
    %1062 = arith.subf %472, %1061 : vector<1x128xf32>
    %1063 = vector.broadcast %1062 : vector<1x128xf32> to vector<32x128xf32>
    %1064 = arith.addf %1060, %1063 : vector<32x128xf32>
    %1065 = arith.addf %1064, %948 : vector<32x128xf32>
    %cst_568 = arith.constant 0.000000e+00 : f32
    %1066 = vector.broadcast %cst_568 : f32 to vector<32x128xf32>
    %1067 = arith.maximumf %1065, %1066 : vector<32x128xf32>
    %1068 = vector.shape_cast %1067 : vector<32x128xf32> to vector<2x16x128xf32>
    %c0_569 = arith.constant 0 : index
    %c3_570 = arith.constant 3 : index
    %c0_571 = arith.constant 0 : index
    %1069 = vector.load %arg23[%c0_569, %c3_570, %c0_571] : memref<2x22x128xf32, #tpu.memory_space<vmem>>, vector<2x16x128xf32>
    tpu.vector_store %arg23[%c0_569, %c3_570, %c0_571], %1068 {strides = array<i32>} : memref<2x22x128xf32, #tpu.memory_space<vmem>>, vector<2x16x128xf32>,
    %c0_572 = arith.constant 0 : index
    %c0_573 = arith.constant 0 : index
    %c0_574 = arith.constant 0 : index
    %1070 = vector.load %arg23[%c0_572, %c0_573, %c0_574] : memref<2x22x128xf32, #tpu.memory_space<vmem>>, vector<2x16x128xf32>
    %1071 = vector.shape_cast %1070 : vector<2x16x128xf32> to vector<32x128xf32>
    %c0_575 = arith.constant 0 : index
    %c0_576 = arith.constant 0 : index
    %c0_577 = arith.constant 0 : index
    %1072 = vector.load %arg17[%c0_575, %c0_576, %c0_577] : memref<7x128x16xbf16, #tpu.memory_space<vmem>>, vector<1x128x16xbf16>
    %1073 = vector.shape_cast %1072 : vector<1x128x16xbf16> to vector<128x16xbf16>
    %1074 = arith.truncf %1071 : vector<32x128xf32> to vector<32x128xbf16>
    %cst_578 = arith.constant dense<0.000000e+00> : vector<32x16xf32>
    %1075 = tpu.matmul %1074, %1073, %cst_578 {dimension_numbers = #tpu.dot_dimension_numbers<[1], [0], [0], [1], [0, 0, 1, 1], [], []>} : vector<32x128xbf16>, vector<128x16xbf16>, vector<32x16xf32> -> vector<32x16xf32>
    %c0_579 = arith.constant 0 : index
    %c1_580 = arith.constant 1 : index
    %c0_581 = arith.constant 0 : index
    %1076 = vector.load %arg23[%c0_579, %c1_580, %c0_581] : memref<2x22x128xf32, #tpu.memory_space<vmem>>, vector<2x16x128xf32>
    %1077 = vector.shape_cast %1076 : vector<2x16x128xf32> to vector<32x128xf32>
    %c1_582 = arith.constant 1 : index
    %c0_583 = arith.constant 0 : index
    %c0_584 = arith.constant 0 : index
    %1078 = vector.load %arg17[%c1_582, %c0_583, %c0_584] : memref<7x128x16xbf16, #tpu.memory_space<vmem>>, vector<1x128x16xbf16>
    %1079 = vector.shape_cast %1078 : vector<1x128x16xbf16> to vector<128x16xbf16>
    %1080 = arith.truncf %1077 : vector<32x128xf32> to vector<32x128xbf16>
    %cst_585 = arith.constant dense<0.000000e+00> : vector<32x16xf32>
    %1081 = tpu.matmul %1080, %1079, %cst_585 {dimension_numbers = #tpu.dot_dimension_numbers<[1], [0], [0], [1], [0, 0, 1, 1], [], []>} : vector<32x128xbf16>, vector<128x16xbf16>, vector<32x16xf32> -> vector<32x16xf32>
    %1082 = arith.addf %1075, %1081 : vector<32x16xf32>
    %c0_586 = arith.constant 0 : index
    %c2_587 = arith.constant 2 : index
    %c0_588 = arith.constant 0 : index
    %1083 = vector.load %arg23[%c0_586, %c2_587, %c0_588] : memref<2x22x128xf32, #tpu.memory_space<vmem>>, vector<2x16x128xf32>
    %1084 = vector.shape_cast %1083 : vector<2x16x128xf32> to vector<32x128xf32>
    %c2_589 = arith.constant 2 : index
    %c0_590 = arith.constant 0 : index
    %c0_591 = arith.constant 0 : index
    %1085 = vector.load %arg17[%c2_589, %c0_590, %c0_591] : memref<7x128x16xbf16, #tpu.memory_space<vmem>>, vector<1x128x16xbf16>
    %1086 = vector.shape_cast %1085 : vector<1x128x16xbf16> to vector<128x16xbf16>
    %1087 = arith.truncf %1084 : vector<32x128xf32> to vector<32x128xbf16>
    %cst_592 = arith.constant dense<0.000000e+00> : vector<32x16xf32>
    %1088 = tpu.matmul %1087, %1086, %cst_592 {dimension_numbers = #tpu.dot_dimension_numbers<[1], [0], [0], [1], [0, 0, 1, 1], [], []>} : vector<32x128xbf16>, vector<128x16xbf16>, vector<32x16xf32> -> vector<32x16xf32>
    %1089 = arith.addf %1082, %1088 : vector<32x16xf32>
    %c0_593 = arith.constant 0 : index
    %c3_594 = arith.constant 3 : index
    %c0_595 = arith.constant 0 : index
    %1090 = vector.load %arg23[%c0_593, %c3_594, %c0_595] : memref<2x22x128xf32, #tpu.memory_space<vmem>>, vector<2x16x128xf32>
    %1091 = vector.shape_cast %1090 : vector<2x16x128xf32> to vector<32x128xf32>
    %c3_596 = arith.constant 3 : index
    %c0_597 = arith.constant 0 : index
    %c0_598 = arith.constant 0 : index
    %1092 = vector.load %arg17[%c3_596, %c0_597, %c0_598] : memref<7x128x16xbf16, #tpu.memory_space<vmem>>, vector<1x128x16xbf16>
    %1093 = vector.shape_cast %1092 : vector<1x128x16xbf16> to vector<128x16xbf16>
    %1094 = arith.truncf %1091 : vector<32x128xf32> to vector<32x128xbf16>
    %cst_599 = arith.constant dense<0.000000e+00> : vector<32x16xf32>
    %1095 = tpu.matmul %1094, %1093, %cst_599 {dimension_numbers = #tpu.dot_dimension_numbers<[1], [0], [0], [1], [0, 0, 1, 1], [], []>} : vector<32x128xbf16>, vector<128x16xbf16>, vector<32x16xf32> -> vector<32x16xf32>
    %1096 = arith.addf %1089, %1095 : vector<32x16xf32>
    %c0_600 = arith.constant 0 : index
    %c4_601 = arith.constant 4 : index
    %c0_602 = arith.constant 0 : index
    %1097 = vector.load %arg23[%c0_600, %c4_601, %c0_602] : memref<2x22x128xf32, #tpu.memory_space<vmem>>, vector<2x16x128xf32>
    %1098 = vector.shape_cast %1097 : vector<2x16x128xf32> to vector<32x128xf32>
    %c4_603 = arith.constant 4 : index
    %c0_604 = arith.constant 0 : index
    %c0_605 = arith.constant 0 : index
    %1099 = vector.load %arg17[%c4_603, %c0_604, %c0_605] : memref<7x128x16xbf16, #tpu.memory_space<vmem>>, vector<1x128x16xbf16>
    %1100 = vector.shape_cast %1099 : vector<1x128x16xbf16> to vector<128x16xbf16>
    %1101 = arith.truncf %1098 : vector<32x128xf32> to vector<32x128xbf16>
    %cst_606 = arith.constant dense<0.000000e+00> : vector<32x16xf32>
    %1102 = tpu.matmul %1101, %1100, %cst_606 {dimension_numbers = #tpu.dot_dimension_numbers<[1], [0], [0], [1], [0, 0, 1, 1], [], []>} : vector<32x128xbf16>, vector<128x16xbf16>, vector<32x16xf32> -> vector<32x16xf32>
    %1103 = arith.addf %1096, %1102 : vector<32x16xf32>
    %c0_607 = arith.constant 0 : index
    %c5_608 = arith.constant 5 : index
    %c0_609 = arith.constant 0 : index
    %1104 = vector.load %arg23[%c0_607, %c5_608, %c0_609] : memref<2x22x128xf32, #tpu.memory_space<vmem>>, vector<2x16x128xf32>
    %1105 = vector.shape_cast %1104 : vector<2x16x128xf32> to vector<32x128xf32>
    %c5_610 = arith.constant 5 : index
    %c0_611 = arith.constant 0 : index
    %c0_612 = arith.constant 0 : index
    %1106 = vector.load %arg17[%c5_610, %c0_611, %c0_612] : memref<7x128x16xbf16, #tpu.memory_space<vmem>>, vector<1x128x16xbf16>
    %1107 = vector.shape_cast %1106 : vector<1x128x16xbf16> to vector<128x16xbf16>
    %1108 = arith.truncf %1105 : vector<32x128xf32> to vector<32x128xbf16>
    %cst_613 = arith.constant dense<0.000000e+00> : vector<32x16xf32>
    %1109 = tpu.matmul %1108, %1107, %cst_613 {dimension_numbers = #tpu.dot_dimension_numbers<[1], [0], [0], [1], [0, 0, 1, 1], [], []>} : vector<32x128xbf16>, vector<128x16xbf16>, vector<32x16xf32> -> vector<32x16xf32>
    %1110 = arith.addf %1103, %1109 : vector<32x16xf32>
    %c0_614 = arith.constant 0 : index
    %c6_615 = arith.constant 6 : index
    %c0_616 = arith.constant 0 : index
    %1111 = vector.load %arg23[%c0_614, %c6_615, %c0_616] : memref<2x22x128xf32, #tpu.memory_space<vmem>>, vector<2x16x128xf32>
    %1112 = vector.shape_cast %1111 : vector<2x16x128xf32> to vector<32x128xf32>
    %c6_617 = arith.constant 6 : index
    %c0_618 = arith.constant 0 : index
    %c0_619 = arith.constant 0 : index
    %1113 = vector.load %arg17[%c6_617, %c0_618, %c0_619] : memref<7x128x16xbf16, #tpu.memory_space<vmem>>, vector<1x128x16xbf16>
    %1114 = vector.shape_cast %1113 : vector<1x128x16xbf16> to vector<128x16xbf16>
    %1115 = arith.truncf %1112 : vector<32x128xf32> to vector<32x128xbf16>
    %cst_620 = arith.constant dense<0.000000e+00> : vector<32x16xf32>
    %1116 = tpu.matmul %1115, %1114, %cst_620 {dimension_numbers = #tpu.dot_dimension_numbers<[1], [0], [0], [1], [0, 0, 1, 1], [], []>} : vector<32x128xbf16>, vector<128x16xbf16>, vector<32x16xf32> -> vector<32x16xf32>
    %1117 = arith.addf %1110, %1116 : vector<32x16xf32>
    %c0_621 = arith.constant 0 : index
    %c0_622 = arith.constant 0 : index
    %1118 = vector.load %arg18[%c0_621, %c0_622] : memref<1x16xf32, #tpu.memory_space<vmem>>, vector<1x16xf32>
    %1119 = vector.broadcast %1118 : vector<1x16xf32> to vector<32x16xf32>
    %1120 = arith.addf %1117, %1119 : vector<32x16xf32>
    %c0_623 = arith.constant 0 : index
    %c0_624 = arith.constant 0 : index
    %1121 = vector.load %arg20[%c0_623, %c0_624] : memref<32x16xf32, #tpu.memory_space<vmem>>, vector<32x16xf32>
    tpu.vector_store %arg20[%c0_623, %c0_624], %1120 {strides = array<i32>} : memref<32x16xf32, #tpu.memory_space<vmem>>, vector<32x16xf32>,
    return
  }
}

</mosaic_0001>

<bundles_post_ra>
// kernel: _forward.1
= control target key start
LH: loop header
LB: loop body
LE: loop exit
PB: predicated region body
PF: predicated region fallthrough
CT: control target
= control target key end

     0   :  { %s12965_s0 = inlined_call_operand.vmem [shape: f32[2,256], index: 0, kind: input, shape index: {}]   ;;  %s12966_s1 = inlined_call_operand.vmem [shape: f32[256,128], index: 1, kind: input, shape index: {}]   ;;  %s12967_s2 = inlined_call_operand.vmem [shape: f32[1,128], index: 2, kind: input, shape index: {}]   ;;  %s12968_s3 = inlined_call_operand.vmem [shape: bf16[128,128], index: 3, kind: input, shape index: {}]   ;;  %s12969_s4 = inlined_call_operand.vmem [shape: f32[1,128], index: 4, kind: input, shape index: {}]   ;;  %s12970_s5 = inlined_call_operand.hbm [shape: bf16[128,128], index: 5, kind: input, shape index: {}]   ;;  %s12971_s6 = inlined_call_operand.vmem [shape: f32[1,128], index: 6, kind: input, shape index: {}]   ;;  %s12972_s7 = inlined_call_operand.vmem [shape: f32[1,128], index: 7, kind: input, shape index: {}]   ;;  %s12973_s8 = inlined_call_operand.vmem [shape: f32[1,128], index: 8, kind: input, shape index: {}]   ;;  %s12974_s9 = inlined_call_operand.hbm [shape: bf16[128,256], index: 9, kind: input, shape index: {}]   ;;  %s12975_s10 = inlined_call_operand.vmem [shape: f32[1,256], index: 10, kind: input, shape index: {}]   ;;  %s12976_s11 = inlined_call_operand.hbm [shape: bf16[7,16,128], index: 11, kind: input, shape index: {}]   ;;  %s12977_s12 = inlined_call_operand.vmem [shape: f32[1,128], index: 12, kind: input, shape index: {}]   ;;  %s12978_s13 = inlined_call_operand.vmem [shape: bf16[3,128,128], index: 13, kind: input, shape index: {}]   ;;  %s12979_s14 = inlined_call_operand.vmem [shape: f32[1,128], index: 14, kind: input, shape index: {}]   ;;  %s12980_s15 = inlined_call_operand.vmem [shape: f32[1,128], index: 15, kind: input, shape index: {}]   ;;  %s12981_s16 = inlined_call_operand.vmem [shape: f32[1,128], index: 16, kind: input, shape index: {}]   ;;  %s12982_s17 = inlined_call_operand.vmem [shape: bf16[7,128,16], index: 17, kind: input, shape index: {}]   ;;  %s12983_s18 = inlined_call_operand.vmem [shape: f32[1,16], index: 18, kind: input, shape index: {}]   ;;  %s12984_s19 = inlined_call_operand.vmem [shape: f32[2,128], index: 19, kind: output, shape index: {0}]   ;;  %s12985_s20 = inlined_call_operand.hbm [shape: f32[32,16], index: 20, kind: output, shape index: {1}]  }
   0x1   :  { %12990 = sst [smem:[#allocation15_spill]] %s12965_s0 }
   0x2   :  { %12991 = sst [smem:[#allocation16_spill]] %s12966_s1 }
   0x3   :  { %12992 = sst [smem:[#allocation17_spill]] %s12967_s2 }
   0x4   :  { %12993 = sst [smem:[#allocation18_spill]] %s12968_s3 }
   0x5   :  { %12994 = sst [smem:[#allocation19_spill]] %s12969_s4 }
   0x6   :  { %26 = vsyncpa [#allocation6], 0 }
   0x7   :  { %27 = vsyncpa [#allocation9], 0 }
   0x8   :  { %28 = vsyncpa [#allocation7], 0  ;;  %s10688_s1 = smov [#allocation8]   ;;  %s10594_s2 = scalar_lea.hbm %s12974_s9, 2048 }
   0x9   :  { %s62_s22 = sshll.u32 %s10688_s1, 4  ;;  %p10595_p0 = scmp.ne.s32.totalorder %s12974_s9, %s10594_s2  ;;  %s63_s22 = int_to_ptr.vmem [resolvable:$true] %s62_s22 }
   0xa   :  { %p10598_p1 = scmp.lt.u32.totalorder %s10594_s2, %s12974_s9 }
   0xc   :  { %p10600_p2 = pnand %p10598_p1, %p10595_p0 }
   0xe   :  { %10603 = shalt.err (!%p10600_p2)
}
   0xf   :  { %s10604_s28 = scalar_lea.vmem %s63_s22, 2048  ;;  %p10609_p4 = scmp.lt.s32.totalorder %s63_s22, %s63_s22 }
  0x10   :  { %p10605_p3 = scmp.ne.s32.totalorder %s63_s22, %s10604_s28  ;;  %p10610_p5 = scmp.lt.s32.totalorder %s10604_s28, %s10604_s28 }
  0x12   :  { %p10611_p6 = por %p10610_p5, %p10609_p4 }
  0x14   :  { %p10612_p7 = pnand %p10611_p6, %p10605_p3 }
  0x16   :  { %10615 = shalt.err (!%p10612_p7)
}
  0x17   :  { %s12989_s4 = smov 128   ;;  %s10690_s29 = smov 8  }
  0x18   :  { %68 = dma.hbm_to_vmem [thread:$0]  %s12974_s9, 2048, %s63_s22, [#allocation9], %s12989_s4, %s12989_s4, %s10690_s29  }
  0x19   :  { %s10691_s21 = smov [#allocation5]   ;;  %s10616_s2 = scalar_lea.hbm %s12970_s5, 1024 }
  0x1a   :  { %s44_s1 = sshll.u32 %s10691_s21, 4  ;;  %p10617_p8 = scmp.ne.s32.totalorder %s12970_s5, %s10616_s2  ;;  %s45_s1 = int_to_ptr.vmem [resolvable:$true] %s44_s1 }
  0x1b   :  { %p10620_p9 = scmp.lt.u32.totalorder %s10616_s2, %s12970_s5 }
  0x1d   :  { %p10622_p10 = pnand %p10620_p9, %p10617_p8 }
  0x1f   :  { %10625 = shalt.err (!%p10622_p10)
}
  0x20   :  { %s10626_s28 = scalar_lea.vmem %s45_s1, 1024  ;;  %p10631_p12 = scmp.lt.s32.totalorder %s45_s1, %s45_s1 }
  0x21   :  { %p10627_p11 = scmp.ne.s32.totalorder %s45_s1, %s10626_s28  ;;  %p10632_p13 = scmp.lt.s32.totalorder %s10626_s28, %s10626_s28 }
  0x23   :  { %p10633_p0 = por %p10632_p13, %p10631_p12 }
  0x25   :  { %p10634_p1 = pnand %p10633_p0, %p10627_p11 }
  0x27   :  { %10637 = shalt.err (!%p10634_p1)
}
  0x28   :  { %s10692_s9 = smov 64   ;;  %s10693_s22 = smov 4  }
  0x29   :  { %50 = dma.hbm_to_vmem [thread:$0]  %s12970_s5, 1024, %s45_s1, [#allocation6], %s10692_s9, %s10692_s9, %s10693_s22  }
  0x2a   :  { %s10694_s21 = smov [#allocation10]   ;;  %s10638_s25 = scalar_lea.hbm %s12976_s11, 896 }
  0x2b   :  { %s76_s23 = sshll.u32 %s10694_s21, 4  ;;  %p10639_p2 = scmp.ne.s32.totalorder %s12976_s11, %s10638_s25  ;;  %s77_s23 = int_to_ptr.vmem [resolvable:$true] %s76_s23 }
  0x2c   :  { %p10642_p3 = scmp.lt.u32.totalorder %s10638_s25, %s12976_s11 }
  0x2e   :  { %p10644_p4 = pnand %p10642_p3, %p10639_p2 }
  0x30   :  { %10647 = shalt.err (!%p10644_p4)
}
  0x31   :  { %s10648_s4 = scalar_lea.vmem %s77_s23, 896  ;;  %p10653_p6 = scmp.lt.s32.totalorder %s77_s23, %s77_s23 }
  0x32   :  { %p10649_p5 = scmp.ne.s32.totalorder %s77_s23, %s10648_s4  ;;  %p10654_p7 = scmp.lt.s32.totalorder %s10648_s4, %s10648_s4 }
  0x34   :  { %p10655_p8 = por %p10654_p7, %p10653_p6 }
  0x36   :  { %p10656_p9 = pnand %p10655_p8, %p10649_p5 }
  0x38   :  { %10659 = shalt.err (!%p10656_p9)
}
  0x39   :  { %82 = dma.hbm_to_vmem [thread:$0]  %s12976_s11, 896, %s77_s23, [#allocation9], %s10692_s9, %s10692_s9, %s10693_s22  }
  0x3a   :  { %10682 = dma.done.wait [#allocation6], 1024  }
  0x3b   :  { %10683 = vsyncadd [#allocation6], 4294966272 }
  0x3c   :  { %10684 = dma.done.wait [#allocation9], 2944  }
  0x3d   :  { %10685 = vsyncadd [#allocation9], 4294964352  ;;  %v10695_v0 = vmov 0.0   ;;  %s12995_s22 = sld [smem:[#allocation16_spill]]  ;;  %s12996_s25 = sld [smem:[#allocation15_spill]]  ;;  %vm10696_vm0 = vmmov 0  }
  0x3e   :  { %107 = vst [vmem:[#allocation2] sm:$0xff] %v10695_v0  ;;  %108 = vst [vmem:[#allocation2 + $0x8] sm:$0xff] %v10695_v0  ;;  %9151 = vmatprep.subr.bf16.mxu1 %v10695_v0  ;;  %s12997_s3 = sld [smem:[#allocation18_spill]]  ;;  %9167 = vmatprep.mubr.msk.bf16.mxu1 %vm10696_vm0, %v10695_v0  ;;  %v11003_v59 = vld [vmem:[#allocation5] sm:$0xff]   ;;  %v11005_v60 = vld [vmem:[#allocation5 + $0x8] sm:$0xff]   ;;  %s12998_s27 = sld [smem:[#allocation17_spill]] }
  0x3f   :  { %109 = vst [vmem:[#allocation2 + $0x10] sm:$0x3] %v10695_v0  ;;  %110 = vst [vmem:[#allocation2 + $0x18] sm:$0xff] %v10695_v0  ;;  %9152 = vmatpush3.bf16.msra.mxu1 %v11003_v59  ;;  %v11009_v61 = vld [vmem:[#allocation5 + $0x10] sm:$0xff]   ;;  %v11013_v62 = vld [vmem:[#allocation5 + $0x18] sm:$0xff]   ;;  %s12999_s1 = sld [smem:[#allocation19_spill]] }
  0x40   :  { %111 = vst [vmem:[#allocation2 + $0x20] sm:$0xff] %v10695_v0  ;;  %112 = vst [vmem:[#allocation2 + $0x28] sm:$0x3] %v10695_v0  ;;  %9153 = vmatprep.subr.bf16.mxu1 %v10695_v0  ;;  %v11017_v63 = vld [vmem:[#allocation5 + $0x20] sm:$0xff]   ;;  %vm476_vm1 = vcmask 1041408   ;;  %vm492_vm2 = vcmask 1040384  }
  0x41   :  { %121 = vst [vmem:[#allocation4] sm:$0xff] %v10695_v0  ;;  %122 = vst [vmem:[#allocation4 + $0x8] sm:$0xff] %v10695_v0  ;;  %s10698_s30 = smov 32   ;;  %vm113_vm3 = vcmask 130048   ;;  %vm1564_vm4 = vcmask 122880   ;;  %s10704_s26 = smov 48  }
  0x42   :  { %123 = vst [vmem:[#allocation4 + $0x10] sm:$0x3f] %v10695_v0  ;;  %124 = vst [vmem:[#allocation4 + $0x18] sm:$0xff] %v10695_v0  ;;  %vm116_vm5 = vcmask 128000  }
  0x43   :  { %125 = vst [vmem:[#allocation4 + $0x20] sm:$0xff] %v10695_v0  ;;  %126 = vst [vmem:[#allocation4 + $0x28] sm:$0x3f] %v10695_v0  ;;  %v144_v1 = vld [vmem:[%s12995_s22 + $0x80] sm:$0xff]  ;;  %v145_v2 = vld [vmem:[%s12995_s22 + $0x88] sm:$0xff]  ;;  %9154 = vmatpush3.bf16.msra.mxu1 %v11005_v60 }
  0x44   :  { %v128_v3 = vld [vmem:[%s12995_s22] sm:$0xff]  ;;  %v10013_v4 = vpack.c.bf16 %v145_v2, %v144_v1  ;;  %v129_v5 = vld [vmem:[%s12995_s22 + $0x8] sm:$0xff]  ;;  %v146_v6 = vld [vmem:[%s12995_s22 + $0x90] sm:$0xff]  ;;  %9155 = vmatprep.subr.bf16.mxu1 %v10695_v0 }
  0x45   :  { %v147_v7 = vld [vmem:[%s12995_s22 + $0x98] sm:$0xff]  ;;  %v10015_v8 = vpack.c.bf16 %v129_v5, %v128_v3  ;;  %v130_v10 = vld [vmem:[%s12995_s22 + $0x10] sm:$0xff]  ;;  %v148_v12 = vld [vmem:[%s12995_s22 + $0xa0] sm:$0xff] }
  0x46   :  { %v10017_v9 = vpack.c.bf16 %v147_v7, %v146_v6  ;;  %v131_v11 = vld [vmem:[%s12995_s22 + $0x18] sm:$0xff]  ;;  %10014 = vmatprep.subr.bf16.mxu0 %v10013_v4  ;;  %v149_v13 = vld [vmem:[%s12995_s22 + $0xa8] sm:$0xff]  ;;  %v132_v16 = vld [vmem:[%s12995_s22 + $0x20] sm:$0xff] }
  0x47   :  { %10016 = vmatpush3.bf16.msra.mxu0 %v10015_v8  ;;  %v10019_v14 = vpack.c.bf16 %v131_v11, %v130_v10  ;;  %v10021_v15 = vpack.c.bf16 %v149_v13, %v148_v12  ;;  %v133_v17 = vld [vmem:[%s12995_s22 + $0x28] sm:$0xff]  ;;  %v150_v18 = vld [vmem:[%s12995_s22 + $0xb0] sm:$0xff]  ;;  %v151_v19 = vld [vmem:[%s12995_s22 + $0xb8] sm:$0xff]  ;;  %9156 = vmatpush3.bf16.msra.mxu1 %v11009_v61 }
  0x48   :  { %10018 = vmatprep.subr.bf16.mxu0 %v10017_v9  ;;  %v10023_v20 = vpack.c.bf16 %v133_v17, %v132_v16  ;;  %v10025_v21 = vpack.c.bf16 %v151_v19, %v150_v18  ;;  %v134_v22 = vld [vmem:[%s12995_s22 + $0x30] sm:$0xff]  ;;  %v135_v23 = vld [vmem:[%s12995_s22 + $0x38] sm:$0xff]  ;;  %v152_v24 = vld [vmem:[%s12995_s22 + $0xc0] sm:$0xff]  ;;  %9157 = vmatprep.subr.bf16.mxu1 %v10695_v0 }
  0x49   :  { %v153_v25 = vld [vmem:[%s12995_s22 + $0xc8] sm:$0xff]  ;;  %v7744_v26 = vld.sshfl [vmem:[%s12996_s25] sm:$0x33 pattern:$0x76325410]  ;;  %v10027_v29 = vpack.c.bf16 %v135_v23, %v134_v22  ;;  %v154_v32 = vld [vmem:[%s12995_s22 + $0xd0] sm:$0xff] }
  0x4a   :  { %v136_v27 = vld [vmem:[%s12995_s22 + $0x40] sm:$0xff]  ;;  %v175_v28 = vcombine.high %v7744_v26, %v7744_v26  ;;  %v137_v30 = vld [vmem:[%s12995_s22 + $0x48] sm:$0xff]  ;;  %v10029_v31 = vpack.c.bf16 %v153_v25, %v152_v24  ;;  %v155_v33 = vld [vmem:[%s12995_s22 + $0xd8] sm:$0xff]  ;;  %s10703_s25 = smov 80  }
  0x4b   :  { %10020 = vmatpush3.bf16.msra.mxu0 %v10019_v14  ;;  %v138_v34 = vld [vmem:[%s12995_s22 + $0x50] sm:$0xff]  ;;  %v139_v35 = vld [vmem:[%s12995_s22 + $0x58] sm:$0xff]  ;;  %v10031_v36 = vpack.c.bf16 %v137_v30, %v136_v27  ;;  %v156_v37 = vld [vmem:[%s12995_s22 + $0xe0] sm:$0xff]  ;;  %v10033_v39 = vpack.c.bf16 %v155_v33, %v154_v32  ;;  %9158 = vmatpush3.bf16.msra.mxu1 %v11013_v62 }
  0x4c   :  { %10022 = vmatprep.subr.bf16.mxu0 %v10021_v15  ;;  %242 = vmatprep.mubr.f32.mxu0 %v175_v28  ;;  %v157_v38 = vld [vmem:[%s12995_s22 + $0xe8] sm:$0xff]  ;;  %v140_v40 = vld [vmem:[%s12995_s22 + $0x60] sm:$0xff]  ;;  %v10035_v42 = vpack.c.bf16 %v139_v35, %v138_v34  ;;  %v158_v43 = vld [vmem:[%s12995_s22 + $0xf0] sm:$0xff] }
  0x4d   :  { %v141_v41 = vld [vmem:[%s12995_s22 + $0x68] sm:$0xff]  ;;  %v159_v44 = vld [vmem:[%s12995_s22 + $0xf8] sm:$0xff]  ;;  %v10037_v45 = vpack.c.bf16 %v157_v38, %v156_v37  ;;  %v142_v46 = vld [vmem:[%s12995_s22 + $0x70] sm:$0xff]  ;;  %9159 = vmatprep.subr.bf16.mxu1 %v10695_v0 }
  0x4e   :  { %v143_v47 = vld [vmem:[%s12995_s22 + $0x78] sm:$0xff]  ;;  %v10039_v48 = vpack.c.bf16 %v141_v41, %v140_v40  ;;  %v10041_v49 = vpack.c.bf16 %v159_v44, %v158_v43  ;;  %v10191_v51 = vld [vmem:[%s12997_s3] sm:$0xff]   ;;  %v10192_v52 = vld [vmem:[%s12997_s3 + $0x8] sm:$0xff]  }
  0x4f   :  { %10024 = vmatpush3.bf16.msra.mxu0 %v10023_v20  ;;  %v10043_v50 = vpack.c.bf16 %v143_v47, %v142_v46  ;;  %v10193_v53 = vld [vmem:[%s12997_s3 + $0x10] sm:$0xff]   ;;  %v10194_v54 = vld [vmem:[%s12997_s3 + $0x18] sm:$0xff]   ;;  %v10195_v55 = vld [vmem:[%s12997_s3 + $0x20] sm:$0xff]   ;;  %9160 = vmatpush3.bf16.msra.mxu1 %v11017_v63 }
  0x50   :  { %10026 = vmatprep.subr.bf16.mxu0 %v10025_v21  ;;  %v10196_v56 = vld [vmem:[%s12997_s3 + $0x28] sm:$0xff]   ;;  %v10197_v57 = vld [vmem:[%s12997_s3 + $0x30] sm:$0xff]   ;;  %v10198_v58 = vld [vmem:[%s12997_s3 + $0x38] sm:$0xff]  }
  0x51   :  { %v11021_v1 = vld [vmem:[#allocation5 + $0x28] sm:$0xff]   ;;  %v11024_v2 = vld [vmem:[#allocation2] sm:$0xff]  ;;  %v11059_v10 = vld [vmem:[#allocation5 + $0x38] sm:$0xff]  }
  0x52   :  { %9161 = vmatprep.subr.bf16.mxu1 %v11024_v2  ;;  %v11027_v3 = vld [vmem:[#allocation5 + $0x30] sm:$0xff]   ;;  %v7745_v11 = vld [vmem:[%s12999_s1] ss:$0 sm:$0xff] }
  0x53   :  { %10028 = vmatpush3.bf16.msra.mxu0 %v10027_v29  ;;  %9162 = vmatpush3.bf16.msra.mxu1 %v11021_v1  ;;  %v11093_v18 = vld [vmem:[%s12971_s6] ss:$0 sm:$0xff]  ;;  %s10697_s6 = smov 16  }
  0x54   :  { %10030 = vmatprep.subr.bf16.mxu0 %v10029_v31  ;;  %9163 = vmatprep.subr.bf16.mxu1 %v11024_v2 }
  0x57   :  { %10032 = vmatpush3.bf16.msra.mxu0 %v10031_v36  ;;  %9164 = vmatpush3.bf16.msra.mxu1 %v11027_v3 }
  0x58   :  { %10034 = vmatprep.subr.bf16.mxu0 %v10033_v39  ;;  %9165 = vmatprep.subr.bf16.mxu1 %v11024_v2 }
  0x5b   :  { %10036 = vmatpush3.bf16.msra.mxu0 %v10035_v42  ;;  %9166 = vmatpush3.bf16.msra.mxu1 %v11059_v10 }
  0x5c   :  { %10038 = vmatprep.subr.bf16.mxu0 %v10037_v45  ;;  %9191 = vmatprep.subr.bf16.mxu1 %v11024_v2 }
  0x5f   :  { %10040 = vmatpush3.bf16.msra.mxu0 %v10039_v48 }
  0x60   :  { %10042 = vmatprep.subr.bf16.mxu0 %v10041_v49 }
  0x63   :  { %10044 = vmatpush3.bf16.msra.mxu0 %v10043_v50 }
  0x64   :  { %9031 = vmatprep.subr.bf16.mxu0 %v10695_v0 }
  0x66   :  { %243 = vmatmul.mubr.f32.vlgmr.msra.gmra.mrb[0].mxu0 %v7744_v26 }
  0x67   :  { %9032 = vmatpush3.bf16.msra.mxu0 %v10191_v51  ;;  %9047 = vmatprep.mubr.msk.bf16.mxu0 %vm10696_vm0, %v10695_v0 }
  0x68   :  { %9033 = vmatprep.subr.bf16.mxu0 %v10695_v0 }
  0x6b   :  { %9034 = vmatpush3.bf16.msra.mxu0 %v10192_v52 }
  0x6c   :  { %9035 = vmatprep.subr.bf16.mxu0 %v10695_v0 }
  0x6f   :  { %9036 = vmatpush3.bf16.msra.mxu0 %v10193_v53 }
  0x70   :  { %9037 = vmatprep.subr.bf16.mxu0 %v10695_v0 }
  0x73   :  { %9038 = vmatpush3.bf16.msra.mxu0 %v10194_v54  ;;  %v10699_v54 = vmov 1966171168  }
  0x74   :  { %9039 = vmatprep.subr.bf16.mxu0 %v10695_v0 }
  0x77   :  { %9040 = vmatpush3.bf16.msra.mxu0 %v10195_v55  ;;  %v517_v55 = vunpack.c.l.s4 %v10699_v54 }
  0x78   :  { %9041 = vmatprep.subr.bf16.mxu0 %v10695_v0 }
  0x7b   :  { %9042 = vmatpush3.bf16.msra.mxu0 %v10196_v56  ;;  %v519_v56 = vlaneseq }
  0x7c   :  { %9043 = vmatprep.subr.bf16.mxu0 %v10695_v0 }
  0x7f   :  { %9044 = vmatpush3.bf16.msra.mxu0 %v10197_v57  ;;  %v518_v57 = vunpack.c.0.s8 %v517_v55 }
  0x80   :  { %9045 = vmatprep.subr.bf16.mxu0 %v10695_v0 }
  0x83   :  { %9046 = vmatpush3.bf16.msra.mxu0 %v10198_v58  ;;  %v11104_v58 = vshrl.u32 %v519_v56, 7 }
  0x84   :  { %9051 = vmatprep.subr.bf16.mxu0 %v10695_v0  ;;  %v7743_v0 = vld [vmem:[%s12998_s27] ss:$0 sm:$0xff] }
 0x139   :  { %v8547_v4 = vpop.f32.mrb[0].mxu0 }
 0x13a   :  { %v8548_v5 = vpop.f32.mrb[1].mxu0 }
 0x13b   :  { %v8549_v6 = vadd.f32 %v8548_v5, %v8547_v4  ;;  %v11107_v4 = vsub.s32 %v518_v57, %v11104_v58 }
 0x13d   :  { %v245_v7 = vadd.f32 %v8549_v6, %v7743_v0 }
 0x13f   :  { %248 = vst [vmem:[%s12984_s19] sm:$0x3] %v245_v7  ;;  %v11039_v8 = vmul.f32 0.5, %v245_v7  ;;  %v11113_v7 = vld [vmem:[%s12972_s7] sm:$0x1] }
 0x141   :  { %v286_v9 = vpack.c.bf16 %v11039_v8, %v11039_v8 }
 0x143   :  { %9048 = vmatmul.mubr.bf16.vlgmr.msra.gmra.mrb[4].mxu0 %v286_v9  ;;  %v11116_v9 = vsub.s32 0, %v11104_v58 }
 0x144   :  { %9052 = vmatpush3.bf16.msra.mxu0 %v11003_v59  ;;  %9067 = vmatprep.mubr.msk.bf16.mxu0 %vm10696_vm0, %v11024_v2 }
 0x145   :  { %9053 = vmatprep.subr.bf16.mxu0 %v11024_v2 }
 0x148   :  { %9054 = vmatpush3.bf16.msra.mxu0 %v11005_v60 }
 0x149   :  { %9055 = vmatprep.subr.bf16.mxu0 %v11024_v2 }
 0x14c   :  { %9056 = vmatpush3.bf16.msra.mxu0 %v11009_v61 }
 0x14d   :  { %9057 = vmatprep.subr.bf16.mxu0 %v11024_v2 }
 0x150   :  { %9058 = vmatpush3.bf16.msra.mxu0 %v11013_v62 }
 0x151   :  { %9059 = vmatprep.subr.bf16.mxu0 %v11024_v2 }
 0x154   :  { %9060 = vmatpush3.bf16.msra.mxu0 %v11017_v63 }
 0x155   :  { %9061 = vmatprep.subr.bf16.mxu0 %v11024_v2 }
 0x158   :  { %9062 = vmatpush3.bf16.msra.mxu0 %v11021_v1 }
 0x159   :  { %9063 = vmatprep.subr.bf16.mxu0 %v11024_v2 }
 0x15c   :  { %9064 = vmatpush3.bf16.msra.mxu0 %v11027_v3 }
 0x15d   :  { %9065 = vmatprep.subr.bf16.mxu0 %v11024_v2 }
 0x160   :  { %9066 = vmatpush3.bf16.msra.mxu0 %v11059_v10 }
 0x161   :  { %9071 = vmatprep.subr.bf16.mxu0 %v11024_v2 }
 0x216   :  { %v375_v12 = vpop.f32.mrb[4].mxu0 }
 0x217   :  { %v11068_v13 = vadd.f32 %v7745_v11, %v375_v12  ;;  %v9049_v14 = vpop.f32.mrb[5].mxu0 }
 0x218   :  { %v378_v15 = vpop.f32.mrb[6].mxu0  ;;  %v11123_v14 = vld [vmem:[%s12973_s8] sm:$0x1] }
 0x219   :  { %v381_v16 = vpack.c.bf16 %v11068_v13, %v11068_v13  ;;  %v9050_v17 = vpop.f32.mrb[7].mxu0 }
 0x21b   :  { %9068 = vmatmul.mubr.bf16.vlgmr.msra.gmra.mrb[8].mxu0 %v381_v16 }
 0x21c   :  { %9072 = vmatpush3.bf16.msra.mxu0 %v11003_v59  ;;  %9087 = vmatprep.mubr.msk.bf16.mxu0 %vm10696_vm0, %v11024_v2 }
 0x21d   :  { %9073 = vmatprep.subr.bf16.mxu0 %v11024_v2 }
 0x220   :  { %9074 = vmatpush3.bf16.msra.mxu0 %v11005_v60 }
 0x221   :  { %9075 = vmatprep.subr.bf16.mxu0 %v11024_v2 }
 0x224   :  { %9076 = vmatpush3.bf16.msra.mxu0 %v11009_v61 }
 0x225   :  { %9077 = vmatprep.subr.bf16.mxu0 %v11024_v2 }
 0x228   :  { %9078 = vmatpush3.bf16.msra.mxu0 %v11013_v62 }
 0x229   :  { %9079 = vmatprep.subr.bf16.mxu0 %v11024_v2 }
 0x22c   :  { %9080 = vmatpush3.bf16.msra.mxu0 %v11017_v63 }
 0x22d   :  { %9081 = vmatprep.subr.bf16.mxu0 %v11024_v2 }
 0x230   :  { %9082 = vmatpush3.bf16.msra.mxu0 %v11021_v1 }
 0x231   :  { %9083 = vmatprep.subr.bf16.mxu0 %v11024_v2 }
 0x234   :  { %9084 = vmatpush3.bf16.msra.mxu0 %v11027_v3 }
 0x235   :  { %9085 = vmatprep.subr.bf16.mxu0 %v11024_v2 }
 0x238   :  { %9086 = vmatpush3.bf16.msra.mxu0 %v11059_v10 }
 0x239   :  { %9091 = vmatprep.subr.bf16.mxu0 %v11024_v2 }
 0x2ee   :  { %v470_v19 = vpop.f32.mrb[8].mxu0 }
 0x2ef   :  { %v471_v20 = vadd.f32 %v11093_v18, %v470_v19  ;;  %v9069_v21 = vpop.f32.mrb[9].mxu0 }
 0x2f0   :  { %v473_v22 = vpop.f32.mrb[10].mxu0 }
 0x2f1   :  { %v477_v23 = vsel %vm476_vm1, %v471_v20, 0.0  ;;  %v484_v24 = vmul.f32 %v471_v20, %v471_v20  ;;  %v9070_v25 = vpop.f32.mrb[11].mxu0 }
 0x2f2   :  { %v478_v26 = vrot.slane %v477_v23, 4 }
 0x2f3   :  { %v485_v27 = vsel %vm476_vm1, %v484_v24, 0.0 }
 0x2f4   :  { %v479_v28 = vadd.f32 %v478_v26, %v477_v23  ;;  %v486_v29 = vrot.slane %v485_v27, 4 }
 0x2f6   :  { %v480_v30 = vrot.slane %v479_v28, 2  ;;  %v487_v31 = vadd.f32 %v486_v29, %v485_v27 }
 0x2f8   :  { %v481_v32 = vadd.f32 %v480_v30, %v479_v28  ;;  %v488_v33 = vrot.slane %v487_v31, 2 }
 0x2fa   :  { %v482_v34 = vrot.slane %v481_v32, 1  ;;  %v489_v35 = vadd.f32 %v488_v33, %v487_v31 }
 0x2fc   :  { %v490_v36 = vrot.slane %v489_v35, 1  ;;  %v483_v37 = vadd.f32 %v482_v34, %v481_v32 }
 0x2fe   :  { %v491_v38 = vadd.f32 %v490_v36, %v489_v35 }
 0x300   :  { %v493_v39 = vsel %vm492_vm2, %v483_v37, %v491_v38 }
 0x301   :  { %v494_v40 = vsel %vm476_vm1, %v493_v39, 0.0 }
 0x302   :  { %495 = vrot.lane.b32.xlu0 %v494_v40, %s10690_s29 }
 0x374   :  { %v496_v41 = vpop.permute.xlu0 %495 }
 0x375   :  { %v497_v42 = vadd.f32 %v496_v41, %v494_v40 }
 0x377   :  { %498 = vrot.lane.b32.xlu0 %v497_v42, %s10697_s6 }
 0x3e9   :  { %v499_v43 = vpop.permute.xlu0 %498 }
 0x3ea   :  { %v500_v44 = vadd.f32 %v499_v43, %v497_v42 }
 0x3ec   :  { %501 = vrot.lane.b32.xlu1 %v500_v44, %s10698_s30 }
 0x45e   :  { %v502_v45 = vpop.permute.xlu1 %501 }
 0x45f   :  { %v503_v46 = vadd.f32 %v502_v45, %v500_v44 }
 0x461   :  { %504 = vrot.lane.b32.xlu1 %v503_v46, %s10692_s9 }
 0x4d3   :  { %v505_v47 = vpop.permute.xlu1 %504 }
 0x4d4   :  { %v506_v48 = vadd.f32 %v505_v47, %v503_v46 }
 0x4d6   :  { %v507_v49 = vmul.f32 0.03125, %v506_v48 }
 0x4d8   :  { %v508_v50 = vmul.f32 %v507_v49, %v507_v49 }
 0x4da   :  { %v510_v51 = vrot.slane %v508_v50, 7 }
 0x4dc   :  { %v512_v52 = vsub.f32 %v507_v49, %v510_v51 }
 0x4de   :  { %v513_v53 = vadd.f32 1e-05, %v512_v52 }
 0x4e0   :  { %10534 = vrsqrt.f32 %v513_v53 }
 0x4ea   :  { %v10535_v0 = vpop.eup %10534 }
 0x4eb   :  { %v522_v5 = vrot.slane %v10535_v0, %v11107_v4 }
 0x4ed   :  { %v523_v6 = vcombine.high %v522_v5, %v522_v5 }
 0x4ef   :  { %v530_v11 = vrot.slane %v523_v6, %v11107_v4 }
 0x4f1   :  { %v532_v12 = vmul.f32 %v530_v11, %v11113_v7 }
 0x4f3   :  { %v537_v15 = vrot.slane %v532_v12, %v11116_v9  ;;  %v540_v16 = vmul.f32 %v532_v12, %v507_v49 }
 0x4f5   :  { %v541_v17 = vsub.f32 %v11123_v14, %v540_v16  ;;  %v539_v21 = vmul.f32 %v537_v15, %v471_v20 }
 0x4f7   :  { %v546_v19 = vrot.slane %v541_v17, %v11116_v9 }
 0x4f9   :  { %v548_v22 = vadd.f32 %v546_v19, %v539_v21 }
 0x4fb   :  { %v549_v23 = vmax.f32 %v548_v22, 0.0 }
 0x4fd   :  { %v550_v24 = vpack.c.bf16 %v549_v23, %v549_v23 }
 0x4ff   :  { %9088 = vmatmul.mubr.bf16.vlgmr.msra.gmra.mrb[12].mxu0 %v550_v24  ;;  %v11166_v24 = vld [vmem:[#allocation5] sm:$0xff]  }
 0x500   :  { %9092 = vmatpush3.bf16.msra.mxu0 %v11003_v59  ;;  %9107 = vmatprep.mubr.msk.bf16.mxu0 %vm10696_vm0, %v11024_v2 }
 0x501   :  { %9093 = vmatprep.subr.bf16.mxu0 %v11024_v2 }
 0x504   :  { %9094 = vmatpush3.bf16.msra.mxu0 %v11005_v60 }
 0x505   :  { %9095 = vmatprep.subr.bf16.mxu0 %v11024_v2 }
 0x508   :  { %9096 = vmatpush3.bf16.msra.mxu0 %v11009_v61 }
 0x509   :  { %9097 = vmatprep.subr.bf16.mxu0 %v11024_v2 }
 0x50c   :  { %9098 = vmatpush3.bf16.msra.mxu0 %v11013_v62 }
 0x50d   :  { %9099 = vmatprep.subr.bf16.mxu0 %v11024_v2 }
 0x510   :  { %9100 = vmatpush3.bf16.msra.mxu0 %v11017_v63 }
 0x511   :  { %9101 = vmatprep.subr.bf16.mxu0 %v11024_v2 }
 0x514   :  { %9102 = vmatpush3.bf16.msra.mxu0 %v11021_v1 }
 0x515   :  { %9103 = vmatprep.subr.bf16.mxu0 %v11024_v2 }
 0x518   :  { %9104 = vmatpush3.bf16.msra.mxu0 %v11027_v3 }
 0x519   :  { %9105 = vmatprep.subr.bf16.mxu0 %v11024_v2 }
 0x51c   :  { %9106 = vmatpush3.bf16.msra.mxu0 %v11059_v10 }
 0x51d   :  { %9111 = vmatprep.subr.bf16.mxu0 %v11024_v2 }
 0x5d2   :  { %v585_v59 = vpop.f32.mrb[12].mxu0 }
 0x5d3   :  { %v586_v60 = vadd.f32 %v11093_v18, %v585_v59  ;;  %v9089_v61 = vpop.f32.mrb[13].mxu0  ;;  %v11172_v59 = vld [vmem:[#allocation5 + $0x8] sm:$0xff]  }
 0x5d4   :  { %v588_v20 = vpop.f32.mrb[14].mxu0 }
 0x5d5   :  { %v591_v25 = vsel %vm476_vm1, %v586_v60, 0.0  ;;  %v598_v26 = vmul.f32 %v586_v60, %v586_v60  ;;  %v9090_v27 = vpop.f32.mrb[15].mxu0 }
 0x5d6   :  { %v592_v28 = vrot.slane %v591_v25, 4 }
 0x5d7   :  { %v599_v29 = vsel %vm476_vm1, %v598_v26, 0.0 }
 0x5d8   :  { %v593_v30 = vadd.f32 %v592_v28, %v591_v25  ;;  %v600_v31 = vrot.slane %v599_v29, 4 }
 0x5da   :  { %v594_v32 = vrot.slane %v593_v30, 2  ;;  %v601_v33 = vadd.f32 %v600_v31, %v599_v29 }
 0x5dc   :  { %v595_v34 = vadd.f32 %v594_v32, %v593_v30  ;;  %v602_v35 = vrot.slane %v601_v33, 2 }
 0x5de   :  { %v596_v36 = vrot.slane %v595_v34, 1  ;;  %v603_v37 = vadd.f32 %v602_v35, %v601_v33 }
 0x5e0   :  { %v604_v38 = vrot.slane %v603_v37, 1  ;;  %v597_v39 = vadd.f32 %v596_v36, %v595_v34 }
 0x5e2   :  { %v605_v40 = vadd.f32 %v604_v38, %v603_v37 }
 0x5e4   :  { %v606_v41 = vsel %vm492_vm2, %v597_v39, %v605_v40 }
 0x5e5   :  { %v607_v42 = vsel %vm476_vm1, %v606_v41, 0.0 }
 0x5e6   :  { %608 = vrot.lane.b32.xlu0 %v607_v42, %s10690_s29 }
 0x658   :  { %v609_v43 = vpop.permute.xlu0 %608 }
 0x659   :  { %v610_v44 = vadd.f32 %v609_v43, %v607_v42 }
 0x65b   :  { %611 = vrot.lane.b32.xlu1 %v610_v44, %s10697_s6 }
 0x6cd   :  { %v612_v45 = vpop.permute.xlu1 %611 }
 0x6ce   :  { %v613_v46 = vadd.f32 %v612_v45, %v610_v44 }
 0x6d0   :  { %614 = vrot.lane.b32.xlu0 %v613_v46, %s10698_s30 }
 0x742   :  { %v615_v47 = vpop.permute.xlu0 %614 }
 0x743   :  { %v616_v48 = vadd.f32 %v615_v47, %v613_v46 }
 0x745   :  { %617 = vrot.lane.b32.xlu1 %v616_v48, %s10692_s9 }
 0x7b7   :  { %v618_v49 = vpop.permute.xlu1 %617 }
 0x7b8   :  { %v619_v50 = vadd.f32 %v618_v49, %v616_v48 }
 0x7ba   :  { %v620_v51 = vmul.f32 0.03125, %v619_v50 }
 0x7bc   :  { %v621_v52 = vmul.f32 %v620_v51, %v620_v51 }
 0x7be   :  { %v623_v53 = vrot.slane %v621_v52, 7 }
 0x7c0   :  { %v625_v54 = vsub.f32 %v620_v51, %v623_v53 }
 0x7c2   :  { %v626_v55 = vadd.f32 1e-05, %v625_v54 }
 0x7c4   :  { %10536 = vrsqrt.f32 %v626_v55 }
 0x7ce   :  { %v10537_v56 = vpop.eup %10536 }
 0x7cf   :  { %v635_v57 = vrot.slane %v10537_v56, %v11107_v4 }
 0x7d1   :  { %v636_v0 = vcombine.high %v635_v57, %v635_v57 }
 0x7d3   :  { %v643_v5 = vrot.slane %v636_v0, %v11107_v4 }
 0x7d5   :  { %v645_v6 = vmul.f32 %v643_v5, %v11113_v7 }
 0x7d7   :  { %v650_v11 = vrot.slane %v645_v6, %v11116_v9  ;;  %v653_v12 = vmul.f32 %v645_v6, %v620_v51 }
 0x7d9   :  { %v654_v15 = vsub.f32 %v11123_v14, %v653_v12  ;;  %v652_v16 = vmul.f32 %v650_v11, %v586_v60 }
 0x7db   :  { %v659_v17 = vrot.slane %v654_v15, %v11116_v9 }
 0x7dd   :  { %v661_v19 = vadd.f32 %v659_v17, %v652_v16  ;;  %v11206_v17 = vld [vmem:[#allocation2] sm:$0xff] }
 0x7de   :  { %114 = vst.msk [vmem:[#allocation3] sm:$0xff] %vm113_vm3, %v11206_v17  ;;  %118 = vst.msk [vmem:[#allocation3 + $0x18] sm:$0xff] %vm113_vm3, %v11206_v17 }
 0x7df   :  { %v662_v21 = vadd.f32 %v661_v19, %v11068_v13  ;;  %v11176_v13 = vld [vmem:[#allocation5 + $0x10] sm:$0xff]   ;;  %v11215_v19 = vld [vmem:[#allocation5 + $0x18] sm:$0xff]   ;;  %115 = vst.msk [vmem:[#allocation3 + $0x8] sm:$0xff] %vm113_vm3, %v11206_v17  ;;  %119 = vst.msk [vmem:[#allocation3 + $0x20] sm:$0xff] %vm113_vm3, %v11206_v17 }
 0x7e0   :  { %117 = vst.msk [vmem:[#allocation3 + $0x10] sm:$0x3f] %vm116_vm5, %v11206_v17  ;;  %120 = vst.msk [vmem:[#allocation3 + $0x28] sm:$0x3f] %vm116_vm5, %v11206_v17 }
 0x7e1   :  { %v11162_v22 = vmax.f32 %v662_v21, 0.0  ;;  %v11219_v21 = vld [vmem:[#allocation5 + $0x20] sm:$0xff]  }
 0x7e3   :  { %v664_v23 = vpack.c.bf16 %v11162_v22, %v11162_v22 }
 0x7e5   :  { %9108 = vmatmul.mubr.bf16.vlgmr.msra.gmra.mrb[16].mxu0 %v664_v23  ;;  %v11223_v23 = vld [vmem:[#allocation5 + $0x28] sm:$0xff]  }
 0x7e6   :  { %9112 = vmatpush3.bf16.msra.mxu0 %v11166_v24  ;;  %9127 = vmatprep.mubr.msk.bf16.mxu0 %vm10696_vm0, %v11024_v2 }
 0x7e7   :  { %9113 = vmatprep.subr.bf16.mxu0 %v11024_v2 }
 0x7ea   :  { %9114 = vmatpush3.bf16.msra.mxu0 %v11172_v59 }
 0x7eb   :  { %9115 = vmatprep.subr.bf16.mxu0 %v11024_v2 }
 0x7ee   :  { %9116 = vmatpush3.bf16.msra.mxu0 %v11176_v13 }
 0x7ef   :  { %9117 = vmatprep.subr.bf16.mxu0 %v11024_v2 }
 0x7f2   :  { %9118 = vmatpush3.bf16.msra.mxu0 %v11013_v62 }
 0x7f3   :  { %9119 = vmatprep.subr.bf16.mxu0 %v11024_v2 }
 0x7f6   :  { %9120 = vmatpush3.bf16.msra.mxu0 %v11017_v63 }
 0x7f7   :  { %9121 = vmatprep.subr.bf16.mxu0 %v11024_v2 }
 0x7fa   :  { %9122 = vmatpush3.bf16.msra.mxu0 %v11021_v1 }
 0x7fb   :  { %9123 = vmatprep.subr.bf16.mxu0 %v11024_v2 }
 0x7fe   :  { %9124 = vmatpush3.bf16.msra.mxu0 %v11027_v3 }
 0x7ff   :  { %9125 = vmatprep.subr.bf16.mxu0 %v11024_v2 }
 0x802   :  { %9126 = vmatpush3.bf16.msra.mxu0 %v11059_v10 }
 0x803   :  { %9131 = vmatprep.subr.bf16.mxu0 %v11024_v2 }
 0x8b8   :  { %v699_v60 = vpop.f32.mrb[16].mxu0 }
 0x8b9   :  { %v700_v62 = vadd.f32 %v11093_v18, %v699_v60  ;;  %v9109_v61 = vpop.f32.mrb[17].mxu0  ;;  %v11227_v60 = vld [vmem:[#allocation5 + $0x30] sm:$0xff]  }
 0x8ba   :  { %v702_v20 = vpop.f32.mrb[18].mxu0 }
 0x8bb   :  { %v705_v63 = vsel %vm476_vm1, %v700_v62, 0.0  ;;  %v712_v25 = vmul.f32 %v700_v62, %v700_v62  ;;  %v9110_v26 = vpop.f32.mrb[19].mxu0 }
 0x8bc   :  { %v706_v1 = vrot.slane %v705_v63, 4 }
 0x8bd   :  { %v713_v27 = vsel %vm476_vm1, %v712_v25, 0.0 }
 0x8be   :  { %v707_v28 = vadd.f32 %v706_v1, %v705_v63  ;;  %v714_v3 = vrot.slane %v713_v27, 4 }
 0x8c0   :  { %v708_v29 = vrot.slane %v707_v28, 2  ;;  %v715_v30 = vadd.f32 %v714_v3, %v713_v27 }
 0x8c2   :  { %v709_v31 = vadd.f32 %v708_v29, %v707_v28  ;;  %v716_v32 = vrot.slane %v715_v30, 2 }
 0x8c4   :  { %v710_v33 = vrot.slane %v709_v31, 1  ;;  %v717_v2 = vadd.f32 %v716_v32, %v715_v30 }
 0x8c6   :  { %v718_v34 = vrot.slane %v717_v2, 1  ;;  %v711_v35 = vadd.f32 %v710_v33, %v709_v31 }
 0x8c8   :  { %v719_v36 = vadd.f32 %v718_v34, %v717_v2 }
 0x8ca   :  { %v720_v37 = vsel %vm492_vm2, %v711_v35, %v719_v36 }
 0x8cb   :  { %v721_v38 = vsel %vm476_vm1, %v720_v37, 0.0 }
 0x8cc   :  { %722 = vrot.lane.b32.xlu0 %v721_v38, %s10690_s29 }
 0x93e   :  { %v723_v39 = vpop.permute.xlu0 %722 }
 0x93f   :  { %v724_v40 = vadd.f32 %v723_v39, %v721_v38 }
 0x941   :  { %725 = vrot.lane.b32.xlu1 %v724_v40, %s10697_s6 }
 0x9b3   :  { %v726_v41 = vpop.permute.xlu1 %725 }
 0x9b4   :  { %v727_v42 = vadd.f32 %v726_v41, %v724_v40 }
 0x9b6   :  { %728 = vrot.lane.b32.xlu0 %v727_v42, %s10698_s30 }
 0xa28   :  { %v729_v43 = vpop.permute.xlu0 %728 }
 0xa29   :  { %v730_v44 = vadd.f32 %v729_v43, %v727_v42 }
 0xa2b   :  { %731 = vrot.lane.b32.xlu1 %v730_v44, %s10692_s9 }
 0xa9d   :  { %v732_v45 = vpop.permute.xlu1 %731 }
 0xa9e   :  { %v733_v46 = vadd.f32 %v732_v45, %v730_v44 }
 0xaa0   :  { %v734_v47 = vmul.f32 0.03125, %v733_v46 }
 0xaa2   :  { %v735_v48 = vmul.f32 %v734_v47, %v734_v47 }
 0xaa4   :  { %v737_v49 = vrot.slane %v735_v48, 7 }
 0xaa6   :  { %v739_v50 = vsub.f32 %v734_v47, %v737_v49 }
 0xaa8   :  { %v740_v51 = vadd.f32 1e-05, %v739_v50 }
 0xaaa   :  { %10538 = vrsqrt.f32 %v740_v51 }
 0xab4   :  { %v10539_v52 = vpop.eup %10538 }
 0xab5   :  { %v749_v53 = vrot.slane %v10539_v52, %v11107_v4 }
 0xab7   :  { %v750_v54 = vcombine.high %v749_v53, %v749_v53 }
 0xab9   :  { %v757_v55 = vrot.slane %v750_v54, %v11107_v4 }
 0xabb   :  { %v759_v56 = vmul.f32 %v757_v55, %v11113_v7 }
 0xabd   :  { %v764_v57 = vrot.slane %v759_v56, %v11116_v9  ;;  %v767_v0 = vmul.f32 %v759_v56, %v734_v47 }
 0xabf   :  { %v768_v5 = vsub.f32 %v11123_v14, %v767_v0  ;;  %v766_v11 = vmul.f32 %v764_v57, %v700_v62 }
 0xac1   :  { %v773_v6 = vrot.slane %v768_v5, %v11116_v9 }
 0xac3   :  { %v775_v12 = vadd.f32 %v773_v6, %v766_v11 }
 0xac5   :  { %v776_v15 = vmax.f32 %v775_v12, 0.0 }
 0xac7   :  { %v777_v16 = vpack.c.bf16 %v776_v15, %v776_v15 }
 0xac9   :  { %9128 = vmatmul.mubr.bf16.vlgmr.msra.gmra.mrb[20].mxu0 %v777_v16 }
 0xaca   :  { %9132 = vmatpush3.bf16.msra.mxu0 %v11166_v24  ;;  %9147 = vmatprep.mubr.msk.bf16.mxu0 %vm10696_vm0, %v11206_v17 }
 0xacb   :  { %9133 = vmatprep.subr.bf16.mxu0 %v11206_v17 }
 0xace   :  { %9134 = vmatpush3.bf16.msra.mxu0 %v11172_v59 }
 0xacf   :  { %9135 = vmatprep.subr.bf16.mxu0 %v11206_v17 }
 0xad2   :  { %9136 = vmatpush3.bf16.msra.mxu0 %v11176_v13 }
 0xad3   :  { %9137 = vmatprep.subr.bf16.mxu0 %v11206_v17 }
 0xad6   :  { %9138 = vmatpush3.bf16.msra.mxu0 %v11215_v19 }
 0xad7   :  { %9139 = vmatprep.subr.bf16.mxu0 %v11206_v17 }
 0xada   :  { %9140 = vmatpush3.bf16.msra.mxu0 %v11219_v21 }
 0xadb   :  { %9141 = vmatprep.subr.bf16.mxu0 %v11206_v17 }
 0xade   :  { %9142 = vmatpush3.bf16.msra.mxu0 %v11223_v23 }
 0xadf   :  { %9143 = vmatprep.subr.bf16.mxu0 %v11206_v17 }
 0xae2   :  { %9144 = vmatpush3.bf16.msra.mxu0 %v11227_v60 }
 0xae3   :  { %9145 = vmatprep.subr.bf16.mxu0 %v11206_v17 }
 0xae6   :  { %9146 = vmatpush3.bf16.msra.mxu0 %v11059_v10 }
 0xae7   :  { %9171 = vmatprep.subr.bf16.mxu0 %v11206_v17 }
 0xb9c   :  { %v812_v62 = vpop.f32.mrb[20].mxu0 }
 0xb9d   :  { %v813_v61 = vadd.f32 %v11093_v18, %v812_v62  ;;  %v9129_v20 = vpop.f32.mrb[21].mxu0 }
 0xb9e   :  { %v815_v63 = vpop.f32.mrb[22].mxu0 }
 0xb9f   :  { %v818_v25 = vsel %vm476_vm1, %v813_v61, 0.0  ;;  %v825_v26 = vmul.f32 %v813_v61, %v813_v61  ;;  %v9130_v1 = vpop.f32.mrb[23].mxu0 }
 0xba0   :  { %v819_v27 = vrot.slane %v818_v25, 4 }
 0xba1   :  { %v826_v28 = vsel %vm476_vm1, %v825_v26, 0.0 }
 0xba2   :  { %v820_v3 = vadd.f32 %v819_v27, %v818_v25  ;;  %v827_v29 = vrot.slane %v826_v28, 4 }
 0xba4   :  { %v821_v30 = vrot.slane %v820_v3, 2  ;;  %v828_v31 = vadd.f32 %v827_v29, %v826_v28 }
 0xba6   :  { %v822_v32 = vadd.f32 %v821_v30, %v820_v3  ;;  %v829_v33 = vrot.slane %v828_v31, 2 }
 0xba8   :  { %v823_v2 = vrot.slane %v822_v32, 1  ;;  %v830_v34 = vadd.f32 %v829_v33, %v828_v31 }
 0xbaa   :  { %v831_v35 = vrot.slane %v830_v34, 1  ;;  %v824_v36 = vadd.f32 %v823_v2, %v822_v32 }
 0xbac   :  { %v832_v37 = vadd.f32 %v831_v35, %v830_v34 }
 0xbae   :  { %v833_v38 = vsel %vm492_vm2, %v824_v36, %v832_v37 }
 0xbaf   :  { %v834_v39 = vsel %vm476_vm1, %v833_v38, 0.0 }
 0xbb0   :  { %835 = vrot.lane.b32.xlu0 %v834_v39, %s10690_s29 }
 0xc22   :  { %v836_v40 = vpop.permute.xlu0 %835 }
 0xc23   :  { %v837_v41 = vadd.f32 %v836_v40, %v834_v39 }
 0xc25   :  { %838 = vrot.lane.b32.xlu1 %v837_v41, %s10697_s6 }
 0xc97   :  { %v839_v42 = vpop.permute.xlu1 %838 }
 0xc98   :  { %v840_v43 = vadd.f32 %v839_v42, %v837_v41 }
 0xc9a   :  { %841 = vrot.lane.b32.xlu0 %v840_v43, %s10698_s30 }
 0xd0c   :  { %v842_v44 = vpop.permute.xlu0 %841 }
 0xd0d   :  { %v843_v45 = vadd.f32 %v842_v44, %v840_v43 }
 0xd0f   :  { %844 = vrot.lane.b32.xlu1 %v843_v45, %s10692_s9 }
 0xd81   :  { %v845_v46 = vpop.permute.xlu1 %844 }
 0xd82   :  { %v846_v47 = vadd.f32 %v845_v46, %v843_v45 }
 0xd84   :  { %v847_v48 = vmul.f32 0.03125, %v846_v47 }
 0xd86   :  { %v848_v49 = vmul.f32 %v847_v48, %v847_v48 }
 0xd88   :  { %v850_v50 = vrot.slane %v848_v49, 7 }
 0xd8a   :  { %v852_v51 = vsub.f32 %v847_v48, %v850_v50 }
 0xd8c   :  { %v853_v52 = vadd.f32 1e-05, %v852_v51 }
 0xd8e   :  { %10540 = vrsqrt.f32 %v853_v52 }
 0xd98   :  { %v10541_v53 = vpop.eup %10540 }
 0xd99   :  { %v862_v54 = vrot.slane %v10541_v53, %v11107_v4 }
 0xd9b   :  { %v863_v55 = vcombine.high %v862_v54, %v862_v54 }
 0xd9d   :  { %v870_v56 = vrot.slane %v863_v55, %v11107_v4 }
 0xd9f   :  { %v872_v57 = vmul.f32 %v870_v56, %v11113_v7 }
 0xda1   :  { %v877_v0 = vrot.slane %v872_v57, %v11116_v9  ;;  %v880_v5 = vmul.f32 %v872_v57, %v847_v48 }
 0xda3   :  { %v881_v6 = vsub.f32 %v11123_v14, %v880_v5  ;;  %v879_v11 = vmul.f32 %v877_v0, %v813_v61 }
 0xda5   :  { %v886_v12 = vrot.slane %v881_v6, %v11116_v9 }
 0xda7   :  { %v888_v15 = vadd.f32 %v886_v12, %v879_v11 }
 0xda9   :  { %v889_v16 = vadd.f32 %v888_v15, %v11162_v22 }
 0xdab   :  { %v11249_v62 = vmax.f32 %v889_v16, 0.0 }
 0xdad   :  { %v891_v20 = vpack.c.bf16 %v11249_v62, %v11249_v62 }
 0xdaf   :  { %9148 = vmatmul.mubr.bf16.vlgmr.msra.gmra.mrb[24].mxu0 %v891_v20 }
 0xdb0   :  { %9172 = vmatpush3.bf16.msra.mxu0 %v11166_v24  ;;  %9187 = vmatprep.mubr.msk.bf16.mxu0 %vm10696_vm0, %v11206_v17 }
 0xdb1   :  { %9173 = vmatprep.subr.bf16.mxu0 %v11206_v17 }
 0xdb4   :  { %9174 = vmatpush3.bf16.msra.mxu0 %v11172_v59 }
 0xdb5   :  { %9175 = vmatprep.subr.bf16.mxu0 %v11206_v17 }
 0xdb8   :  { %9176 = vmatpush3.bf16.msra.mxu0 %v11176_v13 }
 0xdb9   :  { %9177 = vmatprep.subr.bf16.mxu0 %v11206_v17 }
 0xdbc   :  { %9178 = vmatpush3.bf16.msra.mxu0 %v11215_v19 }
 0xdbd   :  { %9179 = vmatprep.subr.bf16.mxu0 %v11206_v17 }
 0xdc0   :  { %9180 = vmatpush3.bf16.msra.mxu0 %v11219_v21 }
 0xdc1   :  { %9181 = vmatprep.subr.bf16.mxu0 %v11206_v17 }
 0xdc4   :  { %9182 = vmatpush3.bf16.msra.mxu0 %v11223_v23 }
 0xdc5   :  { %9183 = vmatprep.subr.bf16.mxu0 %v11206_v17 }
 0xdc8   :  { %9184 = vmatpush3.bf16.msra.mxu0 %v11227_v60 }
 0xdc9   :  { %9185 = vmatprep.subr.bf16.mxu0 %v11206_v17 }
 0xdcc   :  { %9186 = vmatpush3.bf16.msra.mxu0 %v11059_v10 }
 0xdcd   :  { %9211 = vmatprep.subr.bf16.mxu0 %v11206_v17 }
 0xe82   :  { %v926_v22 = vpop.f32.mrb[24].mxu0 }
 0xe83   :  { %v927_v61 = vadd.f32 %v11093_v18, %v926_v22  ;;  %v9149_v63 = vpop.f32.mrb[25].mxu0 }
 0xe84   :  { %v929_v25 = vpop.f32.mrb[26].mxu0 }
 0xe85   :  { %v932_v26 = vsel %vm476_vm1, %v927_v61, 0.0  ;;  %v939_v1 = vmul.f32 %v927_v61, %v927_v61  ;;  %v9150_v27 = vpop.f32.mrb[27].mxu0 }
 0xe86   :  { %v933_v28 = vrot.slane %v932_v26, 4 }
 0xe87   :  { %v940_v3 = vsel %vm476_vm1, %v939_v1, 0.0 }
 0xe88   :  { %v934_v29 = vadd.f32 %v933_v28, %v932_v26  ;;  %v941_v30 = vrot.slane %v940_v3, 4 }
 0xe8a   :  { %v935_v31 = vrot.slane %v934_v29, 2  ;;  %v942_v32 = vadd.f32 %v941_v30, %v940_v3 }
 0xe8c   :  { %v936_v33 = vadd.f32 %v935_v31, %v934_v29  ;;  %v943_v2 = vrot.slane %v942_v32, 2 }
 0xe8e   :  { %v937_v34 = vrot.slane %v936_v33, 1  ;;  %v944_v35 = vadd.f32 %v943_v2, %v942_v32 }
 0xe90   :  { %v945_v36 = vrot.slane %v944_v35, 1  ;;  %v938_v37 = vadd.f32 %v937_v34, %v936_v33 }
 0xe92   :  { %v946_v38 = vadd.f32 %v945_v36, %v944_v35 }
 0xe94   :  { %v947_v39 = vsel %vm492_vm2, %v938_v37, %v946_v38 }
 0xe95   :  { %v948_v40 = vsel %vm476_vm1, %v947_v39, 0.0 }
 0xe96   :  { %949 = vrot.lane.b32.xlu0 %v948_v40, %s10690_s29 }
 0xf08   :  { %v950_v41 = vpop.permute.xlu0 %949 }
 0xf09   :  { %v951_v42 = vadd.f32 %v950_v41, %v948_v40 }
 0xf0b   :  { %952 = vrot.lane.b32.xlu1 %v951_v42, %s10697_s6 }
 0xf7d   :  { %v953_v43 = vpop.permute.xlu1 %952 }
 0xf7e   :  { %v954_v44 = vadd.f32 %v953_v43, %v951_v42 }
 0xf80   :  { %955 = vrot.lane.b32.xlu0 %v954_v44, %s10698_s30 }
 0xff2   :  { %v956_v45 = vpop.permute.xlu0 %955 }
 0xff3   :  { %v957_v46 = vadd.f32 %v956_v45, %v954_v44 }
 0xff5   :  { %958 = vrot.lane.b32.xlu1 %v957_v46, %s10692_s9 }
0x1067   :  { %v959_v47 = vpop.permute.xlu1 %958 }
0x1068   :  { %v960_v48 = vadd.f32 %v959_v47, %v957_v46 }
0x106a   :  { %v961_v49 = vmul.f32 0.03125, %v960_v48 }
0x106c   :  { %v962_v50 = vmul.f32 %v961_v49, %v961_v49 }
0x106e   :  { %v964_v51 = vrot.slane %v962_v50, 7 }
0x1070   :  { %v966_v52 = vsub.f32 %v961_v49, %v964_v51 }
0x1072   :  { %v967_v53 = vadd.f32 1e-05, %v966_v52 }
0x1074   :  { %10542 = vrsqrt.f32 %v967_v53 }
0x107e   :  { %v10543_v54 = vpop.eup %10542 }
0x107f   :  { %v976_v55 = vrot.slane %v10543_v54, %v11107_v4 }
0x1081   :  { %v977_v56 = vcombine.high %v976_v55, %v976_v55 }
0x1083   :  { %v984_v57 = vrot.slane %v977_v56, %v11107_v4 }
0x1085   :  { %v986_v0 = vmul.f32 %v984_v57, %v11113_v7 }
0x1087   :  { %v994_v5 = vmul.f32 %v986_v0, %v961_v49  ;;  %v991_v6 = vrot.slane %v986_v0, %v11116_v9 }
0x1089   :  { %v995_v11 = vsub.f32 %v11123_v14, %v994_v5  ;;  %v993_v12 = vmul.f32 %v991_v6, %v927_v61 }
0x108b   :  { %v1000_v15 = vrot.slane %v995_v11, %v11116_v9  ;;  %v10579_v11 = vld [vmem:[%s12997_s3] sm:$0xff]  }
0x108d   :  { %v1002_v16 = vadd.f32 %v1000_v15, %v993_v12  ;;  %v10581_v12 = vld [vmem:[%s12997_s3 + $0x10] sm:$0xff]   ;;  %v10582_v15 = vld [vmem:[%s12997_s3 + $0x18] sm:$0xff]  }
0x108f   :  { %v1003_v20 = vmax.f32 %v1002_v16, 0.0  ;;  %v10583_v16 = vld [vmem:[%s12997_s3 + $0x20] sm:$0xff]  }
0x1091   :  { %v1004_v22 = vpack.c.bf16 %v1003_v20, %v1003_v20  ;;  %v10584_v20 = vld [vmem:[%s12997_s3 + $0x28] sm:$0xff]  }
0x1093   :  { %9168 = vmatmul.mubr.bf16.vlgmr.msra.gmra.mrb[0].mxu1 %v1004_v22  ;;  %v10585_v22 = vld [vmem:[%s12997_s3 + $0x30] sm:$0xff]  }
0x1094   :  { %9192 = vmatpush3.bf16.msra.mxu1 %v11166_v24  ;;  %9207 = vmatprep.mubr.msk.bf16.mxu1 %vm10696_vm0, %v11206_v17 }
0x1095   :  { %9193 = vmatprep.subr.bf16.mxu1 %v11206_v17 }
0x1098   :  { %9194 = vmatpush3.bf16.msra.mxu1 %v11172_v59 }
0x1099   :  { %9195 = vmatprep.subr.bf16.mxu1 %v11206_v17 }
0x109c   :  { %9196 = vmatpush3.bf16.msra.mxu1 %v11176_v13 }
0x109d   :  { %9197 = vmatprep.subr.bf16.mxu1 %v11206_v17 }
0x10a0   :  { %9198 = vmatpush3.bf16.msra.mxu1 %v11215_v19 }
0x10a1   :  { %9199 = vmatprep.subr.bf16.mxu1 %v11206_v17 }
0x10a4   :  { %9200 = vmatpush3.bf16.msra.mxu1 %v11219_v21 }
0x10a5   :  { %9201 = vmatprep.subr.bf16.mxu1 %v11206_v17 }
0x10a8   :  { %9202 = vmatpush3.bf16.msra.mxu1 %v11223_v23 }
0x10a9   :  { %9203 = vmatprep.subr.bf16.mxu1 %v11206_v17 }
0x10ac   :  { %9204 = vmatpush3.bf16.msra.mxu1 %v11227_v60 }
0x10ad   :  { %9205 = vmatprep.subr.bf16.mxu1 %v11206_v17 }
0x10b0   :  { %9206 = vmatpush3.bf16.msra.mxu1 %v11059_v10 }
0x1166   :  { %v1039_v24 = vpop.f32.mrb[0].mxu1 }
0x1167   :  { %v1040_v59 = vadd.f32 %v11093_v18, %v1039_v24  ;;  %v9169_v13 = vpop.f32.mrb[1].mxu1  ;;  %v10586_v24 = vld [vmem:[%s12997_s3 + $0x38] sm:$0xff]  }
0x1168   :  { %v1042_v19 = vpop.f32.mrb[2].mxu1 }
0x1169   :  { %v1045_v61 = vsel %vm476_vm1, %v1040_v59, 0.0  ;;  %v1052_v21 = vmul.f32 %v1040_v59, %v1040_v59  ;;  %v9170_v63 = vpop.f32.mrb[3].mxu1 }
0x116a   :  { %v1046_v25 = vrot.slane %v1045_v61, 4 }
0x116b   :  { %v1053_v23 = vsel %vm476_vm1, %v1052_v21, 0.0 }
0x116c   :  { %v1047_v26 = vadd.f32 %v1046_v25, %v1045_v61  ;;  %v1054_v1 = vrot.slane %v1053_v23, 4 }
0x116e   :  { %v1048_v27 = vrot.slane %v1047_v26, 2  ;;  %v1055_v60 = vadd.f32 %v1054_v1, %v1053_v23 }
0x1170   :  { %v1049_v28 = vadd.f32 %v1048_v27, %v1047_v26  ;;  %v1056_v3 = vrot.slane %v1055_v60, 2 }
0x1172   :  { %v1050_v29 = vrot.slane %v1049_v28, 1  ;;  %v1057_v10 = vadd.f32 %v1056_v3, %v1055_v60 }
0x1174   :  { %v1058_v30 = vrot.slane %v1057_v10, 1  ;;  %v1051_v31 = vadd.f32 %v1050_v29, %v1049_v28 }
0x1176   :  { %v1059_v32 = vadd.f32 %v1058_v30, %v1057_v10 }
0x1178   :  { %v1060_v33 = vsel %vm492_vm2, %v1051_v31, %v1059_v32 }
0x1179   :  { %v1061_v2 = vsel %vm476_vm1, %v1060_v33, 0.0 }
0x117a   :  { %1062 = vrot.lane.b32.xlu0 %v1061_v2, %s10690_s29 }
0x11ec   :  { %v1063_v34 = vpop.permute.xlu0 %1062 }
0x11ed   :  { %v1064_v35 = vadd.f32 %v1063_v34, %v1061_v2 }
0x11ef   :  { %1065 = vrot.lane.b32.xlu1 %v1064_v35, %s10697_s6 }
0x1261   :  { %v1066_v36 = vpop.permute.xlu1 %1065 }
0x1262   :  { %v1067_v37 = vadd.f32 %v1066_v36, %v1064_v35 }
0x1264   :  { %1068 = vrot.lane.b32.xlu0 %v1067_v37, %s10698_s30 }
0x12d6   :  { %v1069_v38 = vpop.permute.xlu0 %1068 }
0x12d7   :  { %v1070_v39 = vadd.f32 %v1069_v38, %v1067_v37 }
0x12d9   :  { %1071 = vrot.lane.b32.xlu1 %v1070_v39, %s10692_s9 }
0x134b   :  { %v1072_v40 = vpop.permute.xlu1 %1071 }
0x134c   :  { %v1073_v41 = vadd.f32 %v1072_v40, %v1070_v39 }
0x134e   :  { %v1074_v42 = vmul.f32 0.03125, %v1073_v41 }
0x1350   :  { %v1075_v43 = vmul.f32 %v1074_v42, %v1074_v42 }
0x1352   :  { %v1077_v44 = vrot.slane %v1075_v43, 7 }
0x1354   :  { %v1079_v45 = vsub.f32 %v1074_v42, %v1077_v44 }
0x1356   :  { %v1080_v46 = vadd.f32 1e-05, %v1079_v45 }
0x1358   :  { %10544 = vrsqrt.f32 %v1080_v46 }
0x1362   :  { %v10545_v47 = vpop.eup %10544 }
0x1363   :  { %v1089_v48 = vrot.slane %v10545_v47, %v11107_v4 }
0x1365   :  { %v1090_v49 = vcombine.high %v1089_v48, %v1089_v48 }
0x1367   :  { %v1097_v50 = vrot.slane %v1090_v49, %v11107_v4 }
0x1369   :  { %v1099_v51 = vmul.f32 %v1097_v50, %v11113_v7 }
0x136b   :  { %v1104_v52 = vrot.slane %v1099_v51, %v11116_v9  ;;  %v1107_v53 = vmul.f32 %v1099_v51, %v1074_v42 }
0x136d   :  { %v1108_v54 = vsub.f32 %v11123_v14, %v1107_v53  ;;  %v1106_v55 = vmul.f32 %v1104_v52, %v1040_v59 }
0x136f   :  { %v1113_v56 = vrot.slane %v1108_v54, %v11116_v9 }
0x1371   :  { %v1115_v57 = vadd.f32 %v1113_v56, %v1106_v55 }
0x1373   :  { %v1116_v0 = vadd.f32 %v1115_v57, %v11249_v62  ;;  %v10580_v62 = vld [vmem:[%s12997_s3 + $0x8] sm:$0xff]  }
0x1375   :  { %v11319_v5 = vmax.f32 %v1116_v0, 0.0 }
0x1377   :  { %v1118_v6 = vpack.c.bf16 %v11319_v5, %v11319_v5 }
0x1379   :  { %9188 = vmatmul.mubr.bf16.vlgmr.msra.gmra.mrb[28].mxu0 %v1118_v6 }
0x137a   :  { %9212 = vmatpush3.bf16.msra.mxu0 %v10579_v11  ;;  %9227 = vmatprep.mubr.msk.bf16.mxu0 %vm10696_vm0, %v11206_v17 }
0x137b   :  { %9213 = vmatprep.subr.bf16.mxu0 %v11206_v17 }
0x137e   :  { %9214 = vmatpush3.bf16.msra.mxu0 %v10580_v62 }
0x137f   :  { %9215 = vmatprep.subr.bf16.mxu0 %v11206_v17 }
0x1382   :  { %9216 = vmatpush3.bf16.msra.mxu0 %v10581_v12 }
0x1383   :  { %9217 = vmatprep.subr.bf16.mxu0 %v11206_v17 }
0x1386   :  { %9218 = vmatpush3.bf16.msra.mxu0 %v10582_v15 }
0x1387   :  { %9219 = vmatprep.subr.bf16.mxu0 %v11206_v17 }
0x138a   :  { %9220 = vmatpush3.bf16.msra.mxu0 %v10583_v16 }
0x138b   :  { %9221 = vmatprep.subr.bf16.mxu0 %v11206_v17 }
0x138e   :  { %9222 = vmatpush3.bf16.msra.mxu0 %v10584_v20 }
0x138f   :  { %9223 = vmatprep.subr.bf16.mxu0 %v11206_v17 }
0x1392   :  { %9224 = vmatpush3.bf16.msra.mxu0 %v10585_v22 }
0x1393   :  { %9225 = vmatprep.subr.bf16.mxu0 %v11206_v17 }
0x1396   :  { %9226 = vmatpush3.bf16.msra.mxu0 %v10586_v24 }
0x144c   :  { %v1153_v59 = vpop.f32.mrb[28].mxu0 }
0x144d   :  { %v1154_v13 = vadd.f32 %v11093_v18, %v1153_v59  ;;  %v9189_v19 = vpop.f32.mrb[29].mxu0 }
0x144e   :  { %v1156_v61 = vpop.f32.mrb[30].mxu0 }
0x144f   :  { %v1159_v21 = vsel %vm476_vm1, %v1154_v13, 0.0  ;;  %v1166_v63 = vmul.f32 %v1154_v13, %v1154_v13  ;;  %v9190_v25 = vpop.f32.mrb[31].mxu0 }
0x1450   :  { %v1160_v23 = vrot.slane %v1159_v21, 4 }
0x1451   :  { %v1167_v26 = vsel %vm476_vm1, %v1166_v63, 0.0 }
0x1452   :  { %v1161_v1 = vadd.f32 %v1160_v23, %v1159_v21  ;;  %v1168_v27 = vrot.slane %v1167_v26, 4 }
0x1454   :  { %v1162_v60 = vrot.slane %v1161_v1, 2  ;;  %v1169_v28 = vadd.f32 %v1168_v27, %v1167_v26 }
0x1456   :  { %v1163_v3 = vadd.f32 %v1162_v60, %v1161_v1  ;;  %v1170_v29 = vrot.slane %v1169_v28, 2 }
0x1458   :  { %v1164_v10 = vrot.slane %v1163_v3, 1  ;;  %v1171_v30 = vadd.f32 %v1170_v29, %v1169_v28 }
0x145a   :  { %v1172_v31 = vrot.slane %v1171_v30, 1  ;;  %v1165_v32 = vadd.f32 %v1164_v10, %v1163_v3 }
0x145c   :  { %v1173_v33 = vadd.f32 %v1172_v31, %v1171_v30 }
0x145e   :  { %v1174_v2 = vsel %vm492_vm2, %v1165_v32, %v1173_v33 }
0x145f   :  { %v1175_v34 = vsel %vm476_vm1, %v1174_v2, 0.0  ;;  %v10207_v2 = vld [vmem:[#allocation8] ss:$8 sps:$4 sm:$0xff]  }
0x1460   :  { %1176 = vrot.lane.b32.xlu0 %v1175_v34, %s10690_s29 }
0x14d2   :  { %v1177_v35 = vpop.permute.xlu0 %1176 }
0x14d3   :  { %v1178_v36 = vadd.f32 %v1177_v35, %v1175_v34  ;;  %v10209_v34 = vld [vmem:[#allocation8 + $0x4] ss:$8 sps:$4 sm:$0xff]   ;;  %v10212_v35 = vld [vmem:[#allocation8 + $0x14] ss:$8 sps:$4 sm:$0xff]  }
0x14d4   :  { %1498 = vmatprep.subr.bf16.mxu1 %v10209_v34 }
0x14d5   :  { %1179 = vrot.lane.b32.xlu1 %v1178_v36, %s10697_s6 }
0x1547   :  { %v1180_v37 = vpop.permute.xlu1 %1179 }
0x1548   :  { %v1181_v38 = vadd.f32 %v1180_v37, %v1178_v36  ;;  %v10210_v36 = vld [vmem:[#allocation8 + $0x10] ss:$8 sps:$4 sm:$0xff]   ;;  %v10215_v37 = vld [vmem:[#allocation8 + $0x24] ss:$8 sps:$4 sm:$0xff]  }
0x154a   :  { %1182 = vrot.lane.b32.xlu0 %v1181_v38, %s10698_s30 }
0x15bc   :  { %v1183_v39 = vpop.permute.xlu0 %1182 }
0x15bd   :  { %v1184_v40 = vadd.f32 %v1183_v39, %v1181_v38  ;;  %v10213_v38 = vld [vmem:[#allocation8 + $0x20] ss:$8 sps:$4 sm:$0xff]   ;;  %v10218_v39 = vld [vmem:[#allocation8 + $0x34] ss:$8 sps:$4 sm:$0xff]  }
0x15bf   :  { %1185 = vrot.lane.b32.xlu1 %v1184_v40, %s10692_s9 }
0x1631   :  { %v1186_v41 = vpop.permute.xlu1 %1185 }
0x1632   :  { %v1187_v42 = vadd.f32 %v1186_v41, %v1184_v40  ;;  %v10216_v40 = vld [vmem:[#allocation8 + $0x30] ss:$8 sps:$4 sm:$0xff]   ;;  %v10221_v41 = vld [vmem:[#allocation8 + $0x44] ss:$8 sps:$4 sm:$0xff]  }
0x1634   :  { %v1188_v43 = vmul.f32 0.03125, %v1187_v42  ;;  %v10219_v42 = vld [vmem:[#allocation8 + $0x40] ss:$8 sps:$4 sm:$0xff]  }
0x1636   :  { %v1189_v44 = vmul.f32 %v1188_v43, %v1188_v43 }
0x1638   :  { %v1191_v45 = vrot.slane %v1189_v44, 7  ;;  %v10222_v44 = vld [vmem:[#allocation8 + $0x50] ss:$8 sps:$4 sm:$0xff]  }
0x163a   :  { %v1193_v46 = vsub.f32 %v1188_v43, %v1191_v45 }
0x163c   :  { %v1194_v47 = vadd.f32 1e-05, %v1193_v46 }
0x163e   :  { %10546 = vrsqrt.f32 %v1194_v47 }
0x1648   :  { %v10547_v48 = vpop.eup %10546 }
0x1649   :  { %v1203_v49 = vrot.slane %v10547_v48, %v11107_v4 }
0x164b   :  { %v1204_v50 = vcombine.high %v1203_v49, %v1203_v49 }
0x164d   :  { %v1211_v51 = vrot.slane %v1204_v50, %v11107_v4 }
0x164f   :  { %v1213_v52 = vmul.f32 %v1211_v51, %v11113_v7 }
0x1651   :  { %v1218_v53 = vrot.slane %v1213_v52, %v11116_v9  ;;  %v1221_v54 = vmul.f32 %v1213_v52, %v1188_v43  ;;  %v10224_v43 = vld [vmem:[#allocation8 + $0x54] ss:$8 sps:$4 sm:$0xff]  }
0x1653   :  { %v1222_v55 = vsub.f32 %v11123_v14, %v1221_v54  ;;  %v1220_v57 = vmul.f32 %v1218_v53, %v1154_v13 }
0x1655   :  { %v1227_v56 = vrot.slane %v1222_v55, %v11116_v9 }
0x1657   :  { %v1229_v0 = vadd.f32 %v1227_v56, %v1220_v57 }
0x1659   :  { %v1230_v6 = vmax.f32 %v1229_v0, 0.0 }
0x165b   :  { %v1231_v11 = vpack.c.bf16 %v1230_v6, %v1230_v6 }
0x165d   :  { %9208 = vmatmul.mubr.bf16.vlgmr.msra.gmra.mrb[4].mxu1 %v1231_v11 }
0x165e   :  { %1499 = vmatpush1.bf16.msra.mxu1 %v10207_v2 }
0x165f   :  { %1500 = vmatprep.subr.bf16.mxu1 %v10212_v35 }
0x1662   :  { %1501 = vmatpush1.bf16.msra.mxu1 %v10210_v36 }
0x1663   :  { %1502 = vmatprep.subr.bf16.mxu1 %v10215_v37 }
0x1666   :  { %1503 = vmatpush1.bf16.msra.mxu1 %v10213_v38 }
0x1667   :  { %1504 = vmatprep.subr.bf16.mxu1 %v10218_v39 }
0x166a   :  { %1505 = vmatpush1.bf16.msra.mxu1 %v10216_v40 }
0x166b   :  { %1506 = vmatprep.subr.bf16.mxu1 %v10221_v41  ;;  %v10231_v41 = vld [vmem:[#allocation10] sm:$0xff]  }
0x166c   :  { %9237 = vmatprep.subr.bf16.mxu0 %v10231_v41 }
0x166e   :  { %1507 = vmatpush1.bf16.msra.mxu1 %v10219_v42 }
0x166f   :  { %1508 = vmatprep.subr.bf16.mxu1 %v10224_v43  ;;  %v11445_v43 = vld [vmem:[#allocation10 + $0x10] sm:$0xff]  }
0x1672   :  { %1509 = vmatpush1.bf16.msra.mxu1 %v10222_v44  ;;  %v10233_v44 = vld [vmem:[#allocation10 + $0x8] sm:$0xff]  }
0x1730   :  { %v1266_v62 = vpop.f32.mrb[4].mxu1 }
0x1731   :  { %v11372_v12 = vadd.f32 %v11093_v18, %v1266_v62  ;;  %v9209_v15 = vpop.f32.mrb[5].mxu1 }
0x1732   :  { %v1269_v16 = vpop.f32.mrb[6].mxu1 }
0x1733   :  { %v1272_v20 = vsel %vm476_vm1, %v11372_v12, 0.0  ;;  %v1279_v22 = vmul.f32 %v11372_v12, %v11372_v12  ;;  %v9210_v24 = vpop.f32.mrb[7].mxu1 }
0x1734   :  { %v1273_v59 = vrot.slane %v1272_v20, 4  ;;  %v10227_v24 = vld [vmem:[#allocation8 + $0x64] ss:$8 sps:$4 sm:$0xff]  }
0x1735   :  { %v1280_v13 = vsel %vm476_vm1, %v1279_v22, 0.0  ;;  %1510 = vmatprep.subr.bf16.mxu1 %v10227_v24 }
0x1736   :  { %v1274_v19 = vadd.f32 %v1273_v59, %v1272_v20  ;;  %v1281_v61 = vrot.slane %v1280_v13, 4  ;;  %v10225_v59 = vld [vmem:[#allocation8 + $0x60] ss:$8 sps:$4 sm:$0xff]  }
0x1737   :  { %1511 = vmatpush1.bf16.msra.mxu1 %v10225_v59 }
0x1738   :  { %v1275_v21 = vrot.slane %v1274_v19, 2  ;;  %v1282_v63 = vadd.f32 %v1281_v61, %v1280_v13  ;;  %v10228_v13 = vld [vmem:[#allocation8 + $0x70] ss:$8 sps:$4 sm:$0xff]  }
0x173a   :  { %v1276_v25 = vadd.f32 %v1275_v21, %v1274_v19  ;;  %v1283_v23 = vrot.slane %v1282_v63, 2  ;;  %v10700_v19 = vmov 0  }
0x173b   :  { %1530 = vmatprep.mubr.bf16.mxu1 %v10700_v19 }
0x173c   :  { %v1277_v18 = vrot.slane %v1276_v25, 1  ;;  %v1284_v26 = vadd.f32 %v1283_v23, %v1282_v63 }
0x173e   :  { %v1285_v1 = vrot.slane %v1284_v26, 1  ;;  %v1278_v27 = vadd.f32 %v1277_v18, %v1276_v25 }
0x1740   :  { %v1286_v60 = vadd.f32 %v1285_v1, %v1284_v26  ;;  %v1406_v1 = vld [vmem:[%s12975_s10] sm:$0x3]  ;;  %s10701_s10 = smov 96  }
0x1742   :  { %v1287_v28 = vsel %vm492_vm2, %v1278_v27, %v1286_v60  ;;  %v1414_v27 = vsub.s32 1, %v11104_v58  ;;  %v1411_v60 = vrot.slane %v1406_v1, %v11116_v9 }
0x1743   :  { %v1288_v3 = vsel %vm476_vm1, %v1287_v28, 0.0 }
0x1744   :  { %1289 = vrot.lane.b32.xlu0 %v1288_v3, %s10690_s29  ;;  %v1415_v28 = vrot.slane %v1406_v1, %v1414_v27 }
0x17b6   :  { %v1290_v29 = vpop.permute.xlu0 %1289 }
0x17b7   :  { %v1291_v10 = vadd.f32 %v1290_v29, %v1288_v3 }
0x17b9   :  { %1292 = vrot.lane.b32.xlu1 %v1291_v10, %s10697_s6 }
0x182b   :  { %v1293_v30 = vpop.permute.xlu1 %1292 }
0x182c   :  { %v1294_v31 = vadd.f32 %v1293_v30, %v1291_v10 }
0x182e   :  { %1295 = vrot.lane.b32.xlu0 %v1294_v31, %s10698_s30 }
0x18a0   :  { %v1296_v32 = vpop.permute.xlu0 %1295 }
0x18a1   :  { %v1297_v33 = vadd.f32 %v1296_v32, %v1294_v31 }
0x18a3   :  { %1298 = vrot.lane.b32.xlu1 %v1297_v33, %s10692_s9 }
0x1915   :  { %v1299_v45 = vpop.permute.xlu1 %1298 }
0x1916   :  { %v1300_v46 = vadd.f32 %v1299_v45, %v1297_v33 }
0x1918   :  { %v1301_v47 = vmul.f32 0.03125, %v1300_v46 }
0x191a   :  { %v1302_v48 = vmul.f32 %v1301_v47, %v1301_v47 }
0x191c   :  { %v1304_v49 = vrot.slane %v1302_v48, 7 }
0x191e   :  { %v1306_v50 = vsub.f32 %v1301_v47, %v1304_v49 }
0x1920   :  { %v1307_v51 = vadd.f32 1e-05, %v1306_v50 }
0x1922   :  { %10548 = vrsqrt.f32 %v1307_v51 }
0x192c   :  { %v10549_v52 = vpop.eup %10548 }
0x192d   :  { %v1316_v53 = vrot.slane %v10549_v52, %v11107_v4 }
0x192f   :  { %v1317_v54 = vcombine.high %v1316_v53, %v1316_v53 }
0x1931   :  { %v1324_v55 = vrot.slane %v1317_v54, %v11107_v4 }
0x1933   :  { %v1326_v56 = vmul.f32 %v1324_v55, %v11113_v7  ;;  %v10230_v7 = vld [vmem:[#allocation8 + $0x74] ss:$8 sps:$4 sm:$0xff]  }
0x1934   :  { %1512 = vmatprep.subr.bf16.mxu1 %v10230_v7 }
0x1935   :  { %v1331_v57 = vrot.slane %v1326_v56, %v11116_v9  ;;  %v1334_v0 = vmul.f32 %v1326_v56, %v1301_v47  ;;  %1513 = vmatpush1.bf16.msra.mxu1 %v10228_v13 }
0x1936   :  { %9231 = vmatprep.subr.bf16.mxu1 %v10233_v44 }
0x1937   :  { %v1335_v6 = vsub.f32 %v11123_v14, %v1334_v0  ;;  %v1333_v11 = vmul.f32 %v1331_v57, %v11372_v12 }
0x1939   :  { %v1340_v62 = vrot.slane %v1335_v6, %v11116_v9 }
0x193b   :  { %v1342_v15 = vadd.f32 %v1340_v62, %v1333_v11 }
0x193d   :  { %v1343_v16 = vadd.f32 %v1342_v15, %v11319_v5  ;;  %v10587_v5 = vld [vmem:[%s12999_s1] ss:$0 sm:$0xff]  ;;  %s10702_s1 = smov 112  }
0x193f   :  { %v1344_v20 = vmax.f32 %v1343_v16, 0.0 }
0x1941   :  { %v1345_v22 = vpack.c.bf16 %v1344_v20, %v1344_v20 }
0x1943   :  { %9228 = vmatmul.mubr.bf16.vlgmr.msra.gmra.mrb[32].mxu0 %v1345_v22 }
0x1944   :  { %9238 = vmatpush3.bf16.msra.mxu0 %v10231_v41 }
0x1945   :  { %9243 = vmatprep.subr.bf16.mxu0 %v11445_v43 }
0x1a16   :  { %v1380_v14 = vpop.f32.mrb[32].mxu0 }
0x1a17   :  { %v1381_v12 = vadd.f32 %v10587_v5, %v1380_v14  ;;  %v9229_v61 = vpop.f32.mrb[33].mxu0 }
0x1a18   :  { %v1383_v21 = vpop.f32.mrb[34].mxu0 }
0x1a19   :  { %v1386_v63 = vadd.f32 %v1381_v12, %v11039_v8  ;;  %v9230_v25 = vpop.f32.mrb[35].mxu0 }
0x1a1b   :  { %v1387_v23 = vadd.f32 2.0, %v1386_v63  ;;  %v10234_v63 = vld [vmem:[#allocation10 + $0x18] sm:$0xff]  }
0x1a1d   :  { %v1388_v18 = vmul.f32 %v1387_v23, %v11039_v8 }
0x1a1f   :  { %v1405_v26 = vpack.c.bf16 %v1388_v18, %v1388_v18 }
0x1a21   :  { %1531 = vmatmul.mubr.bf16.vlgmr.msra.gmra.mrb[8].mxu1 %v1405_v26 }
0x1a22   :  { %9232 = vmatpush3.bf16.msra.mxu1 %v10233_v44 }
0x1af4   :  { %v1532_v3 = vpop.f32.mrb[8].mxu1 }
0x1af5   :  { %v1533_v29 = vadd.f32 %v1532_v3, %v1411_v60  ;;  %v1534_v10 = vpop.f32.mrb[9].mxu1 }
0x1af6   :  { %v1535_v30 = vadd.f32 %v1534_v10, %v1415_v28  ;;  %v1536_v31 = vpop.f32.mrb[10].mxu1 }
0x1af7   :  { %v1546_v32 = vrot.slane %v1533_v29, %v11107_v4  ;;  %v1537_v33 = vpop.f32.mrb[11].mxu1 }
0x1af8   :  { %v1638_v8 = vrot.slane %v1535_v30, %v11107_v4 }
0x1af9   :  { %v1547_v2 = vcombine.high %v1546_v32, %v1546_v32  ;;  %v1554_v34 = vrot.slane %v1546_v32, %v11107_v4 }
0x1afa   :  { %v1639_v35 = vcombine.high %v1638_v8, %v1638_v8  ;;  %v1646_v58 = vrot.slane %v1638_v8, %v11107_v4 }
0x1afb   :  { %v1561_v36 = vrot.slane %v1547_v2, %v11107_v4  ;;  %1565 = vst.msk [vmem:[#allocation3 + $0x3] sm:$0x1] %vm1564_vm4, %v1554_v34  ;;  %v1570_v37 = vrot.slane %v1554_v34, %v11116_v9  ;;  %v10235_v34 = vld [vmem:[#allocation10 + $0x20] sm:$0xff]  }
0x1afc   :  { %v1653_v38 = vrot.slane %v1639_v35, %v11107_v4  ;;  %1656 = vst.msk [vmem:[#allocation3 + $0xb] sm:$0x1] %vm1564_vm4, %v1646_v58  ;;  %v1661_v39 = vrot.slane %v1646_v58, %v11116_v9 }
0x1afd   :  { %1566 = vst.msk [vmem:[#allocation3 + $0x1b] sm:$0x1] %vm1564_vm4, %v1561_v36  ;;  %1583 = vrot.lane.b32.xlu1 %v1570_v37, %s10701_s10  ;;  %1575 = vrot.lane.b32.xlu0 %v1570_v37, %s10702_s1  ;;  %v1574_v40 = vrot.slane %v1561_v36, %v11116_v9 }
0x1afe   :  { %1657 = vst.msk [vmem:[#allocation3 + $0x23] sm:$0x1] %vm1564_vm4, %v1653_v38  ;;  %v1665_v42 = vrot.slane %v1653_v38, %v11116_v9 }
0x1b01   :  { %1599 = vrot.lane.b32.xlu1 %v1570_v37, %s10692_s9  ;;  %1591 = vrot.lane.b32.xlu0 %v1570_v37, %s10703_s25 }
0x1b05   :  { %1615 = vrot.lane.b32.xlu1 %v1570_v37, %s10698_s30  ;;  %1607 = vrot.lane.b32.xlu0 %v1570_v37, %s10704_s26 }
0x1b09   :  { %1666 = vrot.lane.b32.xlu1 %v1661_v39, %s10702_s1  ;;  %1623 = vrot.lane.b32.xlu0 %v1570_v37, %s10697_s6 }
0x1b0d   :  { %1682 = vrot.lane.b32.xlu1 %v1661_v39, %s10703_s25  ;;  %1674 = vrot.lane.b32.xlu0 %v1661_v39, %s10701_s10 }
0x1b11   :  { %1690 = vrot.lane.b32.xlu0 %v1661_v39, %s10692_s9  ;;  %1577 = vrot.lane.b32.xlu1 %v1574_v40, %s10702_s1 }
0x1b15   :  { %1585 = vrot.lane.b32.xlu0 %v1574_v40, %s10701_s10  ;;  %1593 = vrot.lane.b32.xlu1 %v1574_v40, %s10703_s25 }
0x1b19   :  { %1601 = vrot.lane.b32.xlu0 %v1574_v40, %s10692_s9  ;;  %1609 = vrot.lane.b32.xlu1 %v1574_v40, %s10704_s26 }
0x1b1d   :  { %1617 = vrot.lane.b32.xlu0 %v1574_v40, %s10698_s30  ;;  %1625 = vrot.lane.b32.xlu1 %v1574_v40, %s10697_s6 }
0x1b21   :  { %1668 = vrot.lane.b32.xlu0 %v1665_v42, %s10702_s1  ;;  %1676 = vrot.lane.b32.xlu1 %v1665_v42, %s10701_s10 }
0x1b25   :  { %1684 = vrot.lane.b32.xlu0 %v1665_v42, %s10703_s25  ;;  %1692 = vrot.lane.b32.xlu1 %v1665_v42, %s10692_s9 }
0x1b29   :  { %1698 = vrot.lane.b32.xlu0 %v1661_v39, %s10704_s26  ;;  %1706 = vrot.lane.b32.xlu1 %v1661_v39, %s10698_s30 }
0x1b2d   :  { %1700 = vrot.lane.b32.xlu0 %v1665_v42, %s10704_s26  ;;  %1708 = vrot.lane.b32.xlu1 %v1665_v42, %s10698_s30 }
0x1b31   :  { %1714 = vrot.lane.b32.xlu0 %v1661_v39, %s10697_s6  ;;  %1716 = vrot.lane.b32.xlu1 %v1665_v42, %s10697_s6  ;;  %v10236_v39 = vld [vmem:[#allocation10 + $0x28] sm:$0xff]  }
0x1b6f   :  { %v1584_v17 = vpop.permute.xlu1 %1583  ;;  %v1576_v45 = vpop.permute.xlu0 %1575 }
0x1b70   :  { %1589 = vst.msk [vmem:[#allocation3 + $0x5] sm:$0x1] %vm1564_vm4, %v1584_v17  ;;  %1581 = vst.msk [vmem:[#allocation3 + $0x4] sm:$0x1] %vm1564_vm4, %v1576_v45  ;;  %v10237_v45 = vld [vmem:[#allocation10 + $0x30] sm:$0xff]  }
0x1b73   :  { %v1600_v46 = vpop.permute.xlu1 %1599  ;;  %v1592_v47 = vpop.permute.xlu0 %1591 }
0x1b74   :  { %1605 = vst.msk [vmem:[#allocation3 + $0x7] sm:$0x1] %vm1564_vm4, %v1600_v46  ;;  %1597 = vst.msk [vmem:[#allocation3 + $0x6] sm:$0x1] %vm1564_vm4, %v1592_v47 }
0x1b77   :  { %v1616_v48 = vpop.permute.xlu1 %1615  ;;  %v1608_v49 = vpop.permute.xlu0 %1607 }
0x1b78   :  { %1621 = vst.msk [vmem:[#allocation3 + $0x9] sm:$0x1] %vm1564_vm4, %v1616_v48  ;;  %1613 = vst.msk [vmem:[#allocation3 + $0x8] sm:$0x1] %vm1564_vm4, %v1608_v49 }
0x1b7b   :  { %v1667_v50 = vpop.permute.xlu1 %1666  ;;  %v1624_v51 = vpop.permute.xlu0 %1623  ;;  %v1722_v11 = vld [vmem:[#allocation3] sm:$0xff] }
0x1b7c   :  { %1672 = vst.msk [vmem:[#allocation3 + $0xc] sm:$0x1] %vm1564_vm4, %v1667_v50  ;;  %1629 = vst.msk [vmem:[#allocation3 + $0xa] sm:$0x1] %vm1564_vm4, %v1624_v51 }
0x1b7f   :  { %v1683_v52 = vpop.permute.xlu1 %1682  ;;  %v1675_v53 = vpop.permute.xlu0 %1674  ;;  %v1730_v25 = vld [vmem:[#allocation3 + $0x1] sm:$0xff] }
0x1b80   :  { %1688 = vst.msk [vmem:[#allocation3 + $0xe] sm:$0x1] %vm1564_vm4, %v1683_v52  ;;  %1680 = vst.msk [vmem:[#allocation3 + $0xd] sm:$0x1] %vm1564_vm4, %v1675_v53  ;;  %v1861_v1 = vld [vmem:[#allocation3 + $0x2] sm:$0xff] }
0x1b83   :  { %v1691_v54 = vpop.permute.xlu0 %1690  ;;  %v1578_v55 = vpop.permute.xlu1 %1577  ;;  %v1935_v32 = vld [vmem:[#allocation3 + $0x3] sm:$0xff] }
0x1b84   :  { %1696 = vst.msk [vmem:[#allocation3 + $0xf] sm:$0x1] %vm1564_vm4, %v1691_v54  ;;  %1582 = vst.msk [vmem:[#allocation3 + $0x1c] sm:$0x1] %vm1564_vm4, %v1578_v55  ;;  %v2009_v38 = vld [vmem:[#allocation3 + $0x4] sm:$0xff] }
0x1b85   :  { %v2083_v17 = vld [vmem:[#allocation3 + $0x5] sm:$0xff] }
0x1b87   :  { %v1586_v56 = vpop.permute.xlu0 %1585  ;;  %v1594_v57 = vpop.permute.xlu1 %1593  ;;  %v2157_v51 = vld [vmem:[#allocation3 + $0x6] sm:$0xff] }
0x1b88   :  { %1590 = vst.msk [vmem:[#allocation3 + $0x1d] sm:$0x1] %vm1564_vm4, %v1586_v56  ;;  %1598 = vst.msk [vmem:[#allocation3 + $0x1e] sm:$0x1] %vm1564_vm4, %v1594_v57  ;;  %v10238_v56 = vld [vmem:[%s12978_s13 + $0x40] sm:$0xff]   ;;  %v10239_v57 = vld [vmem:[%s12978_s13 + $0x48] sm:$0xff]  }
0x1b89   :  { %9273 = vmatprep.subr.bf16.mxu1 %v10238_v56 }
0x1b8b   :  { %v1602_v0 = vpop.permute.xlu0 %1601  ;;  %v1610_v6 = vpop.permute.xlu1 %1609  ;;  %v1723_v62 = vld [vmem:[#allocation3 + $0x8] sm:$0xff] }
0x1b8c   :  { %1606 = vst.msk [vmem:[#allocation3 + $0x1f] sm:$0x1] %vm1564_vm4, %v1602_v0  ;;  %1614 = vst.msk [vmem:[#allocation3 + $0x20] sm:$0x1] %vm1564_vm4, %v1610_v6  ;;  %v1728_v15 = vpack.c.bf16 %v1723_v62, %v1722_v11  ;;  %v10240_v0 = vld [vmem:[%s12978_s13 + $0x50] sm:$0xff]   ;;  %v10241_v6 = vld [vmem:[%s12978_s13 + $0x58] sm:$0xff]  }
0x1b8d   :  { %v10242_v11 = vld [vmem:[%s12978_s13 + $0x60] sm:$0xff]   ;;  %v10243_v62 = vld [vmem:[%s12978_s13 + $0x68] sm:$0xff]  }
0x1b8e   :  { %9239 = vmatprep.mubr.msk.bf16.mxu0 %vm113_vm3, %v1728_v15  ;;  %v10244_v15 = vld [vmem:[%s12978_s13 + $0x70] sm:$0xff]  }
0x1b8f   :  { %v1618_v16 = vpop.permute.xlu0 %1617  ;;  %v1626_v20 = vpop.permute.xlu1 %1625 }
0x1b90   :  { %1622 = vst.msk [vmem:[#allocation3 + $0x21] sm:$0x1] %vm1564_vm4, %v1618_v16  ;;  %1630 = vst.msk [vmem:[#allocation3 + $0x22] sm:$0x1] %vm1564_vm4, %v1626_v20  ;;  %v10245_v16 = vld [vmem:[%s12978_s13 + $0x78] sm:$0xff]   ;;  %v10246_v20 = vld [vmem:[%s12978_s13] sm:$0xff]  }
0x1b93   :  { %v1669_v22 = vpop.permute.xlu0 %1668  ;;  %v1677_v24 = vpop.permute.xlu1 %1676  ;;  %v1724_v12 = vld [vmem:[#allocation3 + $0x18] sm:$0xff] }
0x1b94   :  { %1673 = vst.msk [vmem:[#allocation3 + $0x24] sm:$0x1] %vm1564_vm4, %v1669_v22  ;;  %1681 = vst.msk [vmem:[#allocation3 + $0x25] sm:$0x1] %vm1564_vm4, %v1677_v24  ;;  %v1732_v3 = vld [vmem:[#allocation3 + $0x19] sm:$0xff] }
0x1b97   :  { %v1685_v59 = vpop.permute.xlu0 %1684  ;;  %v1693_v7 = vpop.permute.xlu1 %1692  ;;  %v1863_v31 = vld [vmem:[#allocation3 + $0x1a] sm:$0xff] }
0x1b98   :  { %1689 = vst.msk [vmem:[#allocation3 + $0x26] sm:$0x1] %vm1564_vm4, %v1685_v59  ;;  %1697 = vst.msk [vmem:[#allocation3 + $0x27] sm:$0x1] %vm1564_vm4, %v1693_v7  ;;  %v1937_v36 = vld [vmem:[#allocation3 + $0x1b] sm:$0xff] }
0x1b9b   :  { %v1699_v13 = vpop.permute.xlu0 %1698  ;;  %v1707_v19 = vpop.permute.xlu1 %1706  ;;  %v2085_v49 = vld [vmem:[#allocation3 + $0x1d] sm:$0xff] }
0x1b9c   :  { %1704 = vst.msk [vmem:[#allocation3 + $0x10] sm:$0x1] %vm1564_vm4, %v1699_v13  ;;  %1712 = vst.msk [vmem:[#allocation3 + $0x11] sm:$0x1] %vm1564_vm4, %v1707_v19  ;;  %v2159_v54 = vld [vmem:[#allocation3 + $0x1e] sm:$0xff] }
0x1b9d   :  { %v7800_v19 = vld [vmem:[%s12977_s12] ss:$0 sm:$0xff] }
0x1b9f   :  { %v1701_v14 = vpop.permute.xlu0 %1700  ;;  %v1709_v5 = vpop.permute.xlu1 %1708  ;;  %v1725_v61 = vld [vmem:[#allocation3 + $0x20] sm:$0xff] }
0x1ba0   :  { %1705 = vst.msk [vmem:[#allocation3 + $0x28] sm:$0x1] %vm1564_vm4, %v1701_v14  ;;  %1713 = vst.msk [vmem:[#allocation3 + $0x29] sm:$0x1] %vm1564_vm4, %v1709_v5  ;;  %v1729_v21 = vpack.c.bf16 %v1725_v61, %v1724_v12 }
0x1ba2   :  { %9240 = vmatmul.mubr.msk.bf16.vlgmr.msra.gmra.mrb[36].mxu0 %vm113_vm3, %v1729_v21 }
0x1ba3   :  { %9244 = vmatpush3.bf16.msra.mxu0 %v11445_v43  ;;  %v1715_v23 = vpop.permute.xlu0 %1714  ;;  %v1717_v18 = vpop.permute.xlu1 %1716  ;;  %v1731_v26 = vld [vmem:[#allocation3 + $0x9] sm:$0xff]  ;;  %v2011_v43 = vld [vmem:[#allocation3 + $0x1c] sm:$0xff] }
0x1ba4   :  { %v1862_v27 = vld [vmem:[#allocation3 + $0xa] sm:$0xff]  ;;  %1720 = vst.msk [vmem:[#allocation3 + $0x12] sm:$0x1] %vm1564_vm4, %v1715_v23  ;;  %1721 = vst.msk [vmem:[#allocation3 + $0x2a] sm:$0x1] %vm1564_vm4, %v1717_v18  ;;  %v1737_v60 = vpack.c.bf16 %v1731_v26, %v1730_v25  ;;  %9249 = vmatprep.subr.bf16.mxu0 %v10234_v63 }
0x1ba5   :  { %v1868_v28 = vpack.c.bf16 %v1862_v27, %v1861_v1 }
0x1ba6   :  { %9233 = vmatprep.mubr.msk.bf16.mxu1 %vm113_vm3, %v1737_v60 }
0x1ba7   :  { %9245 = vmatprep.mubr.msk.bf16.mxu0 %vm113_vm3, %v1868_v28  ;;  %v1733_v29 = vld [vmem:[#allocation3 + $0x21] sm:$0xff] }
0x1ba8   :  { %v1738_v10 = vpack.c.bf16 %v1733_v29, %v1732_v3  ;;  %v1864_v30 = vld [vmem:[#allocation3 + $0x22] sm:$0xff] }
0x1ba9   :  { %v1869_v8 = vpack.c.bf16 %v1864_v30, %v1863_v31  ;;  %v10247_v28 = vld [vmem:[%s12978_s13 + $0x8] sm:$0xff]   ;;  %v10248_v3 = vld [vmem:[%s12978_s13 + $0x10] sm:$0xff]   ;;  %v10249_v31 = vld [vmem:[%s12978_s13 + $0x18] sm:$0xff]  }
0x1baa   :  { %9234 = vmatmul.mubr.msk.bf16.vlgmr.msra.gmra.mrb[12].mxu1 %vm113_vm3, %v1738_v10 }
0x1bab   :  { %v1936_v33 = vld [vmem:[#allocation3 + $0xb] sm:$0xff]  ;;  %v1938_v35 = vld [vmem:[#allocation3 + $0x23] sm:$0xff]  ;;  %9274 = vmatpush3.bf16.msra.mxu1 %v10238_v56 }
0x1bac   :  { %v1942_v2 = vpack.c.bf16 %v1936_v33, %v1935_v32  ;;  %v2010_v58 = vld [vmem:[#allocation3 + $0xc] sm:$0xff]  ;;  %v1943_v37 = vpack.c.bf16 %v1938_v35, %v1937_v36  ;;  %v2012_v41 = vld [vmem:[#allocation3 + $0x24] sm:$0xff]  ;;  %9275 = vmatprep.subr.bf16.mxu1 %v10239_v57  ;;  %v10250_v32 = vld [vmem:[%s12978_s13 + $0x20] sm:$0xff]  }
0x1bad   :  { %v2016_v40 = vpack.c.bf16 %v2010_v58, %v2009_v38  ;;  %v2084_v42 = vld [vmem:[#allocation3 + $0xd] sm:$0xff]  ;;  %v2017_v44 = vpack.c.bf16 %v2012_v41, %v2011_v43  ;;  %v2086_v47 = vld [vmem:[#allocation3 + $0x25] sm:$0xff]  ;;  %v10258_v43 = vld [vmem:[%s12978_s13 + $0xa0] sm:$0xff]  }
0x1bae   :  { %9246 = vmatmul.mubr.msk.bf16.vlgmr.msra.gmra.mrb[36].mxu0 %vm113_vm3, %v1869_v8  ;;  %v2090_v46 = vpack.c.bf16 %v2084_v42, %v2083_v17  ;;  %v2158_v48 = vld [vmem:[#allocation3 + $0xe] sm:$0xff]  ;;  %v2091_v50 = vpack.c.bf16 %v2086_v47, %v2085_v49  ;;  %v2160_v53 = vld [vmem:[#allocation3 + $0x26] sm:$0xff]  ;;  %v11595_v49 = vld [vmem:[%s12979_s14] ss:$0 sm:$0xff] }
0x1baf   :  { %9250 = vmatpush3.bf16.msra.mxu0 %v10234_v63  ;;  %9251 = vmatprep.mubr.msk.bf16.mxu0 %vm113_vm3, %v1942_v2  ;;  %v2164_v52 = vpack.c.bf16 %v2158_v48, %v2157_v51  ;;  %v2165_v55 = vpack.c.bf16 %v2160_v53, %v2159_v54  ;;  %v10251_v33 = vld [vmem:[%s12978_s13 + $0x28] sm:$0xff]   ;;  %v10252_v8 = vld [vmem:[%s12978_s13 + $0x30] sm:$0xff]   ;;  %v10253_v2 = vld [vmem:[%s12978_s13 + $0x38] sm:$0xff]  }
0x1bb0   :  { %9255 = vmatprep.subr.bf16.mxu0 %v10235_v34  ;;  %9276 = vmatpush3.bf16.msra.mxu1 %v10239_v57  ;;  %v10256_v41 = vld [vmem:[%s12978_s13 + $0x90] sm:$0xff]   ;;  %v10257_v42 = vld [vmem:[%s12978_s13 + $0x98] sm:$0xff]  }
0x1bb1   :  { %9277 = vmatprep.subr.bf16.mxu1 %v10240_v0  ;;  %v10260_v17 = vld [vmem:[%s12978_s13 + $0xb0] sm:$0xff]  }
0x1bb4   :  { %9278 = vmatpush3.bf16.msra.mxu1 %v10240_v0 }
0x1bb5   :  { %9279 = vmatprep.subr.bf16.mxu1 %v10241_v6 }
0x1bb8   :  { %9280 = vmatpush3.bf16.msra.mxu1 %v10241_v6 }
0x1bb9   :  { %9281 = vmatprep.subr.bf16.mxu1 %v10242_v11 }
0x1bba   :  { %9252 = vmatmul.mubr.msk.bf16.vlgmr.msra.gmra.mrb[36].mxu0 %vm113_vm3, %v1943_v37 }
0x1bbb   :  { %9256 = vmatpush3.bf16.msra.mxu0 %v10235_v34  ;;  %9257 = vmatprep.mubr.msk.bf16.mxu0 %vm113_vm3, %v2016_v40  ;;  %v10254_v34 = vld [vmem:[%s12978_s13 + $0x80] sm:$0xff]  }
0x1bbc   :  { %9261 = vmatprep.subr.bf16.mxu0 %v10236_v39  ;;  %9282 = vmatpush3.bf16.msra.mxu1 %v10242_v11 }
0x1bbd   :  { %9283 = vmatprep.subr.bf16.mxu1 %v10243_v62 }
0x1bc0   :  { %9284 = vmatpush3.bf16.msra.mxu1 %v10243_v62 }
0x1bc1   :  { %9285 = vmatprep.subr.bf16.mxu1 %v10244_v15 }
0x1bc4   :  { %9286 = vmatpush3.bf16.msra.mxu1 %v10244_v15 }
0x1bc5   :  { %9287 = vmatprep.subr.bf16.mxu1 %v10245_v16 }
0x1bc6   :  { %9258 = vmatmul.mubr.msk.bf16.vlgmr.msra.gmra.mrb[36].mxu0 %vm113_vm3, %v2017_v44  ;;  %v10259_v44 = vld [vmem:[%s12978_s13 + $0xa8] sm:$0xff]  }
0x1bc7   :  { %9262 = vmatpush3.bf16.msra.mxu0 %v10236_v39  ;;  %9263 = vmatprep.mubr.msk.bf16.mxu0 %vm113_vm3, %v2090_v46  ;;  %v10255_v39 = vld [vmem:[%s12978_s13 + $0x88] sm:$0xff]  }
0x1bc8   :  { %9267 = vmatprep.subr.bf16.mxu0 %v10237_v45  ;;  %9288 = vmatpush3.bf16.msra.mxu1 %v10245_v16 }
0x1bc9   :  { %9293 = vmatprep.subr.bf16.mxu1 %v10246_v20 }
0x1bd2   :  { %9264 = vmatmul.mubr.msk.bf16.vlgmr.msra.gmra.mrb[36].mxu0 %vm113_vm3, %v2091_v50 }
0x1bd3   :  { %9268 = vmatpush3.bf16.msra.mxu0 %v10237_v45  ;;  %9269 = vmatprep.mubr.msk.bf16.mxu0 %vm113_vm3, %v2164_v52  ;;  %v10261_v45 = vld [vmem:[%s12978_s13 + $0xb8] sm:$0xff]  }
0x1bde   :  { %9270 = vmatmul.mubr.msk.bf16.vlgmr.msra.gmra.mrb[36].mxu0 %vm113_vm3, %v2165_v55 }
0x1c7d   :  { %v9235_v22 = vpop.f32.mrb[12].mxu1 }
0x1c7e   :  { %v1785_v24 = vpop.f32.mrb[13].mxu1 }
0x1c7f   :  { %v9236_v59 = vpop.f32.mrb[14].mxu1 }
0x1c80   :  { %v1788_v7 = vpop.f32.mrb[15].mxu1 }
0x1cb1   :  { %v9271_v13 = vpop.f32.mrb[36].mxu0 }
0x1cb2   :  { %v10045_v14 = vadd.f32 %v9271_v13, %v9235_v22  ;;  %v2212_v5 = vpop.f32.mrb[37].mxu0 }
0x1cb3   :  { %v10046_v12 = vadd.f32 %v2212_v5, %v1785_v24  ;;  %v9272_v61 = vpop.f32.mrb[38].mxu0 }
0x1cb4   :  { %v11531_v21 = vadd.f32 %v10045_v14, %v7800_v19  ;;  %v10047_v63 = vadd.f32 %v9272_v61, %v9236_v59  ;;  %v2215_v25 = vpop.f32.mrb[39].mxu0 }
0x1cb5   :  { %v11533_v23 = vadd.f32 %v10046_v12, %v7800_v19  ;;  %v10048_v18 = vadd.f32 %v2215_v25, %v1788_v7 }
0x1cb6   :  { %2247 = vst [vmem:[#allocation2 + $0x19] sm:$0xff] %v11531_v21  ;;  %v11536_v26 = vadd.f32 %v10047_v63, %v7800_v19 }
0x1cb7   :  { %2245 = vst [vmem:[#allocation2 + $0x1] sm:$0xff] %v11533_v23  ;;  %v11539_v1 = vadd.f32 %v10048_v18, %v7800_v19 }
0x1cb8   :  { %2248 = vst [vmem:[#allocation2 + $0x21] sm:$0xff] %v11536_v26  ;;  %v2293_v60 = vpack.c.bf16 %v11536_v26, %v11531_v21 }
0x1cb9   :  { %2246 = vst [vmem:[#allocation2 + $0x9] sm:$0xff] %v11539_v1  ;;  %v2292_v27 = vpack.c.bf16 %v11539_v1, %v11533_v23 }
0x1cbb   :  { %9289 = vmatprep.mubr.bf16.mxu1 %v2292_v27 }
0x1cbc   :  { %9290 = vmatmul.mubr.bf16.vlgmr.msra.gmra.mrb[16].mxu1 %v2293_v60 }
0x1cbd   :  { %9294 = vmatpush3.bf16.msra.mxu1 %v10246_v20  ;;  %v2251_v37 = vld [vmem:[#allocation2 + $0x18] sm:$0xff] }
0x1cbe   :  { %9295 = vmatprep.subr.bf16.mxu1 %v10247_v28  ;;  %v2249_v10 = vld [vmem:[#allocation2] sm:$0xff] }
0x1cbf   :  { %v2252_v35 = vld [vmem:[#allocation2 + $0x20] sm:$0xff] }
0x1cc0   :  { %v2250_v29 = vld [vmem:[#allocation2 + $0x8] sm:$0xff]  ;;  %v2270_v38 = vpack.c.bf16 %v2252_v35, %v2251_v37  ;;  %v2490_v46 = vld [vmem:[#allocation2 + $0x1a] sm:$0xff] }
0x1cc1   :  { %v2269_v30 = vpack.c.bf16 %v2250_v29, %v2249_v10  ;;  %9296 = vmatpush3.bf16.msra.mxu1 %v10247_v28  ;;  %v2488_v58 = vld [vmem:[#allocation2 + $0x2] sm:$0xff]  ;;  %v2489_v36 = vld [vmem:[#allocation2 + $0xa] sm:$0xff]  ;;  %v10268_v37 = vld [vmem:[%s12978_s13 + $0x70] sm:$0xff]  }
0x1cc2   :  { %9297 = vmatprep.subr.bf16.mxu1 %v10248_v3  ;;  %v2509_v40 = vpack.c.bf16 %v2489_v36, %v2488_v58  ;;  %v2491_v47 = vld [vmem:[#allocation2 + $0x22] sm:$0xff]  ;;  %v10267_v36 = vld [vmem:[%s12978_s13 + $0x68] sm:$0xff]  }
0x1cc3   :  { %9309 = vmatprep.mubr.bf16.mxu1 %v2269_v30  ;;  %v2510_v48 = vpack.c.bf16 %v2491_v47, %v2490_v46  ;;  %v10265_v35 = vld [vmem:[%s12978_s13 + $0x58] sm:$0xff]   ;;  %v10266_v58 = vld [vmem:[%s12978_s13 + $0x60] sm:$0xff]  }
0x1cc5   :  { %9298 = vmatpush3.bf16.msra.mxu1 %v10248_v3 }
0x1cc6   :  { %9299 = vmatprep.subr.bf16.mxu1 %v10249_v31 }
0x1cc9   :  { %9300 = vmatpush3.bf16.msra.mxu1 %v10249_v31 }
0x1cca   :  { %9301 = vmatprep.subr.bf16.mxu1 %v10250_v32 }
0x1ccd   :  { %9302 = vmatpush3.bf16.msra.mxu1 %v10250_v32 }
0x1cce   :  { %9303 = vmatprep.subr.bf16.mxu1 %v10251_v33 }
0x1cd1   :  { %9304 = vmatpush3.bf16.msra.mxu1 %v10251_v33  ;;  %v10262_v33 = vld [vmem:[%s12978_s13 + $0x40] sm:$0xff]  }
0x1cd2   :  { %9305 = vmatprep.subr.bf16.mxu1 %v10252_v8  ;;  %9333 = vmatprep.subr.bf16.mxu0 %v10262_v33 }
0x1cd3   :  { %9334 = vmatpush3.bf16.msra.mxu0 %v10262_v33 }
0x1cd5   :  { %9306 = vmatpush3.bf16.msra.mxu1 %v10252_v8 }
0x1cd6   :  { %9307 = vmatprep.subr.bf16.mxu1 %v10253_v2 }
0x1cd9   :  { %9308 = vmatpush3.bf16.msra.mxu1 %v10253_v2  ;;  %v10263_v2 = vld [vmem:[%s12978_s13 + $0x48] sm:$0xff]  }
0x1cda   :  { %9313 = vmatprep.subr.bf16.mxu1 %v10254_v34  ;;  %9335 = vmatprep.subr.bf16.mxu0 %v10263_v2 }
0x1cdb   :  { %9336 = vmatpush3.bf16.msra.mxu0 %v10263_v2 }
0x1cdc   :  { %9310 = vmatmul.mubr.bf16.vlgmr.msra.gmra.mrb[16].mxu1 %v2270_v38  ;;  %v10269_v38 = vld [vmem:[%s12978_s13 + $0x78] sm:$0xff]  }
0x1cdd   :  { %9314 = vmatpush3.bf16.msra.mxu1 %v10254_v34  ;;  %9329 = vmatprep.mubr.bf16.mxu1 %v2509_v40  ;;  %v10264_v34 = vld [vmem:[%s12978_s13 + $0x50] sm:$0xff]  }
0x1cde   :  { %9315 = vmatprep.subr.bf16.mxu1 %v10255_v39  ;;  %9337 = vmatprep.subr.bf16.mxu0 %v10264_v34 }
0x1cdf   :  { %9338 = vmatpush3.bf16.msra.mxu0 %v10264_v34  ;;  %v10280_v34 = vld [vmem:[%s12978_s13 + $0x90] sm:$0xff]  }
0x1ce0   :  { %9339 = vmatprep.subr.bf16.mxu0 %v10265_v35 }
0x1ce1   :  { %9316 = vmatpush3.bf16.msra.mxu1 %v10255_v39  ;;  %v10270_v39 = vld [vmem:[%s12978_s13] sm:$0xff]  }
0x1ce2   :  { %9317 = vmatprep.subr.bf16.mxu1 %v10256_v41 }
0x1ce3   :  { %9340 = vmatpush3.bf16.msra.mxu0 %v10265_v35  ;;  %v10281_v35 = vld [vmem:[%s12978_s13 + $0x98] sm:$0xff]  }
0x1ce4   :  { %9341 = vmatprep.subr.bf16.mxu0 %v10266_v58 }
0x1ce5   :  { %9318 = vmatpush3.bf16.msra.mxu1 %v10256_v41 }
0x1ce6   :  { %9319 = vmatprep.subr.bf16.mxu1 %v10257_v42 }
0x1ce7   :  { %9342 = vmatpush3.bf16.msra.mxu0 %v10266_v58  ;;  %v10282_v58 = vld [vmem:[%s12978_s13 + $0xa0] sm:$0xff]  }
0x1ce8   :  { %9343 = vmatprep.subr.bf16.mxu0 %v10267_v36 }
0x1ce9   :  { %9320 = vmatpush3.bf16.msra.mxu1 %v10257_v42 }
0x1cea   :  { %9321 = vmatprep.subr.bf16.mxu1 %v10258_v43 }
0x1ceb   :  { %9344 = vmatpush3.bf16.msra.mxu0 %v10267_v36  ;;  %v10283_v36 = vld [vmem:[%s12978_s13 + $0xa8] sm:$0xff]  }
0x1cec   :  { %9345 = vmatprep.subr.bf16.mxu0 %v10268_v37 }
0x1ced   :  { %9322 = vmatpush3.bf16.msra.mxu1 %v10258_v43 }
0x1cee   :  { %9323 = vmatprep.subr.bf16.mxu1 %v10259_v44 }
0x1cef   :  { %9346 = vmatpush3.bf16.msra.mxu0 %v10268_v37  ;;  %v10284_v37 = vld [vmem:[%s12978_s13 + $0xb0] sm:$0xff]  }
0x1cf0   :  { %9347 = vmatprep.subr.bf16.mxu0 %v10269_v38 }
0x1cf1   :  { %9324 = vmatpush3.bf16.msra.mxu1 %v10259_v44 }
0x1cf2   :  { %9325 = vmatprep.subr.bf16.mxu1 %v10260_v17 }
0x1cf3   :  { %9348 = vmatpush3.bf16.msra.mxu0 %v10269_v38  ;;  %v10285_v38 = vld [vmem:[%s12978_s13 + $0xb8] sm:$0xff]  }
0x1cf4   :  { %9353 = vmatprep.subr.bf16.mxu0 %v10270_v39 }
0x1cf5   :  { %9326 = vmatpush3.bf16.msra.mxu1 %v10260_v17 }
0x1cf6   :  { %9327 = vmatprep.subr.bf16.mxu1 %v10261_v45 }
0x1cf9   :  { %9328 = vmatpush3.bf16.msra.mxu1 %v10261_v45 }
0x1cfc   :  { %9330 = vmatmul.mubr.bf16.vlgmr.msra.gmra.mrb[16].mxu1 %v2510_v48 }
0x1dcf   :  { %v9331_v50 = vpop.f32.mrb[16].mxu1 }
0x1dd0   :  { %v2593_v51 = vpop.f32.mrb[17].mxu1  ;;  %v11601_v55 = vadd.f32 %v9331_v50, %v11595_v49  ;;  %v11658_v50 = vld [vmem:[%s12980_s15] sm:$0x1] }
0x1dd1   :  { %v11598_v52 = vadd.f32 %v11595_v49, %v2593_v51  ;;  %v9332_v53 = vpop.f32.mrb[18].mxu1 }
0x1dd2   :  { %v2596_v54 = vpop.f32.mrb[19].mxu1  ;;  %v11609_v0 = vadd.f32 %v9332_v53, %v11595_v49  ;;  %v2633_v62 = vmul.f32 %v11601_v55, %v11601_v55 }
0x1dd3   :  { %v11604_v56 = vadd.f32 %v11595_v49, %v2596_v54  ;;  %v2631_v57 = vmul.f32 %v11598_v52, %v11598_v52  ;;  %v11665_v54 = vld [vmem:[%s12981_s16] sm:$0x1] }
0x1dd4   :  { %v2634_v20 = vmul.f32 %v11609_v0, %v11609_v0 }
0x1dd5   :  { %v2622_v6 = vadd.f32 %v11604_v56, %v11598_v52  ;;  %v2632_v11 = vmul.f32 %v11604_v56, %v11604_v56 }
0x1dd7   :  { %v2623_v15 = vadd.f32 %v2622_v6, %v11601_v55  ;;  %v2635_v16 = vadd.f32 %v2632_v11, %v2631_v57 }
0x1dd9   :  { %v2624_v22 = vadd.f32 %v2623_v15, %v11609_v0  ;;  %v2636_v24 = vadd.f32 %v2635_v16, %v2633_v62 }
0x1ddb   :  { %v2625_v59 = vrot.slane %v2624_v22, 4  ;;  %v2637_v7 = vadd.f32 %v2636_v24, %v2634_v20 }
0x1ddd   :  { %v2626_v13 = vadd.f32 %v2625_v59, %v2624_v22  ;;  %v2638_v19 = vrot.slane %v2637_v7, 4 }
0x1ddf   :  { %v2627_v14 = vrot.slane %v2626_v13, 2  ;;  %v2639_v5 = vadd.f32 %v2638_v19, %v2637_v7 }
0x1de1   :  { %v2628_v12 = vadd.f32 %v2627_v14, %v2626_v13  ;;  %v2640_v61 = vrot.slane %v2639_v5, 2 }
0x1de3   :  { %v2629_v63 = vrot.slane %v2628_v12, 1  ;;  %v2641_v25 = vadd.f32 %v2640_v61, %v2639_v5 }
0x1de5   :  { %v2642_v18 = vrot.slane %v2641_v25, 1  ;;  %v2630_v27 = vadd.f32 %v2629_v63, %v2628_v12 }
0x1de7   :  { %v2643_v60 = vadd.f32 %v2642_v18, %v2641_v25  ;;  %v10273_v18 = vld [vmem:[%s12978_s13 + $0x18] sm:$0xff]  }
0x1de9   :  { %v2644_v28 = vsel %vm492_vm2, %v2630_v27, %v2643_v60  ;;  %v10274_v27 = vld [vmem:[%s12978_s13 + $0x20] sm:$0xff]   ;;  %v10275_v60 = vld [vmem:[%s12978_s13 + $0x28] sm:$0xff]  }
0x1dea   :  { %v2645_v3 = vsel %vm476_vm1, %v2644_v28, 0.0  ;;  %v10276_v28 = vld [vmem:[%s12978_s13 + $0x30] sm:$0xff]  }
0x1deb   :  { %2646 = vrot.lane.b32.xlu0 %v2645_v3, %s10690_s29 }
0x1e5d   :  { %v2647_v29 = vpop.permute.xlu0 %2646 }
0x1e5e   :  { %v2648_v10 = vadd.f32 %v2647_v29, %v2645_v3  ;;  %v10277_v3 = vld [vmem:[%s12978_s13 + $0x38] sm:$0xff]   ;;  %v10278_v29 = vld [vmem:[%s12978_s13 + $0x80] sm:$0xff]  }
0x1e60   :  { %2649 = vrot.lane.b32.xlu1 %v2648_v10, %s10697_s6 }
0x1ed2   :  { %v2650_v30 = vpop.permute.xlu1 %2649 }
0x1ed3   :  { %v2651_v31 = vadd.f32 %v2650_v30, %v2648_v10 }
0x1ed5   :  { %2652 = vrot.lane.b32.xlu0 %v2651_v31, %s10698_s30 }
0x1f47   :  { %v2653_v32 = vpop.permute.xlu0 %2652 }
0x1f48   :  { %v2654_v8 = vadd.f32 %v2653_v32, %v2651_v31 }
0x1f4a   :  { %2655 = vrot.lane.b32.xlu1 %v2654_v8, %s10692_s9 }
0x1fbc   :  { %v2656_v40 = vpop.permute.xlu1 %2655 }
0x1fbd   :  { %v2657_v41 = vadd.f32 %v2656_v40, %v2654_v8  ;;  %v10279_v8 = vld [vmem:[%s12978_s13 + $0x88] sm:$0xff]  }
0x1fbf   :  { %v2658_v42 = vmul.f32 0.001953125, %v2657_v41 }
0x1fc1   :  { %v2659_v43 = vmul.f32 %v2658_v42, %v2658_v42 }
0x1fc3   :  { %v2661_v44 = vrot.slane %v2659_v43, 7 }
0x1fc5   :  { %v2663_v17 = vsub.f32 %v2658_v42, %v2661_v44 }
0x1fc7   :  { %v2664_v45 = vadd.f32 1e-05, %v2663_v17 }
0x1fc9   :  { %10550 = vrsqrt.f32 %v2664_v45 }
0x1fd3   :  { %v10551_v46 = vpop.eup %10550 }
0x1fd4   :  { %v2673_v47 = vrot.slane %v10551_v46, %v11107_v4 }
0x1fd6   :  { %v2674_v48 = vcombine.high %v2673_v47, %v2673_v47 }
0x1fd8   :  { %v2681_v51 = vrot.slane %v2674_v48, %v11107_v4 }
0x1fda   :  { %v2683_v53 = vmul.f32 %v2681_v51, %v11658_v50 }
0x1fdc   :  { %v2688_v57 = vrot.slane %v2683_v53, %v11116_v9  ;;  %v2694_v6 = vmul.f32 %v2683_v53, %v2658_v42 }
0x1fde   :  { %v2695_v11 = vsub.f32 %v11665_v54, %v2694_v6  ;;  %v2690_v62 = vmul.f32 %v2688_v57, %v11598_v52  ;;  %v2691_v15 = vmul.f32 %v2688_v57, %v11604_v56  ;;  %v2692_v16 = vmul.f32 %v2688_v57, %v11601_v55  ;;  %v10271_v55 = vld [vmem:[%s12978_s13 + $0x8] sm:$0xff]  }
0x1fdf   :  { %v2693_v20 = vmul.f32 %v2688_v57, %v11609_v0  ;;  %v10272_v0 = vld [vmem:[%s12978_s13 + $0x10] sm:$0xff]  }
0x1fe0   :  { %v2700_v22 = vrot.slane %v2695_v11, %v11116_v9 }
0x1fe2   :  { %v2702_v24 = vadd.f32 %v2700_v22, %v2690_v62  ;;  %v2703_v59 = vadd.f32 %v2700_v22, %v2691_v15  ;;  %v2704_v7 = vadd.f32 %v2700_v22, %v2692_v16  ;;  %v2705_v13 = vadd.f32 %v2700_v22, %v2693_v20 }
0x1fe4   :  { %v2706_v19 = vmax.f32 %v2702_v24, 0.0  ;;  %v2707_v14 = vmax.f32 %v2703_v59, 0.0  ;;  %v2708_v5 = vmax.f32 %v2704_v7, 0.0  ;;  %v2709_v12 = vmax.f32 %v2705_v13, 0.0 }
0x1fe6   :  { %2710 = vst [vmem:[#allocation2 + $0x1] sm:$0xff] %v2706_v19  ;;  %2711 = vst [vmem:[#allocation2 + $0x9] sm:$0xff] %v2707_v14  ;;  %v2756_v52 = vpack.c.bf16 %v2707_v14, %v2706_v19  ;;  %v2757_v56 = vpack.c.bf16 %v2709_v12, %v2708_v5 }
0x1fe7   :  { %2712 = vst [vmem:[#allocation2 + $0x19] sm:$0xff] %v2708_v5  ;;  %2713 = vst [vmem:[#allocation2 + $0x21] sm:$0xff] %v2709_v12 }
0x1fe8   :  { %9349 = vmatprep.mubr.bf16.mxu0 %v2756_v52 }
0x1fe9   :  { %9350 = vmatmul.mubr.bf16.vlgmr.msra.gmra.mrb[40].mxu0 %v2757_v56 }
0x1fea   :  { %9354 = vmatpush3.bf16.msra.mxu0 %v10270_v39 }
0x1feb   :  { %9355 = vmatprep.subr.bf16.mxu0 %v10271_v55 }
0x1fed   :  { %v2715_v61 = vld [vmem:[#allocation2 + $0x8] sm:$0xff]  ;;  %v2714_v63 = vld [vmem:[#allocation2] sm:$0xff] }
0x1fee   :  { %9356 = vmatpush3.bf16.msra.mxu0 %v10271_v55  ;;  %v2734_v25 = vpack.c.bf16 %v2715_v61, %v2714_v63  ;;  %v2717_v10 = vld [vmem:[#allocation2 + $0x20] sm:$0xff]  ;;  %v2716_v30 = vld [vmem:[#allocation2 + $0x18] sm:$0xff]  ;;  %v2953_v32 = vld [vmem:[#allocation2 + $0xa] sm:$0xff] }
0x1fef   :  { %9357 = vmatprep.subr.bf16.mxu0 %v10272_v0  ;;  %v2952_v31 = vld [vmem:[#allocation2 + $0x2] sm:$0xff]  ;;  %v2735_v33 = vpack.c.bf16 %v2717_v10, %v2716_v30  ;;  %v2954_v39 = vld [vmem:[#allocation2 + $0x1a] sm:$0xff]  ;;  %v10287_v10 = vld [vmem:[%s12978_s13 + $0x48] sm:$0xff]  }
0x1ff0   :  { %9369 = vmatprep.mubr.bf16.mxu0 %v2734_v25  ;;  %v2972_v2 = vpack.c.bf16 %v2953_v32, %v2952_v31  ;;  %v2955_v40 = vld [vmem:[#allocation2 + $0x22] sm:$0xff]  ;;  %v10288_v30 = vld [vmem:[%s12978_s13 + $0x50] sm:$0xff]  }
0x1ff1   :  { %v2973_v41 = vpack.c.bf16 %v2955_v40, %v2954_v39  ;;  %v10289_v31 = vld [vmem:[%s12978_s13 + $0x58] sm:$0xff]   ;;  %v10290_v32 = vld [vmem:[%s12978_s13 + $0x60] sm:$0xff]  }
0x1ff2   :  { %9358 = vmatpush3.bf16.msra.mxu0 %v10272_v0 }
0x1ff3   :  { %9359 = vmatprep.subr.bf16.mxu0 %v10273_v18 }
0x1ff6   :  { %9360 = vmatpush3.bf16.msra.mxu0 %v10273_v18 }
0x1ff7   :  { %9361 = vmatprep.subr.bf16.mxu0 %v10274_v27 }
0x1ffa   :  { %9362 = vmatpush3.bf16.msra.mxu0 %v10274_v27 }
0x1ffb   :  { %9363 = vmatprep.subr.bf16.mxu0 %v10275_v60 }
0x1ffe   :  { %9364 = vmatpush3.bf16.msra.mxu0 %v10275_v60 }
0x1fff   :  { %9365 = vmatprep.subr.bf16.mxu0 %v10276_v28 }
0x2002   :  { %9366 = vmatpush3.bf16.msra.mxu0 %v10276_v28 }
0x2003   :  { %9367 = vmatprep.subr.bf16.mxu0 %v10277_v3 }
0x2006   :  { %9368 = vmatpush3.bf16.msra.mxu0 %v10277_v3 }
0x2007   :  { %9373 = vmatprep.subr.bf16.mxu0 %v10278_v29 }
0x2009   :  { %9370 = vmatmul.mubr.bf16.vlgmr.msra.gmra.mrb[40].mxu0 %v2735_v33  ;;  %v10291_v33 = vld [vmem:[%s12978_s13 + $0x68] sm:$0xff]  }
0x200a   :  { %9374 = vmatpush3.bf16.msra.mxu0 %v10278_v29  ;;  %9389 = vmatprep.mubr.bf16.mxu0 %v2972_v2  ;;  %v10286_v29 = vld [vmem:[%s12978_s13 + $0x40] sm:$0xff]   ;;  %v10293_v2 = vld [vmem:[%s12978_s13 + $0x78] sm:$0xff]  }
0x200b   :  { %9375 = vmatprep.subr.bf16.mxu0 %v10279_v8  ;;  %9393 = vmatprep.subr.bf16.mxu1 %v10286_v29 }
0x200c   :  { %9394 = vmatpush3.bf16.msra.mxu1 %v10286_v29  ;;  %v10303_v29 = vld [vmem:[%s12978_s13 + $0x88] sm:$0xff]  }
0x200d   :  { %9395 = vmatprep.subr.bf16.mxu1 %v10287_v10 }
0x200e   :  { %9376 = vmatpush3.bf16.msra.mxu0 %v10279_v8  ;;  %v10292_v8 = vld [vmem:[%s12978_s13 + $0x70] sm:$0xff]  }
0x200f   :  { %9377 = vmatprep.subr.bf16.mxu0 %v10280_v34 }
0x2010   :  { %9396 = vmatpush3.bf16.msra.mxu1 %v10287_v10 }
0x2011   :  { %9397 = vmatprep.subr.bf16.mxu1 %v10288_v30 }
0x2012   :  { %9378 = vmatpush3.bf16.msra.mxu0 %v10280_v34  ;;  %v10294_v34 = vld [vmem:[%s12978_s13] sm:$0xff]  }
0x2013   :  { %9379 = vmatprep.subr.bf16.mxu0 %v10281_v35 }
0x2014   :  { %9398 = vmatpush3.bf16.msra.mxu1 %v10288_v30  ;;  %v10304_v30 = vld [vmem:[%s12978_s13 + $0x90] sm:$0xff]  }
0x2015   :  { %9399 = vmatprep.subr.bf16.mxu1 %v10289_v31 }
0x2016   :  { %9380 = vmatpush3.bf16.msra.mxu0 %v10281_v35 }
0x2017   :  { %9381 = vmatprep.subr.bf16.mxu0 %v10282_v58 }
0x2018   :  { %9400 = vmatpush3.bf16.msra.mxu1 %v10289_v31  ;;  %v10305_v31 = vld [vmem:[%s12978_s13 + $0x98] sm:$0xff]  }
0x2019   :  { %9401 = vmatprep.subr.bf16.mxu1 %v10290_v32 }
0x201a   :  { %9382 = vmatpush3.bf16.msra.mxu0 %v10282_v58 }
0x201b   :  { %9383 = vmatprep.subr.bf16.mxu0 %v10283_v36 }
0x201c   :  { %9402 = vmatpush3.bf16.msra.mxu1 %v10290_v32  ;;  %v10306_v32 = vld [vmem:[%s12978_s13 + $0xa0] sm:$0xff]  }
0x201d   :  { %9403 = vmatprep.subr.bf16.mxu1 %v10291_v33 }
0x201e   :  { %9384 = vmatpush3.bf16.msra.mxu0 %v10283_v36 }
0x201f   :  { %9385 = vmatprep.subr.bf16.mxu0 %v10284_v37 }
0x2020   :  { %9404 = vmatpush3.bf16.msra.mxu1 %v10291_v33  ;;  %v10307_v33 = vld [vmem:[%s12978_s13 + $0xa8] sm:$0xff]  }
0x2021   :  { %9405 = vmatprep.subr.bf16.mxu1 %v10292_v8 }
0x2022   :  { %9386 = vmatpush3.bf16.msra.mxu0 %v10284_v37 }
0x2023   :  { %9387 = vmatprep.subr.bf16.mxu0 %v10285_v38 }
0x2024   :  { %9406 = vmatpush3.bf16.msra.mxu1 %v10292_v8  ;;  %v10308_v8 = vld [vmem:[%s12978_s13 + $0xb0] sm:$0xff]  }
0x2025   :  { %9407 = vmatprep.subr.bf16.mxu1 %v10293_v2 }
0x2026   :  { %9388 = vmatpush3.bf16.msra.mxu0 %v10285_v38 }
0x2028   :  { %9408 = vmatpush3.bf16.msra.mxu1 %v10293_v2  ;;  %v10309_v2 = vld [vmem:[%s12978_s13 + $0xb8] sm:$0xff]  }
0x2029   :  { %9390 = vmatmul.mubr.bf16.vlgmr.msra.gmra.mrb[40].mxu0 %v2973_v41  ;;  %9413 = vmatprep.subr.bf16.mxu1 %v10294_v34 }
0x20fc   :  { %v9391_v42 = vpop.f32.mrb[40].mxu0 }
0x20fd   :  { %v3056_v43 = vpop.f32.mrb[41].mxu0  ;;  %v11723_v46 = vadd.f32 %v9391_v42, %v11595_v49 }
0x20fe   :  { %v11720_v44 = vadd.f32 %v11595_v49, %v3056_v43  ;;  %v9392_v17 = vpop.f32.mrb[42].mxu0 }
0x20ff   :  { %v3059_v45 = vpop.f32.mrb[43].mxu0  ;;  %v11731_v51 = vadd.f32 %v9392_v17, %v11595_v49  ;;  %v3090_v6 = vmul.f32 %v11723_v46, %v11723_v46 }
0x2100   :  { %v11726_v47 = vadd.f32 %v11595_v49, %v3059_v45  ;;  %v3088_v48 = vmul.f32 %v11720_v44, %v11720_v44 }
0x2101   :  { %v3091_v15 = vmul.f32 %v11731_v51, %v11731_v51 }
0x2102   :  { %v3079_v53 = vadd.f32 %v11726_v47, %v11720_v44  ;;  %v3089_v57 = vmul.f32 %v11726_v47, %v11726_v47 }
0x2104   :  { %v3080_v11 = vadd.f32 %v3079_v53, %v11723_v46  ;;  %v3092_v62 = vadd.f32 %v3089_v57, %v3088_v48 }
0x2106   :  { %v3081_v16 = vadd.f32 %v3080_v11, %v11731_v51  ;;  %v3093_v20 = vadd.f32 %v3092_v62, %v3090_v6 }
0x2108   :  { %v3082_v22 = vrot.slane %v3081_v16, 4  ;;  %v3094_v24 = vadd.f32 %v3093_v20, %v3091_v15 }
0x210a   :  { %v3083_v59 = vadd.f32 %v3082_v22, %v3081_v16  ;;  %v3095_v7 = vrot.slane %v3094_v24, 4 }
0x210c   :  { %v3084_v13 = vrot.slane %v3083_v59, 2  ;;  %v3096_v19 = vadd.f32 %v3095_v7, %v3094_v24 }
0x210e   :  { %v3085_v14 = vadd.f32 %v3084_v13, %v3083_v59  ;;  %v3097_v5 = vrot.slane %v3096_v19, 2 }
0x2110   :  { %v3086_v12 = vrot.slane %v3085_v14, 1  ;;  %v3098_v52 = vadd.f32 %v3097_v5, %v3096_v19 }
0x2112   :  { %v3099_v56 = vrot.slane %v3098_v52, 1  ;;  %v3087_v55 = vadd.f32 %v3086_v12, %v3085_v14 }
0x2114   :  { %v3100_v0 = vadd.f32 %v3099_v56, %v3098_v52  ;;  %v10297_v56 = vld [vmem:[%s12978_s13 + $0x18] sm:$0xff]  }
0x2116   :  { %v3101_v61 = vsel %vm492_vm2, %v3087_v55, %v3100_v0  ;;  %v10298_v55 = vld [vmem:[%s12978_s13 + $0x20] sm:$0xff]   ;;  %v10299_v0 = vld [vmem:[%s12978_s13 + $0x28] sm:$0xff]  }
0x2117   :  { %v3102_v63 = vsel %vm476_vm1, %v3101_v61, 0.0  ;;  %v10300_v61 = vld [vmem:[%s12978_s13 + $0x30] sm:$0xff]  }
0x2118   :  { %3103 = vrot.lane.b32.xlu0 %v3102_v63, %s10690_s29 }
0x218a   :  { %v3104_v25 = vpop.permute.xlu0 %3103 }
0x218b   :  { %v3105_v18 = vadd.f32 %v3104_v25, %v3102_v63  ;;  %v10301_v63 = vld [vmem:[%s12978_s13 + $0x38] sm:$0xff]   ;;  %v10302_v25 = vld [vmem:[%s12978_s13 + $0x80] sm:$0xff]  }
0x218d   :  { %3106 = vrot.lane.b32.xlu1 %v3105_v18, %s10697_s6 }
0x21ff   :  { %v3107_v27 = vpop.permute.xlu1 %3106 }
0x2200   :  { %v3108_v60 = vadd.f32 %v3107_v27, %v3105_v18 }
0x2202   :  { %3109 = vrot.lane.b32.xlu0 %v3108_v60, %s10698_s30 }
0x2274   :  { %v3110_v28 = vpop.permute.xlu0 %3109 }
0x2275   :  { %v3111_v3 = vadd.f32 %v3110_v28, %v3108_v60 }
0x2277   :  { %3112 = vrot.lane.b32.xlu1 %v3111_v3, %s10692_s9 }
0x22e9   :  { %v3113_v35 = vpop.permute.xlu1 %3112 }
0x22ea   :  { %v3114_v58 = vadd.f32 %v3113_v35, %v3111_v3 }
0x22ec   :  { %v3115_v36 = vmul.f32 0.001953125, %v3114_v58 }
0x22ee   :  { %v3116_v37 = vmul.f32 %v3115_v36, %v3115_v36 }
0x22f0   :  { %v3118_v38 = vrot.slane %v3116_v37, 7 }
0x22f2   :  { %v3120_v39 = vsub.f32 %v3115_v36, %v3118_v38 }
0x22f4   :  { %v3121_v40 = vadd.f32 1e-05, %v3120_v39 }
0x22f6   :  { %10552 = vrsqrt.f32 %v3121_v40 }
0x2300   :  { %v10553_v41 = vpop.eup %10552 }
0x2301   :  { %v3130_v42 = vrot.slane %v10553_v41, %v11107_v4 }
0x2303   :  { %v3131_v43 = vcombine.high %v3130_v42, %v3130_v42 }
0x2305   :  { %v3138_v17 = vrot.slane %v3131_v43, %v11107_v4 }
0x2307   :  { %v3140_v45 = vmul.f32 %v3138_v17, %v11658_v50 }
0x2309   :  { %v3145_v48 = vrot.slane %v3140_v45, %v11116_v9  ;;  %v3151_v53 = vmul.f32 %v3140_v45, %v3115_v36 }
0x230b   :  { %v3152_v57 = vsub.f32 %v11665_v54, %v3151_v53  ;;  %v3147_v6 = vmul.f32 %v3145_v48, %v11720_v44  ;;  %v3148_v11 = vmul.f32 %v3145_v48, %v11726_v47  ;;  %v3149_v62 = vmul.f32 %v3145_v48, %v11723_v46 }
0x230c   :  { %v3150_v15 = vmul.f32 %v3145_v48, %v11731_v51 }
0x230d   :  { %v3157_v16 = vrot.slane %v3152_v57, %v11116_v9 }
0x230f   :  { %v3159_v20 = vadd.f32 %v3157_v16, %v3147_v6  ;;  %v3160_v22 = vadd.f32 %v3157_v16, %v3148_v11  ;;  %v3161_v24 = vadd.f32 %v3157_v16, %v3149_v62  ;;  %v3162_v59 = vadd.f32 %v3157_v16, %v3150_v15 }
0x2311   :  { %v3163_v7 = vadd.f32 %v3159_v20, %v11533_v23  ;;  %v3164_v13 = vadd.f32 %v3160_v22, %v11539_v1  ;;  %v3165_v19 = vadd.f32 %v3161_v24, %v11531_v21  ;;  %v3166_v44 = vadd.f32 %v3162_v59, %v11536_v26  ;;  %v10295_v26 = vld [vmem:[%s12978_s13 + $0x8] sm:$0xff]   ;;  %v10296_v1 = vld [vmem:[%s12978_s13 + $0x10] sm:$0xff]  }
0x2313   :  { %v11790_v14 = vmax.f32 %v3163_v7, 0.0  ;;  %v11792_v47 = vmax.f32 %v3164_v13, 0.0  ;;  %v11794_v46 = vmax.f32 %v3165_v19, 0.0  ;;  %v11796_v51 = vmax.f32 %v3166_v44, 0.0 }
0x2315   :  { %3171 = vst [vmem:[#allocation2 + $0x1] sm:$0xff] %v11790_v14  ;;  %3172 = vst [vmem:[#allocation2 + $0x9] sm:$0xff] %v11792_v47  ;;  %v3217_v21 = vpack.c.bf16 %v11792_v47, %v11790_v14  ;;  %v3218_v23 = vpack.c.bf16 %v11796_v51, %v11794_v46 }
0x2316   :  { %3173 = vst [vmem:[#allocation2 + $0x19] sm:$0xff] %v11794_v46  ;;  %3174 = vst [vmem:[#allocation2 + $0x21] sm:$0xff] %v11796_v51 }
0x2317   :  { %9409 = vmatprep.mubr.bf16.mxu1 %v3217_v21 }
0x2318   :  { %9410 = vmatmul.mubr.bf16.vlgmr.msra.gmra.mrb[20].mxu1 %v3218_v23 }
0x2319   :  { %9414 = vmatpush3.bf16.msra.mxu1 %v10294_v34 }
0x231a   :  { %9415 = vmatprep.subr.bf16.mxu1 %v10295_v26 }
0x231c   :  { %v3175_v5 = vld [vmem:[#allocation2] sm:$0xff]  ;;  %v3176_v12 = vld [vmem:[#allocation2 + $0x8] sm:$0xff] }
0x231d   :  { %v3195_v52 = vpack.c.bf16 %v3176_v12, %v3175_v5  ;;  %9416 = vmatpush3.bf16.msra.mxu1 %v10295_v26  ;;  %v3177_v18 = vld [vmem:[#allocation2 + $0x18] sm:$0xff]  ;;  %v3178_v27 = vld [vmem:[#allocation2 + $0x20] sm:$0xff]  ;;  %v3414_v28 = vld [vmem:[#allocation2 + $0xa] sm:$0xff] }
0x231e   :  { %9417 = vmatprep.subr.bf16.mxu1 %v10296_v1  ;;  %v3413_v60 = vld [vmem:[#allocation2 + $0x2] sm:$0xff]  ;;  %v3196_v3 = vpack.c.bf16 %v3178_v27, %v3177_v18  ;;  %v3415_v34 = vld [vmem:[#allocation2 + $0x1a] sm:$0xff]  ;;  %v10311_v18 = vld [vmem:[%s12978_s13 + $0x48] sm:$0xff]  }
0x231f   :  { %9429 = vmatprep.mubr.bf16.mxu1 %v3195_v52  ;;  %v3433_v10 = vpack.c.bf16 %v3414_v28, %v3413_v60  ;;  %v3416_v35 = vld [vmem:[#allocation2 + $0x22] sm:$0xff]  ;;  %v10312_v27 = vld [vmem:[%s12978_s13 + $0x50] sm:$0xff]  }
0x2320   :  { %v3434_v58 = vpack.c.bf16 %v3416_v35, %v3415_v34  ;;  %v10313_v60 = vld [vmem:[%s12978_s13 + $0x58] sm:$0xff]   ;;  %v10314_v28 = vld [vmem:[%s12978_s13 + $0x60] sm:$0xff]  }
0x2321   :  { %9418 = vmatpush3.bf16.msra.mxu1 %v10296_v1 }
0x2322   :  { %9419 = vmatprep.subr.bf16.mxu1 %v10297_v56 }
0x2325   :  { %9420 = vmatpush3.bf16.msra.mxu1 %v10297_v56 }
0x2326   :  { %9421 = vmatprep.subr.bf16.mxu1 %v10298_v55 }
0x2329   :  { %9422 = vmatpush3.bf16.msra.mxu1 %v10298_v55 }
0x232a   :  { %9423 = vmatprep.subr.bf16.mxu1 %v10299_v0 }
0x232d   :  { %9424 = vmatpush3.bf16.msra.mxu1 %v10299_v0 }
0x232e   :  { %9425 = vmatprep.subr.bf16.mxu1 %v10300_v61 }
0x2331   :  { %9426 = vmatpush3.bf16.msra.mxu1 %v10300_v61 }
0x2332   :  { %9427 = vmatprep.subr.bf16.mxu1 %v10301_v63 }
0x2335   :  { %9428 = vmatpush3.bf16.msra.mxu1 %v10301_v63  ;;  %v10310_v63 = vld [vmem:[%s12978_s13 + $0x40] sm:$0xff]  }
0x2336   :  { %9433 = vmatprep.subr.bf16.mxu1 %v10302_v25  ;;  %9453 = vmatprep.subr.bf16.mxu0 %v10310_v63 }
0x2337   :  { %9454 = vmatpush3.bf16.msra.mxu0 %v10310_v63 }
0x2338   :  { %9430 = vmatmul.mubr.bf16.vlgmr.msra.gmra.mrb[20].mxu1 %v3196_v3  ;;  %9455 = vmatprep.subr.bf16.mxu0 %v10311_v18  ;;  %v10315_v3 = vld [vmem:[%s12978_s13 + $0x68] sm:$0xff]  }
0x2339   :  { %9434 = vmatpush3.bf16.msra.mxu1 %v10302_v25  ;;  %9449 = vmatprep.mubr.bf16.mxu1 %v3433_v10  ;;  %v10317_v10 = vld [vmem:[%s12978_s13 + $0x78] sm:$0xff]  }
0x233a   :  { %9435 = vmatprep.subr.bf16.mxu1 %v10303_v29 }
0x233b   :  { %9456 = vmatpush3.bf16.msra.mxu0 %v10311_v18 }
0x233c   :  { %9457 = vmatprep.subr.bf16.mxu0 %v10312_v27 }
0x233d   :  { %9436 = vmatpush3.bf16.msra.mxu1 %v10303_v29  ;;  %v10316_v29 = vld [vmem:[%s12978_s13 + $0x70] sm:$0xff]  }
0x233e   :  { %9437 = vmatprep.subr.bf16.mxu1 %v10304_v30 }
0x233f   :  { %9458 = vmatpush3.bf16.msra.mxu0 %v10312_v27  ;;  %v10328_v27 = vld [vmem:[%s12978_s13 + $0x90] sm:$0xff]  }
0x2340   :  { %9459 = vmatprep.subr.bf16.mxu0 %v10313_v60 }
0x2341   :  { %9438 = vmatpush3.bf16.msra.mxu1 %v10304_v30  ;;  %v10318_v30 = vld [vmem:[%s12978_s13] sm:$0xff]  }
0x2342   :  { %9439 = vmatprep.subr.bf16.mxu1 %v10305_v31 }
0x2343   :  { %9460 = vmatpush3.bf16.msra.mxu0 %v10313_v60  ;;  %v10329_v60 = vld [vmem:[%s12978_s13 + $0x98] sm:$0xff]  }
0x2344   :  { %9461 = vmatprep.subr.bf16.mxu0 %v10314_v28 }
0x2345   :  { %9440 = vmatpush3.bf16.msra.mxu1 %v10305_v31 }
0x2346   :  { %9441 = vmatprep.subr.bf16.mxu1 %v10306_v32 }
0x2347   :  { %9462 = vmatpush3.bf16.msra.mxu0 %v10314_v28  ;;  %v10330_v28 = vld [vmem:[%s12978_s13 + $0xa0] sm:$0xff]  }
0x2348   :  { %9463 = vmatprep.subr.bf16.mxu0 %v10315_v3 }
0x2349   :  { %9442 = vmatpush3.bf16.msra.mxu1 %v10306_v32 }
0x234a   :  { %9443 = vmatprep.subr.bf16.mxu1 %v10307_v33 }
0x234b   :  { %9464 = vmatpush3.bf16.msra.mxu0 %v10315_v3  ;;  %v10331_v3 = vld [vmem:[%s12978_s13 + $0xa8] sm:$0xff]  }
0x234c   :  { %9465 = vmatprep.subr.bf16.mxu0 %v10316_v29 }
0x234d   :  { %9444 = vmatpush3.bf16.msra.mxu1 %v10307_v33 }
0x234e   :  { %9445 = vmatprep.subr.bf16.mxu1 %v10308_v8 }
0x234f   :  { %9466 = vmatpush3.bf16.msra.mxu0 %v10316_v29  ;;  %v10332_v29 = vld [vmem:[%s12978_s13 + $0xb0] sm:$0xff]  }
0x2350   :  { %9467 = vmatprep.subr.bf16.mxu0 %v10317_v10 }
0x2351   :  { %9446 = vmatpush3.bf16.msra.mxu1 %v10308_v8 }
0x2352   :  { %9447 = vmatprep.subr.bf16.mxu1 %v10309_v2 }
0x2353   :  { %9468 = vmatpush3.bf16.msra.mxu0 %v10317_v10  ;;  %v10333_v10 = vld [vmem:[%s12978_s13 + $0xb8] sm:$0xff]  }
0x2354   :  { %9473 = vmatprep.subr.bf16.mxu0 %v10318_v30 }
0x2355   :  { %9448 = vmatpush3.bf16.msra.mxu1 %v10309_v2 }
0x2358   :  { %9450 = vmatmul.mubr.bf16.vlgmr.msra.gmra.mrb[20].mxu1 %v3434_v58 }
0x242b   :  { %v9451_v36 = vpop.f32.mrb[20].mxu1 }
0x242c   :  { %v3517_v37 = vpop.f32.mrb[21].mxu1  ;;  %v11855_v41 = vadd.f32 %v9451_v36, %v11595_v49 }
0x242d   :  { %v11852_v38 = vadd.f32 %v11595_v49, %v3517_v37  ;;  %v9452_v39 = vpop.f32.mrb[22].mxu1 }
0x242e   :  { %v3520_v40 = vpop.f32.mrb[23].mxu1  ;;  %v11863_v17 = vadd.f32 %v9452_v39, %v11595_v49  ;;  %v3551_v53 = vmul.f32 %v11855_v41, %v11855_v41 }
0x242f   :  { %v11858_v42 = vadd.f32 %v11595_v49, %v3520_v40  ;;  %v3549_v43 = vmul.f32 %v11852_v38, %v11852_v38 }
0x2430   :  { %v3552_v11 = vmul.f32 %v11863_v17, %v11863_v17 }
0x2431   :  { %v3540_v45 = vadd.f32 %v11858_v42, %v11852_v38  ;;  %v3550_v48 = vmul.f32 %v11858_v42, %v11858_v42 }
0x2433   :  { %v3541_v57 = vadd.f32 %v3540_v45, %v11855_v41  ;;  %v3553_v6 = vadd.f32 %v3550_v48, %v3549_v43 }
0x2435   :  { %v3542_v62 = vadd.f32 %v3541_v57, %v11863_v17  ;;  %v3554_v15 = vadd.f32 %v3553_v6, %v3551_v53 }
0x2437   :  { %v3543_v16 = vrot.slane %v3542_v62, 4  ;;  %v3555_v20 = vadd.f32 %v3554_v15, %v3552_v11 }
0x2439   :  { %v3544_v22 = vadd.f32 %v3543_v16, %v3542_v62  ;;  %v3556_v24 = vrot.slane %v3555_v20, 4 }
0x243b   :  { %v3545_v59 = vrot.slane %v3544_v22, 2  ;;  %v3557_v7 = vadd.f32 %v3556_v24, %v3555_v20 }
0x243d   :  { %v3546_v13 = vadd.f32 %v3545_v59, %v3544_v22  ;;  %v3558_v19 = vrot.slane %v3557_v7, 2 }
0x243f   :  { %v3547_v44 = vrot.slane %v3546_v13, 1  ;;  %v3559_v21 = vadd.f32 %v3558_v19, %v3557_v7 }
0x2441   :  { %v3560_v23 = vrot.slane %v3559_v21, 1  ;;  %v3548_v26 = vadd.f32 %v3547_v44, %v3546_v13 }
0x2443   :  { %v3561_v1 = vadd.f32 %v3560_v23, %v3559_v21  ;;  %v10321_v23 = vld [vmem:[%s12978_s13 + $0x18] sm:$0xff]  }
0x2445   :  { %v3562_v5 = vsel %vm492_vm2, %v3548_v26, %v3561_v1  ;;  %v10322_v26 = vld [vmem:[%s12978_s13 + $0x20] sm:$0xff]   ;;  %v10323_v1 = vld [vmem:[%s12978_s13 + $0x28] sm:$0xff]  }
0x2446   :  { %v3563_v12 = vsel %vm476_vm1, %v3562_v5, 0.0  ;;  %v10324_v5 = vld [vmem:[%s12978_s13 + $0x30] sm:$0xff]  }
0x2447   :  { %3564 = vrot.lane.b32.xlu0 %v3563_v12, %s10690_s29 }
0x24b9   :  { %v3565_v52 = vpop.permute.xlu0 %3564 }
0x24ba   :  { %v3566_v56 = vadd.f32 %v3565_v52, %v3563_v12  ;;  %v10325_v12 = vld [vmem:[%s12978_s13 + $0x38] sm:$0xff]   ;;  %v10326_v52 = vld [vmem:[%s12978_s13 + $0x80] sm:$0xff]  }
0x24bc   :  { %3567 = vrot.lane.b32.xlu1 %v3566_v56, %s10697_s6 }
0x252e   :  { %v3568_v55 = vpop.permute.xlu1 %3567 }
0x252f   :  { %v3569_v0 = vadd.f32 %v3568_v55, %v3566_v56 }
0x2531   :  { %3570 = vrot.lane.b32.xlu0 %v3569_v0, %s10698_s30 }
0x25a3   :  { %v3571_v61 = vpop.permute.xlu0 %3570 }
0x25a4   :  { %v3572_v25 = vadd.f32 %v3571_v61, %v3569_v0 }
0x25a6   :  { %3573 = vrot.lane.b32.xlu1 %v3572_v25, %s10692_s9 }
0x2618   :  { %v3574_v31 = vpop.permute.xlu1 %3573 }
0x2619   :  { %v3575_v32 = vadd.f32 %v3574_v31, %v3572_v25  ;;  %v10327_v25 = vld [vmem:[%s12978_s13 + $0x88] sm:$0xff]  }
0x261b   :  { %v3576_v33 = vmul.f32 0.001953125, %v3575_v32 }
0x261d   :  { %v3577_v8 = vmul.f32 %v3576_v33, %v3576_v33 }
0x261f   :  { %v3579_v2 = vrot.slane %v3577_v8, 7 }
0x2621   :  { %v3581_v34 = vsub.f32 %v3576_v33, %v3579_v2 }
0x2623   :  { %v3582_v35 = vadd.f32 1e-05, %v3581_v34 }
0x2625   :  { %10554 = vrsqrt.f32 %v3582_v35 }
0x262f   :  { %v10555_v58 = vpop.eup %10554 }
0x2630   :  { %v3591_v36 = vrot.slane %v10555_v58, %v11107_v4  ;;  %v11969_v58 = vld [vmem:[%s12979_s14] ss:$0 sm:$0xff] }
0x2632   :  { %v3592_v37 = vcombine.high %v3591_v36, %v3591_v36 }
0x2634   :  { %v3599_v39 = vrot.slane %v3592_v37, %v11107_v4 }
0x2636   :  { %v3601_v40 = vmul.f32 %v3599_v39, %v11658_v50 }
0x2638   :  { %v3606_v43 = vrot.slane %v3601_v40, %v11116_v9  ;;  %v3612_v45 = vmul.f32 %v3601_v40, %v3576_v33 }
0x263a   :  { %v3613_v48 = vsub.f32 %v11665_v54, %v3612_v45  ;;  %v3608_v53 = vmul.f32 %v3606_v43, %v11852_v38  ;;  %v3609_v57 = vmul.f32 %v3606_v43, %v11858_v42  ;;  %v3610_v6 = vmul.f32 %v3606_v43, %v11855_v41  ;;  %v10319_v41 = vld [vmem:[%s12978_s13 + $0x8] sm:$0xff]  }
0x263b   :  { %v3611_v11 = vmul.f32 %v3606_v43, %v11863_v17  ;;  %v10320_v17 = vld [vmem:[%s12978_s13 + $0x10] sm:$0xff]  }
0x263c   :  { %v3618_v62 = vrot.slane %v3613_v48, %v11116_v9 }
0x263e   :  { %v3620_v15 = vadd.f32 %v3618_v62, %v3608_v53  ;;  %v3621_v16 = vadd.f32 %v3618_v62, %v3609_v57  ;;  %v3622_v20 = vadd.f32 %v3618_v62, %v3610_v6  ;;  %v3623_v22 = vadd.f32 %v3618_v62, %v3611_v11 }
0x2640   :  { %v3624_v24 = vmax.f32 %v3620_v15, 0.0  ;;  %v3625_v59 = vmax.f32 %v3621_v16, 0.0  ;;  %v3626_v7 = vmax.f32 %v3622_v20, 0.0  ;;  %v3627_v13 = vmax.f32 %v3623_v22, 0.0 }
0x2642   :  { %3628 = vst [vmem:[#allocation2 + $0x1] sm:$0xff] %v3624_v24  ;;  %3629 = vst [vmem:[#allocation2 + $0x9] sm:$0xff] %v3625_v59  ;;  %v3674_v38 = vpack.c.bf16 %v3625_v59, %v3624_v24  ;;  %v3675_v42 = vpack.c.bf16 %v3627_v13, %v3626_v7 }
0x2643   :  { %3630 = vst [vmem:[#allocation2 + $0x19] sm:$0xff] %v3626_v7  ;;  %3631 = vst [vmem:[#allocation2 + $0x21] sm:$0xff] %v3627_v13 }
0x2644   :  { %9469 = vmatprep.mubr.bf16.mxu0 %v3674_v38 }
0x2645   :  { %9470 = vmatmul.mubr.bf16.vlgmr.msra.gmra.mrb[44].mxu0 %v3675_v42 }
0x2646   :  { %9474 = vmatpush3.bf16.msra.mxu0 %v10318_v30 }
0x2647   :  { %9475 = vmatprep.subr.bf16.mxu0 %v10319_v41 }
0x2649   :  { %v3632_v19 = vld [vmem:[#allocation2] sm:$0xff]  ;;  %v3633_v44 = vld [vmem:[#allocation2 + $0x8] sm:$0xff] }
0x264a   :  { %v3652_v21 = vpack.c.bf16 %v3633_v44, %v3632_v19  ;;  %9476 = vmatpush3.bf16.msra.mxu0 %v10319_v41  ;;  %v3634_v56 = vld [vmem:[#allocation2 + $0x18] sm:$0xff]  ;;  %v3635_v55 = vld [vmem:[#allocation2 + $0x20] sm:$0xff]  ;;  %v3871_v61 = vld [vmem:[#allocation2 + $0xa] sm:$0xff] }
0x264b   :  { %9477 = vmatprep.subr.bf16.mxu0 %v10320_v17  ;;  %v3870_v0 = vld [vmem:[#allocation2 + $0x2] sm:$0xff]  ;;  %v3653_v63 = vpack.c.bf16 %v3635_v55, %v3634_v56  ;;  %v3872_v30 = vld [vmem:[#allocation2 + $0x1a] sm:$0xff]  ;;  %v10335_v56 = vld [vmem:[%s12978_s13 + $0x48] sm:$0xff]  }
0x264c   :  { %9489 = vmatprep.mubr.bf16.mxu0 %v3652_v21  ;;  %v3890_v18 = vpack.c.bf16 %v3871_v61, %v3870_v0  ;;  %v3873_v31 = vld [vmem:[#allocation2 + $0x22] sm:$0xff]  ;;  %v10336_v55 = vld [vmem:[%s12978_s13 + $0x50] sm:$0xff]  }
0x264d   :  { %v3891_v32 = vpack.c.bf16 %v3873_v31, %v3872_v30  ;;  %v10337_v0 = vld [vmem:[%s12978_s13 + $0x58] sm:$0xff]   ;;  %v10338_v61 = vld [vmem:[%s12978_s13 + $0x60] sm:$0xff]  }
0x264e   :  { %9478 = vmatpush3.bf16.msra.mxu0 %v10320_v17 }
0x264f   :  { %9479 = vmatprep.subr.bf16.mxu0 %v10321_v23 }
0x2652   :  { %9480 = vmatpush3.bf16.msra.mxu0 %v10321_v23 }
0x2653   :  { %9481 = vmatprep.subr.bf16.mxu0 %v10322_v26 }
0x2656   :  { %9482 = vmatpush3.bf16.msra.mxu0 %v10322_v26 }
0x2657   :  { %9483 = vmatprep.subr.bf16.mxu0 %v10323_v1 }
0x265a   :  { %9484 = vmatpush3.bf16.msra.mxu0 %v10323_v1 }
0x265b   :  { %9485 = vmatprep.subr.bf16.mxu0 %v10324_v5 }
0x265e   :  { %9486 = vmatpush3.bf16.msra.mxu0 %v10324_v5 }
0x265f   :  { %9487 = vmatprep.subr.bf16.mxu0 %v10325_v12 }
0x2662   :  { %9488 = vmatpush3.bf16.msra.mxu0 %v10325_v12 }
0x2663   :  { %9493 = vmatprep.subr.bf16.mxu0 %v10326_v52 }
0x2665   :  { %9490 = vmatmul.mubr.bf16.vlgmr.msra.gmra.mrb[44].mxu0 %v3653_v63  ;;  %v10339_v63 = vld [vmem:[%s12978_s13 + $0x68] sm:$0xff]  }
0x2666   :  { %9494 = vmatpush3.bf16.msra.mxu0 %v10326_v52  ;;  %9509 = vmatprep.mubr.bf16.mxu0 %v3890_v18  ;;  %v10334_v52 = vld [vmem:[%s12978_s13 + $0x40] sm:$0xff]   ;;  %v10341_v18 = vld [vmem:[%s12978_s13 + $0x78] sm:$0xff]  }
0x2667   :  { %9495 = vmatprep.subr.bf16.mxu0 %v10327_v25  ;;  %9513 = vmatprep.subr.bf16.mxu1 %v10334_v52 }
0x2668   :  { %9514 = vmatpush3.bf16.msra.mxu1 %v10334_v52  ;;  %v10352_v52 = vld [vmem:[%s12978_s13 + $0x90] sm:$0xff]  }
0x2669   :  { %9515 = vmatprep.subr.bf16.mxu1 %v10335_v56 }
0x266a   :  { %9496 = vmatpush3.bf16.msra.mxu0 %v10327_v25  ;;  %v10340_v25 = vld [vmem:[%s12978_s13 + $0x70] sm:$0xff]  }
0x266b   :  { %9497 = vmatprep.subr.bf16.mxu0 %v10328_v27 }
0x266c   :  { %9516 = vmatpush3.bf16.msra.mxu1 %v10335_v56  ;;  %v10353_v56 = vld [vmem:[%s12978_s13 + $0x98] sm:$0xff]  }
0x266d   :  { %9517 = vmatprep.subr.bf16.mxu1 %v10336_v55 }
0x266e   :  { %9498 = vmatpush3.bf16.msra.mxu0 %v10328_v27  ;;  %v10342_v27 = vld [vmem:[%s12978_s13] sm:$0xff]  }
0x266f   :  { %9499 = vmatprep.subr.bf16.mxu0 %v10329_v60 }
0x2670   :  { %9518 = vmatpush3.bf16.msra.mxu1 %v10336_v55  ;;  %v10354_v55 = vld [vmem:[%s12978_s13 + $0xa0] sm:$0xff]  }
0x2671   :  { %9519 = vmatprep.subr.bf16.mxu1 %v10337_v0 }
0x2672   :  { %9500 = vmatpush3.bf16.msra.mxu0 %v10329_v60 }
0x2673   :  { %9501 = vmatprep.subr.bf16.mxu0 %v10330_v28 }
0x2674   :  { %9520 = vmatpush3.bf16.msra.mxu1 %v10337_v0  ;;  %v10355_v0 = vld [vmem:[%s12978_s13 + $0xa8] sm:$0xff]  }
0x2675   :  { %9521 = vmatprep.subr.bf16.mxu1 %v10338_v61 }
0x2676   :  { %9502 = vmatpush3.bf16.msra.mxu0 %v10330_v28 }
0x2677   :  { %9503 = vmatprep.subr.bf16.mxu0 %v10331_v3 }
0x2678   :  { %9522 = vmatpush3.bf16.msra.mxu1 %v10338_v61  ;;  %v10356_v61 = vld [vmem:[%s12978_s13 + $0xb0] sm:$0xff]  }
0x2679   :  { %9523 = vmatprep.subr.bf16.mxu1 %v10339_v63 }
0x267a   :  { %9504 = vmatpush3.bf16.msra.mxu0 %v10331_v3 }
0x267b   :  { %9505 = vmatprep.subr.bf16.mxu0 %v10332_v29 }
0x267c   :  { %9524 = vmatpush3.bf16.msra.mxu1 %v10339_v63  ;;  %v10357_v63 = vld [vmem:[%s12978_s13 + $0xb8] sm:$0xff]  }
0x267d   :  { %9525 = vmatprep.subr.bf16.mxu1 %v10340_v25 }
0x267e   :  { %9506 = vmatpush3.bf16.msra.mxu0 %v10332_v29 }
0x267f   :  { %9507 = vmatprep.subr.bf16.mxu0 %v10333_v10 }
0x2680   :  { %9526 = vmatpush3.bf16.msra.mxu1 %v10340_v25 }
0x2681   :  { %9527 = vmatprep.subr.bf16.mxu1 %v10341_v18 }
0x2682   :  { %9508 = vmatpush3.bf16.msra.mxu0 %v10333_v10 }
0x2684   :  { %9528 = vmatpush3.bf16.msra.mxu1 %v10341_v18 }
0x2685   :  { %9510 = vmatmul.mubr.bf16.vlgmr.msra.gmra.mrb[44].mxu0 %v3891_v32  ;;  %9533 = vmatprep.subr.bf16.mxu1 %v10342_v27 }
0x2758   :  { %v9511_v33 = vpop.f32.mrb[44].mxu0 }
0x2759   :  { %v3974_v8 = vpop.f32.mrb[45].mxu0  ;;  %v11972_v36 = vadd.f32 %v11969_v58, %v9511_v33 }
0x275a   :  { %v11964_v2 = vadd.f32 %v11595_v49, %v3974_v8  ;;  %v9512_v34 = vpop.f32.mrb[46].mxu0 }
0x275b   :  { %v3977_v35 = vpop.f32.mrb[47].mxu0  ;;  %v11980_v40 = vadd.f32 %v11969_v58, %v9512_v34  ;;  %v4008_v45 = vmul.f32 %v11972_v36, %v11972_v36 }
0x275c   :  { %v11975_v37 = vadd.f32 %v11969_v58, %v3977_v35  ;;  %v4006_v39 = vmul.f32 %v11964_v2, %v11964_v2 }
0x275d   :  { %v4009_v57 = vmul.f32 %v11980_v40, %v11980_v40 }
0x275e   :  { %v3997_v49 = vadd.f32 %v11975_v37, %v11964_v2  ;;  %v4007_v43 = vmul.f32 %v11975_v37, %v11975_v37 }
0x2760   :  { %v3998_v48 = vadd.f32 %v3997_v49, %v11972_v36  ;;  %v4010_v53 = vadd.f32 %v4007_v43, %v4006_v39 }
0x2762   :  { %v3999_v6 = vadd.f32 %v3998_v48, %v11980_v40  ;;  %v4011_v11 = vadd.f32 %v4010_v53, %v4008_v45 }
0x2764   :  { %v4000_v62 = vrot.slane %v3999_v6, 4  ;;  %v4012_v15 = vadd.f32 %v4011_v11, %v4009_v57 }
0x2766   :  { %v4001_v16 = vadd.f32 %v4000_v62, %v3999_v6  ;;  %v4013_v20 = vrot.slane %v4012_v15, 4 }
0x2768   :  { %v4002_v22 = vrot.slane %v4001_v16, 2  ;;  %v4014_v24 = vadd.f32 %v4013_v20, %v4012_v15 }
0x276a   :  { %v4003_v59 = vadd.f32 %v4002_v22, %v4001_v16  ;;  %v4015_v7 = vrot.slane %v4014_v24, 2 }
0x276c   :  { %v4004_v13 = vrot.slane %v4003_v59, 1  ;;  %v4016_v38 = vadd.f32 %v4015_v7, %v4014_v24 }
0x276e   :  { %v4017_v42 = vrot.slane %v4016_v38, 1  ;;  %v4005_v41 = vadd.f32 %v4004_v13, %v4003_v59  ;;  %v10345_v13 = vld [vmem:[%s12978_s13 + $0x18] sm:$0xff]  }
0x2770   :  { %v4018_v17 = vadd.f32 %v4017_v42, %v4016_v38  ;;  %v10346_v38 = vld [vmem:[%s12978_s13 + $0x20] sm:$0xff]   ;;  %v10347_v42 = vld [vmem:[%s12978_s13 + $0x28] sm:$0xff]  }
0x2772   :  { %v4019_v19 = vsel %vm492_vm2, %v4005_v41, %v4018_v17  ;;  %v10348_v41 = vld [vmem:[%s12978_s13 + $0x30] sm:$0xff]   ;;  %v10349_v17 = vld [vmem:[%s12978_s13 + $0x38] sm:$0xff]  }
0x2773   :  { %v4020_v44 = vsel %vm476_vm1, %v4019_v19, 0.0  ;;  %v10350_v19 = vld [vmem:[%s12978_s13 + $0x80] sm:$0xff]  }
0x2774   :  { %4021 = vrot.lane.b32.xlu0 %v4020_v44, %s10690_s29 }
0x27e6   :  { %v4022_v21 = vpop.permute.xlu0 %4021 }
0x27e7   :  { %v4023_v23 = vadd.f32 %v4022_v21, %v4020_v44 }
0x27e9   :  { %4024 = vrot.lane.b32.xlu1 %v4023_v23, %s10697_s6 }
0x285b   :  { %v4025_v26 = vpop.permute.xlu1 %4024 }
0x285c   :  { %v4026_v1 = vadd.f32 %v4025_v26, %v4023_v23 }
0x285e   :  { %4027 = vrot.lane.b32.xlu0 %v4026_v1, %s10698_s30 }
0x28d0   :  { %v4028_v5 = vpop.permute.xlu0 %4027 }
0x28d1   :  { %v4029_v12 = vadd.f32 %v4028_v5, %v4026_v1  ;;  %v10351_v5 = vld [vmem:[%s12978_s13 + $0x88] sm:$0xff]  }
0x28d3   :  { %4030 = vrot.lane.b32.xlu1 %v4029_v12, %s10692_s9 }
0x2945   :  { %v4031_v60 = vpop.permute.xlu1 %4030 }
0x2946   :  { %v4032_v28 = vadd.f32 %v4031_v60, %v4029_v12 }
0x2948   :  { %v4033_v3 = vmul.f32 0.001953125, %v4032_v28 }
0x294a   :  { %v4034_v29 = vmul.f32 %v4033_v3, %v4033_v3 }
0x294c   :  { %v4036_v10 = vrot.slane %v4034_v29, 7 }
0x294e   :  { %v4038_v30 = vsub.f32 %v4033_v3, %v4036_v10 }
0x2950   :  { %v4039_v31 = vadd.f32 1e-05, %v4038_v30 }
0x2952   :  { %10556 = vrsqrt.f32 %v4039_v31 }
0x295c   :  { %v10557_v32 = vpop.eup %10556 }
0x295d   :  { %v4048_v33 = vrot.slane %v10557_v32, %v11107_v4 }
0x295f   :  { %v4049_v8 = vcombine.high %v4048_v33, %v4048_v33 }
0x2961   :  { %v4056_v34 = vrot.slane %v4049_v8, %v11107_v4 }
0x2963   :  { %v4058_v35 = vmul.f32 %v4056_v34, %v11658_v50 }
0x2965   :  { %v4063_v39 = vrot.slane %v4058_v35, %v11116_v9  ;;  %v4069_v49 = vmul.f32 %v4058_v35, %v4033_v3 }
0x2967   :  { %v4070_v43 = vsub.f32 %v11665_v54, %v4069_v49  ;;  %v4065_v45 = vmul.f32 %v4063_v39, %v11964_v2  ;;  %v4066_v48 = vmul.f32 %v4063_v39, %v11975_v37  ;;  %v4067_v53 = vmul.f32 %v4063_v39, %v11972_v36 }
0x2968   :  { %v4068_v57 = vmul.f32 %v4063_v39, %v11980_v40 }
0x2969   :  { %v4075_v6 = vrot.slane %v4070_v43, %v11116_v9 }
0x296b   :  { %v4077_v11 = vadd.f32 %v4075_v6, %v4065_v45  ;;  %v4078_v62 = vadd.f32 %v4075_v6, %v4066_v48  ;;  %v4079_v15 = vadd.f32 %v4075_v6, %v4067_v53  ;;  %v4080_v16 = vadd.f32 %v4075_v6, %v4068_v57 }
0x296d   :  { %v4081_v50 = vadd.f32 %v4077_v11, %v11790_v14  ;;  %v4082_v20 = vadd.f32 %v4078_v62, %v11792_v47  ;;  %v4083_v54 = vadd.f32 %v4079_v15, %v11794_v46  ;;  %v4084_v2 = vadd.f32 %v4080_v16, %v11796_v51  ;;  %v10343_v46 = vld [vmem:[%s12978_s13 + $0x8] sm:$0xff]   ;;  %v10344_v51 = vld [vmem:[%s12978_s13 + $0x10] sm:$0xff]  }
0x296f   :  { %v12039_v22 = vmax.f32 %v4081_v50, 0.0  ;;  %v12041_v37 = vmax.f32 %v4082_v20, 0.0  ;;  %v12043_v36 = vmax.f32 %v4083_v54, 0.0  ;;  %v12045_v40 = vmax.f32 %v4084_v2, 0.0 }
0x2971   :  { %4089 = vst [vmem:[#allocation2 + $0x1] sm:$0xff] %v12039_v22  ;;  %4090 = vst [vmem:[#allocation2 + $0x9] sm:$0xff] %v12041_v37  ;;  %v4135_v14 = vpack.c.bf16 %v12041_v37, %v12039_v22  ;;  %v4136_v47 = vpack.c.bf16 %v12045_v40, %v12043_v36 }
0x2972   :  { %4091 = vst [vmem:[#allocation2 + $0x19] sm:$0xff] %v12043_v36  ;;  %4092 = vst [vmem:[#allocation2 + $0x21] sm:$0xff] %v12045_v40 }
0x2973   :  { %9529 = vmatprep.mubr.bf16.mxu1 %v4135_v14 }
0x2974   :  { %9530 = vmatmul.mubr.bf16.vlgmr.msra.gmra.mrb[24].mxu1 %v4136_v47 }
0x2975   :  { %9534 = vmatpush3.bf16.msra.mxu1 %v10342_v27 }
0x2976   :  { %9535 = vmatprep.subr.bf16.mxu1 %v10343_v46 }
0x2978   :  { %v4093_v24 = vld [vmem:[#allocation2] sm:$0xff]  ;;  %v4094_v59 = vld [vmem:[#allocation2 + $0x8] sm:$0xff] }
0x2979   :  { %v4113_v7 = vpack.c.bf16 %v4094_v59, %v4093_v24  ;;  %9536 = vmatpush3.bf16.msra.mxu1 %v10343_v46  ;;  %v4095_v44 = vld [vmem:[#allocation2 + $0x18] sm:$0xff]  ;;  %v4096_v21 = vld [vmem:[#allocation2 + $0x20] sm:$0xff]  ;;  %v4332_v26 = vld [vmem:[#allocation2 + $0xa] sm:$0xff] }
0x297a   :  { %9537 = vmatprep.subr.bf16.mxu1 %v10344_v51  ;;  %v4331_v23 = vld [vmem:[#allocation2 + $0x2] sm:$0xff]  ;;  %v4114_v1 = vpack.c.bf16 %v4096_v21, %v4095_v44  ;;  %v4333_v25 = vld [vmem:[#allocation2 + $0x1a] sm:$0xff] }
0x297b   :  { %9549 = vmatprep.mubr.bf16.mxu1 %v4113_v7  ;;  %v4351_v12 = vpack.c.bf16 %v4332_v26, %v4331_v23  ;;  %v4334_v18 = vld [vmem:[#allocation2 + $0x22] sm:$0xff]  ;;  %v10363_v23 = vld [vmem:[%s12978_s13 + $0x68] sm:$0xff]   ;;  %v10364_v26 = vld [vmem:[%s12978_s13 + $0x70] sm:$0xff]  }
0x297c   :  { %v4352_v27 = vpack.c.bf16 %v4334_v18, %v4333_v25  ;;  %v10361_v44 = vld [vmem:[%s12978_s13 + $0x58] sm:$0xff]   ;;  %v10362_v21 = vld [vmem:[%s12978_s13 + $0x60] sm:$0xff]  }
0x297d   :  { %9538 = vmatpush3.bf16.msra.mxu1 %v10344_v51 }
0x297e   :  { %9539 = vmatprep.subr.bf16.mxu1 %v10345_v13 }
0x2981   :  { %9540 = vmatpush3.bf16.msra.mxu1 %v10345_v13 }
0x2982   :  { %9541 = vmatprep.subr.bf16.mxu1 %v10346_v38 }
0x2985   :  { %9542 = vmatpush3.bf16.msra.mxu1 %v10346_v38 }
0x2986   :  { %9543 = vmatprep.subr.bf16.mxu1 %v10347_v42 }
0x2989   :  { %9544 = vmatpush3.bf16.msra.mxu1 %v10347_v42  ;;  %v10358_v42 = vld [vmem:[%s12978_s13 + $0x40] sm:$0xff]  }
0x298a   :  { %9545 = vmatprep.subr.bf16.mxu1 %v10348_v41  ;;  %9573 = vmatprep.subr.bf16.mxu0 %v10358_v42 }
0x298b   :  { %9574 = vmatpush3.bf16.msra.mxu0 %v10358_v42 }
0x298d   :  { %9546 = vmatpush3.bf16.msra.mxu1 %v10348_v41 }
0x298e   :  { %9547 = vmatprep.subr.bf16.mxu1 %v10349_v17 }
0x2991   :  { %9548 = vmatpush3.bf16.msra.mxu1 %v10349_v17  ;;  %v10359_v17 = vld [vmem:[%s12978_s13 + $0x48] sm:$0xff]  }
0x2992   :  { %9553 = vmatprep.subr.bf16.mxu1 %v10350_v19  ;;  %9575 = vmatprep.subr.bf16.mxu0 %v10359_v17 }
0x2993   :  { %9576 = vmatpush3.bf16.msra.mxu0 %v10359_v17 }
0x2994   :  { %9550 = vmatmul.mubr.bf16.vlgmr.msra.gmra.mrb[24].mxu1 %v4114_v1  ;;  %v10365_v1 = vld [vmem:[%s12978_s13 + $0x78] sm:$0xff]  }
0x2995   :  { %9554 = vmatpush3.bf16.msra.mxu1 %v10350_v19  ;;  %9569 = vmatprep.mubr.bf16.mxu1 %v4351_v12  ;;  %v10360_v19 = vld [vmem:[%s12978_s13 + $0x50] sm:$0xff]  }
0x2996   :  { %9555 = vmatprep.subr.bf16.mxu1 %v10351_v5  ;;  %9577 = vmatprep.subr.bf16.mxu0 %v10360_v19 }
0x2997   :  { %9578 = vmatpush3.bf16.msra.mxu0 %v10360_v19  ;;  %v10376_v19 = vld [vmem:[%s12978_s13 + $0x90] sm:$0xff]  }
0x2998   :  { %9579 = vmatprep.subr.bf16.mxu0 %v10361_v44 }
0x2999   :  { %9556 = vmatpush3.bf16.msra.mxu1 %v10351_v5  ;;  %v10366_v5 = vld [vmem:[%s12978_s13] sm:$0xff]  }
0x299a   :  { %9557 = vmatprep.subr.bf16.mxu1 %v10352_v52 }
0x299b   :  { %9580 = vmatpush3.bf16.msra.mxu0 %v10361_v44  ;;  %v10377_v44 = vld [vmem:[%s12978_s13 + $0x98] sm:$0xff]  }
0x299c   :  { %9581 = vmatprep.subr.bf16.mxu0 %v10362_v21 }
0x299d   :  { %9558 = vmatpush3.bf16.msra.mxu1 %v10352_v52 }
0x299e   :  { %9559 = vmatprep.subr.bf16.mxu1 %v10353_v56 }
0x299f   :  { %9582 = vmatpush3.bf16.msra.mxu0 %v10362_v21  ;;  %v10378_v21 = vld [vmem:[%s12978_s13 + $0xa0] sm:$0xff]  }
0x29a0   :  { %9583 = vmatprep.subr.bf16.mxu0 %v10363_v23 }
0x29a1   :  { %9560 = vmatpush3.bf16.msra.mxu1 %v10353_v56 }
0x29a2   :  { %9561 = vmatprep.subr.bf16.mxu1 %v10354_v55 }
0x29a3   :  { %9584 = vmatpush3.bf16.msra.mxu0 %v10363_v23  ;;  %v10379_v23 = vld [vmem:[%s12978_s13 + $0xa8] sm:$0xff]  }
0x29a4   :  { %9585 = vmatprep.subr.bf16.mxu0 %v10364_v26 }
0x29a5   :  { %9562 = vmatpush3.bf16.msra.mxu1 %v10354_v55 }
0x29a6   :  { %9563 = vmatprep.subr.bf16.mxu1 %v10355_v0 }
0x29a7   :  { %9586 = vmatpush3.bf16.msra.mxu0 %v10364_v26  ;;  %v10380_v26 = vld [vmem:[%s12978_s13 + $0xb0] sm:$0xff]  }
0x29a8   :  { %9587 = vmatprep.subr.bf16.mxu0 %v10365_v1 }
0x29a9   :  { %9564 = vmatpush3.bf16.msra.mxu1 %v10355_v0 }
0x29aa   :  { %9565 = vmatprep.subr.bf16.mxu1 %v10356_v61 }
0x29ab   :  { %9588 = vmatpush3.bf16.msra.mxu0 %v10365_v1  ;;  %v10381_v1 = vld [vmem:[%s12978_s13 + $0xb8] sm:$0xff]  }
0x29ac   :  { %9593 = vmatprep.subr.bf16.mxu0 %v10366_v5 }
0x29ad   :  { %9566 = vmatpush3.bf16.msra.mxu1 %v10356_v61 }
0x29ae   :  { %9567 = vmatprep.subr.bf16.mxu1 %v10357_v63 }
0x29b1   :  { %9568 = vmatpush3.bf16.msra.mxu1 %v10357_v63 }
0x29b4   :  { %9570 = vmatmul.mubr.bf16.vlgmr.msra.gmra.mrb[24].mxu1 %v4352_v27 }
0x2a87   :  { %v9571_v60 = vpop.f32.mrb[24].mxu1 }
0x2a88   :  { %v4435_v28 = vpop.f32.mrb[25].mxu1  ;;  %v12104_v30 = vadd.f32 %v11969_v58, %v9571_v60 }
0x2a89   :  { %v12101_v3 = vadd.f32 %v11969_v58, %v4435_v28  ;;  %v9572_v29 = vpop.f32.mrb[26].mxu1  ;;  %v12162_v28 = vld [vmem:[%s12980_s15] sm:$0x1] }
0x2a8a   :  { %v4438_v10 = vpop.f32.mrb[27].mxu1  ;;  %v12112_v33 = vadd.f32 %v11969_v58, %v9572_v29  ;;  %v4469_v35 = vmul.f32 %v12104_v30, %v12104_v30 }
0x2a8b   :  { %v12107_v31 = vadd.f32 %v11969_v58, %v4438_v10  ;;  %v4467_v32 = vmul.f32 %v12101_v3, %v12101_v3 }
0x2a8c   :  { %v4470_v43 = vmul.f32 %v12112_v33, %v12112_v33 }
0x2a8d   :  { %v4458_v8 = vadd.f32 %v12107_v31, %v12101_v3  ;;  %v4468_v34 = vmul.f32 %v12107_v31, %v12107_v31 }
0x2a8f   :  { %v4459_v39 = vadd.f32 %v4458_v8, %v12104_v30  ;;  %v4471_v49 = vadd.f32 %v4468_v34, %v4467_v32  ;;  %v12169_v8 = vld [vmem:[%s12981_s16] sm:$0x1] }
0x2a91   :  { %v4460_v45 = vadd.f32 %v4459_v39, %v12112_v33  ;;  %v4472_v48 = vadd.f32 %v4471_v49, %v4469_v35 }
0x2a93   :  { %v4461_v53 = vrot.slane %v4460_v45, 4  ;;  %v4473_v57 = vadd.f32 %v4472_v48, %v4470_v43 }
0x2a95   :  { %v4462_v6 = vadd.f32 %v4461_v53, %v4460_v45  ;;  %v4474_v11 = vrot.slane %v4473_v57, 4 }
0x2a97   :  { %v4463_v62 = vrot.slane %v4462_v6, 2  ;;  %v4475_v15 = vadd.f32 %v4474_v11, %v4473_v57 }
0x2a99   :  { %v4464_v16 = vadd.f32 %v4463_v62, %v4462_v6  ;;  %v4476_v50 = vrot.slane %v4475_v15, 2 }
0x2a9b   :  { %v4465_v20 = vrot.slane %v4464_v16, 1  ;;  %v4477_v54 = vadd.f32 %v4476_v50, %v4475_v15 }
0x2a9d   :  { %v4478_v2 = vrot.slane %v4477_v54, 1  ;;  %v4466_v14 = vadd.f32 %v4465_v20, %v4464_v16 }
0x2a9f   :  { %v4479_v47 = vadd.f32 %v4478_v2, %v4477_v54  ;;  %v10369_v2 = vld [vmem:[%s12978_s13 + $0x18] sm:$0xff]  }
0x2aa1   :  { %v4480_v46 = vsel %vm492_vm2, %v4466_v14, %v4479_v47  ;;  %v10370_v14 = vld [vmem:[%s12978_s13 + $0x20] sm:$0xff]   ;;  %v10371_v47 = vld [vmem:[%s12978_s13 + $0x28] sm:$0xff]  }
0x2aa2   :  { %v4481_v51 = vsel %vm476_vm1, %v4480_v46, 0.0  ;;  %v10372_v46 = vld [vmem:[%s12978_s13 + $0x30] sm:$0xff]  }
0x2aa3   :  { %4482 = vrot.lane.b32.xlu0 %v4481_v51, %s10690_s29 }
0x2b15   :  { %v4483_v24 = vpop.permute.xlu0 %4482 }
0x2b16   :  { %v4484_v59 = vadd.f32 %v4483_v24, %v4481_v51  ;;  %v10373_v51 = vld [vmem:[%s12978_s13 + $0x38] sm:$0xff]   ;;  %v10374_v24 = vld [vmem:[%s12978_s13 + $0x80] sm:$0xff]  }
0x2b18   :  { %4485 = vrot.lane.b32.xlu1 %v4484_v59, %s10697_s6 }
0x2b8a   :  { %v4486_v7 = vpop.permute.xlu1 %4485 }
0x2b8b   :  { %v4487_v13 = vadd.f32 %v4486_v7, %v4484_v59 }
0x2b8d   :  { %4488 = vrot.lane.b32.xlu0 %v4487_v13, %s10698_s30 }
0x2bff   :  { %v4489_v38 = vpop.permute.xlu0 %4488 }
0x2c00   :  { %v4490_v41 = vadd.f32 %v4489_v38, %v4487_v13 }
0x2c02   :  { %4491 = vrot.lane.b32.xlu1 %v4490_v41, %s10692_s9 }
0x2c74   :  { %v4492_v12 = vpop.permute.xlu1 %4491 }
0x2c75   :  { %v4493_v52 = vadd.f32 %v4492_v12, %v4490_v41  ;;  %v10375_v41 = vld [vmem:[%s12978_s13 + $0x88] sm:$0xff]  }
0x2c77   :  { %v4494_v56 = vmul.f32 0.001953125, %v4493_v52 }
0x2c79   :  { %v4495_v55 = vmul.f32 %v4494_v56, %v4494_v56 }
0x2c7b   :  { %v4497_v0 = vrot.slane %v4495_v55, 7 }
0x2c7d   :  { %v4499_v61 = vsub.f32 %v4494_v56, %v4497_v0 }
0x2c7f   :  { %v4500_v63 = vadd.f32 1e-05, %v4499_v61 }
0x2c81   :  { %10558 = vrsqrt.f32 %v4500_v63 }
0x2c8b   :  { %v10559_v25 = vpop.eup %10558 }
0x2c8c   :  { %v4509_v18 = vrot.slane %v10559_v25, %v11107_v4 }
0x2c8e   :  { %v4510_v27 = vcombine.high %v4509_v18, %v4509_v18 }
0x2c90   :  { %v4517_v60 = vrot.slane %v4510_v27, %v11107_v4 }
0x2c92   :  { %v4519_v29 = vmul.f32 %v12162_v28, %v4517_v60 }
0x2c94   :  { %v4524_v10 = vrot.slane %v4519_v29, %v11116_v9  ;;  %v4530_v32 = vmul.f32 %v4519_v29, %v4494_v56 }
0x2c96   :  { %v4531_v34 = vsub.f32 %v12169_v8, %v4530_v32  ;;  %v4526_v35 = vmul.f32 %v4524_v10, %v12101_v3  ;;  %v4527_v39 = vmul.f32 %v4524_v10, %v12107_v31  ;;  %v4528_v49 = vmul.f32 %v4524_v10, %v12104_v30  ;;  %v10367_v30 = vld [vmem:[%s12978_s13 + $0x8] sm:$0xff]  }
0x2c97   :  { %v4529_v43 = vmul.f32 %v4524_v10, %v12112_v33  ;;  %v10368_v33 = vld [vmem:[%s12978_s13 + $0x10] sm:$0xff]  }
0x2c98   :  { %v4536_v45 = vrot.slane %v4531_v34, %v11116_v9 }
0x2c9a   :  { %v4538_v48 = vadd.f32 %v4536_v45, %v4526_v35  ;;  %v4539_v53 = vadd.f32 %v4536_v45, %v4527_v39  ;;  %v4540_v57 = vadd.f32 %v4536_v45, %v4528_v49  ;;  %v4541_v6 = vadd.f32 %v4536_v45, %v4529_v43 }
0x2c9c   :  { %v4542_v11 = vmax.f32 %v4538_v48, 0.0  ;;  %v4543_v62 = vmax.f32 %v4539_v53, 0.0  ;;  %v4544_v15 = vmax.f32 %v4540_v57, 0.0  ;;  %v4545_v16 = vmax.f32 %v4541_v6, 0.0 }
0x2c9e   :  { %4546 = vst [vmem:[#allocation2 + $0x1] sm:$0xff] %v4542_v11  ;;  %4547 = vst [vmem:[#allocation2 + $0x9] sm:$0xff] %v4543_v62  ;;  %v4592_v3 = vpack.c.bf16 %v4543_v62, %v4542_v11  ;;  %v4593_v31 = vpack.c.bf16 %v4545_v16, %v4544_v15 }
0x2c9f   :  { %4548 = vst [vmem:[#allocation2 + $0x19] sm:$0xff] %v4544_v15  ;;  %4549 = vst [vmem:[#allocation2 + $0x21] sm:$0xff] %v4545_v16 }
0x2ca0   :  { %9589 = vmatprep.mubr.bf16.mxu0 %v4592_v3 }
0x2ca1   :  { %9590 = vmatmul.mubr.bf16.vlgmr.msra.gmra.mrb[48].mxu0 %v4593_v31 }
0x2ca2   :  { %9594 = vmatpush3.bf16.msra.mxu0 %v10366_v5 }
0x2ca3   :  { %9595 = vmatprep.subr.bf16.mxu0 %v10367_v30 }
0x2ca5   :  { %v4550_v50 = vld [vmem:[#allocation2] sm:$0xff]  ;;  %v4551_v20 = vld [vmem:[#allocation2 + $0x8] sm:$0xff] }
0x2ca6   :  { %v4570_v54 = vpack.c.bf16 %v4551_v20, %v4550_v50  ;;  %9596 = vmatpush3.bf16.msra.mxu0 %v10367_v30  ;;  %v4552_v59 = vld [vmem:[#allocation2 + $0x18] sm:$0xff]  ;;  %v4553_v7 = vld [vmem:[#allocation2 + $0x20] sm:$0xff]  ;;  %v4789_v38 = vld [vmem:[#allocation2 + $0xa] sm:$0xff] }
0x2ca7   :  { %9597 = vmatprep.subr.bf16.mxu0 %v10368_v33  ;;  %v4788_v13 = vld [vmem:[#allocation2 + $0x2] sm:$0xff]  ;;  %v4571_v42 = vpack.c.bf16 %v4553_v7, %v4552_v59  ;;  %v4790_v5 = vld [vmem:[#allocation2 + $0x1a] sm:$0xff]  ;;  %v10383_v59 = vld [vmem:[%s12978_s13 + $0x48] sm:$0xff]  }
0x2ca8   :  { %9609 = vmatprep.mubr.bf16.mxu0 %v4570_v54  ;;  %v4808_v17 = vpack.c.bf16 %v4789_v38, %v4788_v13  ;;  %v4791_v12 = vld [vmem:[#allocation2 + $0x22] sm:$0xff]  ;;  %v10384_v7 = vld [vmem:[%s12978_s13 + $0x50] sm:$0xff]  }
0x2ca9   :  { %v4809_v52 = vpack.c.bf16 %v4791_v12, %v4790_v5  ;;  %v10385_v13 = vld [vmem:[%s12978_s13 + $0x58] sm:$0xff]   ;;  %v10386_v38 = vld [vmem:[%s12978_s13 + $0x60] sm:$0xff]  }
0x2caa   :  { %9598 = vmatpush3.bf16.msra.mxu0 %v10368_v33 }
0x2cab   :  { %9599 = vmatprep.subr.bf16.mxu0 %v10369_v2 }
0x2cae   :  { %9600 = vmatpush3.bf16.msra.mxu0 %v10369_v2 }
0x2caf   :  { %9601 = vmatprep.subr.bf16.mxu0 %v10370_v14 }
0x2cb2   :  { %9602 = vmatpush3.bf16.msra.mxu0 %v10370_v14 }
0x2cb3   :  { %9603 = vmatprep.subr.bf16.mxu0 %v10371_v47 }
0x2cb6   :  { %9604 = vmatpush3.bf16.msra.mxu0 %v10371_v47 }
0x2cb7   :  { %9605 = vmatprep.subr.bf16.mxu0 %v10372_v46 }
0x2cba   :  { %9606 = vmatpush3.bf16.msra.mxu0 %v10372_v46 }
0x2cbb   :  { %9607 = vmatprep.subr.bf16.mxu0 %v10373_v51 }
0x2cbe   :  { %9608 = vmatpush3.bf16.msra.mxu0 %v10373_v51 }
0x2cbf   :  { %9613 = vmatprep.subr.bf16.mxu0 %v10374_v24 }
0x2cc1   :  { %9610 = vmatmul.mubr.bf16.vlgmr.msra.gmra.mrb[48].mxu0 %v4571_v42  ;;  %v10387_v42 = vld [vmem:[%s12978_s13 + $0x68] sm:$0xff]  }
0x2cc2   :  { %9614 = vmatpush3.bf16.msra.mxu0 %v10374_v24  ;;  %9629 = vmatprep.mubr.bf16.mxu0 %v4808_v17  ;;  %v10382_v24 = vld [vmem:[%s12978_s13 + $0x40] sm:$0xff]   ;;  %v10389_v17 = vld [vmem:[%s12978_s13 + $0x78] sm:$0xff]  }
0x2cc3   :  { %9615 = vmatprep.subr.bf16.mxu0 %v10375_v41  ;;  %9633 = vmatprep.subr.bf16.mxu1 %v10382_v24 }
0x2cc4   :  { %9634 = vmatpush3.bf16.msra.mxu1 %v10382_v24  ;;  %v10399_v24 = vld [vmem:[%s12978_s13 + $0x88] sm:$0xff]  }
0x2cc5   :  { %9635 = vmatprep.subr.bf16.mxu1 %v10383_v59 }
0x2cc6   :  { %9616 = vmatpush3.bf16.msra.mxu0 %v10375_v41  ;;  %v10388_v41 = vld [vmem:[%s12978_s13 + $0x70] sm:$0xff]  }
0x2cc7   :  { %9617 = vmatprep.subr.bf16.mxu0 %v10376_v19 }
0x2cc8   :  { %9636 = vmatpush3.bf16.msra.mxu1 %v10383_v59 }
0x2cc9   :  { %9637 = vmatprep.subr.bf16.mxu1 %v10384_v7 }
0x2cca   :  { %9618 = vmatpush3.bf16.msra.mxu0 %v10376_v19  ;;  %v10390_v19 = vld [vmem:[%s12978_s13] sm:$0xff]  }
0x2ccb   :  { %9619 = vmatprep.subr.bf16.mxu0 %v10377_v44 }
0x2ccc   :  { %9638 = vmatpush3.bf16.msra.mxu1 %v10384_v7  ;;  %v10400_v7 = vld [vmem:[%s12978_s13 + $0x90] sm:$0xff]  }
0x2ccd   :  { %9639 = vmatprep.subr.bf16.mxu1 %v10385_v13 }
0x2cce   :  { %9620 = vmatpush3.bf16.msra.mxu0 %v10377_v44 }
0x2ccf   :  { %9621 = vmatprep.subr.bf16.mxu0 %v10378_v21 }
0x2cd0   :  { %9640 = vmatpush3.bf16.msra.mxu1 %v10385_v13  ;;  %v10401_v13 = vld [vmem:[%s12978_s13 + $0x98] sm:$0xff]  }
0x2cd1   :  { %9641 = vmatprep.subr.bf16.mxu1 %v10386_v38 }
0x2cd2   :  { %9622 = vmatpush3.bf16.msra.mxu0 %v10378_v21 }
0x2cd3   :  { %9623 = vmatprep.subr.bf16.mxu0 %v10379_v23 }
0x2cd4   :  { %9642 = vmatpush3.bf16.msra.mxu1 %v10386_v38  ;;  %v10402_v38 = vld [vmem:[%s12978_s13 + $0xa0] sm:$0xff]  }
0x2cd5   :  { %9643 = vmatprep.subr.bf16.mxu1 %v10387_v42 }
0x2cd6   :  { %9624 = vmatpush3.bf16.msra.mxu0 %v10379_v23 }
0x2cd7   :  { %9625 = vmatprep.subr.bf16.mxu0 %v10380_v26 }
0x2cd8   :  { %9644 = vmatpush3.bf16.msra.mxu1 %v10387_v42  ;;  %v10403_v42 = vld [vmem:[%s12978_s13 + $0xa8] sm:$0xff]  }
0x2cd9   :  { %9645 = vmatprep.subr.bf16.mxu1 %v10388_v41 }
0x2cda   :  { %9626 = vmatpush3.bf16.msra.mxu0 %v10380_v26 }
0x2cdb   :  { %9627 = vmatprep.subr.bf16.mxu0 %v10381_v1 }
0x2cdc   :  { %9646 = vmatpush3.bf16.msra.mxu1 %v10388_v41  ;;  %v10404_v41 = vld [vmem:[%s12978_s13 + $0xb0] sm:$0xff]  }
0x2cdd   :  { %9647 = vmatprep.subr.bf16.mxu1 %v10389_v17 }
0x2cde   :  { %9628 = vmatpush3.bf16.msra.mxu0 %v10381_v1 }
0x2ce0   :  { %9648 = vmatpush3.bf16.msra.mxu1 %v10389_v17  ;;  %v10405_v17 = vld [vmem:[%s12978_s13 + $0xb8] sm:$0xff]  }
0x2ce1   :  { %9630 = vmatmul.mubr.bf16.vlgmr.msra.gmra.mrb[48].mxu0 %v4809_v52  ;;  %9653 = vmatprep.subr.bf16.mxu1 %v10390_v19 }
0x2db4   :  { %v9631_v56 = vpop.f32.mrb[48].mxu0 }
0x2db5   :  { %v4892_v55 = vpop.f32.mrb[49].mxu0  ;;  %v12226_v25 = vadd.f32 %v11969_v58, %v9631_v56 }
0x2db6   :  { %v12223_v0 = vadd.f32 %v11969_v58, %v4892_v55  ;;  %v9632_v61 = vpop.f32.mrb[50].mxu0 }
0x2db7   :  { %v4895_v63 = vpop.f32.mrb[51].mxu0  ;;  %v12234_v60 = vadd.f32 %v11969_v58, %v9632_v61  ;;  %v4926_v32 = vmul.f32 %v12226_v25, %v12226_v25 }
0x2db8   :  { %v12229_v18 = vadd.f32 %v11969_v58, %v4895_v63  ;;  %v4924_v27 = vmul.f32 %v12223_v0, %v12223_v0 }
0x2db9   :  { %v4927_v39 = vmul.f32 %v12234_v60, %v12234_v60 }
0x2dba   :  { %v4915_v29 = vadd.f32 %v12229_v18, %v12223_v0  ;;  %v4925_v10 = vmul.f32 %v12229_v18, %v12229_v18 }
0x2dbc   :  { %v4916_v34 = vadd.f32 %v4915_v29, %v12226_v25  ;;  %v4928_v35 = vadd.f32 %v4925_v10, %v4924_v27 }
0x2dbe   :  { %v4917_v49 = vadd.f32 %v4916_v34, %v12234_v60  ;;  %v4929_v43 = vadd.f32 %v4928_v35, %v4926_v32 }
0x2dc0   :  { %v4918_v45 = vrot.slane %v4917_v49, 4  ;;  %v4930_v48 = vadd.f32 %v4929_v43, %v4927_v39 }
0x2dc2   :  { %v4919_v53 = vadd.f32 %v4918_v45, %v4917_v49  ;;  %v4931_v57 = vrot.slane %v4930_v48, 4 }
0x2dc4   :  { %v4920_v6 = vrot.slane %v4919_v53, 2  ;;  %v4932_v11 = vadd.f32 %v4931_v57, %v4930_v48 }
0x2dc6   :  { %v4921_v62 = vadd.f32 %v4920_v6, %v4919_v53  ;;  %v4933_v15 = vrot.slane %v4932_v11, 2 }
0x2dc8   :  { %v4922_v16 = vrot.slane %v4921_v62, 1  ;;  %v4934_v3 = vadd.f32 %v4933_v15, %v4932_v11 }
0x2dca   :  { %v4935_v31 = vrot.slane %v4934_v3, 1  ;;  %v4923_v30 = vadd.f32 %v4922_v16, %v4921_v62 }
0x2dcc   :  { %v4936_v33 = vadd.f32 %v4935_v31, %v4934_v3  ;;  %v10393_v31 = vld [vmem:[%s12978_s13 + $0x18] sm:$0xff]  }
0x2dce   :  { %v4937_v50 = vsel %vm492_vm2, %v4923_v30, %v4936_v33  ;;  %v10394_v30 = vld [vmem:[%s12978_s13 + $0x20] sm:$0xff]   ;;  %v10395_v33 = vld [vmem:[%s12978_s13 + $0x28] sm:$0xff]  }
0x2dcf   :  { %v4938_v20 = vsel %vm476_vm1, %v4937_v50, 0.0  ;;  %v10396_v50 = vld [vmem:[%s12978_s13 + $0x30] sm:$0xff]  }
0x2dd0   :  { %4939 = vrot.lane.b32.xlu0 %v4938_v20, %s10690_s29 }
0x2e42   :  { %v4940_v54 = vpop.permute.xlu0 %4939 }
0x2e43   :  { %v4941_v2 = vadd.f32 %v4940_v54, %v4938_v20  ;;  %v10397_v20 = vld [vmem:[%s12978_s13 + $0x38] sm:$0xff]   ;;  %v10398_v54 = vld [vmem:[%s12978_s13 + $0x80] sm:$0xff]  }
0x2e45   :  { %4942 = vrot.lane.b32.xlu1 %v4941_v2, %s10697_s6 }
0x2eb7   :  { %v4943_v14 = vpop.permute.xlu1 %4942 }
0x2eb8   :  { %v4944_v47 = vadd.f32 %v4943_v14, %v4941_v2 }
0x2eba   :  { %4945 = vrot.lane.b32.xlu0 %v4944_v47, %s10698_s30 }
0x2f2c   :  { %v4946_v46 = vpop.permute.xlu0 %4945 }
0x2f2d   :  { %v4947_v51 = vadd.f32 %v4946_v46, %v4944_v47 }
0x2f2f   :  { %4948 = vrot.lane.b32.xlu1 %v4947_v51, %s10692_s9 }
0x2fa1   :  { %v4949_v44 = vpop.permute.xlu1 %4948 }
0x2fa2   :  { %v4950_v21 = vadd.f32 %v4949_v44, %v4947_v51 }
0x2fa4   :  { %v4951_v23 = vmul.f32 0.001953125, %v4950_v21 }
0x2fa6   :  { %v4952_v26 = vmul.f32 %v4951_v23, %v4951_v23 }
0x2fa8   :  { %v4954_v1 = vrot.slane %v4952_v26, 7 }
0x2faa   :  { %v4956_v5 = vsub.f32 %v4951_v23, %v4954_v1 }
0x2fac   :  { %v4957_v12 = vadd.f32 1e-05, %v4956_v5 }
0x2fae   :  { %10560 = vrsqrt.f32 %v4957_v12 }
0x2fb8   :  { %v10561_v52 = vpop.eup %10560 }
0x2fb9   :  { %v4966_v56 = vrot.slane %v10561_v52, %v11107_v4 }
0x2fbb   :  { %v4967_v55 = vcombine.high %v4966_v56, %v4966_v56 }
0x2fbd   :  { %v4974_v61 = vrot.slane %v4967_v55, %v11107_v4 }
0x2fbf   :  { %v4976_v63 = vmul.f32 %v12162_v28, %v4974_v61  ;;  %v12368_v61 = vld [vmem:[%s12979_s14] ss:$0 sm:$0xff] }
0x2fc1   :  { %v4981_v27 = vrot.slane %v4976_v63, %v11116_v9  ;;  %v4987_v29 = vmul.f32 %v4976_v63, %v4951_v23 }
0x2fc3   :  { %v4988_v10 = vsub.f32 %v12169_v8, %v4987_v29  ;;  %v4983_v32 = vmul.f32 %v4981_v27, %v12223_v0  ;;  %v4984_v34 = vmul.f32 %v4981_v27, %v12229_v18  ;;  %v4985_v35 = vmul.f32 %v4981_v27, %v12226_v25 }
0x2fc4   :  { %v4986_v39 = vmul.f32 %v4981_v27, %v12234_v60 }
0x2fc5   :  { %v4993_v49 = vrot.slane %v4988_v10, %v11116_v9 }
0x2fc7   :  { %v4995_v43 = vadd.f32 %v4993_v49, %v4983_v32  ;;  %v4996_v45 = vadd.f32 %v4993_v49, %v4984_v34  ;;  %v4997_v48 = vadd.f32 %v4993_v49, %v4985_v35  ;;  %v4998_v53 = vadd.f32 %v4993_v49, %v4986_v39 }
0x2fc9   :  { %v4999_v57 = vadd.f32 %v4995_v43, %v12039_v22  ;;  %v5000_v6 = vadd.f32 %v4996_v45, %v12041_v37  ;;  %v5001_v11 = vadd.f32 %v4997_v48, %v12043_v36  ;;  %v5002_v0 = vadd.f32 %v4998_v53, %v12045_v40  ;;  %v10391_v36 = vld [vmem:[%s12978_s13 + $0x8] sm:$0xff]   ;;  %v10392_v40 = vld [vmem:[%s12978_s13 + $0x10] sm:$0xff]  }
0x2fcb   :  { %v12293_v62 = vmax.f32 %v4999_v57, 0.0  ;;  %v12295_v18 = vmax.f32 %v5000_v6, 0.0  ;;  %v12297_v25 = vmax.f32 %v5001_v11, 0.0  ;;  %v12299_v60 = vmax.f32 %v5002_v0, 0.0 }
0x2fcd   :  { %5007 = vst [vmem:[#allocation2 + $0x1] sm:$0xff] %v12293_v62  ;;  %5008 = vst [vmem:[#allocation2 + $0x9] sm:$0xff] %v12295_v18  ;;  %v5053_v22 = vpack.c.bf16 %v12295_v18, %v12293_v62  ;;  %v5054_v37 = vpack.c.bf16 %v12299_v60, %v12297_v25 }
0x2fce   :  { %5009 = vst [vmem:[#allocation2 + $0x19] sm:$0xff] %v12297_v25  ;;  %5010 = vst [vmem:[#allocation2 + $0x21] sm:$0xff] %v12299_v60 }
0x2fcf   :  { %9649 = vmatprep.mubr.bf16.mxu1 %v5053_v22 }
0x2fd0   :  { %9650 = vmatmul.mubr.bf16.vlgmr.msra.gmra.mrb[28].mxu1 %v5054_v37 }
0x2fd1   :  { %9654 = vmatpush3.bf16.msra.mxu1 %v10390_v19 }
0x2fd2   :  { %9655 = vmatprep.subr.bf16.mxu1 %v10391_v36 }
0x2fd4   :  { %v5011_v15 = vld [vmem:[#allocation2] sm:$0xff]  ;;  %v5012_v16 = vld [vmem:[#allocation2 + $0x8] sm:$0xff] }
0x2fd5   :  { %v5031_v3 = vpack.c.bf16 %v5012_v16, %v5011_v15  ;;  %9656 = vmatpush3.bf16.msra.mxu1 %v10391_v36  ;;  %v5013_v2 = vld [vmem:[#allocation2 + $0x18] sm:$0xff]  ;;  %v5014_v14 = vld [vmem:[#allocation2 + $0x20] sm:$0xff]  ;;  %v5250_v46 = vld [vmem:[#allocation2 + $0xa] sm:$0xff] }
0x2fd6   :  { %9657 = vmatprep.subr.bf16.mxu1 %v10392_v40  ;;  %v5249_v47 = vld [vmem:[#allocation2 + $0x2] sm:$0xff]  ;;  %v5032_v51 = vpack.c.bf16 %v5014_v14, %v5013_v2  ;;  %v5251_v19 = vld [vmem:[#allocation2 + $0x1a] sm:$0xff]  ;;  %v10407_v2 = vld [vmem:[%s12978_s13 + $0x48] sm:$0xff]  }
0x2fd7   :  { %9669 = vmatprep.mubr.bf16.mxu1 %v5031_v3  ;;  %v5269_v59 = vpack.c.bf16 %v5250_v46, %v5249_v47  ;;  %v5252_v44 = vld [vmem:[#allocation2 + $0x22] sm:$0xff]  ;;  %v10408_v14 = vld [vmem:[%s12978_s13 + $0x50] sm:$0xff]  }
0x2fd8   :  { %v5270_v21 = vpack.c.bf16 %v5252_v44, %v5251_v19  ;;  %v10409_v47 = vld [vmem:[%s12978_s13 + $0x58] sm:$0xff]   ;;  %v10410_v46 = vld [vmem:[%s12978_s13 + $0x60] sm:$0xff]  }
0x2fd9   :  { %9658 = vmatpush3.bf16.msra.mxu1 %v10392_v40 }
0x2fda   :  { %9659 = vmatprep.subr.bf16.mxu1 %v10393_v31 }
0x2fdd   :  { %9660 = vmatpush3.bf16.msra.mxu1 %v10393_v31 }
0x2fde   :  { %9661 = vmatprep.subr.bf16.mxu1 %v10394_v30 }
0x2fe1   :  { %9662 = vmatpush3.bf16.msra.mxu1 %v10394_v30 }
0x2fe2   :  { %9663 = vmatprep.subr.bf16.mxu1 %v10395_v33 }
0x2fe5   :  { %9664 = vmatpush3.bf16.msra.mxu1 %v10395_v33 }
0x2fe6   :  { %9665 = vmatprep.subr.bf16.mxu1 %v10396_v50 }
0x2fe9   :  { %9666 = vmatpush3.bf16.msra.mxu1 %v10396_v50 }
0x2fea   :  { %9667 = vmatprep.subr.bf16.mxu1 %v10397_v20 }
0x2fed   :  { %9668 = vmatpush3.bf16.msra.mxu1 %v10397_v20  ;;  %v10406_v20 = vld [vmem:[%s12978_s13 + $0x40] sm:$0xff]  }
0x2fee   :  { %9673 = vmatprep.subr.bf16.mxu1 %v10398_v54  ;;  %9693 = vmatprep.subr.bf16.mxu0 %v10406_v20 }
0x2fef   :  { %9694 = vmatpush3.bf16.msra.mxu0 %v10406_v20 }
0x2ff0   :  { %9670 = vmatmul.mubr.bf16.vlgmr.msra.gmra.mrb[28].mxu1 %v5032_v51  ;;  %9695 = vmatprep.subr.bf16.mxu0 %v10407_v2  ;;  %v10411_v51 = vld [vmem:[%s12978_s13 + $0x68] sm:$0xff]  }
0x2ff1   :  { %9674 = vmatpush3.bf16.msra.mxu1 %v10398_v54  ;;  %9689 = vmatprep.mubr.bf16.mxu1 %v5269_v59  ;;  %v10413_v59 = vld [vmem:[%s12978_s13 + $0x78] sm:$0xff]  }
0x2ff2   :  { %9675 = vmatprep.subr.bf16.mxu1 %v10399_v24 }
0x2ff3   :  { %9696 = vmatpush3.bf16.msra.mxu0 %v10407_v2 }
0x2ff4   :  { %9697 = vmatprep.subr.bf16.mxu0 %v10408_v14 }
0x2ff5   :  { %9676 = vmatpush3.bf16.msra.mxu1 %v10399_v24  ;;  %v10412_v24 = vld [vmem:[%s12978_s13 + $0x70] sm:$0xff]  }
0x2ff6   :  { %9677 = vmatprep.subr.bf16.mxu1 %v10400_v7 }
0x2ff7   :  { %9698 = vmatpush3.bf16.msra.mxu0 %v10408_v14  ;;  %v10424_v14 = vld [vmem:[%s12978_s13 + $0x90] sm:$0xff]  }
0x2ff8   :  { %9699 = vmatprep.subr.bf16.mxu0 %v10409_v47 }
0x2ff9   :  { %9678 = vmatpush3.bf16.msra.mxu1 %v10400_v7  ;;  %v10414_v7 = vld [vmem:[%s12978_s13] sm:$0xff]  }
0x2ffa   :  { %9679 = vmatprep.subr.bf16.mxu1 %v10401_v13 }
0x2ffb   :  { %9700 = vmatpush3.bf16.msra.mxu0 %v10409_v47  ;;  %v10425_v47 = vld [vmem:[%s12978_s13 + $0x98] sm:$0xff]  }
0x2ffc   :  { %9701 = vmatprep.subr.bf16.mxu0 %v10410_v46 }
0x2ffd   :  { %9680 = vmatpush3.bf16.msra.mxu1 %v10401_v13 }
0x2ffe   :  { %9681 = vmatprep.subr.bf16.mxu1 %v10402_v38 }
0x2fff   :  { %9702 = vmatpush3.bf16.msra.mxu0 %v10410_v46  ;;  %v10426_v46 = vld [vmem:[%s12978_s13 + $0xa0] sm:$0xff]  }
0x3000   :  { %9703 = vmatprep.subr.bf16.mxu0 %v10411_v51 }
0x3001   :  { %9682 = vmatpush3.bf16.msra.mxu1 %v10402_v38 }
0x3002   :  { %9683 = vmatprep.subr.bf16.mxu1 %v10403_v42 }
0x3003   :  { %9704 = vmatpush3.bf16.msra.mxu0 %v10411_v51  ;;  %v10427_v51 = vld [vmem:[%s12978_s13 + $0xa8] sm:$0xff]  }
0x3004   :  { %9705 = vmatprep.subr.bf16.mxu0 %v10412_v24 }
0x3005   :  { %9684 = vmatpush3.bf16.msra.mxu1 %v10403_v42 }
0x3006   :  { %9685 = vmatprep.subr.bf16.mxu1 %v10404_v41 }
0x3007   :  { %9706 = vmatpush3.bf16.msra.mxu0 %v10412_v24  ;;  %v10428_v24 = vld [vmem:[%s12978_s13 + $0xb0] sm:$0xff]  }
0x3008   :  { %9707 = vmatprep.subr.bf16.mxu0 %v10413_v59 }
0x3009   :  { %9686 = vmatpush3.bf16.msra.mxu1 %v10404_v41 }
0x300a   :  { %9687 = vmatprep.subr.bf16.mxu1 %v10405_v17 }
0x300b   :  { %9708 = vmatpush3.bf16.msra.mxu0 %v10413_v59  ;;  %v10429_v59 = vld [vmem:[%s12978_s13 + $0xb8] sm:$0xff]  }
0x300c   :  { %9713 = vmatprep.subr.bf16.mxu0 %v10414_v7 }
0x300d   :  { %9688 = vmatpush3.bf16.msra.mxu1 %v10405_v17 }
0x3010   :  { %9690 = vmatmul.mubr.bf16.vlgmr.msra.gmra.mrb[28].mxu1 %v5270_v21 }
0x30e3   :  { %v9691_v23 = vpop.f32.mrb[28].mxu1 }
0x30e4   :  { %v5353_v26 = vpop.f32.mrb[29].mxu1  ;;  %v12358_v52 = vadd.f32 %v11969_v58, %v9691_v23 }
0x30e5   :  { %v12355_v1 = vadd.f32 %v11969_v58, %v5353_v26  ;;  %v9692_v5 = vpop.f32.mrb[30].mxu1 }
0x30e6   :  { %v5356_v12 = vpop.f32.mrb[31].mxu1  ;;  %v12371_v63 = vadd.f32 %v12368_v61, %v9692_v5 }
0x30e7   :  { %v12361_v56 = vadd.f32 %v11969_v58, %v5356_v12  ;;  %v5385_v55 = vmul.f32 %v12355_v1, %v12355_v1  ;;  %v5387_v58 = vmul.f32 %v12358_v52, %v12358_v52 }
0x30e8   :  { %v5388_v34 = vmul.f32 %v12371_v63, %v12371_v63 }
0x30e9   :  { %v5376_v27 = vadd.f32 %v12361_v56, %v12355_v1  ;;  %v5386_v29 = vmul.f32 %v12361_v56, %v12361_v56 }
0x30eb   :  { %v5377_v10 = vadd.f32 %v5376_v27, %v12358_v52  ;;  %v5389_v32 = vadd.f32 %v5386_v29, %v5385_v55 }
0x30ed   :  { %v5378_v35 = vadd.f32 %v5377_v10, %v12371_v63  ;;  %v5390_v39 = vadd.f32 %v5389_v32, %v5387_v58 }
0x30ef   :  { %v5379_v49 = vrot.slane %v5378_v35, 4  ;;  %v5391_v43 = vadd.f32 %v5390_v39, %v5388_v34 }
0x30f1   :  { %v5380_v45 = vadd.f32 %v5379_v49, %v5378_v35  ;;  %v5392_v48 = vrot.slane %v5391_v43, 4 }
0x30f3   :  { %v5381_v53 = vrot.slane %v5380_v45, 2  ;;  %v5393_v57 = vadd.f32 %v5392_v48, %v5391_v43 }
0x30f5   :  { %v5382_v6 = vadd.f32 %v5381_v53, %v5380_v45  ;;  %v5394_v11 = vrot.slane %v5393_v57, 2 }
0x30f7   :  { %v5383_v0 = vrot.slane %v5382_v6, 1  ;;  %v5395_v22 = vadd.f32 %v5394_v11, %v5393_v57 }
0x30f9   :  { %v5396_v37 = vrot.slane %v5395_v22, 1  ;;  %v5384_v36 = vadd.f32 %v5383_v0, %v5382_v6 }
0x30fb   :  { %v5397_v40 = vadd.f32 %v5396_v37, %v5395_v22  ;;  %v10417_v37 = vld [vmem:[%s12978_s13 + $0x18] sm:$0xff]  }
0x30fd   :  { %v5398_v15 = vsel %vm492_vm2, %v5384_v36, %v5397_v40  ;;  %v10418_v36 = vld [vmem:[%s12978_s13 + $0x20] sm:$0xff]   ;;  %v10419_v40 = vld [vmem:[%s12978_s13 + $0x28] sm:$0xff]  }
0x30fe   :  { %v5399_v16 = vsel %vm476_vm1, %v5398_v15, 0.0  ;;  %v10420_v15 = vld [vmem:[%s12978_s13 + $0x30] sm:$0xff]  }
0x30ff   :  { %5400 = vrot.lane.b32.xlu0 %v5399_v16, %s10690_s29 }
0x3171   :  { %v5401_v3 = vpop.permute.xlu0 %5400 }
0x3172   :  { %v5402_v31 = vadd.f32 %v5401_v3, %v5399_v16  ;;  %v10421_v16 = vld [vmem:[%s12978_s13 + $0x38] sm:$0xff]   ;;  %v10422_v3 = vld [vmem:[%s12978_s13 + $0x80] sm:$0xff]  }
0x3174   :  { %5403 = vrot.lane.b32.xlu1 %v5402_v31, %s10697_s6 }
0x31e6   :  { %v5404_v30 = vpop.permute.xlu1 %5403 }
0x31e7   :  { %v5405_v33 = vadd.f32 %v5404_v30, %v5402_v31 }
0x31e9   :  { %5406 = vrot.lane.b32.xlu0 %v5405_v33, %s10698_s30 }
0x325b   :  { %v5407_v50 = vpop.permute.xlu0 %5406 }
0x325c   :  { %v5408_v54 = vadd.f32 %v5407_v50, %v5405_v33 }
0x325e   :  { %5409 = vrot.lane.b32.xlu1 %v5408_v54, %s10692_s9 }
0x32d0   :  { %v5410_v13 = vpop.permute.xlu1 %5409 }
0x32d1   :  { %v5411_v38 = vadd.f32 %v5410_v13, %v5408_v54  ;;  %v10423_v54 = vld [vmem:[%s12978_s13 + $0x88] sm:$0xff]  }
0x32d3   :  { %v5412_v42 = vmul.f32 0.001953125, %v5411_v38 }
0x32d5   :  { %v5413_v41 = vmul.f32 %v5412_v42, %v5412_v42 }
0x32d7   :  { %v5415_v17 = vrot.slane %v5413_v41, 7 }
0x32d9   :  { %v5417_v19 = vsub.f32 %v5412_v42, %v5415_v17 }
0x32db   :  { %v5418_v44 = vadd.f32 1e-05, %v5417_v19 }
0x32dd   :  { %10562 = vrsqrt.f32 %v5418_v44 }
0x32e7   :  { %v10563_v21 = vpop.eup %10562 }
0x32e8   :  { %v5427_v23 = vrot.slane %v10563_v21, %v11107_v4 }
0x32ea   :  { %v5428_v26 = vcombine.high %v5427_v23, %v5427_v23 }
0x32ec   :  { %v5435_v5 = vrot.slane %v5428_v26, %v11107_v4 }
0x32ee   :  { %v5437_v12 = vmul.f32 %v12162_v28, %v5435_v5 }
0x32f0   :  { %v5442_v55 = vrot.slane %v5437_v12, %v11116_v9  ;;  %v5448_v27 = vmul.f32 %v5437_v12, %v5412_v42 }
0x32f2   :  { %v5449_v29 = vsub.f32 %v12169_v8, %v5448_v27  ;;  %v5444_v58 = vmul.f32 %v5442_v55, %v12355_v1  ;;  %v5445_v10 = vmul.f32 %v5442_v55, %v12361_v56  ;;  %v5446_v32 = vmul.f32 %v5442_v55, %v12358_v52  ;;  %v10415_v52 = vld [vmem:[%s12978_s13 + $0x8] sm:$0xff]  }
0x32f3   :  { %v5447_v34 = vmul.f32 %v5442_v55, %v12371_v63  ;;  %v10416_v63 = vld [vmem:[%s12978_s13 + $0x10] sm:$0xff]  }
0x32f4   :  { %v5454_v35 = vrot.slane %v5449_v29, %v11116_v9 }
0x32f6   :  { %v5456_v39 = vadd.f32 %v5454_v35, %v5444_v58  ;;  %v5457_v49 = vadd.f32 %v5454_v35, %v5445_v10  ;;  %v5458_v43 = vadd.f32 %v5454_v35, %v5446_v32  ;;  %v5459_v45 = vadd.f32 %v5454_v35, %v5447_v34 }
0x32f8   :  { %v5460_v48 = vmax.f32 %v5456_v39, 0.0  ;;  %v5461_v53 = vmax.f32 %v5457_v49, 0.0  ;;  %v5462_v57 = vmax.f32 %v5458_v43, 0.0  ;;  %v5463_v6 = vmax.f32 %v5459_v45, 0.0 }
0x32fa   :  { %5464 = vst [vmem:[#allocation2 + $0x1] sm:$0xff] %v5460_v48  ;;  %5465 = vst [vmem:[#allocation2 + $0x9] sm:$0xff] %v5461_v53  ;;  %v5510_v1 = vpack.c.bf16 %v5461_v53, %v5460_v48  ;;  %v5511_v56 = vpack.c.bf16 %v5463_v6, %v5462_v57 }
0x32fb   :  { %5466 = vst [vmem:[#allocation2 + $0x19] sm:$0xff] %v5462_v57  ;;  %5467 = vst [vmem:[#allocation2 + $0x21] sm:$0xff] %v5463_v6 }
0x32fc   :  { %9709 = vmatprep.mubr.bf16.mxu0 %v5510_v1 }
0x32fd   :  { %9710 = vmatmul.mubr.bf16.vlgmr.msra.gmra.mrb[52].mxu0 %v5511_v56 }
0x32fe   :  { %9714 = vmatpush3.bf16.msra.mxu0 %v10414_v7 }
0x32ff   :  { %9715 = vmatprep.subr.bf16.mxu0 %v10415_v52 }
0x3301   :  { %v5468_v11 = vld [vmem:[#allocation2] sm:$0xff]  ;;  %v5469_v0 = vld [vmem:[#allocation2 + $0x8] sm:$0xff] }
0x3302   :  { %v5488_v22 = vpack.c.bf16 %v5469_v0, %v5468_v11  ;;  %9716 = vmatpush3.bf16.msra.mxu0 %v10415_v52  ;;  %v5470_v31 = vld [vmem:[#allocation2 + $0x18] sm:$0xff]  ;;  %v5471_v30 = vld [vmem:[#allocation2 + $0x20] sm:$0xff]  ;;  %v5707_v50 = vld [vmem:[#allocation2 + $0xa] sm:$0xff] }
0x3303   :  { %9717 = vmatprep.subr.bf16.mxu0 %v10416_v63  ;;  %v5706_v33 = vld [vmem:[#allocation2 + $0x2] sm:$0xff]  ;;  %v5489_v20 = vpack.c.bf16 %v5471_v30, %v5470_v31  ;;  %v5708_v7 = vld [vmem:[#allocation2 + $0x1a] sm:$0xff]  ;;  %v10431_v31 = vld [vmem:[%s12978_s13 + $0x48] sm:$0xff]  }
0x3304   :  { %9729 = vmatprep.mubr.bf16.mxu0 %v5488_v22  ;;  %v5726_v2 = vpack.c.bf16 %v5707_v50, %v5706_v33  ;;  %v5709_v13 = vld [vmem:[#allocation2 + $0x22] sm:$0xff]  ;;  %v10432_v30 = vld [vmem:[%s12978_s13 + $0x50] sm:$0xff]  }
0x3305   :  { %v5727_v38 = vpack.c.bf16 %v5709_v13, %v5708_v7  ;;  %v10433_v33 = vld [vmem:[%s12978_s13 + $0x58] sm:$0xff]   ;;  %v10434_v50 = vld [vmem:[%s12978_s13 + $0x60] sm:$0xff]  }
0x3306   :  { %9718 = vmatpush3.bf16.msra.mxu0 %v10416_v63 }
0x3307   :  { %9719 = vmatprep.subr.bf16.mxu0 %v10417_v37 }
0x330a   :  { %9720 = vmatpush3.bf16.msra.mxu0 %v10417_v37 }
0x330b   :  { %9721 = vmatprep.subr.bf16.mxu0 %v10418_v36 }
0x330e   :  { %9722 = vmatpush3.bf16.msra.mxu0 %v10418_v36 }
0x330f   :  { %9723 = vmatprep.subr.bf16.mxu0 %v10419_v40 }
0x3312   :  { %9724 = vmatpush3.bf16.msra.mxu0 %v10419_v40 }
0x3313   :  { %9725 = vmatprep.subr.bf16.mxu0 %v10420_v15 }
0x3316   :  { %9726 = vmatpush3.bf16.msra.mxu0 %v10420_v15 }
0x3317   :  { %9727 = vmatprep.subr.bf16.mxu0 %v10421_v16 }
0x331a   :  { %9728 = vmatpush3.bf16.msra.mxu0 %v10421_v16 }
0x331b   :  { %9733 = vmatprep.subr.bf16.mxu0 %v10422_v3 }
0x331d   :  { %9730 = vmatmul.mubr.bf16.vlgmr.msra.gmra.mrb[52].mxu0 %v5489_v20  ;;  %v10435_v20 = vld [vmem:[%s12978_s13 + $0x68] sm:$0xff]  }
0x331e   :  { %9734 = vmatpush3.bf16.msra.mxu0 %v10422_v3  ;;  %9749 = vmatprep.mubr.bf16.mxu0 %v5726_v2  ;;  %v10430_v3 = vld [vmem:[%s12978_s13 + $0x40] sm:$0xff]   ;;  %v10437_v2 = vld [vmem:[%s12978_s13 + $0x78] sm:$0xff]  }
0x331f   :  { %9735 = vmatprep.subr.bf16.mxu0 %v10423_v54  ;;  %9753 = vmatprep.subr.bf16.mxu1 %v10430_v3 }
0x3320   :  { %9754 = vmatpush3.bf16.msra.mxu1 %v10430_v3  ;;  %v10448_v3 = vld [vmem:[%s12978_s13 + $0x90] sm:$0xff]  }
0x3321   :  { %9755 = vmatprep.subr.bf16.mxu1 %v10431_v31 }
0x3322   :  { %9736 = vmatpush3.bf16.msra.mxu0 %v10423_v54  ;;  %v10436_v54 = vld [vmem:[%s12978_s13 + $0x70] sm:$0xff]  }
0x3323   :  { %9737 = vmatprep.subr.bf16.mxu0 %v10424_v14 }
0x3324   :  { %9756 = vmatpush3.bf16.msra.mxu1 %v10431_v31  ;;  %v10449_v31 = vld [vmem:[%s12978_s13 + $0x98] sm:$0xff]  }
0x3325   :  { %9757 = vmatprep.subr.bf16.mxu1 %v10432_v30 }
0x3326   :  { %9738 = vmatpush3.bf16.msra.mxu0 %v10424_v14  ;;  %v10438_v14 = vld [vmem:[%s12978_s13] sm:$0xff]  }
0x3327   :  { %9739 = vmatprep.subr.bf16.mxu0 %v10425_v47 }
0x3328   :  { %9758 = vmatpush3.bf16.msra.mxu1 %v10432_v30  ;;  %v10450_v30 = vld [vmem:[%s12978_s13 + $0xa0] sm:$0xff]  }
0x3329   :  { %9759 = vmatprep.subr.bf16.mxu1 %v10433_v33 }
0x332a   :  { %9740 = vmatpush3.bf16.msra.mxu0 %v10425_v47 }
0x332b   :  { %9741 = vmatprep.subr.bf16.mxu0 %v10426_v46 }
0x332c   :  { %9760 = vmatpush3.bf16.msra.mxu1 %v10433_v33  ;;  %v10451_v33 = vld [vmem:[%s12978_s13 + $0xa8] sm:$0xff]  }
0x332d   :  { %9761 = vmatprep.subr.bf16.mxu1 %v10434_v50 }
0x332e   :  { %9742 = vmatpush3.bf16.msra.mxu0 %v10426_v46 }
0x332f   :  { %9743 = vmatprep.subr.bf16.mxu0 %v10427_v51 }
0x3330   :  { %9762 = vmatpush3.bf16.msra.mxu1 %v10434_v50  ;;  %v10452_v50 = vld [vmem:[%s12978_s13 + $0xb0] sm:$0xff]  }
0x3331   :  { %9763 = vmatprep.subr.bf16.mxu1 %v10435_v20 }
0x3332   :  { %9744 = vmatpush3.bf16.msra.mxu0 %v10427_v51 }
0x3333   :  { %9745 = vmatprep.subr.bf16.mxu0 %v10428_v24 }
0x3334   :  { %9764 = vmatpush3.bf16.msra.mxu1 %v10435_v20  ;;  %v10453_v20 = vld [vmem:[%s12978_s13 + $0xb8] sm:$0xff]  }
0x3335   :  { %9765 = vmatprep.subr.bf16.mxu1 %v10436_v54 }
0x3336   :  { %9746 = vmatpush3.bf16.msra.mxu0 %v10428_v24 }
0x3337   :  { %9747 = vmatprep.subr.bf16.mxu0 %v10429_v59 }
0x3338   :  { %9766 = vmatpush3.bf16.msra.mxu1 %v10436_v54 }
0x3339   :  { %9767 = vmatprep.subr.bf16.mxu1 %v10437_v2 }
0x333a   :  { %9748 = vmatpush3.bf16.msra.mxu0 %v10429_v59 }
0x333c   :  { %9768 = vmatpush3.bf16.msra.mxu1 %v10437_v2 }
0x333d   :  { %9750 = vmatmul.mubr.bf16.vlgmr.msra.gmra.mrb[52].mxu0 %v5727_v38  ;;  %9773 = vmatprep.subr.bf16.mxu1 %v10438_v14 }
0x3410   :  { %v9751_v42 = vpop.f32.mrb[52].mxu0 }
0x3411   :  { %v5810_v41 = vpop.f32.mrb[53].mxu0  ;;  %v12475_v21 = vadd.f32 %v12368_v61, %v9751_v42 }
0x3412   :  { %v12472_v17 = vadd.f32 %v12368_v61, %v5810_v41  ;;  %v9752_v19 = vpop.f32.mrb[54].mxu0 }
0x3413   :  { %v5813_v44 = vpop.f32.mrb[55].mxu0  ;;  %v12483_v5 = vadd.f32 %v12368_v61, %v9752_v19  ;;  %v5844_v27 = vmul.f32 %v12475_v21, %v12475_v21 }
0x3414   :  { %v12478_v23 = vadd.f32 %v12368_v61, %v5813_v44  ;;  %v5842_v26 = vmul.f32 %v12472_v17, %v12472_v17 }
0x3415   :  { %v5845_v10 = vmul.f32 %v12483_v5, %v12483_v5 }
0x3416   :  { %v5833_v12 = vadd.f32 %v12478_v23, %v12472_v17  ;;  %v5843_v55 = vmul.f32 %v12478_v23, %v12478_v23 }
0x3418   :  { %v5834_v29 = vadd.f32 %v5833_v12, %v12475_v21  ;;  %v5846_v58 = vadd.f32 %v5843_v55, %v5842_v26 }
0x341a   :  { %v5835_v32 = vadd.f32 %v5834_v29, %v12483_v5  ;;  %v5847_v34 = vadd.f32 %v5846_v58, %v5844_v27 }
0x341c   :  { %v5836_v35 = vrot.slane %v5835_v32, 4  ;;  %v5848_v39 = vadd.f32 %v5847_v34, %v5845_v10 }
0x341e   :  { %v5837_v49 = vadd.f32 %v5836_v35, %v5835_v32  ;;  %v5849_v43 = vrot.slane %v5848_v39, 4 }
0x3420   :  { %v5838_v45 = vrot.slane %v5837_v49, 2  ;;  %v5850_v48 = vadd.f32 %v5849_v43, %v5848_v39 }
0x3422   :  { %v5839_v53 = vadd.f32 %v5838_v45, %v5837_v49  ;;  %v5851_v57 = vrot.slane %v5850_v48, 2 }
0x3424   :  { %v5840_v6 = vrot.slane %v5839_v53, 1  ;;  %v5852_v1 = vadd.f32 %v5851_v57, %v5850_v48 }
0x3426   :  { %v5853_v56 = vrot.slane %v5852_v1, 1  ;;  %v5841_v52 = vadd.f32 %v5840_v6, %v5839_v53  ;;  %v10441_v6 = vld [vmem:[%s12978_s13 + $0x18] sm:$0xff]  }
0x3428   :  { %v5854_v63 = vadd.f32 %v5853_v56, %v5852_v1  ;;  %v10442_v1 = vld [vmem:[%s12978_s13 + $0x20] sm:$0xff]   ;;  %v10443_v56 = vld [vmem:[%s12978_s13 + $0x28] sm:$0xff]  }
0x342a   :  { %v5855_v11 = vsel %vm492_vm2, %v5841_v52, %v5854_v63  ;;  %v10444_v52 = vld [vmem:[%s12978_s13 + $0x30] sm:$0xff]   ;;  %v10445_v63 = vld [vmem:[%s12978_s13 + $0x38] sm:$0xff]  }
0x342b   :  { %v5856_v0 = vsel %vm476_vm1, %v5855_v11, 0.0  ;;  %v10446_v11 = vld [vmem:[%s12978_s13 + $0x80] sm:$0xff]  }
0x342c   :  { %5857 = vrot.lane.b32.xlu0 %v5856_v0, %s10690_s29 }
0x349e   :  { %v5858_v22 = vpop.permute.xlu0 %5857 }
0x349f   :  { %v5859_v37 = vadd.f32 %v5858_v22, %v5856_v0 }
0x34a1   :  { %5860 = vrot.lane.b32.xlu1 %v5859_v37, %s10697_s6 }
0x3513   :  { %v5861_v36 = vpop.permute.xlu1 %5860 }
0x3514   :  { %v5862_v40 = vadd.f32 %v5861_v36, %v5859_v37 }
0x3516   :  { %5863 = vrot.lane.b32.xlu0 %v5862_v40, %s10698_s30 }
0x3588   :  { %v5864_v15 = vpop.permute.xlu0 %5863 }
0x3589   :  { %v5865_v16 = vadd.f32 %v5864_v15, %v5862_v40  ;;  %v10447_v15 = vld [vmem:[%s12978_s13 + $0x88] sm:$0xff]  }
0x358b   :  { %5866 = vrot.lane.b32.xlu1 %v5865_v16, %s10692_s9 }
0x35fd   :  { %v5867_v47 = vpop.permute.xlu1 %5866 }
0x35fe   :  { %v5868_v46 = vadd.f32 %v5867_v47, %v5865_v16 }
0x3600   :  { %v5869_v51 = vmul.f32 0.001953125, %v5868_v46 }
0x3602   :  { %v5870_v24 = vmul.f32 %v5869_v51, %v5869_v51 }
0x3604   :  { %v5872_v59 = vrot.slane %v5870_v24, 7 }
0x3606   :  { %v5874_v7 = vsub.f32 %v5869_v51, %v5872_v59 }
0x3608   :  { %v5875_v13 = vadd.f32 1e-05, %v5874_v7 }
0x360a   :  { %10564 = vrsqrt.f32 %v5875_v13 }
0x3614   :  { %v10565_v38 = vpop.eup %10564 }
0x3615   :  { %v5884_v42 = vrot.slane %v10565_v38, %v11107_v4 }
0x3617   :  { %v5885_v41 = vcombine.high %v5884_v42, %v5884_v42 }
0x3619   :  { %v5892_v19 = vrot.slane %v5885_v41, %v11107_v4 }
0x361b   :  { %v5894_v44 = vmul.f32 %v12162_v28, %v5892_v19 }
0x361d   :  { %v5899_v26 = vrot.slane %v5894_v44, %v11116_v9  ;;  %v5905_v12 = vmul.f32 %v5894_v44, %v5869_v51 }
0x361f   :  { %v5906_v55 = vsub.f32 %v12169_v8, %v5905_v12  ;;  %v5901_v27 = vmul.f32 %v5899_v26, %v12472_v17  ;;  %v5902_v29 = vmul.f32 %v5899_v26, %v12478_v23  ;;  %v5903_v58 = vmul.f32 %v5899_v26, %v12475_v21 }
0x3620   :  { %v5904_v10 = vmul.f32 %v5899_v26, %v12483_v5 }
0x3621   :  { %v5911_v32 = vrot.slane %v5906_v55, %v11116_v9 }
0x3623   :  { %v5913_v34 = vadd.f32 %v5911_v32, %v5901_v27  ;;  %v5914_v35 = vadd.f32 %v5911_v32, %v5902_v29  ;;  %v5915_v39 = vadd.f32 %v5911_v32, %v5903_v58  ;;  %v5916_v49 = vadd.f32 %v5911_v32, %v5904_v10 }
0x3625   :  { %v5917_v28 = vadd.f32 %v5913_v34, %v12293_v62  ;;  %v5918_v43 = vadd.f32 %v5914_v35, %v12295_v18  ;;  %v5919_v8 = vadd.f32 %v5915_v39, %v12297_v25  ;;  %v5920_v17 = vadd.f32 %v5916_v49, %v12299_v60  ;;  %v10439_v25 = vld [vmem:[%s12978_s13 + $0x8] sm:$0xff]   ;;  %v10440_v60 = vld [vmem:[%s12978_s13 + $0x10] sm:$0xff]  }
0x3627   :  { %v12542_v45 = vmax.f32 %v5917_v28, 0.0  ;;  %v12544_v23 = vmax.f32 %v5918_v43, 0.0  ;;  %v12546_v21 = vmax.f32 %v5919_v8, 0.0  ;;  %v12548_v5 = vmax.f32 %v5920_v17, 0.0 }
0x3629   :  { %5925 = vst [vmem:[#allocation2 + $0x1] sm:$0xff] %v12542_v45  ;;  %5926 = vst [vmem:[#allocation2 + $0x9] sm:$0xff] %v12544_v23  ;;  %v5971_v62 = vpack.c.bf16 %v12544_v23, %v12542_v45  ;;  %v5972_v18 = vpack.c.bf16 %v12548_v5, %v12546_v21 }
0x362a   :  { %5927 = vst [vmem:[#allocation2 + $0x19] sm:$0xff] %v12546_v21  ;;  %5928 = vst [vmem:[#allocation2 + $0x21] sm:$0xff] %v12548_v5 }
0x362b   :  { %9769 = vmatprep.mubr.bf16.mxu1 %v5971_v62 }
0x362c   :  { %9770 = vmatmul.mubr.bf16.vlgmr.msra.gmra.mrb[32].mxu1 %v5972_v18 }
0x362d   :  { %9774 = vmatpush3.bf16.msra.mxu1 %v10438_v14 }
0x362e   :  { %9775 = vmatprep.subr.bf16.mxu1 %v10439_v25 }
0x3630   :  { %v5929_v48 = vld [vmem:[#allocation2] sm:$0xff]  ;;  %v5930_v53 = vld [vmem:[#allocation2 + $0x8] sm:$0xff] }
0x3631   :  { %v5949_v57 = vpack.c.bf16 %v5930_v53, %v5929_v48  ;;  %9776 = vmatpush3.bf16.msra.mxu1 %v10439_v25  ;;  %v5931_v0 = vld [vmem:[#allocation2 + $0x18] sm:$0xff]  ;;  %v5932_v22 = vld [vmem:[#allocation2 + $0x20] sm:$0xff]  ;;  %v6168_v36 = vld [vmem:[#allocation2 + $0xa] sm:$0xff] }
0x3632   :  { %9777 = vmatprep.subr.bf16.mxu1 %v10440_v60  ;;  %v6167_v37 = vld [vmem:[#allocation2 + $0x2] sm:$0xff]  ;;  %v5950_v40 = vpack.c.bf16 %v5932_v22, %v5931_v0  ;;  %v6169_v54 = vld [vmem:[#allocation2 + $0x1a] sm:$0xff] }
0x3633   :  { %9789 = vmatprep.mubr.bf16.mxu1 %v5949_v57  ;;  %v6187_v16 = vpack.c.bf16 %v6168_v36, %v6167_v37  ;;  %v6170_v2 = vld [vmem:[#allocation2 + $0x22] sm:$0xff]  ;;  %v10459_v37 = vld [vmem:[%s12978_s13 + $0x68] sm:$0xff]   ;;  %v10460_v36 = vld [vmem:[%s12978_s13 + $0x70] sm:$0xff]  }
0x3634   :  { %v6188_v14 = vpack.c.bf16 %v6170_v2, %v6169_v54  ;;  %v10457_v0 = vld [vmem:[%s12978_s13 + $0x58] sm:$0xff]   ;;  %v10458_v22 = vld [vmem:[%s12978_s13 + $0x60] sm:$0xff]  }
0x3635   :  { %9778 = vmatpush3.bf16.msra.mxu1 %v10440_v60 }
0x3636   :  { %9779 = vmatprep.subr.bf16.mxu1 %v10441_v6 }
0x3639   :  { %9780 = vmatpush3.bf16.msra.mxu1 %v10441_v6 }
0x363a   :  { %9781 = vmatprep.subr.bf16.mxu1 %v10442_v1 }
0x363d   :  { %9782 = vmatpush3.bf16.msra.mxu1 %v10442_v1 }
0x363e   :  { %9783 = vmatprep.subr.bf16.mxu1 %v10443_v56 }
0x3641   :  { %9784 = vmatpush3.bf16.msra.mxu1 %v10443_v56  ;;  %v10454_v56 = vld [vmem:[%s12978_s13 + $0x40] sm:$0xff]  }
0x3642   :  { %9785 = vmatprep.subr.bf16.mxu1 %v10444_v52  ;;  %9813 = vmatprep.subr.bf16.mxu0 %v10454_v56 }
0x3643   :  { %9814 = vmatpush3.bf16.msra.mxu0 %v10454_v56 }
0x3645   :  { %9786 = vmatpush3.bf16.msra.mxu1 %v10444_v52 }
0x3646   :  { %9787 = vmatprep.subr.bf16.mxu1 %v10445_v63 }
0x3649   :  { %9788 = vmatpush3.bf16.msra.mxu1 %v10445_v63  ;;  %v10455_v63 = vld [vmem:[%s12978_s13 + $0x48] sm:$0xff]  }
0x364a   :  { %9793 = vmatprep.subr.bf16.mxu1 %v10446_v11  ;;  %9815 = vmatprep.subr.bf16.mxu0 %v10455_v63 }
0x364b   :  { %9816 = vmatpush3.bf16.msra.mxu0 %v10455_v63 }
0x364c   :  { %9790 = vmatmul.mubr.bf16.vlgmr.msra.gmra.mrb[32].mxu1 %v5950_v40  ;;  %v10461_v40 = vld [vmem:[%s12978_s13 + $0x78] sm:$0xff]  }
0x364d   :  { %9794 = vmatpush3.bf16.msra.mxu1 %v10446_v11  ;;  %9809 = vmatprep.mubr.bf16.mxu1 %v6187_v16  ;;  %v10456_v11 = vld [vmem:[%s12978_s13 + $0x50] sm:$0xff]  }
0x364e   :  { %9795 = vmatprep.subr.bf16.mxu1 %v10447_v15  ;;  %9817 = vmatprep.subr.bf16.mxu0 %v10456_v11 }
0x364f   :  { %9818 = vmatpush3.bf16.msra.mxu0 %v10456_v11  ;;  %v10472_v11 = vld [vmem:[%s12978_s13 + $0x90] sm:$0xff]  }
0x3650   :  { %9819 = vmatprep.subr.bf16.mxu0 %v10457_v0 }
0x3651   :  { %9796 = vmatpush3.bf16.msra.mxu1 %v10447_v15  ;;  %v10462_v15 = vld [vmem:[%s12978_s13] sm:$0xff]  }
0x3652   :  { %9797 = vmatprep.subr.bf16.mxu1 %v10448_v3 }
0x3653   :  { %9820 = vmatpush3.bf16.msra.mxu0 %v10457_v0  ;;  %v10473_v0 = vld [vmem:[%s12978_s13 + $0x98] sm:$0xff]  }
0x3654   :  { %9821 = vmatprep.subr.bf16.mxu0 %v10458_v22 }
0x3655   :  { %9798 = vmatpush3.bf16.msra.mxu1 %v10448_v3 }
0x3656   :  { %9799 = vmatprep.subr.bf16.mxu1 %v10449_v31 }
0x3657   :  { %9822 = vmatpush3.bf16.msra.mxu0 %v10458_v22  ;;  %v10474_v22 = vld [vmem:[%s12978_s13 + $0xa0] sm:$0xff]  }
0x3658   :  { %9823 = vmatprep.subr.bf16.mxu0 %v10459_v37 }
0x3659   :  { %9800 = vmatpush3.bf16.msra.mxu1 %v10449_v31 }
0x365a   :  { %9801 = vmatprep.subr.bf16.mxu1 %v10450_v30 }
0x365b   :  { %9824 = vmatpush3.bf16.msra.mxu0 %v10459_v37  ;;  %v10475_v37 = vld [vmem:[%s12978_s13 + $0xa8] sm:$0xff]  }
0x365c   :  { %9825 = vmatprep.subr.bf16.mxu0 %v10460_v36 }
0x365d   :  { %9802 = vmatpush3.bf16.msra.mxu1 %v10450_v30 }
0x365e   :  { %9803 = vmatprep.subr.bf16.mxu1 %v10451_v33 }
0x365f   :  { %9826 = vmatpush3.bf16.msra.mxu0 %v10460_v36  ;;  %v10476_v36 = vld [vmem:[%s12978_s13 + $0xb0] sm:$0xff]  }
0x3660   :  { %9827 = vmatprep.subr.bf16.mxu0 %v10461_v40 }
0x3661   :  { %9804 = vmatpush3.bf16.msra.mxu1 %v10451_v33 }
0x3662   :  { %9805 = vmatprep.subr.bf16.mxu1 %v10452_v50 }
0x3663   :  { %9828 = vmatpush3.bf16.msra.mxu0 %v10461_v40  ;;  %v10477_v40 = vld [vmem:[%s12978_s13 + $0xb8] sm:$0xff]  }
0x3664   :  { %9833 = vmatprep.subr.bf16.mxu0 %v10462_v15 }
0x3665   :  { %9806 = vmatpush3.bf16.msra.mxu1 %v10452_v50 }
0x3666   :  { %9807 = vmatprep.subr.bf16.mxu1 %v10453_v20 }
0x3669   :  { %9808 = vmatpush3.bf16.msra.mxu1 %v10453_v20 }
0x366c   :  { %9810 = vmatmul.mubr.bf16.vlgmr.msra.gmra.mrb[32].mxu1 %v6188_v14 }
0x373f   :  { %v9811_v47 = vpop.f32.mrb[32].mxu1 }
0x3740   :  { %v6271_v46 = vpop.f32.mrb[33].mxu1  ;;  %v12607_v7 = vadd.f32 %v12368_v61, %v9811_v47 }
0x3741   :  { %v12604_v51 = vadd.f32 %v12368_v61, %v6271_v46  ;;  %v9812_v24 = vpop.f32.mrb[34].mxu1  ;;  %v12665_v46 = vld [vmem:[%s12980_s15] sm:$0x1] }
0x3742   :  { %v6274_v59 = vpop.f32.mrb[35].mxu1  ;;  %v12615_v42 = vadd.f32 %v12368_v61, %v9812_v24  ;;  %v6305_v44 = vmul.f32 %v12607_v7, %v12607_v7 }
0x3743   :  { %v12610_v13 = vadd.f32 %v12368_v61, %v6274_v59  ;;  %v6303_v38 = vmul.f32 %v12604_v51, %v12604_v51 }
0x3744   :  { %v6306_v55 = vmul.f32 %v12615_v42, %v12615_v42 }
0x3745   :  { %v6294_v41 = vadd.f32 %v12610_v13, %v12604_v51  ;;  %v6304_v19 = vmul.f32 %v12610_v13, %v12610_v13 }
0x3747   :  { %v6295_v26 = vadd.f32 %v6294_v41, %v12607_v7  ;;  %v6307_v12 = vadd.f32 %v6304_v19, %v6303_v38  ;;  %v12672_v41 = vld [vmem:[%s12981_s16] sm:$0x1] }
0x3749   :  { %v6296_v27 = vadd.f32 %v6295_v26, %v12615_v42  ;;  %v6308_v29 = vadd.f32 %v6307_v12, %v6305_v44 }
0x374b   :  { %v6297_v58 = vrot.slane %v6296_v27, 4  ;;  %v6309_v10 = vadd.f32 %v6308_v29, %v6306_v55 }
0x374d   :  { %v6298_v32 = vadd.f32 %v6297_v58, %v6296_v27  ;;  %v6310_v34 = vrot.slane %v6309_v10, 4 }
0x374f   :  { %v6299_v35 = vrot.slane %v6298_v32, 2  ;;  %v6311_v39 = vadd.f32 %v6310_v34, %v6309_v10 }
0x3751   :  { %v6300_v49 = vadd.f32 %v6299_v35, %v6298_v32  ;;  %v6312_v28 = vrot.slane %v6311_v39, 2 }
0x3753   :  { %v6301_v43 = vrot.slane %v6300_v49, 1  ;;  %v6313_v8 = vadd.f32 %v6312_v28, %v6311_v39 }
0x3755   :  { %v6314_v17 = vrot.slane %v6313_v8, 1  ;;  %v6302_v62 = vadd.f32 %v6301_v43, %v6300_v49 }
0x3757   :  { %v6315_v18 = vadd.f32 %v6314_v17, %v6313_v8  ;;  %v10465_v17 = vld [vmem:[%s12978_s13 + $0x18] sm:$0xff]  }
0x3759   :  { %v6316_v25 = vsel %vm492_vm2, %v6302_v62, %v6315_v18  ;;  %v10466_v62 = vld [vmem:[%s12978_s13 + $0x20] sm:$0xff]   ;;  %v10467_v18 = vld [vmem:[%s12978_s13 + $0x28] sm:$0xff]  }
0x375a   :  { %v6317_v60 = vsel %vm476_vm1, %v6316_v25, 0.0  ;;  %v10468_v25 = vld [vmem:[%s12978_s13 + $0x30] sm:$0xff]  }
0x375b   :  { %6318 = vrot.lane.b32.xlu0 %v6317_v60, %s10690_s29 }
0x37cd   :  { %v6319_v48 = vpop.permute.xlu0 %6318 }
0x37ce   :  { %v6320_v53 = vadd.f32 %v6319_v48, %v6317_v60  ;;  %v10469_v60 = vld [vmem:[%s12978_s13 + $0x38] sm:$0xff]   ;;  %v10470_v48 = vld [vmem:[%s12978_s13 + $0x80] sm:$0xff]  }
0x37d0   :  { %6321 = vrot.lane.b32.xlu1 %v6320_v53, %s10697_s6 }
0x3842   :  { %v6322_v57 = vpop.permute.xlu1 %6321 }
0x3843   :  { %v6323_v6 = vadd.f32 %v6322_v57, %v6320_v53 }
0x3845   :  { %6324 = vrot.lane.b32.xlu0 %v6323_v6, %s10698_s30 }
0x38b7   :  { %v6325_v1 = vpop.permute.xlu0 %6324 }
0x38b8   :  { %v6326_v52 = vadd.f32 %v6325_v1, %v6323_v6 }
0x38ba   :  { %6327 = vrot.lane.b32.xlu1 %v6326_v52, %s10692_s9 }
0x392c   :  { %v6328_v16 = vpop.permute.xlu1 %6327 }
0x392d   :  { %v6329_v3 = vadd.f32 %v6328_v16, %v6326_v52  ;;  %v10471_v52 = vld [vmem:[%s12978_s13 + $0x88] sm:$0xff]  }
0x392f   :  { %v6330_v31 = vmul.f32 0.001953125, %v6329_v3 }
0x3931   :  { %v6331_v30 = vmul.f32 %v6330_v31, %v6330_v31 }
0x3933   :  { %v6333_v33 = vrot.slane %v6331_v30, 7 }
0x3935   :  { %v6335_v50 = vsub.f32 %v6330_v31, %v6333_v33 }
0x3937   :  { %v6336_v20 = vadd.f32 1e-05, %v6335_v50 }
0x3939   :  { %10566 = vrsqrt.f32 %v6336_v20 }
0x3943   :  { %v10567_v54 = vpop.eup %10566 }
0x3944   :  { %v6345_v2 = vrot.slane %v10567_v54, %v11107_v4 }
0x3946   :  { %v6346_v14 = vcombine.high %v6345_v2, %v6345_v2 }
0x3948   :  { %v6353_v47 = vrot.slane %v6346_v14, %v11107_v4 }
0x394a   :  { %v6355_v24 = vmul.f32 %v12665_v46, %v6353_v47 }
0x394c   :  { %v6360_v59 = vrot.slane %v6355_v24, %v11116_v9  ;;  %v6366_v38 = vmul.f32 %v6355_v24, %v6330_v31 }
0x394e   :  { %v6367_v19 = vsub.f32 %v12672_v41, %v6366_v38  ;;  %v6362_v44 = vmul.f32 %v6360_v59, %v12604_v51  ;;  %v6363_v26 = vmul.f32 %v6360_v59, %v12610_v13  ;;  %v6364_v12 = vmul.f32 %v6360_v59, %v12607_v7  ;;  %v10463_v7 = vld [vmem:[%s12978_s13 + $0x8] sm:$0xff]  }
0x394f   :  { %v6365_v55 = vmul.f32 %v6360_v59, %v12615_v42  ;;  %v10464_v42 = vld [vmem:[%s12978_s13 + $0x10] sm:$0xff]  }
0x3950   :  { %v6372_v27 = vrot.slane %v6367_v19, %v11116_v9 }
0x3952   :  { %v6374_v29 = vadd.f32 %v6372_v27, %v6362_v44  ;;  %v6375_v58 = vadd.f32 %v6372_v27, %v6363_v26  ;;  %v6376_v10 = vadd.f32 %v6372_v27, %v6364_v12  ;;  %v6377_v32 = vadd.f32 %v6372_v27, %v6365_v55 }
0x3954   :  { %v6378_v34 = vmax.f32 %v6374_v29, 0.0  ;;  %v6379_v35 = vmax.f32 %v6375_v58, 0.0  ;;  %v6380_v39 = vmax.f32 %v6376_v10, 0.0  ;;  %v6381_v49 = vmax.f32 %v6377_v32, 0.0 }
0x3956   :  { %6382 = vst [vmem:[#allocation2 + $0x1] sm:$0xff] %v6378_v34  ;;  %6383 = vst [vmem:[#allocation2 + $0x9] sm:$0xff] %v6379_v35  ;;  %v6428_v51 = vpack.c.bf16 %v6379_v35, %v6378_v34  ;;  %v6429_v13 = vpack.c.bf16 %v6381_v49, %v6380_v39 }
0x3957   :  { %6384 = vst [vmem:[#allocation2 + $0x19] sm:$0xff] %v6380_v39  ;;  %6385 = vst [vmem:[#allocation2 + $0x21] sm:$0xff] %v6381_v49 }
0x3958   :  { %9829 = vmatprep.mubr.bf16.mxu0 %v6428_v51 }
0x3959   :  { %9830 = vmatmul.mubr.bf16.vlgmr.msra.gmra.mrb[56].mxu0 %v6429_v13 }
0x395a   :  { %9834 = vmatpush3.bf16.msra.mxu0 %v10462_v15 }
0x395b   :  { %9835 = vmatprep.subr.bf16.mxu0 %v10463_v7 }
0x395d   :  { %v6386_v28 = vld [vmem:[#allocation2] sm:$0xff]  ;;  %v6387_v43 = vld [vmem:[#allocation2 + $0x8] sm:$0xff] }
0x395e   :  { %v6406_v8 = vpack.c.bf16 %v6387_v43, %v6386_v28  ;;  %9836 = vmatpush3.bf16.msra.mxu0 %v10463_v7  ;;  %v6388_v53 = vld [vmem:[#allocation2 + $0x18] sm:$0xff]  ;;  %v6389_v57 = vld [vmem:[#allocation2 + $0x20] sm:$0xff]  ;;  %v6625_v1 = vld [vmem:[#allocation2 + $0xa] sm:$0xff] }
0x395f   :  { %9837 = vmatprep.subr.bf16.mxu0 %v10464_v42  ;;  %v6624_v6 = vld [vmem:[#allocation2 + $0x2] sm:$0xff]  ;;  %v6407_v56 = vpack.c.bf16 %v6389_v57, %v6388_v53  ;;  %v6626_v15 = vld [vmem:[#allocation2 + $0x1a] sm:$0xff] }
0x3960   :  { %9849 = vmatprep.mubr.bf16.mxu0 %v6406_v8  ;;  %v6644_v63 = vpack.c.bf16 %v6625_v1, %v6624_v6  ;;  %v6627_v16 = vld [vmem:[#allocation2 + $0x22] sm:$0xff]  ;;  %v10480_v53 = vld [vmem:[%s12982_s17 + $0x50] sm:$0xff]   ;;  %v10483_v1 = vld [vmem:[%s12982_s17 + $0x68] sm:$0xff]  }
0x3961   :  { %v6645_v3 = vpack.c.bf16 %v6627_v16, %v6626_v15  ;;  %v10481_v57 = vld [vmem:[%s12982_s17 + $0x58] sm:$0xff]   ;;  %v10482_v6 = vld [vmem:[%s12982_s17 + $0x60] sm:$0xff]  }
0x3962   :  { %9838 = vmatpush3.bf16.msra.mxu0 %v10464_v42 }
0x3963   :  { %9839 = vmatprep.subr.bf16.mxu0 %v10465_v17 }
0x3966   :  { %9840 = vmatpush3.bf16.msra.mxu0 %v10465_v17 }
0x3967   :  { %9841 = vmatprep.subr.bf16.mxu0 %v10466_v62 }
0x396a   :  { %9842 = vmatpush3.bf16.msra.mxu0 %v10466_v62 }
0x396b   :  { %9843 = vmatprep.subr.bf16.mxu0 %v10467_v18 }
0x396e   :  { %9844 = vmatpush3.bf16.msra.mxu0 %v10467_v18 }
0x396f   :  { %9845 = vmatprep.subr.bf16.mxu0 %v10468_v25 }
0x3972   :  { %9846 = vmatpush3.bf16.msra.mxu0 %v10468_v25 }
0x3973   :  { %9847 = vmatprep.subr.bf16.mxu0 %v10469_v60 }
0x3976   :  { %9848 = vmatpush3.bf16.msra.mxu0 %v10469_v60  ;;  %v10478_v60 = vld [vmem:[%s12982_s17 + $0x40] sm:$0xff]  }
0x3977   :  { %9853 = vmatprep.subr.bf16.mxu0 %v10470_v48  ;;  %9873 = vmatprep.subr.bf16.mxu1 %v10478_v60 }
0x3978   :  { %9874 = vmatpush3.bf16.msra.mxu1 %v10478_v60 }
0x3979   :  { %9850 = vmatmul.mubr.bf16.vlgmr.msra.gmra.mrb[56].mxu0 %v6407_v56  ;;  %v10484_v56 = vld [vmem:[%s12982_s17 + $0x70] sm:$0xff]  }
0x397a   :  { %9854 = vmatpush3.bf16.msra.mxu0 %v10470_v48  ;;  %9869 = vmatprep.mubr.bf16.mxu0 %v6644_v63  ;;  %v10479_v48 = vld [vmem:[%s12982_s17 + $0x48] sm:$0xff]   ;;  %v10486_v63 = vld [vmem:[%s12982_s17] sm:$0xff]  }
0x397b   :  { %9855 = vmatprep.subr.bf16.mxu0 %v10471_v52  ;;  %9875 = vmatprep.subr.bf16.mxu1 %v10479_v48 }
0x397c   :  { %9876 = vmatpush3.bf16.msra.mxu1 %v10479_v48  ;;  %v10495_v48 = vld [vmem:[%s12982_s17 + $0x88] sm:$0xff]  }
0x397d   :  { %9877 = vmatprep.subr.bf16.mxu1 %v10480_v53 }
0x397e   :  { %9856 = vmatpush3.bf16.msra.mxu0 %v10471_v52  ;;  %v10485_v52 = vld [vmem:[%s12982_s17 + $0x78] sm:$0xff]  }
0x397f   :  { %9857 = vmatprep.subr.bf16.mxu0 %v10472_v11 }
0x3980   :  { %9878 = vmatpush3.bf16.msra.mxu1 %v10480_v53 }
0x3981   :  { %9879 = vmatprep.subr.bf16.mxu1 %v10481_v57 }
0x3982   :  { %9858 = vmatpush3.bf16.msra.mxu0 %v10472_v11 }
0x3983   :  { %9859 = vmatprep.subr.bf16.mxu0 %v10473_v0 }
0x3984   :  { %9880 = vmatpush3.bf16.msra.mxu1 %v10481_v57  ;;  %v10496_v57 = vld [vmem:[%s12982_s17 + $0x90] sm:$0xff]  }
0x3985   :  { %9881 = vmatprep.subr.bf16.mxu1 %v10482_v6 }
0x3986   :  { %9860 = vmatpush3.bf16.msra.mxu0 %v10473_v0 }
0x3987   :  { %9861 = vmatprep.subr.bf16.mxu0 %v10474_v22 }
0x3988   :  { %9882 = vmatpush3.bf16.msra.mxu1 %v10482_v6  ;;  %v10497_v6 = vld [vmem:[%s12982_s17 + $0x98] sm:$0xff]  }
0x3989   :  { %9883 = vmatprep.subr.bf16.mxu1 %v10483_v1 }
0x398a   :  { %9862 = vmatpush3.bf16.msra.mxu0 %v10474_v22 }
0x398b   :  { %9863 = vmatprep.subr.bf16.mxu0 %v10475_v37 }
0x398c   :  { %9884 = vmatpush3.bf16.msra.mxu1 %v10483_v1  ;;  %v10498_v1 = vld [vmem:[%s12982_s17 + $0xa0] sm:$0xff]  }
0x398d   :  { %9885 = vmatprep.subr.bf16.mxu1 %v10484_v56 }
0x398e   :  { %9864 = vmatpush3.bf16.msra.mxu0 %v10475_v37 }
0x398f   :  { %9865 = vmatprep.subr.bf16.mxu0 %v10476_v36 }
0x3990   :  { %9886 = vmatpush3.bf16.msra.mxu1 %v10484_v56  ;;  %v10499_v56 = vld [vmem:[%s12982_s17 + $0xa8] sm:$0xff]  }
0x3991   :  { %9887 = vmatprep.subr.bf16.mxu1 %v10485_v52 }
0x3992   :  { %9866 = vmatpush3.bf16.msra.mxu0 %v10476_v36 }
0x3993   :  { %9867 = vmatprep.subr.bf16.mxu0 %v10477_v40 }
0x3994   :  { %9888 = vmatpush3.bf16.msra.mxu1 %v10485_v52  ;;  %v10500_v52 = vld [vmem:[%s12982_s17 + $0xb0] sm:$0xff]  }
0x3995   :  { %9893 = vmatprep.subr.bf16.mxu1 %v10486_v63 }
0x3996   :  { %9868 = vmatpush3.bf16.msra.mxu0 %v10477_v40 }
0x3999   :  { %9870 = vmatmul.mubr.bf16.vlgmr.msra.gmra.mrb[56].mxu0 %v6645_v3 }
0x3a6c   :  { %v9871_v31 = vpop.f32.mrb[56].mxu0 }
0x3a6d   :  { %v6728_v30 = vpop.f32.mrb[57].mxu0  ;;  %v12729_v54 = vadd.f32 %v12368_v61, %v9871_v31 }
0x3a6e   :  { %v12726_v33 = vadd.f32 %v12368_v61, %v6728_v30  ;;  %v9872_v50 = vpop.f32.mrb[58].mxu0 }
0x3a6f   :  { %v6731_v20 = vpop.f32.mrb[59].mxu0  ;;  %v12737_v47 = vadd.f32 %v12368_v61, %v9872_v50  ;;  %v6762_v38 = vmul.f32 %v12729_v54, %v12729_v54 }
0x3a70   :  { %v12732_v2 = vadd.f32 %v12368_v61, %v6731_v20  ;;  %v6760_v14 = vmul.f32 %v12726_v33, %v12726_v33 }
0x3a71   :  { %v6763_v26 = vmul.f32 %v12737_v47, %v12737_v47 }
0x3a72   :  { %v6751_v24 = vadd.f32 %v12732_v2, %v12726_v33  ;;  %v6761_v59 = vmul.f32 %v12732_v2, %v12732_v2 }
0x3a74   :  { %v6752_v19 = vadd.f32 %v6751_v24, %v12729_v54  ;;  %v6764_v44 = vadd.f32 %v6761_v59, %v6760_v14 }
0x3a76   :  { %v6753_v12 = vadd.f32 %v6752_v19, %v12737_v47  ;;  %v6765_v55 = vadd.f32 %v6764_v44, %v6762_v38 }
0x3a78   :  { %v6754_v61 = vrot.slane %v6753_v12, 4  ;;  %v6766_v27 = vadd.f32 %v6765_v55, %v6763_v26 }
0x3a7a   :  { %v6755_v29 = vadd.f32 %v6754_v61, %v6753_v12  ;;  %v6767_v58 = vrot.slane %v6766_v27, 4 }
0x3a7c   :  { %v6756_v10 = vrot.slane %v6755_v29, 2  ;;  %v6768_v32 = vadd.f32 %v6767_v58, %v6766_v27 }
0x3a7e   :  { %v6757_v34 = vadd.f32 %v6756_v10, %v6755_v29  ;;  %v6769_v35 = vrot.slane %v6768_v32, 2 }
0x3a80   :  { %v6758_v39 = vrot.slane %v6757_v34, 1  ;;  %v6770_v49 = vadd.f32 %v6769_v35, %v6768_v32 }
0x3a82   :  { %v6771_v51 = vrot.slane %v6770_v49, 1  ;;  %v6759_v13 = vadd.f32 %v6758_v39, %v6757_v34  ;;  %v10487_v39 = vld [vmem:[%s12982_s17 + $0x8] sm:$0xff]  }
0x3a84   :  { %v6772_v7 = vadd.f32 %v6771_v51, %v6770_v49  ;;  %v10488_v51 = vld [vmem:[%s12982_s17 + $0x10] sm:$0xff]  }
0x3a86   :  { %v6773_v42 = vsel %vm492_vm2, %v6759_v13, %v6772_v7  ;;  %v10489_v13 = vld [vmem:[%s12982_s17 + $0x18] sm:$0xff]   ;;  %v10490_v7 = vld [vmem:[%s12982_s17 + $0x20] sm:$0xff]  }
0x3a87   :  { %v6774_v28 = vsel %vm476_vm1, %v6773_v42, 0.0  ;;  %v10491_v42 = vld [vmem:[%s12982_s17 + $0x28] sm:$0xff]  }
0x3a88   :  { %6775 = vrot.lane.b32.xlu0 %v6774_v28, %s10690_s29 }
0x3afa   :  { %v6776_v43 = vpop.permute.xlu0 %6775 }
0x3afb   :  { %v6777_v8 = vadd.f32 %v6776_v43, %v6774_v28  ;;  %v10492_v28 = vld [vmem:[%s12982_s17 + $0x30] sm:$0xff]   ;;  %v10493_v43 = vld [vmem:[%s12982_s17 + $0x38] sm:$0xff]  }
0x3afd   :  { %6778 = vrot.lane.b32.xlu1 %v6777_v8, %s10697_s6 }
0x3b6f   :  { %v6779_v17 = vpop.permute.xlu1 %6778 }
0x3b70   :  { %v6780_v62 = vadd.f32 %v6779_v17, %v6777_v8  ;;  %v10494_v8 = vld [vmem:[%s12982_s17 + $0x80] sm:$0xff]  }
0x3b72   :  { %6781 = vrot.lane.b32.xlu0 %v6780_v62, %s10698_s30  ;;  %s10705_s30 = smov [#allocation11]  }
0x3be4   :  { %v6782_v18 = vpop.permute.xlu0 %6781 }
0x3be5   :  { %v6783_v25 = vadd.f32 %v6782_v18, %v6780_v62 }
0x3be7   :  { %6784 = vrot.lane.b32.xlu1 %v6783_v25, %s10692_s9  ;;  %s7728_s9 = sshll.u32 %s10705_s30, 4  ;;  %s7729_s9 = int_to_ptr.vmem [resolvable:$true] %s7728_s9 }
0x3be8   :  { %p10665_p11 = scmp.lt.s32.totalorder %s7729_s9, %s7729_s9 }
0x3c59   :  { %v6785_v11 = vpop.permute.xlu1 %6784 }
0x3c5a   :  { %v6786_v0 = vadd.f32 %v6785_v11, %v6783_v25  ;;  %v10502_v11 = vld [vmem:[%s12982_s17 + $0xc0] sm:$0xff]  }
0x3c5c   :  { %v6787_v22 = vmul.f32 0.001953125, %v6786_v0 }
0x3c5e   :  { %v6788_v37 = vmul.f32 %v6787_v22, %v6787_v22 }
0x3c60   :  { %v6790_v36 = vrot.slane %v6788_v37, 7 }
0x3c62   :  { %v6792_v40 = vsub.f32 %v6787_v22, %v6790_v36  ;;  %v10503_v36 = vld [vmem:[%s12982_s17 + $0xc8] sm:$0xff]  }
0x3c64   :  { %v6793_v15 = vadd.f32 1e-05, %v6792_v40  ;;  %v10504_v40 = vld [vmem:[%s12982_s17 + $0xd0] sm:$0xff]  }
0x3c66   :  { %10568 = vrsqrt.f32 %v6793_v15  ;;  %v10505_v15 = vld [vmem:[%s12982_s17 + $0xd8] sm:$0xff]  }
0x3c70   :  { %v10569_v16 = vpop.eup %10568 }
0x3c71   :  { %v6802_v3 = vrot.slane %v10569_v16, %v11107_v4  ;;  %v10506_v16 = vld [vmem:[%s12982_s17 + $0xe0] sm:$0xff]  }
0x3c73   :  { %v6803_v31 = vcombine.high %v6802_v3, %v6802_v3  ;;  %v10507_v3 = vld [vmem:[%s12982_s17 + $0xe8] sm:$0xff]  }
0x3c75   :  { %v6810_v30 = vrot.slane %v6803_v31, %v11107_v4  ;;  %v10508_v31 = vld [vmem:[%s12982_s17 + $0xf0] sm:$0xff]  }
0x3c77   :  { %v6812_v50 = vmul.f32 %v12665_v46, %v6810_v30  ;;  %v10509_v30 = vld [vmem:[%s12982_s17 + $0xf8] sm:$0xff]  }
0x3c79   :  { %v6817_v20 = vrot.slane %v6812_v50, %v11116_v9  ;;  %v6823_v14 = vmul.f32 %v6812_v50, %v6787_v22  ;;  %v10510_v50 = vld [vmem:[%s12982_s17 + $0x100] sm:$0xff]  }
0x3c7b   :  { %v6824_v24 = vsub.f32 %v12672_v41, %v6823_v14  ;;  %v6819_v59 = vmul.f32 %v6817_v20, %v12726_v33  ;;  %v6820_v38 = vmul.f32 %v6817_v20, %v12732_v2  ;;  %v6821_v19 = vmul.f32 %v6817_v20, %v12729_v54 }
0x3c7c   :  { %v6822_v44 = vmul.f32 %v6817_v20, %v12737_v47 }
0x3c7d   :  { %v6829_v26 = vrot.slane %v6824_v24, %v11116_v9  ;;  %v10511_v24 = vld [vmem:[%s12982_s17 + $0x108] sm:$0xff]  }
0x3c7f   :  { %v6831_v12 = vadd.f32 %v6829_v26, %v6819_v59  ;;  %v6832_v55 = vadd.f32 %v6829_v26, %v6820_v38  ;;  %v6833_v4 = vadd.f32 %v6829_v26, %v6821_v19  ;;  %v6834_v61 = vadd.f32 %v6829_v26, %v6822_v44  ;;  %v10512_v38 = vld [vmem:[%s12982_s17 + $0x110] sm:$0xff]   ;;  %v10513_v19 = vld [vmem:[%s12982_s17 + $0x118] sm:$0xff]   ;;  %v10514_v44 = vld [vmem:[%s12982_s17 + $0x120] sm:$0xff]  }
0x3c80   :  { %v10515_v26 = vld [vmem:[%s12982_s17 + $0x128] sm:$0xff]  }
0x3c81   :  { %v6835_v46 = vadd.f32 %v6831_v12, %v12542_v45  ;;  %v6836_v27 = vadd.f32 %v6832_v55, %v12544_v23  ;;  %v6837_v41 = vadd.f32 %v6833_v4, %v12546_v21  ;;  %v6838_v33 = vadd.f32 %v6834_v61, %v12548_v5  ;;  %v10516_v12 = vld [vmem:[%s12982_s17 + $0x130] sm:$0xff]   ;;  %v10517_v55 = vld [vmem:[%s12982_s17 + $0x138] sm:$0xff]   ;;  %v10518_v4 = vld [vmem:[%s12982_s17 + $0x140] sm:$0xff]  }
0x3c83   :  { %v6839_v29 = vmax.f32 %v6835_v46, 0.0  ;;  %v6840_v2 = vmax.f32 %v6836_v27, 0.0  ;;  %v6841_v58 = vmax.f32 %v6837_v41, 0.0  ;;  %v6842_v54 = vmax.f32 %v6838_v33, 0.0 }
0x3c85   :  { %6843 = vst [vmem:[#allocation4 + $0x3] sm:$0xff] %v6839_v29  ;;  %6844 = vst [vmem:[#allocation4 + $0xb] sm:$0xff] %v6840_v2  ;;  %v12796_v9 = vpack.c.bf16 %v6840_v2, %v6839_v29  ;;  %v12798_v47 = vpack.c.bf16 %v6842_v54, %v6841_v58  ;;  %v10519_v29 = vld [vmem:[%s12982_s17 + $0x148] sm:$0xff]  }
0x3c86   :  { %6845 = vst [vmem:[#allocation4 + $0x1b] sm:$0xff] %v6841_v58  ;;  %6846 = vst [vmem:[#allocation4 + $0x23] sm:$0xff] %v6842_v54  ;;  %v10520_v58 = vld [vmem:[%s12982_s17 + $0x150] sm:$0xff]   ;;  %v10521_v54 = vld [vmem:[%s12982_s17 + $0x158] sm:$0xff]  }
0x3c8c   :  { %v6869_v10 = vld [vmem:[#allocation4 + $0x1] sm:$0xff]  ;;  %v6870_v45 = vld [vmem:[#allocation4 + $0x9] sm:$0xff] }
0x3c8d   :  { %v6871_v32 = vld [vmem:[#allocation4 + $0x19] sm:$0xff]  ;;  %v6890_v23 = vpack.c.bf16 %v6870_v45, %v6869_v10  ;;  %v6872_v34 = vld [vmem:[#allocation4 + $0x21] sm:$0xff]  ;;  %v7087_v25 = vld [vmem:[#allocation4 + $0xa] sm:$0xff] }
0x3c8e   :  { %v6847_v21 = vld [vmem:[#allocation4] sm:$0xff]  ;;  %v6848_v35 = vld [vmem:[#allocation4 + $0x8] sm:$0xff]  ;;  %v6891_v5 = vpack.c.bf16 %v6872_v34, %v6871_v32  ;;  %v6849_v17 = vld [vmem:[#allocation4 + $0x18] sm:$0xff] }
0x3c8f   :  { %9889 = vmatprep.mubr.bf16.mxu1 %v6890_v23  ;;  %v6867_v49 = vpack.c.bf16 %v6848_v35, %v6847_v21  ;;  %v6850_v62 = vld [vmem:[#allocation4 + $0x20] sm:$0xff]  ;;  %v7335_v14 = vld [vmem:[#allocation4 + $0xc] sm:$0xff]  ;;  %v10524_v10 = vld [vmem:[%s12982_s17 + $0x170] sm:$0xff]  }
0x3c90   :  { %9890 = vmatmul.mubr.bf16.vlgmr.msra.gmra.mrb[36].mxu1 %v6891_v5  ;;  %v7086_v18 = vld [vmem:[#allocation4 + $0x2] sm:$0xff]  ;;  %v6868_v60 = vpack.c.bf16 %v6850_v62, %v6849_v17  ;;  %v7088_v0 = vld [vmem:[#allocation4 + $0x1a] sm:$0xff]  ;;  %v7459_v41 = vld [vmem:[#allocation4 + $0xd] sm:$0xff] }
0x3c91   :  { %9894 = vmatpush3.bf16.msra.mxu1 %v10486_v63  ;;  %9909 = vmatprep.mubr.bf16.mxu1 %v6867_v49  ;;  %v7107_v53 = vpack.c.bf16 %v7087_v25, %v7086_v18  ;;  %v10501_v63 = vld [vmem:[%s12982_s17 + $0xb8] sm:$0xff]   ;;  %v10526_v32 = vld [vmem:[%s12982_s17 + $0x180] sm:$0xff]  }
0x3c92   :  { %9895 = vmatprep.subr.bf16.mxu1 %v10487_v39  ;;  %v7089_v22 = vld [vmem:[#allocation4 + $0x22] sm:$0xff]  ;;  %v7583_v35 = vld [vmem:[#allocation4 + $0xe] sm:$0xff] }
0x3c93   :  { %v7108_v37 = vpack.c.bf16 %v7089_v22, %v7088_v0  ;;  %v7334_v20 = vld [vmem:[#allocation4 + $0x4] sm:$0xff]  ;;  %v7336_v61 = vld [vmem:[#allocation4 + $0x1c] sm:$0xff] }
0x3c94   :  { %v7355_v59 = vpack.c.bf16 %v7335_v14, %v7334_v20  ;;  %v7337_v46 = vld [vmem:[#allocation4 + $0x24] sm:$0xff] }
0x3c95   :  { %9896 = vmatpush3.bf16.msra.mxu1 %v10487_v39  ;;  %v7458_v27 = vld [vmem:[#allocation4 + $0x5] sm:$0xff]  ;;  %v7356_v33 = vpack.c.bf16 %v7337_v46, %v7336_v61  ;;  %v7460_v23 = vld [vmem:[#allocation4 + $0x1d] sm:$0xff]  ;;  %v10527_v39 = vld [vmem:[%s12982_s17 + $0x188] sm:$0xff]  }
0x3c96   :  { %9897 = vmatprep.subr.bf16.mxu1 %v10488_v51  ;;  %v7479_v2 = vpack.c.bf16 %v7459_v41, %v7458_v27  ;;  %v10525_v45 = vld [vmem:[%s12982_s17 + $0x178] sm:$0xff]   ;;  %v8514_v18 = vld [vmem:[%s12983_s18] ss:$0 sm:$0xff] }
0x3c97   :  { %v7461_v34 = vld [vmem:[#allocation4 + $0x25] sm:$0xff] }
0x3c98   :  { %v7582_v21 = vld [vmem:[#allocation4 + $0x6] sm:$0xff]  ;;  %v7480_v5 = vpack.c.bf16 %v7461_v34, %v7460_v23 }
0x3c99   :  { %9898 = vmatpush3.bf16.msra.mxu1 %v10488_v51  ;;  %v7603_v49 = vpack.c.bf16 %v7583_v35, %v7582_v21  ;;  %v10528_v51 = vld [vmem:[%s12982_s17 + $0x190] sm:$0xff]   ;;  %v7585_v17 = vld [vmem:[#allocation4 + $0x26] sm:$0xff] }
0x3c9a   :  { %9899 = vmatprep.subr.bf16.mxu1 %v10489_v13 }
0x3c9d   :  { %9900 = vmatpush3.bf16.msra.mxu1 %v10489_v13  ;;  %v10529_v13 = vld [vmem:[%s12982_s17 + $0x198] sm:$0xff]  }
0x3c9e   :  { %9901 = vmatprep.subr.bf16.mxu1 %v10490_v7 }
0x3ca1   :  { %9902 = vmatpush3.bf16.msra.mxu1 %v10490_v7  ;;  %v10530_v7 = vld [vmem:[%s12982_s17 + $0x1a0] sm:$0xff]  }
0x3ca2   :  { %9903 = vmatprep.subr.bf16.mxu1 %v10491_v42 }
0x3ca5   :  { %9904 = vmatpush3.bf16.msra.mxu1 %v10491_v42  ;;  %v10531_v42 = vld [vmem:[%s12982_s17 + $0x1a8] sm:$0xff]  }
0x3ca6   :  { %9905 = vmatprep.subr.bf16.mxu1 %v10492_v28 }
0x3ca9   :  { %9906 = vmatpush3.bf16.msra.mxu1 %v10492_v28  ;;  %v10532_v28 = vld [vmem:[%s12982_s17 + $0x1b0] sm:$0xff]  }
0x3caa   :  { %9907 = vmatprep.subr.bf16.mxu1 %v10493_v43 }
0x3cad   :  { %9908 = vmatpush3.bf16.msra.mxu1 %v10493_v43  ;;  %v10533_v43 = vld [vmem:[%s12982_s17 + $0x1b8] sm:$0xff]  }
0x3cae   :  { %9913 = vmatprep.subr.bf16.mxu1 %v10494_v8 }
0x3cb0   :  { %9910 = vmatmul.mubr.bf16.vlgmr.msra.gmra.mrb[36].mxu1 %v6868_v60 }
0x3cb1   :  { %9914 = vmatpush3.bf16.msra.mxu1 %v10494_v8  ;;  %9929 = vmatprep.mubr.bf16.mxu1 %v7107_v53  ;;  %v7584_v8 = vld [vmem:[#allocation4 + $0x1e] sm:$0xff] }
0x3cb2   :  { %9915 = vmatprep.subr.bf16.mxu1 %v10495_v48  ;;  %v7604_v62 = vpack.c.bf16 %v7585_v17, %v7584_v8 }
0x3cb5   :  { %9916 = vmatpush3.bf16.msra.mxu1 %v10495_v48 }
0x3cb6   :  { %9917 = vmatprep.subr.bf16.mxu1 %v10496_v57 }
0x3cb9   :  { %9918 = vmatpush3.bf16.msra.mxu1 %v10496_v57 }
0x3cba   :  { %9919 = vmatprep.subr.bf16.mxu1 %v10497_v6 }
0x3cbd   :  { %9920 = vmatpush3.bf16.msra.mxu1 %v10497_v6 }
0x3cbe   :  { %9921 = vmatprep.subr.bf16.mxu1 %v10498_v1 }
0x3cc1   :  { %9922 = vmatpush3.bf16.msra.mxu1 %v10498_v1 }
0x3cc2   :  { %9923 = vmatprep.subr.bf16.mxu1 %v10499_v56 }
0x3cc5   :  { %9924 = vmatpush3.bf16.msra.mxu1 %v10499_v56 }
0x3cc6   :  { %9925 = vmatprep.subr.bf16.mxu1 %v10500_v52 }
0x3cc9   :  { %9926 = vmatpush3.bf16.msra.mxu1 %v10500_v52 }
0x3cca   :  { %9927 = vmatprep.subr.bf16.mxu1 %v10501_v63 }
0x3ccd   :  { %9928 = vmatpush3.bf16.msra.mxu1 %v10501_v63 }
0x3cce   :  { %9933 = vmatprep.subr.bf16.mxu1 %v10502_v11 }
0x3cd0   :  { %9930 = vmatmul.mubr.bf16.vlgmr.msra.gmra.mrb[36].mxu1 %v7108_v37 }
0x3cd1   :  { %9934 = vmatpush3.bf16.msra.mxu1 %v10502_v11  ;;  %9949 = vmatprep.mubr.bf16.mxu1 %v12796_v9  ;;  %v10522_v9 = vld [vmem:[%s12982_s17 + $0x160] sm:$0xff]  }
0x3cd2   :  { %9935 = vmatprep.subr.bf16.mxu1 %v10503_v36 }
0x3cd5   :  { %9936 = vmatpush3.bf16.msra.mxu1 %v10503_v36 }
0x3cd6   :  { %9937 = vmatprep.subr.bf16.mxu1 %v10504_v40 }
0x3cd9   :  { %9938 = vmatpush3.bf16.msra.mxu1 %v10504_v40 }
0x3cda   :  { %9939 = vmatprep.subr.bf16.mxu1 %v10505_v15 }
0x3cdd   :  { %9940 = vmatpush3.bf16.msra.mxu1 %v10505_v15 }
0x3cde   :  { %9941 = vmatprep.subr.bf16.mxu1 %v10506_v16 }
0x3ce1   :  { %9942 = vmatpush3.bf16.msra.mxu1 %v10506_v16 }
0x3ce2   :  { %9943 = vmatprep.subr.bf16.mxu1 %v10507_v3 }
0x3ce5   :  { %9944 = vmatpush3.bf16.msra.mxu1 %v10507_v3 }
0x3ce6   :  { %9945 = vmatprep.subr.bf16.mxu1 %v10508_v31 }
0x3ce9   :  { %9946 = vmatpush3.bf16.msra.mxu1 %v10508_v31 }
0x3cea   :  { %9947 = vmatprep.subr.bf16.mxu1 %v10509_v30 }
0x3ced   :  { %9948 = vmatpush3.bf16.msra.mxu1 %v10509_v30 }
0x3cee   :  { %9953 = vmatprep.subr.bf16.mxu1 %v10510_v50 }
0x3cf0   :  { %9950 = vmatmul.mubr.bf16.vlgmr.msra.gmra.mrb[36].mxu1 %v12798_v47  ;;  %v10523_v47 = vld [vmem:[%s12982_s17 + $0x168] sm:$0xff]   ;;  %s10660_s17 = scalar_lea.vmem %s7729_s9, 512 }
0x3cf1   :  { %9954 = vmatpush3.bf16.msra.mxu1 %v10510_v50  ;;  %9969 = vmatprep.mubr.bf16.mxu1 %v7355_v59  ;;  %p10661_p10 = scmp.ne.s32.totalorder %s7729_s9, %s10660_s17  ;;  %p10666_p12 = scmp.lt.s32.totalorder %s10660_s17, %s10660_s17 }
0x3cf2   :  { %9955 = vmatprep.subr.bf16.mxu1 %v10511_v24 }
0x3cf3   :  { %p10667_p13 = por %p10666_p12, %p10665_p11 }
0x3cf5   :  { %9956 = vmatpush3.bf16.msra.mxu1 %v10511_v24  ;;  %p10668_p0 = pnand %p10667_p13, %p10661_p10 }
0x3cf6   :  { %9957 = vmatprep.subr.bf16.mxu1 %v10512_v38 }
0x3cf9   :  { %9958 = vmatpush3.bf16.msra.mxu1 %v10512_v38 }
0x3cfa   :  { %9959 = vmatprep.subr.bf16.mxu1 %v10513_v19 }
0x3cfd   :  { %9960 = vmatpush3.bf16.msra.mxu1 %v10513_v19 }
0x3cfe   :  { %9961 = vmatprep.subr.bf16.mxu1 %v10514_v44 }
0x3d01   :  { %9962 = vmatpush3.bf16.msra.mxu1 %v10514_v44 }
0x3d02   :  { %9963 = vmatprep.subr.bf16.mxu1 %v10515_v26 }
0x3d05   :  { %9964 = vmatpush3.bf16.msra.mxu1 %v10515_v26 }
0x3d06   :  { %9965 = vmatprep.subr.bf16.mxu1 %v10516_v12 }
0x3d09   :  { %9966 = vmatpush3.bf16.msra.mxu1 %v10516_v12 }
0x3d0a   :  { %9967 = vmatprep.subr.bf16.mxu1 %v10517_v55 }
0x3d0d   :  { %9968 = vmatpush3.bf16.msra.mxu1 %v10517_v55 }
0x3d0e   :  { %9973 = vmatprep.subr.bf16.mxu1 %v10518_v4 }
0x3d10   :  { %9970 = vmatmul.mubr.bf16.vlgmr.msra.gmra.mrb[36].mxu1 %v7356_v33 }
0x3d11   :  { %9974 = vmatpush3.bf16.msra.mxu1 %v10518_v4  ;;  %9989 = vmatprep.mubr.bf16.mxu1 %v7479_v2 }
0x3d12   :  { %9975 = vmatprep.subr.bf16.mxu1 %v10519_v29 }
0x3d15   :  { %9976 = vmatpush3.bf16.msra.mxu1 %v10519_v29 }
0x3d16   :  { %9977 = vmatprep.subr.bf16.mxu1 %v10520_v58 }
0x3d19   :  { %9978 = vmatpush3.bf16.msra.mxu1 %v10520_v58 }
0x3d1a   :  { %9979 = vmatprep.subr.bf16.mxu1 %v10521_v54 }
0x3d1d   :  { %9980 = vmatpush3.bf16.msra.mxu1 %v10521_v54 }
0x3d1e   :  { %9981 = vmatprep.subr.bf16.mxu1 %v10522_v9 }
0x3d21   :  { %9982 = vmatpush3.bf16.msra.mxu1 %v10522_v9 }
0x3d22   :  { %9983 = vmatprep.subr.bf16.mxu1 %v10523_v47 }
0x3d25   :  { %9984 = vmatpush3.bf16.msra.mxu1 %v10523_v47 }
0x3d26   :  { %9985 = vmatprep.subr.bf16.mxu1 %v10524_v10 }
0x3d29   :  { %9986 = vmatpush3.bf16.msra.mxu1 %v10524_v10 }
0x3d2a   :  { %9987 = vmatprep.subr.bf16.mxu1 %v10525_v45 }
0x3d2d   :  { %9988 = vmatpush3.bf16.msra.mxu1 %v10525_v45 }
0x3d2e   :  { %9993 = vmatprep.subr.bf16.mxu1 %v10526_v32 }
0x3d30   :  { %9990 = vmatmul.mubr.bf16.vlgmr.msra.gmra.mrb[36].mxu1 %v7480_v5 }
0x3d31   :  { %9994 = vmatpush3.bf16.msra.mxu1 %v10526_v32  ;;  %10009 = vmatprep.mubr.bf16.mxu1 %v7603_v49 }
0x3d32   :  { %9995 = vmatprep.subr.bf16.mxu1 %v10527_v39 }
0x3d35   :  { %9996 = vmatpush3.bf16.msra.mxu1 %v10527_v39 }
0x3d36   :  { %9997 = vmatprep.subr.bf16.mxu1 %v10528_v51 }
0x3d39   :  { %9998 = vmatpush3.bf16.msra.mxu1 %v10528_v51 }
0x3d3a   :  { %9999 = vmatprep.subr.bf16.mxu1 %v10529_v13 }
0x3d3d   :  { %10000 = vmatpush3.bf16.msra.mxu1 %v10529_v13 }
0x3d3e   :  { %10001 = vmatprep.subr.bf16.mxu1 %v10530_v7 }
0x3d41   :  { %10002 = vmatpush3.bf16.msra.mxu1 %v10530_v7 }
0x3d42   :  { %10003 = vmatprep.subr.bf16.mxu1 %v10531_v42 }
0x3d45   :  { %10004 = vmatpush3.bf16.msra.mxu1 %v10531_v42 }
0x3d46   :  { %10005 = vmatprep.subr.bf16.mxu1 %v10532_v28 }
0x3d49   :  { %10006 = vmatpush3.bf16.msra.mxu1 %v10532_v28 }
0x3d4a   :  { %10007 = vmatprep.subr.bf16.mxu1 %v10533_v43 }
0x3d4d   :  { %10008 = vmatpush3.bf16.msra.mxu1 %v10533_v43 }
0x3d50   :  { %10010 = vmatmul.mubr.bf16.vlgmr.msra.gmra.mrb[36].mxu1 %v7604_v62 }
0x3e23   :  { %v10011_v25 = vpop.f32.mrb[36].mxu1 }
0x3e24   :  { %v7715_v60 = vadd.f32 %v10011_v25, %v8514_v18  ;;  %v7687_v48 = vpop.f32.mrb[37].mxu1 }
0x3e25   :  { %v7713_v53 = vadd.f32 %v8514_v18, %v7687_v48  ;;  %v10012_v57 = vpop.f32.mrb[38].mxu1 }
0x3e26   :  { %7719 = vst.msk [vmem:[#allocation11 + $0x10] sm:$0xff] %vm113_vm3, %v7715_v60  ;;  %v7716_v6 = vadd.f32 %v10012_v57, %v8514_v18  ;;  %v7690_v1 = vpop.f32.mrb[39].mxu1 }
0x3e27   :  { %7717 = vst.msk [vmem:[#allocation11] sm:$0xff] %vm113_vm3, %v7713_v53  ;;  %v7714_v56 = vadd.f32 %v8514_v18, %v7690_v1 }
0x3e28   :  { %7720 = vst.msk [vmem:[#allocation11 + $0x18] sm:$0xff] %vm113_vm3, %v7716_v6 }
0x3e29   :  { %7718 = vst.msk [vmem:[#allocation11 + $0x8] sm:$0xff] %vm113_vm3, %v7714_v56 }
0x3e2a   :  { %10671 = shalt.err (!%p10668_p0)
}
0x3e2b   :  { %s10672_s8 = scalar_lea.hbm %s12985_s20, 512 }
0x3e2c   :  { %p10673_p1 = scmp.ne.s32.totalorder %s12985_s20, %s10672_s8  ;;  %p10676_p2 = scmp.lt.u32.totalorder %s10672_s8, %s12985_s20 }
0x3e2e   :  { %p10678_p3 = pnand %p10676_p2, %p10673_p1 }
0x3e30   :  { %10681 = shalt.err (!%p10678_p3)
}
0x3e31   :  { %s13000_s26 = smov 128  }
0x3e32   :  { %7734 = dma.vmem_to_hbm [thread:$0]  %s7729_s9, 512, %s12985_s20, [#allocation7], %s13000_s26, %s13000_s26, %s10690_s29  }
0x3e33   :  { %10686 = dma.done.wait [#allocation7], 512  }
0x3e34   :  { %10687 = vsyncadd [#allocation7], 4294966784 }
0x3e35   :  { %7740 = vsyncpa [#allocation6], 1 }
0x3e36   :  { %7741 = vsyncpa [#allocation9], 1 }
0x3e37   :  { %7742 = vsyncpa [#allocation7], 1 }

</bundles_post_ra>
